<compile_context>
chip_gen: v7x
topology: tpu7x:2x2x1
jax: 0.10.0
libtpu: 0.0.40
codegen_flags: <defaults>
</compile_context>

<pallas_src>
import numpy as np

import jax
import jax.numpy as jnp
from jax.experimental import pallas as pl
from jax.experimental.pallas import tpu as pltpu

B = 2          # batch
C_IN = 256     # conv1 in channels
C_MID = 128    # conv1 out / conv2 in
C_OUT = 64     # conv2 out
H = W = 8      # spatial (implied by ad_layer1 = Linear(8*8*64, 512))
HW = H * W
FC1 = 512
FC2 = 32
FC3 = 1


def calc_coeff(iter_num, high=1.0, low=0.0, alpha=10.0, max_iter=10000.0):
    # forward-identity GRL coefficient (gradient-only; kept for completeness)
    return float(2.0 * (high - low) / (1.0 + np.exp(-alpha * iter_num / max_iter))
                 - (high - low) + low)


# ------------------------------ fused Pallas kernel ------------------------------

def _adv_net_kernel(x_ref, wc1_ref, bc1_ref, wc2_ref, bc2_ref,
                    wf1_ref, bf1_ref, wf2_ref, bf2_ref, wf3_ref, bf3_ref,
                    o_ref, conv_scr, flat_scr):
    # ---- conv1 -> conv2 (1x1 convs == channel matmuls), channels-major layout ----
    # x_ref: (B, C_IN, HW); wc1: (C_MID, C_IN); wc2: (C_OUT, C_MID); biases as (C, 1) columns.
    for b in range(B):                                 # B = 2, unrolled
        xb = x_ref[b]                                  # (256, 64)
        h1 = jnp.dot(wc1_ref[...], xb, preferred_element_type=jnp.float32) + bc1_ref[...]
        h2 = jnp.dot(wc2_ref[...], h1, preferred_element_type=jnp.float32) + bc2_ref[...]
        conv_scr[...] = h2                             # (64, 64): rows = out channels, cols = h*W+w
        # flatten in PyTorch (c, h, w) order: flat[b, c*HW + s] = h2[c, s]
        for c in range(C_OUT):
            flat_scr[b:b + 1, c * HW:(c + 1) * HW] = conv_scr[c:c + 1, :]

    # GRL (x * 1.0 + gradient hook) is forward-identity; dropout is identity in eval mode.
    flat = flat_scr[...].astype(jnp.bfloat16)          # (B, 4096) -> bf16 to match bf16 fc1 weight
    z1 = jnp.dot(flat, wf1_ref[...], preferred_element_type=jnp.float32) + bf1_ref[...]
    z1 = jnp.maximum(z1, 0.0)                          # relu1 (dropout1 = identity)
    z2 = jnp.dot(z1, wf2_ref[...], preferred_element_type=jnp.float32) + bf2_ref[...]
    z2 = jnp.maximum(z2, 0.0)                          # relu2 (dropout2 = identity)
    z3 = jnp.dot(z2, wf3_ref[...], preferred_element_type=jnp.float32) + bf3_ref[...]
    o_ref[...] = jax.nn.sigmoid(z3)


_VMEM_SPEC = pl.BlockSpec(memory_space=pltpu.MemorySpace.VMEM)


# ------------------------- one-time parameter preparation -------------------------

def prepare_params(params):
    """Hoisted out of the forward: re-layout weights once, store big fc1 weight in bf16."""
    return {
        "wc1": params["conv1_w"][:, :, 0, 0],                        # (128, 256)
        "bc1": params["conv1_b"].reshape(C_MID, 1),                  # (128, 1)
        "wc2": params["conv2_w"][:, :, 0, 0],                        # (64, 128)
        "bc2": params["conv2_b"].reshape(C_OUT, 1),                  # (64, 1)
        "wf1": params["fc1_w"].T.astype(jnp.bfloat16),               # (4096, 512), columns already (c,h,w)
        "bf1": params["fc1_b"].reshape(1, FC1),                      # (1, 512)
        "wf2": params["fc2_w"].T,                                    # (512, 32)
        "bf2": params["fc2_b"].reshape(1, FC2),                      # (1, 32)
        "wf3": params["fc3_w"].T,                                    # (32, 1)
        "bf3": params["fc3_b"].reshape(1, FC3),                      # (1, 1)
    }


@jax.jit
def adversarial_network_forward(x_nchw, p):
    """Pallas implementation of AdversarialNetwork.forward (eval mode)."""
    x3 = x_nchw.reshape(B, C_IN, HW)                   # free reshape; stays in (c, s) order
    return pl.pallas_call(
        _adv_net_kernel,
        out_shape=jax.ShapeDtypeStruct((B, FC3), jnp.float32),
        in_specs=[_VMEM_SPEC] * 11,
        out_specs=_VMEM_SPEC,
        scratch_shapes=[
            pltpu.VMEM((C_OUT, HW), jnp.float32),      # conv2 output for one sample
            pltpu.VMEM((B, C_OUT * HW), jnp.float32),  # flattened activations
        ],
        compiler_params=pltpu.CompilerParams(vmem_limit_bytes=24 << 20),
    )(x3, p["wc1"], p["bc1"], p["wc2"], p["bc2"],
      p["wf1"], p["bf1"], p["wf2"], p["bf2"], p["wf3"], p["bf3"])


# ----------------------------- pure-JAX reference (check) -----------------------------

def reference_forward(x_nchw, params):
    w1 = params["conv1_w"][:, :, 0, 0]                               # (128, 256)
    x = jnp.einsum("bchw,oc->bohw", x_nchw, w1) + params["conv1_b"][None, :, None, None]
    w2 = params["conv2_w"][:, :, 0, 0]                               # (64, 128)
    x = jnp.einsum("bchw,oc->bohw", x, w2) + params["conv2_b"][None, :, None, None]
    x = x.reshape(B, -1)                                             # PyTorch view: (c, h, w) order
    x = jnp.maximum(x @ params["fc1_w"].T + params["fc1_b"], 0.0)
    x = jnp.maximum(x @ params["fc2_w"].T + params["fc2_b"], 0.0)
    y = x @ params["fc3_w"].T + params["fc3_b"]
    return jax.nn.sigmoid(y)


# ------------------------------------ parameter init ----------------------------------

def init_params(key):
    ks = jax.random.split(key, 10)
    s = 0.02
    return {
        "conv1_w": s * jax.random.normal(ks[0], (C_MID, C_IN, 1, 1), jnp.float32),
        "conv1_b": s * jax.random.normal(ks[1], (C_MID,), jnp.float32),
        "conv2_w": s * jax.random.normal(ks[2], (C_OUT, C_MID, 1, 1), jnp.float32),
        "conv2_b": s * jax.random.normal(ks[3], (C_OUT,), jnp.float32),
        "fc1_w":  s * jax.random.normal(ks[4], (FC1, HW * C_OUT), jnp.float32),
        "fc1_b":  s * jax.random.normal(ks[5], (FC1,), jnp.float32),
        "fc2_w":  s * jax.random.normal(ks[6], (FC2, FC1), jnp.float32),
        "fc2_b":  s * jax.random.normal(ks[7], (FC2,), jnp.float32),
        "fc3_w":  s * jax.random.normal(ks[8], (FC3, FC2), jnp.float32),
        "fc3_b":  s * jax.random.normal(ks[9], (FC3,), jnp.float32),
    }


if __name__ == "__main__":
    key = jax.random.PRNGKey(0)
    k_x, k_p = jax.random.split(key)
    x = jax.random.normal(k_x, (B, C_IN, H, W), jnp.float32)   # NCHW, matches nn.Conv2d(256, ...)
    params = init_params(k_p)

    # one-time parameter re-layout (outside the jitted forward)
    prepped = jax.block_until_ready(prepare_params(params))

    y = jax.block_until_ready(adversarial_network_forward(x, prepped))
    assert y.shape == (B, 1)

    y_ref = jax.block_until_ready(reference_forward(x, params))
    np.testing.assert_allclose(np.asarray(y), np.asarray(y_ref), rtol=2e-3, atol=2e-3)

    # GRL coefficient (forward-identity; affects gradients only)
    _ = calc_coeff(0, 1.0, 0.0, 10.0, 10000.0 * 2)

    print("KERNEL_OK")
</pallas_src>

<mosaic_0001>
module attributes {stable_mosaic.version = 11 : i64} {
  func.func @_adv_net_kernel(%arg0: memref<2x256x64xf32, #tpu.memory_space<vmem>>, %arg1: memref<128x256xf32, #tpu.memory_space<vmem>>, %arg2: memref<128x1xf32, #tpu.memory_space<vmem>>, %arg3: memref<64x128xf32, #tpu.memory_space<vmem>>, %arg4: memref<64x1xf32, #tpu.memory_space<vmem>>, %arg5: memref<4096x512xbf16, #tpu.memory_space<vmem>>, %arg6: memref<1x512xf32, #tpu.memory_space<vmem>>, %arg7: memref<512x32xf32, #tpu.memory_space<vmem>>, %arg8: memref<1x32xf32, #tpu.memory_space<vmem>>, %arg9: memref<32x1xf32, #tpu.memory_space<vmem>>, %arg10: memref<1x1xf32, #tpu.memory_space<vmem>>, %arg11: memref<2x1xf32, #tpu.memory_space<vmem>>, %arg12: memref<64x64xf32, #tpu.memory_space<vmem>>, %arg13: memref<2x4096xf32, #tpu.memory_space<vmem>>) attributes {dimension_semantics = [], scalar_prefetch = 0 : i64, scratch_operands = 2 : i64, tpu.core_type = #tpu.core_type<tc>} {
    %c0 = arith.constant 0 : index
    %c0_0 = arith.constant 0 : index
    %c0_1 = arith.constant 0 : index
    %0 = vector.load %arg0[%c0, %c0_0, %c0_1] : memref<2x256x64xf32, #tpu.memory_space<vmem>>, vector<1x256x64xf32>
    %1 = vector.shape_cast %0 : vector<1x256x64xf32> to vector<256x64xf32>
    %c0_2 = arith.constant 0 : index
    %c0_3 = arith.constant 0 : index
    %2 = vector.load %arg1[%c0_2, %c0_3] : memref<128x256xf32, #tpu.memory_space<vmem>>, vector<128x256xf32>
    %cst = arith.constant dense<0.000000e+00> : vector<128x64xf32>
    %3 = tpu.matmul %2, %1, %cst {dimension_numbers = #tpu.dot_dimension_numbers<[1], [0], [0], [1], [0, 0, 1, 1], [], []>} : vector<128x256xf32>, vector<256x64xf32>, vector<128x64xf32> -> vector<128x64xf32>
    %c0_4 = arith.constant 0 : index
    %c0_5 = arith.constant 0 : index
    %4 = vector.load %arg2[%c0_4, %c0_5] : memref<128x1xf32, #tpu.memory_space<vmem>>, vector<128x1xf32>
    %5 = vector.broadcast %4 : vector<128x1xf32> to vector<128x64xf32>
    %6 = arith.addf %3, %5 : vector<128x64xf32>
    %c0_6 = arith.constant 0 : index
    %c0_7 = arith.constant 0 : index
    %7 = vector.load %arg3[%c0_6, %c0_7] : memref<64x128xf32, #tpu.memory_space<vmem>>, vector<64x128xf32>
    %cst_8 = arith.constant dense<0.000000e+00> : vector<64x64xf32>
    %8 = tpu.matmul %7, %6, %cst_8 {dimension_numbers = #tpu.dot_dimension_numbers<[1], [0], [0], [1], [0, 0, 1, 1], [], []>} : vector<64x128xf32>, vector<128x64xf32>, vector<64x64xf32> -> vector<64x64xf32>
    %c0_9 = arith.constant 0 : index
    %c0_10 = arith.constant 0 : index
    %9 = vector.load %arg4[%c0_9, %c0_10] : memref<64x1xf32, #tpu.memory_space<vmem>>, vector<64x1xf32>
    %10 = vector.broadcast %9 : vector<64x1xf32> to vector<64x64xf32>
    %11 = arith.addf %8, %10 : vector<64x64xf32>
    %c0_11 = arith.constant 0 : index
    %c0_12 = arith.constant 0 : index
    %12 = vector.load %arg12[%c0_11, %c0_12] : memref<64x64xf32, #tpu.memory_space<vmem>>, vector<64x64xf32>
    tpu.vector_store %arg12[%c0_11, %c0_12], %11 {strides = array<i32>} : memref<64x64xf32, #tpu.memory_space<vmem>>, vector<64x64xf32>,
    %c0_13 = arith.constant 0 : index
    %c0_14 = arith.constant 0 : index
    %13 = vector.load %arg12[%c0_13, %c0_14] : memref<64x64xf32, #tpu.memory_space<vmem>>, vector<1x64xf32>
    %c0_15 = arith.constant 0 : index
    %c0_16 = arith.constant 0 : index
    %14 = vector.load %arg13[%c0_15, %c0_16] : memref<2x4096xf32, #tpu.memory_space<vmem>>, vector<1x64xf32>
    tpu.vector_store %arg13[%c0_15, %c0_16], %13 {strides = array<i32>} : memref<2x4096xf32, #tpu.memory_space<vmem>>, vector<1x64xf32>,
    %c1 = arith.constant 1 : index
    %c0_17 = arith.constant 0 : index
    %15 = vector.load %arg12[%c1, %c0_17] : memref<64x64xf32, #tpu.memory_space<vmem>>, vector<1x64xf32>
    %c0_18 = arith.constant 0 : index
    %c64 = arith.constant 64 : index
    %16 = vector.load %arg13[%c0_18, %c64] : memref<2x4096xf32, #tpu.memory_space<vmem>>, vector<1x64xf32>
    tpu.vector_store %arg13[%c0_18, %c64], %15 {strides = array<i32>} : memref<2x4096xf32, #tpu.memory_space<vmem>>, vector<1x64xf32>,
    %c2 = arith.constant 2 : index
    %c0_19 = arith.constant 0 : index
    %17 = vector.load %arg12[%c2, %c0_19] : memref<64x64xf32, #tpu.memory_space<vmem>>, vector<1x64xf32>
    %c0_20 = arith.constant 0 : index
    %c128 = arith.constant 128 : index
    %18 = vector.load %arg13[%c0_20, %c128] : memref<2x4096xf32, #tpu.memory_space<vmem>>, vector<1x64xf32>
    tpu.vector_store %arg13[%c0_20, %c128], %17 {strides = array<i32>} : memref<2x4096xf32, #tpu.memory_space<vmem>>, vector<1x64xf32>,
    %c3 = arith.constant 3 : index
    %c0_21 = arith.constant 0 : index
    %19 = vector.load %arg12[%c3, %c0_21] : memref<64x64xf32, #tpu.memory_space<vmem>>, vector<1x64xf32>
    %c0_22 = arith.constant 0 : index
    %c192 = arith.constant 192 : index
    %20 = vector.load %arg13[%c0_22, %c192] : memref<2x4096xf32, #tpu.memory_space<vmem>>, vector<1x64xf32>
    tpu.vector_store %arg13[%c0_22, %c192], %19 {strides = array<i32>} : memref<2x4096xf32, #tpu.memory_space<vmem>>, vector<1x64xf32>,
    %c4 = arith.constant 4 : index
    %c0_23 = arith.constant 0 : index
    %21 = vector.load %arg12[%c4, %c0_23] : memref<64x64xf32, #tpu.memory_space<vmem>>, vector<1x64xf32>
    %c0_24 = arith.constant 0 : index
    %c256 = arith.constant 256 : index
    %22 = vector.load %arg13[%c0_24, %c256] : memref<2x4096xf32, #tpu.memory_space<vmem>>, vector<1x64xf32>
    tpu.vector_store %arg13[%c0_24, %c256], %21 {strides = array<i32>} : memref<2x4096xf32, #tpu.memory_space<vmem>>, vector<1x64xf32>,
    %c5 = arith.constant 5 : index
    %c0_25 = arith.constant 0 : index
    %23 = vector.load %arg12[%c5, %c0_25] : memref<64x64xf32, #tpu.memory_space<vmem>>, vector<1x64xf32>
    %c0_26 = arith.constant 0 : index
    %c320 = arith.constant 320 : index
    %24 = vector.load %arg13[%c0_26, %c320] : memref<2x4096xf32, #tpu.memory_space<vmem>>, vector<1x64xf32>
    tpu.vector_store %arg13[%c0_26, %c320], %23 {strides = array<i32>} : memref<2x4096xf32, #tpu.memory_space<vmem>>, vector<1x64xf32>,
    %c6 = arith.constant 6 : index
    %c0_27 = arith.constant 0 : index
    %25 = vector.load %arg12[%c6, %c0_27] : memref<64x64xf32, #tpu.memory_space<vmem>>, vector<1x64xf32>
    %c0_28 = arith.constant 0 : index
    %c384 = arith.constant 384 : index
    %26 = vector.load %arg13[%c0_28, %c384] : memref<2x4096xf32, #tpu.memory_space<vmem>>, vector<1x64xf32>
    tpu.vector_store %arg13[%c0_28, %c384], %25 {strides = array<i32>} : memref<2x4096xf32, #tpu.memory_space<vmem>>, vector<1x64xf32>,
    %c7 = arith.constant 7 : index
    %c0_29 = arith.constant 0 : index
    %27 = vector.load %arg12[%c7, %c0_29] : memref<64x64xf32, #tpu.memory_space<vmem>>, vector<1x64xf32>
    %c0_30 = arith.constant 0 : index
    %c448 = arith.constant 448 : index
    %28 = vector.load %arg13[%c0_30, %c448] : memref<2x4096xf32, #tpu.memory_space<vmem>>, vector<1x64xf32>
    tpu.vector_store %arg13[%c0_30, %c448], %27 {strides = array<i32>} : memref<2x4096xf32, #tpu.memory_space<vmem>>, vector<1x64xf32>,
    %c8 = arith.constant 8 : index
    %c0_31 = arith.constant 0 : index
    %29 = vector.load %arg12[%c8, %c0_31] : memref<64x64xf32, #tpu.memory_space<vmem>>, vector<1x64xf32>
    %c0_32 = arith.constant 0 : index
    %c512 = arith.constant 512 : index
    %30 = vector.load %arg13[%c0_32, %c512] : memref<2x4096xf32, #tpu.memory_space<vmem>>, vector<1x64xf32>
    tpu.vector_store %arg13[%c0_32, %c512], %29 {strides = array<i32>} : memref<2x4096xf32, #tpu.memory_space<vmem>>, vector<1x64xf32>,
    %c9 = arith.constant 9 : index
    %c0_33 = arith.constant 0 : index
    %31 = vector.load %arg12[%c9, %c0_33] : memref<64x64xf32, #tpu.memory_space<vmem>>, vector<1x64xf32>
    %c0_34 = arith.constant 0 : index
    %c576 = arith.constant 576 : index
    %32 = vector.load %arg13[%c0_34, %c576] : memref<2x4096xf32, #tpu.memory_space<vmem>>, vector<1x64xf32>
    tpu.vector_store %arg13[%c0_34, %c576], %31 {strides = array<i32>} : memref<2x4096xf32, #tpu.memory_space<vmem>>, vector<1x64xf32>,
    %c10 = arith.constant 10 : index
    %c0_35 = arith.constant 0 : index
    %33 = vector.load %arg12[%c10, %c0_35] : memref<64x64xf32, #tpu.memory_space<vmem>>, vector<1x64xf32>
    %c0_36 = arith.constant 0 : index
    %c640 = arith.constant 640 : index
    %34 = vector.load %arg13[%c0_36, %c640] : memref<2x4096xf32, #tpu.memory_space<vmem>>, vector<1x64xf32>
    tpu.vector_store %arg13[%c0_36, %c640], %33 {strides = array<i32>} : memref<2x4096xf32, #tpu.memory_space<vmem>>, vector<1x64xf32>,
    %c11 = arith.constant 11 : index
    %c0_37 = arith.constant 0 : index
    %35 = vector.load %arg12[%c11, %c0_37] : memref<64x64xf32, #tpu.memory_space<vmem>>, vector<1x64xf32>
    %c0_38 = arith.constant 0 : index
    %c704 = arith.constant 704 : index
    %36 = vector.load %arg13[%c0_38, %c704] : memref<2x4096xf32, #tpu.memory_space<vmem>>, vector<1x64xf32>
    tpu.vector_store %arg13[%c0_38, %c704], %35 {strides = array<i32>} : memref<2x4096xf32, #tpu.memory_space<vmem>>, vector<1x64xf32>,
    %c12 = arith.constant 12 : index
    %c0_39 = arith.constant 0 : index
    %37 = vector.load %arg12[%c12, %c0_39] : memref<64x64xf32, #tpu.memory_space<vmem>>, vector<1x64xf32>
    %c0_40 = arith.constant 0 : index
    %c768 = arith.constant 768 : index
    %38 = vector.load %arg13[%c0_40, %c768] : memref<2x4096xf32, #tpu.memory_space<vmem>>, vector<1x64xf32>
    tpu.vector_store %arg13[%c0_40, %c768], %37 {strides = array<i32>} : memref<2x4096xf32, #tpu.memory_space<vmem>>, vector<1x64xf32>,
    %c13 = arith.constant 13 : index
    %c0_41 = arith.constant 0 : index
    %39 = vector.load %arg12[%c13, %c0_41] : memref<64x64xf32, #tpu.memory_space<vmem>>, vector<1x64xf32>
    %c0_42 = arith.constant 0 : index
    %c832 = arith.constant 832 : index
    %40 = vector.load %arg13[%c0_42, %c832] : memref<2x4096xf32, #tpu.memory_space<vmem>>, vector<1x64xf32>
    tpu.vector_store %arg13[%c0_42, %c832], %39 {strides = array<i32>} : memref<2x4096xf32, #tpu.memory_space<vmem>>, vector<1x64xf32>,
    %c14 = arith.constant 14 : index
    %c0_43 = arith.constant 0 : index
    %41 = vector.load %arg12[%c14, %c0_43] : memref<64x64xf32, #tpu.memory_space<vmem>>, vector<1x64xf32>
    %c0_44 = arith.constant 0 : index
    %c896 = arith.constant 896 : index
    %42 = vector.load %arg13[%c0_44, %c896] : memref<2x4096xf32, #tpu.memory_space<vmem>>, vector<1x64xf32>
    tpu.vector_store %arg13[%c0_44, %c896], %41 {strides = array<i32>} : memref<2x4096xf32, #tpu.memory_space<vmem>>, vector<1x64xf32>,
    %c15 = arith.constant 15 : index
    %c0_45 = arith.constant 0 : index
    %43 = vector.load %arg12[%c15, %c0_45] : memref<64x64xf32, #tpu.memory_space<vmem>>, vector<1x64xf32>
    %c0_46 = arith.constant 0 : index
    %c960 = arith.constant 960 : index
    %44 = vector.load %arg13[%c0_46, %c960] : memref<2x4096xf32, #tpu.memory_space<vmem>>, vector<1x64xf32>
    tpu.vector_store %arg13[%c0_46, %c960], %43 {strides = array<i32>} : memref<2x4096xf32, #tpu.memory_space<vmem>>, vector<1x64xf32>,
    %c16 = arith.constant 16 : index
    %c0_47 = arith.constant 0 : index
    %45 = vector.load %arg12[%c16, %c0_47] : memref<64x64xf32, #tpu.memory_space<vmem>>, vector<1x64xf32>
    %c0_48 = arith.constant 0 : index
    %c1024 = arith.constant 1024 : index
    %46 = vector.load %arg13[%c0_48, %c1024] : memref<2x4096xf32, #tpu.memory_space<vmem>>, vector<1x64xf32>
    tpu.vector_store %arg13[%c0_48, %c1024], %45 {strides = array<i32>} : memref<2x4096xf32, #tpu.memory_space<vmem>>, vector<1x64xf32>,
    %c17 = arith.constant 17 : index
    %c0_49 = arith.constant 0 : index
    %47 = vector.load %arg12[%c17, %c0_49] : memref<64x64xf32, #tpu.memory_space<vmem>>, vector<1x64xf32>
    %c0_50 = arith.constant 0 : index
    %c1088 = arith.constant 1088 : index
    %48 = vector.load %arg13[%c0_50, %c1088] : memref<2x4096xf32, #tpu.memory_space<vmem>>, vector<1x64xf32>
    tpu.vector_store %arg13[%c0_50, %c1088], %47 {strides = array<i32>} : memref<2x4096xf32, #tpu.memory_space<vmem>>, vector<1x64xf32>,
    %c18 = arith.constant 18 : index
    %c0_51 = arith.constant 0 : index
    %49 = vector.load %arg12[%c18, %c0_51] : memref<64x64xf32, #tpu.memory_space<vmem>>, vector<1x64xf32>
    %c0_52 = arith.constant 0 : index
    %c1152 = arith.constant 1152 : index
    %50 = vector.load %arg13[%c0_52, %c1152] : memref<2x4096xf32, #tpu.memory_space<vmem>>, vector<1x64xf32>
    tpu.vector_store %arg13[%c0_52, %c1152], %49 {strides = array<i32>} : memref<2x4096xf32, #tpu.memory_space<vmem>>, vector<1x64xf32>,
    %c19 = arith.constant 19 : index
    %c0_53 = arith.constant 0 : index
    %51 = vector.load %arg12[%c19, %c0_53] : memref<64x64xf32, #tpu.memory_space<vmem>>, vector<1x64xf32>
    %c0_54 = arith.constant 0 : index
    %c1216 = arith.constant 1216 : index
    %52 = vector.load %arg13[%c0_54, %c1216] : memref<2x4096xf32, #tpu.memory_space<vmem>>, vector<1x64xf32>
    tpu.vector_store %arg13[%c0_54, %c1216], %51 {strides = array<i32>} : memref<2x4096xf32, #tpu.memory_space<vmem>>, vector<1x64xf32>,
    %c20 = arith.constant 20 : index
    %c0_55 = arith.constant 0 : index
    %53 = vector.load %arg12[%c20, %c0_55] : memref<64x64xf32, #tpu.memory_space<vmem>>, vector<1x64xf32>
    %c0_56 = arith.constant 0 : index
    %c1280 = arith.constant 1280 : index
    %54 = vector.load %arg13[%c0_56, %c1280] : memref<2x4096xf32, #tpu.memory_space<vmem>>, vector<1x64xf32>
    tpu.vector_store %arg13[%c0_56, %c1280], %53 {strides = array<i32>} : memref<2x4096xf32, #tpu.memory_space<vmem>>, vector<1x64xf32>,
    %c21 = arith.constant 21 : index
    %c0_57 = arith.constant 0 : index
    %55 = vector.load %arg12[%c21, %c0_57] : memref<64x64xf32, #tpu.memory_space<vmem>>, vector<1x64xf32>
    %c0_58 = arith.constant 0 : index
    %c1344 = arith.constant 1344 : index
    %56 = vector.load %arg13[%c0_58, %c1344] : memref<2x4096xf32, #tpu.memory_space<vmem>>, vector<1x64xf32>
    tpu.vector_store %arg13[%c0_58, %c1344], %55 {strides = array<i32>} : memref<2x4096xf32, #tpu.memory_space<vmem>>, vector<1x64xf32>,
    %c22 = arith.constant 22 : index
    %c0_59 = arith.constant 0 : index
    %57 = vector.load %arg12[%c22, %c0_59] : memref<64x64xf32, #tpu.memory_space<vmem>>, vector<1x64xf32>
    %c0_60 = arith.constant 0 : index
    %c1408 = arith.constant 1408 : index
    %58 = vector.load %arg13[%c0_60, %c1408] : memref<2x4096xf32, #tpu.memory_space<vmem>>, vector<1x64xf32>
    tpu.vector_store %arg13[%c0_60, %c1408], %57 {strides = array<i32>} : memref<2x4096xf32, #tpu.memory_space<vmem>>, vector<1x64xf32>,
    %c23 = arith.constant 23 : index
    %c0_61 = arith.constant 0 : index
    %59 = vector.load %arg12[%c23, %c0_61] : memref<64x64xf32, #tpu.memory_space<vmem>>, vector<1x64xf32>
    %c0_62 = arith.constant 0 : index
    %c1472 = arith.constant 1472 : index
    %60 = vector.load %arg13[%c0_62, %c1472] : memref<2x4096xf32, #tpu.memory_space<vmem>>, vector<1x64xf32>
    tpu.vector_store %arg13[%c0_62, %c1472], %59 {strides = array<i32>} : memref<2x4096xf32, #tpu.memory_space<vmem>>, vector<1x64xf32>,
    %c24 = arith.constant 24 : index
    %c0_63 = arith.constant 0 : index
    %61 = vector.load %arg12[%c24, %c0_63] : memref<64x64xf32, #tpu.memory_space<vmem>>, vector<1x64xf32>
    %c0_64 = arith.constant 0 : index
    %c1536 = arith.constant 1536 : index
    %62 = vector.load %arg13[%c0_64, %c1536] : memref<2x4096xf32, #tpu.memory_space<vmem>>, vector<1x64xf32>
    tpu.vector_store %arg13[%c0_64, %c1536], %61 {strides = array<i32>} : memref<2x4096xf32, #tpu.memory_space<vmem>>, vector<1x64xf32>,
    %c25 = arith.constant 25 : index
    %c0_65 = arith.constant 0 : index
    %63 = vector.load %arg12[%c25, %c0_65] : memref<64x64xf32, #tpu.memory_space<vmem>>, vector<1x64xf32>
    %c0_66 = arith.constant 0 : index
    %c1600 = arith.constant 1600 : index
    %64 = vector.load %arg13[%c0_66, %c1600] : memref<2x4096xf32, #tpu.memory_space<vmem>>, vector<1x64xf32>
    tpu.vector_store %arg13[%c0_66, %c1600], %63 {strides = array<i32>} : memref<2x4096xf32, #tpu.memory_space<vmem>>, vector<1x64xf32>,
    %c26 = arith.constant 26 : index
    %c0_67 = arith.constant 0 : index
    %65 = vector.load %arg12[%c26, %c0_67] : memref<64x64xf32, #tpu.memory_space<vmem>>, vector<1x64xf32>
    %c0_68 = arith.constant 0 : index
    %c1664 = arith.constant 1664 : index
    %66 = vector.load %arg13[%c0_68, %c1664] : memref<2x4096xf32, #tpu.memory_space<vmem>>, vector<1x64xf32>
    tpu.vector_store %arg13[%c0_68, %c1664], %65 {strides = array<i32>} : memref<2x4096xf32, #tpu.memory_space<vmem>>, vector<1x64xf32>,
    %c27 = arith.constant 27 : index
    %c0_69 = arith.constant 0 : index
    %67 = vector.load %arg12[%c27, %c0_69] : memref<64x64xf32, #tpu.memory_space<vmem>>, vector<1x64xf32>
    %c0_70 = arith.constant 0 : index
    %c1728 = arith.constant 1728 : index
    %68 = vector.load %arg13[%c0_70, %c1728] : memref<2x4096xf32, #tpu.memory_space<vmem>>, vector<1x64xf32>
    tpu.vector_store %arg13[%c0_70, %c1728], %67 {strides = array<i32>} : memref<2x4096xf32, #tpu.memory_space<vmem>>, vector<1x64xf32>,
    %c28 = arith.constant 28 : index
    %c0_71 = arith.constant 0 : index
    %69 = vector.load %arg12[%c28, %c0_71] : memref<64x64xf32, #tpu.memory_space<vmem>>, vector<1x64xf32>
    %c0_72 = arith.constant 0 : index
    %c1792 = arith.constant 1792 : index
    %70 = vector.load %arg13[%c0_72, %c1792] : memref<2x4096xf32, #tpu.memory_space<vmem>>, vector<1x64xf32>
    tpu.vector_store %arg13[%c0_72, %c1792], %69 {strides = array<i32>} : memref<2x4096xf32, #tpu.memory_space<vmem>>, vector<1x64xf32>,
    %c29 = arith.constant 29 : index
    %c0_73 = arith.constant 0 : index
    %71 = vector.load %arg12[%c29, %c0_73] : memref<64x64xf32, #tpu.memory_space<vmem>>, vector<1x64xf32>
    %c0_74 = arith.constant 0 : index
    %c1856 = arith.constant 1856 : index
    %72 = vector.load %arg13[%c0_74, %c1856] : memref<2x4096xf32, #tpu.memory_space<vmem>>, vector<1x64xf32>
    tpu.vector_store %arg13[%c0_74, %c1856], %71 {strides = array<i32>} : memref<2x4096xf32, #tpu.memory_space<vmem>>, vector<1x64xf32>,
    %c30 = arith.constant 30 : index
    %c0_75 = arith.constant 0 : index
    %73 = vector.load %arg12[%c30, %c0_75] : memref<64x64xf32, #tpu.memory_space<vmem>>, vector<1x64xf32>
    %c0_76 = arith.constant 0 : index
    %c1920 = arith.constant 1920 : index
    %74 = vector.load %arg13[%c0_76, %c1920] : memref<2x4096xf32, #tpu.memory_space<vmem>>, vector<1x64xf32>
    tpu.vector_store %arg13[%c0_76, %c1920], %73 {strides = array<i32>} : memref<2x4096xf32, #tpu.memory_space<vmem>>, vector<1x64xf32>,
    %c31 = arith.constant 31 : index
    %c0_77 = arith.constant 0 : index
    %75 = vector.load %arg12[%c31, %c0_77] : memref<64x64xf32, #tpu.memory_space<vmem>>, vector<1x64xf32>
    %c0_78 = arith.constant 0 : index
    %c1984 = arith.constant 1984 : index
    %76 = vector.load %arg13[%c0_78, %c1984] : memref<2x4096xf32, #tpu.memory_space<vmem>>, vector<1x64xf32>
    tpu.vector_store %arg13[%c0_78, %c1984], %75 {strides = array<i32>} : memref<2x4096xf32, #tpu.memory_space<vmem>>, vector<1x64xf32>,
    %c32 = arith.constant 32 : index
    %c0_79 = arith.constant 0 : index
    %77 = vector.load %arg12[%c32, %c0_79] : memref<64x64xf32, #tpu.memory_space<vmem>>, vector<1x64xf32>
    %c0_80 = arith.constant 0 : index
    %c2048 = arith.constant 2048 : index
    %78 = vector.load %arg13[%c0_80, %c2048] : memref<2x4096xf32, #tpu.memory_space<vmem>>, vector<1x64xf32>
    tpu.vector_store %arg13[%c0_80, %c2048], %77 {strides = array<i32>} : memref<2x4096xf32, #tpu.memory_space<vmem>>, vector<1x64xf32>,
    %c33 = arith.constant 33 : index
    %c0_81 = arith.constant 0 : index
    %79 = vector.load %arg12[%c33, %c0_81] : memref<64x64xf32, #tpu.memory_space<vmem>>, vector<1x64xf32>
    %c0_82 = arith.constant 0 : index
    %c2112 = arith.constant 2112 : index
    %80 = vector.load %arg13[%c0_82, %c2112] : memref<2x4096xf32, #tpu.memory_space<vmem>>, vector<1x64xf32>
    tpu.vector_store %arg13[%c0_82, %c2112], %79 {strides = array<i32>} : memref<2x4096xf32, #tpu.memory_space<vmem>>, vector<1x64xf32>,
    %c34 = arith.constant 34 : index
    %c0_83 = arith.constant 0 : index
    %81 = vector.load %arg12[%c34, %c0_83] : memref<64x64xf32, #tpu.memory_space<vmem>>, vector<1x64xf32>
    %c0_84 = arith.constant 0 : index
    %c2176 = arith.constant 2176 : index
    %82 = vector.load %arg13[%c0_84, %c2176] : memref<2x4096xf32, #tpu.memory_space<vmem>>, vector<1x64xf32>
    tpu.vector_store %arg13[%c0_84, %c2176], %81 {strides = array<i32>} : memref<2x4096xf32, #tpu.memory_space<vmem>>, vector<1x64xf32>,
    %c35 = arith.constant 35 : index
    %c0_85 = arith.constant 0 : index
    %83 = vector.load %arg12[%c35, %c0_85] : memref<64x64xf32, #tpu.memory_space<vmem>>, vector<1x64xf32>
    %c0_86 = arith.constant 0 : index
    %c2240 = arith.constant 2240 : index
    %84 = vector.load %arg13[%c0_86, %c2240] : memref<2x4096xf32, #tpu.memory_space<vmem>>, vector<1x64xf32>
    tpu.vector_store %arg13[%c0_86, %c2240], %83 {strides = array<i32>} : memref<2x4096xf32, #tpu.memory_space<vmem>>, vector<1x64xf32>,
    %c36 = arith.constant 36 : index
    %c0_87 = arith.constant 0 : index
    %85 = vector.load %arg12[%c36, %c0_87] : memref<64x64xf32, #tpu.memory_space<vmem>>, vector<1x64xf32>
    %c0_88 = arith.constant 0 : index
    %c2304 = arith.constant 2304 : index
    %86 = vector.load %arg13[%c0_88, %c2304] : memref<2x4096xf32, #tpu.memory_space<vmem>>, vector<1x64xf32>
    tpu.vector_store %arg13[%c0_88, %c2304], %85 {strides = array<i32>} : memref<2x4096xf32, #tpu.memory_space<vmem>>, vector<1x64xf32>,
    %c37 = arith.constant 37 : index
    %c0_89 = arith.constant 0 : index
    %87 = vector.load %arg12[%c37, %c0_89] : memref<64x64xf32, #tpu.memory_space<vmem>>, vector<1x64xf32>
    %c0_90 = arith.constant 0 : index
    %c2368 = arith.constant 2368 : index
    %88 = vector.load %arg13[%c0_90, %c2368] : memref<2x4096xf32, #tpu.memory_space<vmem>>, vector<1x64xf32>
    tpu.vector_store %arg13[%c0_90, %c2368], %87 {strides = array<i32>} : memref<2x4096xf32, #tpu.memory_space<vmem>>, vector<1x64xf32>,
    %c38 = arith.constant 38 : index
    %c0_91 = arith.constant 0 : index
    %89 = vector.load %arg12[%c38, %c0_91] : memref<64x64xf32, #tpu.memory_space<vmem>>, vector<1x64xf32>
    %c0_92 = arith.constant 0 : index
    %c2432 = arith.constant 2432 : index
    %90 = vector.load %arg13[%c0_92, %c2432] : memref<2x4096xf32, #tpu.memory_space<vmem>>, vector<1x64xf32>
    tpu.vector_store %arg13[%c0_92, %c2432], %89 {strides = array<i32>} : memref<2x4096xf32, #tpu.memory_space<vmem>>, vector<1x64xf32>,
    %c39 = arith.constant 39 : index
    %c0_93 = arith.constant 0 : index
    %91 = vector.load %arg12[%c39, %c0_93] : memref<64x64xf32, #tpu.memory_space<vmem>>, vector<1x64xf32>
    %c0_94 = arith.constant 0 : index
    %c2496 = arith.constant 2496 : index
    %92 = vector.load %arg13[%c0_94, %c2496] : memref<2x4096xf32, #tpu.memory_space<vmem>>, vector<1x64xf32>
    tpu.vector_store %arg13[%c0_94, %c2496], %91 {strides = array<i32>} : memref<2x4096xf32, #tpu.memory_space<vmem>>, vector<1x64xf32>,
    %c40 = arith.constant 40 : index
    %c0_95 = arith.constant 0 : index
    %93 = vector.load %arg12[%c40, %c0_95] : memref<64x64xf32, #tpu.memory_space<vmem>>, vector<1x64xf32>
    %c0_96 = arith.constant 0 : index
    %c2560 = arith.constant 2560 : index
    %94 = vector.load %arg13[%c0_96, %c2560] : memref<2x4096xf32, #tpu.memory_space<vmem>>, vector<1x64xf32>
    tpu.vector_store %arg13[%c0_96, %c2560], %93 {strides = array<i32>} : memref<2x4096xf32, #tpu.memory_space<vmem>>, vector<1x64xf32>,
    %c41 = arith.constant 41 : index
    %c0_97 = arith.constant 0 : index
    %95 = vector.load %arg12[%c41, %c0_97] : memref<64x64xf32, #tpu.memory_space<vmem>>, vector<1x64xf32>
    %c0_98 = arith.constant 0 : index
    %c2624 = arith.constant 2624 : index
    %96 = vector.load %arg13[%c0_98, %c2624] : memref<2x4096xf32, #tpu.memory_space<vmem>>, vector<1x64xf32>
    tpu.vector_store %arg13[%c0_98, %c2624], %95 {strides = array<i32>} : memref<2x4096xf32, #tpu.memory_space<vmem>>, vector<1x64xf32>,
    %c42 = arith.constant 42 : index
    %c0_99 = arith.constant 0 : index
    %97 = vector.load %arg12[%c42, %c0_99] : memref<64x64xf32, #tpu.memory_space<vmem>>, vector<1x64xf32>
    %c0_100 = arith.constant 0 : index
    %c2688 = arith.constant 2688 : index
    %98 = vector.load %arg13[%c0_100, %c2688] : memref<2x4096xf32, #tpu.memory_space<vmem>>, vector<1x64xf32>
    tpu.vector_store %arg13[%c0_100, %c2688], %97 {strides = array<i32>} : memref<2x4096xf32, #tpu.memory_space<vmem>>, vector<1x64xf32>,
    %c43 = arith.constant 43 : index
    %c0_101 = arith.constant 0 : index
    %99 = vector.load %arg12[%c43, %c0_101] : memref<64x64xf32, #tpu.memory_space<vmem>>, vector<1x64xf32>
    %c0_102 = arith.constant 0 : index
    %c2752 = arith.constant 2752 : index
    %100 = vector.load %arg13[%c0_102, %c2752] : memref<2x4096xf32, #tpu.memory_space<vmem>>, vector<1x64xf32>
    tpu.vector_store %arg13[%c0_102, %c2752], %99 {strides = array<i32>} : memref<2x4096xf32, #tpu.memory_space<vmem>>, vector<1x64xf32>,
    %c44 = arith.constant 44 : index
    %c0_103 = arith.constant 0 : index
    %101 = vector.load %arg12[%c44, %c0_103] : memref<64x64xf32, #tpu.memory_space<vmem>>, vector<1x64xf32>
    %c0_104 = arith.constant 0 : index
    %c2816 = arith.constant 2816 : index
    %102 = vector.load %arg13[%c0_104, %c2816] : memref<2x4096xf32, #tpu.memory_space<vmem>>, vector<1x64xf32>
    tpu.vector_store %arg13[%c0_104, %c2816], %101 {strides = array<i32>} : memref<2x4096xf32, #tpu.memory_space<vmem>>, vector<1x64xf32>,
    %c45 = arith.constant 45 : index
    %c0_105 = arith.constant 0 : index
    %103 = vector.load %arg12[%c45, %c0_105] : memref<64x64xf32, #tpu.memory_space<vmem>>, vector<1x64xf32>
    %c0_106 = arith.constant 0 : index
    %c2880 = arith.constant 2880 : index
    %104 = vector.load %arg13[%c0_106, %c2880] : memref<2x4096xf32, #tpu.memory_space<vmem>>, vector<1x64xf32>
    tpu.vector_store %arg13[%c0_106, %c2880], %103 {strides = array<i32>} : memref<2x4096xf32, #tpu.memory_space<vmem>>, vector<1x64xf32>,
    %c46 = arith.constant 46 : index
    %c0_107 = arith.constant 0 : index
    %105 = vector.load %arg12[%c46, %c0_107] : memref<64x64xf32, #tpu.memory_space<vmem>>, vector<1x64xf32>
    %c0_108 = arith.constant 0 : index
    %c2944 = arith.constant 2944 : index
    %106 = vector.load %arg13[%c0_108, %c2944] : memref<2x4096xf32, #tpu.memory_space<vmem>>, vector<1x64xf32>
    tpu.vector_store %arg13[%c0_108, %c2944], %105 {strides = array<i32>} : memref<2x4096xf32, #tpu.memory_space<vmem>>, vector<1x64xf32>,
    %c47 = arith.constant 47 : index
    %c0_109 = arith.constant 0 : index
    %107 = vector.load %arg12[%c47, %c0_109] : memref<64x64xf32, #tpu.memory_space<vmem>>, vector<1x64xf32>
    %c0_110 = arith.constant 0 : index
    %c3008 = arith.constant 3008 : index
    %108 = vector.load %arg13[%c0_110, %c3008] : memref<2x4096xf32, #tpu.memory_space<vmem>>, vector<1x64xf32>
    tpu.vector_store %arg13[%c0_110, %c3008], %107 {strides = array<i32>} : memref<2x4096xf32, #tpu.memory_space<vmem>>, vector<1x64xf32>,
    %c48 = arith.constant 48 : index
    %c0_111 = arith.constant 0 : index
    %109 = vector.load %arg12[%c48, %c0_111] : memref<64x64xf32, #tpu.memory_space<vmem>>, vector<1x64xf32>
    %c0_112 = arith.constant 0 : index
    %c3072 = arith.constant 3072 : index
    %110 = vector.load %arg13[%c0_112, %c3072] : memref<2x4096xf32, #tpu.memory_space<vmem>>, vector<1x64xf32>
    tpu.vector_store %arg13[%c0_112, %c3072], %109 {strides = array<i32>} : memref<2x4096xf32, #tpu.memory_space<vmem>>, vector<1x64xf32>,
    %c49 = arith.constant 49 : index
    %c0_113 = arith.constant 0 : index
    %111 = vector.load %arg12[%c49, %c0_113] : memref<64x64xf32, #tpu.memory_space<vmem>>, vector<1x64xf32>
    %c0_114 = arith.constant 0 : index
    %c3136 = arith.constant 3136 : index
    %112 = vector.load %arg13[%c0_114, %c3136] : memref<2x4096xf32, #tpu.memory_space<vmem>>, vector<1x64xf32>
    tpu.vector_store %arg13[%c0_114, %c3136], %111 {strides = array<i32>} : memref<2x4096xf32, #tpu.memory_space<vmem>>, vector<1x64xf32>,
    %c50 = arith.constant 50 : index
    %c0_115 = arith.constant 0 : index
    %113 = vector.load %arg12[%c50, %c0_115] : memref<64x64xf32, #tpu.memory_space<vmem>>, vector<1x64xf32>
    %c0_116 = arith.constant 0 : index
    %c3200 = arith.constant 3200 : index
    %114 = vector.load %arg13[%c0_116, %c3200] : memref<2x4096xf32, #tpu.memory_space<vmem>>, vector<1x64xf32>
    tpu.vector_store %arg13[%c0_116, %c3200], %113 {strides = array<i32>} : memref<2x4096xf32, #tpu.memory_space<vmem>>, vector<1x64xf32>,
    %c51 = arith.constant 51 : index
    %c0_117 = arith.constant 0 : index
    %115 = vector.load %arg12[%c51, %c0_117] : memref<64x64xf32, #tpu.memory_space<vmem>>, vector<1x64xf32>
    %c0_118 = arith.constant 0 : index
    %c3264 = arith.constant 3264 : index
    %116 = vector.load %arg13[%c0_118, %c3264] : memref<2x4096xf32, #tpu.memory_space<vmem>>, vector<1x64xf32>
    tpu.vector_store %arg13[%c0_118, %c3264], %115 {strides = array<i32>} : memref<2x4096xf32, #tpu.memory_space<vmem>>, vector<1x64xf32>,
    %c52 = arith.constant 52 : index
    %c0_119 = arith.constant 0 : index
    %117 = vector.load %arg12[%c52, %c0_119] : memref<64x64xf32, #tpu.memory_space<vmem>>, vector<1x64xf32>
    %c0_120 = arith.constant 0 : index
    %c3328 = arith.constant 3328 : index
    %118 = vector.load %arg13[%c0_120, %c3328] : memref<2x4096xf32, #tpu.memory_space<vmem>>, vector<1x64xf32>
    tpu.vector_store %arg13[%c0_120, %c3328], %117 {strides = array<i32>} : memref<2x4096xf32, #tpu.memory_space<vmem>>, vector<1x64xf32>,
    %c53 = arith.constant 53 : index
    %c0_121 = arith.constant 0 : index
    %119 = vector.load %arg12[%c53, %c0_121] : memref<64x64xf32, #tpu.memory_space<vmem>>, vector<1x64xf32>
    %c0_122 = arith.constant 0 : index
    %c3392 = arith.constant 3392 : index
    %120 = vector.load %arg13[%c0_122, %c3392] : memref<2x4096xf32, #tpu.memory_space<vmem>>, vector<1x64xf32>
    tpu.vector_store %arg13[%c0_122, %c3392], %119 {strides = array<i32>} : memref<2x4096xf32, #tpu.memory_space<vmem>>, vector<1x64xf32>,
    %c54 = arith.constant 54 : index
    %c0_123 = arith.constant 0 : index
    %121 = vector.load %arg12[%c54, %c0_123] : memref<64x64xf32, #tpu.memory_space<vmem>>, vector<1x64xf32>
    %c0_124 = arith.constant 0 : index
    %c3456 = arith.constant 3456 : index
    %122 = vector.load %arg13[%c0_124, %c3456] : memref<2x4096xf32, #tpu.memory_space<vmem>>, vector<1x64xf32>
    tpu.vector_store %arg13[%c0_124, %c3456], %121 {strides = array<i32>} : memref<2x4096xf32, #tpu.memory_space<vmem>>, vector<1x64xf32>,
    %c55 = arith.constant 55 : index
    %c0_125 = arith.constant 0 : index
    %123 = vector.load %arg12[%c55, %c0_125] : memref<64x64xf32, #tpu.memory_space<vmem>>, vector<1x64xf32>
    %c0_126 = arith.constant 0 : index
    %c3520 = arith.constant 3520 : index
    %124 = vector.load %arg13[%c0_126, %c3520] : memref<2x4096xf32, #tpu.memory_space<vmem>>, vector<1x64xf32>
    tpu.vector_store %arg13[%c0_126, %c3520], %123 {strides = array<i32>} : memref<2x4096xf32, #tpu.memory_space<vmem>>, vector<1x64xf32>,
    %c56 = arith.constant 56 : index
    %c0_127 = arith.constant 0 : index
    %125 = vector.load %arg12[%c56, %c0_127] : memref<64x64xf32, #tpu.memory_space<vmem>>, vector<1x64xf32>
    %c0_128 = arith.constant 0 : index
    %c3584 = arith.constant 3584 : index
    %126 = vector.load %arg13[%c0_128, %c3584] : memref<2x4096xf32, #tpu.memory_space<vmem>>, vector<1x64xf32>
    tpu.vector_store %arg13[%c0_128, %c3584], %125 {strides = array<i32>} : memref<2x4096xf32, #tpu.memory_space<vmem>>, vector<1x64xf32>,
    %c57 = arith.constant 57 : index
    %c0_129 = arith.constant 0 : index
    %127 = vector.load %arg12[%c57, %c0_129] : memref<64x64xf32, #tpu.memory_space<vmem>>, vector<1x64xf32>
    %c0_130 = arith.constant 0 : index
    %c3648 = arith.constant 3648 : index
    %128 = vector.load %arg13[%c0_130, %c3648] : memref<2x4096xf32, #tpu.memory_space<vmem>>, vector<1x64xf32>
    tpu.vector_store %arg13[%c0_130, %c3648], %127 {strides = array<i32>} : memref<2x4096xf32, #tpu.memory_space<vmem>>, vector<1x64xf32>,
    %c58 = arith.constant 58 : index
    %c0_131 = arith.constant 0 : index
    %129 = vector.load %arg12[%c58, %c0_131] : memref<64x64xf32, #tpu.memory_space<vmem>>, vector<1x64xf32>
    %c0_132 = arith.constant 0 : index
    %c3712 = arith.constant 3712 : index
    %130 = vector.load %arg13[%c0_132, %c3712] : memref<2x4096xf32, #tpu.memory_space<vmem>>, vector<1x64xf32>
    tpu.vector_store %arg13[%c0_132, %c3712], %129 {strides = array<i32>} : memref<2x4096xf32, #tpu.memory_space<vmem>>, vector<1x64xf32>,
    %c59 = arith.constant 59 : index
    %c0_133 = arith.constant 0 : index
    %131 = vector.load %arg12[%c59, %c0_133] : memref<64x64xf32, #tpu.memory_space<vmem>>, vector<1x64xf32>
    %c0_134 = arith.constant 0 : index
    %c3776 = arith.constant 3776 : index
    %132 = vector.load %arg13[%c0_134, %c3776] : memref<2x4096xf32, #tpu.memory_space<vmem>>, vector<1x64xf32>
    tpu.vector_store %arg13[%c0_134, %c3776], %131 {strides = array<i32>} : memref<2x4096xf32, #tpu.memory_space<vmem>>, vector<1x64xf32>,
    %c60 = arith.constant 60 : index
    %c0_135 = arith.constant 0 : index
    %133 = vector.load %arg12[%c60, %c0_135] : memref<64x64xf32, #tpu.memory_space<vmem>>, vector<1x64xf32>
    %c0_136 = arith.constant 0 : index
    %c3840 = arith.constant 3840 : index
    %134 = vector.load %arg13[%c0_136, %c3840] : memref<2x4096xf32, #tpu.memory_space<vmem>>, vector<1x64xf32>
    tpu.vector_store %arg13[%c0_136, %c3840], %133 {strides = array<i32>} : memref<2x4096xf32, #tpu.memory_space<vmem>>, vector<1x64xf32>,
    %c61 = arith.constant 61 : index
    %c0_137 = arith.constant 0 : index
    %135 = vector.load %arg12[%c61, %c0_137] : memref<64x64xf32, #tpu.memory_space<vmem>>, vector<1x64xf32>
    %c0_138 = arith.constant 0 : index
    %c3904 = arith.constant 3904 : index
    %136 = vector.load %arg13[%c0_138, %c3904] : memref<2x4096xf32, #tpu.memory_space<vmem>>, vector<1x64xf32>
    tpu.vector_store %arg13[%c0_138, %c3904], %135 {strides = array<i32>} : memref<2x4096xf32, #tpu.memory_space<vmem>>, vector<1x64xf32>,
    %c62 = arith.constant 62 : index
    %c0_139 = arith.constant 0 : index
    %137 = vector.load %arg12[%c62, %c0_139] : memref<64x64xf32, #tpu.memory_space<vmem>>, vector<1x64xf32>
    %c0_140 = arith.constant 0 : index
    %c3968 = arith.constant 3968 : index
    %138 = vector.load %arg13[%c0_140, %c3968] : memref<2x4096xf32, #tpu.memory_space<vmem>>, vector<1x64xf32>
    tpu.vector_store %arg13[%c0_140, %c3968], %137 {strides = array<i32>} : memref<2x4096xf32, #tpu.memory_space<vmem>>, vector<1x64xf32>,
    %c63 = arith.constant 63 : index
    %c0_141 = arith.constant 0 : index
    %139 = vector.load %arg12[%c63, %c0_141] : memref<64x64xf32, #tpu.memory_space<vmem>>, vector<1x64xf32>
    %c0_142 = arith.constant 0 : index
    %c4032 = arith.constant 4032 : index
    %140 = vector.load %arg13[%c0_142, %c4032] : memref<2x4096xf32, #tpu.memory_space<vmem>>, vector<1x64xf32>
    tpu.vector_store %arg13[%c0_142, %c4032], %139 {strides = array<i32>} : memref<2x4096xf32, #tpu.memory_space<vmem>>, vector<1x64xf32>,
    %c1_143 = arith.constant 1 : index
    %c0_144 = arith.constant 0 : index
    %c0_145 = arith.constant 0 : index
    %141 = vector.load %arg0[%c1_143, %c0_144, %c0_145] : memref<2x256x64xf32, #tpu.memory_space<vmem>>, vector<1x256x64xf32>
    %142 = vector.shape_cast %141 : vector<1x256x64xf32> to vector<256x64xf32>
    %c0_146 = arith.constant 0 : index
    %c0_147 = arith.constant 0 : index
    %143 = vector.load %arg1[%c0_146, %c0_147] : memref<128x256xf32, #tpu.memory_space<vmem>>, vector<128x256xf32>
    %cst_148 = arith.constant dense<0.000000e+00> : vector<128x64xf32>
    %144 = tpu.matmul %143, %142, %cst_148 {dimension_numbers = #tpu.dot_dimension_numbers<[1], [0], [0], [1], [0, 0, 1, 1], [], []>} : vector<128x256xf32>, vector<256x64xf32>, vector<128x64xf32> -> vector<128x64xf32>
    %c0_149 = arith.constant 0 : index
    %c0_150 = arith.constant 0 : index
    %145 = vector.load %arg2[%c0_149, %c0_150] : memref<128x1xf32, #tpu.memory_space<vmem>>, vector<128x1xf32>
    %146 = vector.broadcast %145 : vector<128x1xf32> to vector<128x64xf32>
    %147 = arith.addf %144, %146 : vector<128x64xf32>
    %c0_151 = arith.constant 0 : index
    %c0_152 = arith.constant 0 : index
    %148 = vector.load %arg3[%c0_151, %c0_152] : memref<64x128xf32, #tpu.memory_space<vmem>>, vector<64x128xf32>
    %cst_153 = arith.constant dense<0.000000e+00> : vector<64x64xf32>
    %149 = tpu.matmul %148, %147, %cst_153 {dimension_numbers = #tpu.dot_dimension_numbers<[1], [0], [0], [1], [0, 0, 1, 1], [], []>} : vector<64x128xf32>, vector<128x64xf32>, vector<64x64xf32> -> vector<64x64xf32>
    %c0_154 = arith.constant 0 : index
    %c0_155 = arith.constant 0 : index
    %150 = vector.load %arg4[%c0_154, %c0_155] : memref<64x1xf32, #tpu.memory_space<vmem>>, vector<64x1xf32>
    %151 = vector.broadcast %150 : vector<64x1xf32> to vector<64x64xf32>
    %152 = arith.addf %149, %151 : vector<64x64xf32>
    %c0_156 = arith.constant 0 : index
    %c0_157 = arith.constant 0 : index
    %153 = vector.load %arg12[%c0_156, %c0_157] : memref<64x64xf32, #tpu.memory_space<vmem>>, vector<64x64xf32>
    tpu.vector_store %arg12[%c0_156, %c0_157], %152 {strides = array<i32>} : memref<64x64xf32, #tpu.memory_space<vmem>>, vector<64x64xf32>,
    %c0_158 = arith.constant 0 : index
    %c0_159 = arith.constant 0 : index
    %154 = vector.load %arg12[%c0_158, %c0_159] : memref<64x64xf32, #tpu.memory_space<vmem>>, vector<1x64xf32>
    %c1_160 = arith.constant 1 : index
    %c0_161 = arith.constant 0 : index
    %155 = vector.load %arg13[%c1_160, %c0_161] : memref<2x4096xf32, #tpu.memory_space<vmem>>, vector<1x64xf32>
    tpu.vector_store %arg13[%c1_160, %c0_161], %154 {strides = array<i32>} : memref<2x4096xf32, #tpu.memory_space<vmem>>, vector<1x64xf32>,
    %c1_162 = arith.constant 1 : index
    %c0_163 = arith.constant 0 : index
    %156 = vector.load %arg12[%c1_162, %c0_163] : memref<64x64xf32, #tpu.memory_space<vmem>>, vector<1x64xf32>
    %c1_164 = arith.constant 1 : index
    %c64_165 = arith.constant 64 : index
    %157 = vector.load %arg13[%c1_164, %c64_165] : memref<2x4096xf32, #tpu.memory_space<vmem>>, vector<1x64xf32>
    tpu.vector_store %arg13[%c1_164, %c64_165], %156 {strides = array<i32>} : memref<2x4096xf32, #tpu.memory_space<vmem>>, vector<1x64xf32>,
    %c2_166 = arith.constant 2 : index
    %c0_167 = arith.constant 0 : index
    %158 = vector.load %arg12[%c2_166, %c0_167] : memref<64x64xf32, #tpu.memory_space<vmem>>, vector<1x64xf32>
    %c1_168 = arith.constant 1 : index
    %c128_169 = arith.constant 128 : index
    %159 = vector.load %arg13[%c1_168, %c128_169] : memref<2x4096xf32, #tpu.memory_space<vmem>>, vector<1x64xf32>
    tpu.vector_store %arg13[%c1_168, %c128_169], %158 {strides = array<i32>} : memref<2x4096xf32, #tpu.memory_space<vmem>>, vector<1x64xf32>,
    %c3_170 = arith.constant 3 : index
    %c0_171 = arith.constant 0 : index
    %160 = vector.load %arg12[%c3_170, %c0_171] : memref<64x64xf32, #tpu.memory_space<vmem>>, vector<1x64xf32>
    %c1_172 = arith.constant 1 : index
    %c192_173 = arith.constant 192 : index
    %161 = vector.load %arg13[%c1_172, %c192_173] : memref<2x4096xf32, #tpu.memory_space<vmem>>, vector<1x64xf32>
    tpu.vector_store %arg13[%c1_172, %c192_173], %160 {strides = array<i32>} : memref<2x4096xf32, #tpu.memory_space<vmem>>, vector<1x64xf32>,
    %c4_174 = arith.constant 4 : index
    %c0_175 = arith.constant 0 : index
    %162 = vector.load %arg12[%c4_174, %c0_175] : memref<64x64xf32, #tpu.memory_space<vmem>>, vector<1x64xf32>
    %c1_176 = arith.constant 1 : index
    %c256_177 = arith.constant 256 : index
    %163 = vector.load %arg13[%c1_176, %c256_177] : memref<2x4096xf32, #tpu.memory_space<vmem>>, vector<1x64xf32>
    tpu.vector_store %arg13[%c1_176, %c256_177], %162 {strides = array<i32>} : memref<2x4096xf32, #tpu.memory_space<vmem>>, vector<1x64xf32>,
    %c5_178 = arith.constant 5 : index
    %c0_179 = arith.constant 0 : index
    %164 = vector.load %arg12[%c5_178, %c0_179] : memref<64x64xf32, #tpu.memory_space<vmem>>, vector<1x64xf32>
    %c1_180 = arith.constant 1 : index
    %c320_181 = arith.constant 320 : index
    %165 = vector.load %arg13[%c1_180, %c320_181] : memref<2x4096xf32, #tpu.memory_space<vmem>>, vector<1x64xf32>
    tpu.vector_store %arg13[%c1_180, %c320_181], %164 {strides = array<i32>} : memref<2x4096xf32, #tpu.memory_space<vmem>>, vector<1x64xf32>,
    %c6_182 = arith.constant 6 : index
    %c0_183 = arith.constant 0 : index
    %166 = vector.load %arg12[%c6_182, %c0_183] : memref<64x64xf32, #tpu.memory_space<vmem>>, vector<1x64xf32>
    %c1_184 = arith.constant 1 : index
    %c384_185 = arith.constant 384 : index
    %167 = vector.load %arg13[%c1_184, %c384_185] : memref<2x4096xf32, #tpu.memory_space<vmem>>, vector<1x64xf32>
    tpu.vector_store %arg13[%c1_184, %c384_185], %166 {strides = array<i32>} : memref<2x4096xf32, #tpu.memory_space<vmem>>, vector<1x64xf32>,
    %c7_186 = arith.constant 7 : index
    %c0_187 = arith.constant 0 : index
    %168 = vector.load %arg12[%c7_186, %c0_187] : memref<64x64xf32, #tpu.memory_space<vmem>>, vector<1x64xf32>
    %c1_188 = arith.constant 1 : index
    %c448_189 = arith.constant 448 : index
    %169 = vector.load %arg13[%c1_188, %c448_189] : memref<2x4096xf32, #tpu.memory_space<vmem>>, vector<1x64xf32>
    tpu.vector_store %arg13[%c1_188, %c448_189], %168 {strides = array<i32>} : memref<2x4096xf32, #tpu.memory_space<vmem>>, vector<1x64xf32>,
    %c8_190 = arith.constant 8 : index
    %c0_191 = arith.constant 0 : index
    %170 = vector.load %arg12[%c8_190, %c0_191] : memref<64x64xf32, #tpu.memory_space<vmem>>, vector<1x64xf32>
    %c1_192 = arith.constant 1 : index
    %c512_193 = arith.constant 512 : index
    %171 = vector.load %arg13[%c1_192, %c512_193] : memref<2x4096xf32, #tpu.memory_space<vmem>>, vector<1x64xf32>
    tpu.vector_store %arg13[%c1_192, %c512_193], %170 {strides = array<i32>} : memref<2x4096xf32, #tpu.memory_space<vmem>>, vector<1x64xf32>,
    %c9_194 = arith.constant 9 : index
    %c0_195 = arith.constant 0 : index
    %172 = vector.load %arg12[%c9_194, %c0_195] : memref<64x64xf32, #tpu.memory_space<vmem>>, vector<1x64xf32>
    %c1_196 = arith.constant 1 : index
    %c576_197 = arith.constant 576 : index
    %173 = vector.load %arg13[%c1_196, %c576_197] : memref<2x4096xf32, #tpu.memory_space<vmem>>, vector<1x64xf32>
    tpu.vector_store %arg13[%c1_196, %c576_197], %172 {strides = array<i32>} : memref<2x4096xf32, #tpu.memory_space<vmem>>, vector<1x64xf32>,
    %c10_198 = arith.constant 10 : index
    %c0_199 = arith.constant 0 : index
    %174 = vector.load %arg12[%c10_198, %c0_199] : memref<64x64xf32, #tpu.memory_space<vmem>>, vector<1x64xf32>
    %c1_200 = arith.constant 1 : index
    %c640_201 = arith.constant 640 : index
    %175 = vector.load %arg13[%c1_200, %c640_201] : memref<2x4096xf32, #tpu.memory_space<vmem>>, vector<1x64xf32>
    tpu.vector_store %arg13[%c1_200, %c640_201], %174 {strides = array<i32>} : memref<2x4096xf32, #tpu.memory_space<vmem>>, vector<1x64xf32>,
    %c11_202 = arith.constant 11 : index
    %c0_203 = arith.constant 0 : index
    %176 = vector.load %arg12[%c11_202, %c0_203] : memref<64x64xf32, #tpu.memory_space<vmem>>, vector<1x64xf32>
    %c1_204 = arith.constant 1 : index
    %c704_205 = arith.constant 704 : index
    %177 = vector.load %arg13[%c1_204, %c704_205] : memref<2x4096xf32, #tpu.memory_space<vmem>>, vector<1x64xf32>
    tpu.vector_store %arg13[%c1_204, %c704_205], %176 {strides = array<i32>} : memref<2x4096xf32, #tpu.memory_space<vmem>>, vector<1x64xf32>,
    %c12_206 = arith.constant 12 : index
    %c0_207 = arith.constant 0 : index
    %178 = vector.load %arg12[%c12_206, %c0_207] : memref<64x64xf32, #tpu.memory_space<vmem>>, vector<1x64xf32>
    %c1_208 = arith.constant 1 : index
    %c768_209 = arith.constant 768 : index
    %179 = vector.load %arg13[%c1_208, %c768_209] : memref<2x4096xf32, #tpu.memory_space<vmem>>, vector<1x64xf32>
    tpu.vector_store %arg13[%c1_208, %c768_209], %178 {strides = array<i32>} : memref<2x4096xf32, #tpu.memory_space<vmem>>, vector<1x64xf32>,
    %c13_210 = arith.constant 13 : index
    %c0_211 = arith.constant 0 : index
    %180 = vector.load %arg12[%c13_210, %c0_211] : memref<64x64xf32, #tpu.memory_space<vmem>>, vector<1x64xf32>
    %c1_212 = arith.constant 1 : index
    %c832_213 = arith.constant 832 : index
    %181 = vector.load %arg13[%c1_212, %c832_213] : memref<2x4096xf32, #tpu.memory_space<vmem>>, vector<1x64xf32>
    tpu.vector_store %arg13[%c1_212, %c832_213], %180 {strides = array<i32>} : memref<2x4096xf32, #tpu.memory_space<vmem>>, vector<1x64xf32>,
    %c14_214 = arith.constant 14 : index
    %c0_215 = arith.constant 0 : index
    %182 = vector.load %arg12[%c14_214, %c0_215] : memref<64x64xf32, #tpu.memory_space<vmem>>, vector<1x64xf32>
    %c1_216 = arith.constant 1 : index
    %c896_217 = arith.constant 896 : index
    %183 = vector.load %arg13[%c1_216, %c896_217] : memref<2x4096xf32, #tpu.memory_space<vmem>>, vector<1x64xf32>
    tpu.vector_store %arg13[%c1_216, %c896_217], %182 {strides = array<i32>} : memref<2x4096xf32, #tpu.memory_space<vmem>>, vector<1x64xf32>,
    %c15_218 = arith.constant 15 : index
    %c0_219 = arith.constant 0 : index
    %184 = vector.load %arg12[%c15_218, %c0_219] : memref<64x64xf32, #tpu.memory_space<vmem>>, vector<1x64xf32>
    %c1_220 = arith.constant 1 : index
    %c960_221 = arith.constant 960 : index
    %185 = vector.load %arg13[%c1_220, %c960_221] : memref<2x4096xf32, #tpu.memory_space<vmem>>, vector<1x64xf32>
    tpu.vector_store %arg13[%c1_220, %c960_221], %184 {strides = array<i32>} : memref<2x4096xf32, #tpu.memory_space<vmem>>, vector<1x64xf32>,
    %c16_222 = arith.constant 16 : index
    %c0_223 = arith.constant 0 : index
    %186 = vector.load %arg12[%c16_222, %c0_223] : memref<64x64xf32, #tpu.memory_space<vmem>>, vector<1x64xf32>
    %c1_224 = arith.constant 1 : index
    %c1024_225 = arith.constant 1024 : index
    %187 = vector.load %arg13[%c1_224, %c1024_225] : memref<2x4096xf32, #tpu.memory_space<vmem>>, vector<1x64xf32>
    tpu.vector_store %arg13[%c1_224, %c1024_225], %186 {strides = array<i32>} : memref<2x4096xf32, #tpu.memory_space<vmem>>, vector<1x64xf32>,
    %c17_226 = arith.constant 17 : index
    %c0_227 = arith.constant 0 : index
    %188 = vector.load %arg12[%c17_226, %c0_227] : memref<64x64xf32, #tpu.memory_space<vmem>>, vector<1x64xf32>
    %c1_228 = arith.constant 1 : index
    %c1088_229 = arith.constant 1088 : index
    %189 = vector.load %arg13[%c1_228, %c1088_229] : memref<2x4096xf32, #tpu.memory_space<vmem>>, vector<1x64xf32>
    tpu.vector_store %arg13[%c1_228, %c1088_229], %188 {strides = array<i32>} : memref<2x4096xf32, #tpu.memory_space<vmem>>, vector<1x64xf32>,
    %c18_230 = arith.constant 18 : index
    %c0_231 = arith.constant 0 : index
    %190 = vector.load %arg12[%c18_230, %c0_231] : memref<64x64xf32, #tpu.memory_space<vmem>>, vector<1x64xf32>
    %c1_232 = arith.constant 1 : index
    %c1152_233 = arith.constant 1152 : index
    %191 = vector.load %arg13[%c1_232, %c1152_233] : memref<2x4096xf32, #tpu.memory_space<vmem>>, vector<1x64xf32>
    tpu.vector_store %arg13[%c1_232, %c1152_233], %190 {strides = array<i32>} : memref<2x4096xf32, #tpu.memory_space<vmem>>, vector<1x64xf32>,
    %c19_234 = arith.constant 19 : index
    %c0_235 = arith.constant 0 : index
    %192 = vector.load %arg12[%c19_234, %c0_235] : memref<64x64xf32, #tpu.memory_space<vmem>>, vector<1x64xf32>
    %c1_236 = arith.constant 1 : index
    %c1216_237 = arith.constant 1216 : index
    %193 = vector.load %arg13[%c1_236, %c1216_237] : memref<2x4096xf32, #tpu.memory_space<vmem>>, vector<1x64xf32>
    tpu.vector_store %arg13[%c1_236, %c1216_237], %192 {strides = array<i32>} : memref<2x4096xf32, #tpu.memory_space<vmem>>, vector<1x64xf32>,
    %c20_238 = arith.constant 20 : index
    %c0_239 = arith.constant 0 : index
    %194 = vector.load %arg12[%c20_238, %c0_239] : memref<64x64xf32, #tpu.memory_space<vmem>>, vector<1x64xf32>
    %c1_240 = arith.constant 1 : index
    %c1280_241 = arith.constant 1280 : index
    %195 = vector.load %arg13[%c1_240, %c1280_241] : memref<2x4096xf32, #tpu.memory_space<vmem>>, vector<1x64xf32>
    tpu.vector_store %arg13[%c1_240, %c1280_241], %194 {strides = array<i32>} : memref<2x4096xf32, #tpu.memory_space<vmem>>, vector<1x64xf32>,
    %c21_242 = arith.constant 21 : index
    %c0_243 = arith.constant 0 : index
    %196 = vector.load %arg12[%c21_242, %c0_243] : memref<64x64xf32, #tpu.memory_space<vmem>>, vector<1x64xf32>
    %c1_244 = arith.constant 1 : index
    %c1344_245 = arith.constant 1344 : index
    %197 = vector.load %arg13[%c1_244, %c1344_245] : memref<2x4096xf32, #tpu.memory_space<vmem>>, vector<1x64xf32>
    tpu.vector_store %arg13[%c1_244, %c1344_245], %196 {strides = array<i32>} : memref<2x4096xf32, #tpu.memory_space<vmem>>, vector<1x64xf32>,
    %c22_246 = arith.constant 22 : index
    %c0_247 = arith.constant 0 : index
    %198 = vector.load %arg12[%c22_246, %c0_247] : memref<64x64xf32, #tpu.memory_space<vmem>>, vector<1x64xf32>
    %c1_248 = arith.constant 1 : index
    %c1408_249 = arith.constant 1408 : index
    %199 = vector.load %arg13[%c1_248, %c1408_249] : memref<2x4096xf32, #tpu.memory_space<vmem>>, vector<1x64xf32>
    tpu.vector_store %arg13[%c1_248, %c1408_249], %198 {strides = array<i32>} : memref<2x4096xf32, #tpu.memory_space<vmem>>, vector<1x64xf32>,
    %c23_250 = arith.constant 23 : index
    %c0_251 = arith.constant 0 : index
    %200 = vector.load %arg12[%c23_250, %c0_251] : memref<64x64xf32, #tpu.memory_space<vmem>>, vector<1x64xf32>
    %c1_252 = arith.constant 1 : index
    %c1472_253 = arith.constant 1472 : index
    %201 = vector.load %arg13[%c1_252, %c1472_253] : memref<2x4096xf32, #tpu.memory_space<vmem>>, vector<1x64xf32>
    tpu.vector_store %arg13[%c1_252, %c1472_253], %200 {strides = array<i32>} : memref<2x4096xf32, #tpu.memory_space<vmem>>, vector<1x64xf32>,
    %c24_254 = arith.constant 24 : index
    %c0_255 = arith.constant 0 : index
    %202 = vector.load %arg12[%c24_254, %c0_255] : memref<64x64xf32, #tpu.memory_space<vmem>>, vector<1x64xf32>
    %c1_256 = arith.constant 1 : index
    %c1536_257 = arith.constant 1536 : index
    %203 = vector.load %arg13[%c1_256, %c1536_257] : memref<2x4096xf32, #tpu.memory_space<vmem>>, vector<1x64xf32>
    tpu.vector_store %arg13[%c1_256, %c1536_257], %202 {strides = array<i32>} : memref<2x4096xf32, #tpu.memory_space<vmem>>, vector<1x64xf32>,
    %c25_258 = arith.constant 25 : index
    %c0_259 = arith.constant 0 : index
    %204 = vector.load %arg12[%c25_258, %c0_259] : memref<64x64xf32, #tpu.memory_space<vmem>>, vector<1x64xf32>
    %c1_260 = arith.constant 1 : index
    %c1600_261 = arith.constant 1600 : index
    %205 = vector.load %arg13[%c1_260, %c1600_261] : memref<2x4096xf32, #tpu.memory_space<vmem>>, vector<1x64xf32>
    tpu.vector_store %arg13[%c1_260, %c1600_261], %204 {strides = array<i32>} : memref<2x4096xf32, #tpu.memory_space<vmem>>, vector<1x64xf32>,
    %c26_262 = arith.constant 26 : index
    %c0_263 = arith.constant 0 : index
    %206 = vector.load %arg12[%c26_262, %c0_263] : memref<64x64xf32, #tpu.memory_space<vmem>>, vector<1x64xf32>
    %c1_264 = arith.constant 1 : index
    %c1664_265 = arith.constant 1664 : index
    %207 = vector.load %arg13[%c1_264, %c1664_265] : memref<2x4096xf32, #tpu.memory_space<vmem>>, vector<1x64xf32>
    tpu.vector_store %arg13[%c1_264, %c1664_265], %206 {strides = array<i32>} : memref<2x4096xf32, #tpu.memory_space<vmem>>, vector<1x64xf32>,
    %c27_266 = arith.constant 27 : index
    %c0_267 = arith.constant 0 : index
    %208 = vector.load %arg12[%c27_266, %c0_267] : memref<64x64xf32, #tpu.memory_space<vmem>>, vector<1x64xf32>
    %c1_268 = arith.constant 1 : index
    %c1728_269 = arith.constant 1728 : index
    %209 = vector.load %arg13[%c1_268, %c1728_269] : memref<2x4096xf32, #tpu.memory_space<vmem>>, vector<1x64xf32>
    tpu.vector_store %arg13[%c1_268, %c1728_269], %208 {strides = array<i32>} : memref<2x4096xf32, #tpu.memory_space<vmem>>, vector<1x64xf32>,
    %c28_270 = arith.constant 28 : index
    %c0_271 = arith.constant 0 : index
    %210 = vector.load %arg12[%c28_270, %c0_271] : memref<64x64xf32, #tpu.memory_space<vmem>>, vector<1x64xf32>
    %c1_272 = arith.constant 1 : index
    %c1792_273 = arith.constant 1792 : index
    %211 = vector.load %arg13[%c1_272, %c1792_273] : memref<2x4096xf32, #tpu.memory_space<vmem>>, vector<1x64xf32>
    tpu.vector_store %arg13[%c1_272, %c1792_273], %210 {strides = array<i32>} : memref<2x4096xf32, #tpu.memory_space<vmem>>, vector<1x64xf32>,
    %c29_274 = arith.constant 29 : index
    %c0_275 = arith.constant 0 : index
    %212 = vector.load %arg12[%c29_274, %c0_275] : memref<64x64xf32, #tpu.memory_space<vmem>>, vector<1x64xf32>
    %c1_276 = arith.constant 1 : index
    %c1856_277 = arith.constant 1856 : index
    %213 = vector.load %arg13[%c1_276, %c1856_277] : memref<2x4096xf32, #tpu.memory_space<vmem>>, vector<1x64xf32>
    tpu.vector_store %arg13[%c1_276, %c1856_277], %212 {strides = array<i32>} : memref<2x4096xf32, #tpu.memory_space<vmem>>, vector<1x64xf32>,
    %c30_278 = arith.constant 30 : index
    %c0_279 = arith.constant 0 : index
    %214 = vector.load %arg12[%c30_278, %c0_279] : memref<64x64xf32, #tpu.memory_space<vmem>>, vector<1x64xf32>
    %c1_280 = arith.constant 1 : index
    %c1920_281 = arith.constant 1920 : index
    %215 = vector.load %arg13[%c1_280, %c1920_281] : memref<2x4096xf32, #tpu.memory_space<vmem>>, vector<1x64xf32>
    tpu.vector_store %arg13[%c1_280, %c1920_281], %214 {strides = array<i32>} : memref<2x4096xf32, #tpu.memory_space<vmem>>, vector<1x64xf32>,
    %c31_282 = arith.constant 31 : index
    %c0_283 = arith.constant 0 : index
    %216 = vector.load %arg12[%c31_282, %c0_283] : memref<64x64xf32, #tpu.memory_space<vmem>>, vector<1x64xf32>
    %c1_284 = arith.constant 1 : index
    %c1984_285 = arith.constant 1984 : index
    %217 = vector.load %arg13[%c1_284, %c1984_285] : memref<2x4096xf32, #tpu.memory_space<vmem>>, vector<1x64xf32>
    tpu.vector_store %arg13[%c1_284, %c1984_285], %216 {strides = array<i32>} : memref<2x4096xf32, #tpu.memory_space<vmem>>, vector<1x64xf32>,
    %c32_286 = arith.constant 32 : index
    %c0_287 = arith.constant 0 : index
    %218 = vector.load %arg12[%c32_286, %c0_287] : memref<64x64xf32, #tpu.memory_space<vmem>>, vector<1x64xf32>
    %c1_288 = arith.constant 1 : index
    %c2048_289 = arith.constant 2048 : index
    %219 = vector.load %arg13[%c1_288, %c2048_289] : memref<2x4096xf32, #tpu.memory_space<vmem>>, vector<1x64xf32>
    tpu.vector_store %arg13[%c1_288, %c2048_289], %218 {strides = array<i32>} : memref<2x4096xf32, #tpu.memory_space<vmem>>, vector<1x64xf32>,
    %c33_290 = arith.constant 33 : index
    %c0_291 = arith.constant 0 : index
    %220 = vector.load %arg12[%c33_290, %c0_291] : memref<64x64xf32, #tpu.memory_space<vmem>>, vector<1x64xf32>
    %c1_292 = arith.constant 1 : index
    %c2112_293 = arith.constant 2112 : index
    %221 = vector.load %arg13[%c1_292, %c2112_293] : memref<2x4096xf32, #tpu.memory_space<vmem>>, vector<1x64xf32>
    tpu.vector_store %arg13[%c1_292, %c2112_293], %220 {strides = array<i32>} : memref<2x4096xf32, #tpu.memory_space<vmem>>, vector<1x64xf32>,
    %c34_294 = arith.constant 34 : index
    %c0_295 = arith.constant 0 : index
    %222 = vector.load %arg12[%c34_294, %c0_295] : memref<64x64xf32, #tpu.memory_space<vmem>>, vector<1x64xf32>
    %c1_296 = arith.constant 1 : index
    %c2176_297 = arith.constant 2176 : index
    %223 = vector.load %arg13[%c1_296, %c2176_297] : memref<2x4096xf32, #tpu.memory_space<vmem>>, vector<1x64xf32>
    tpu.vector_store %arg13[%c1_296, %c2176_297], %222 {strides = array<i32>} : memref<2x4096xf32, #tpu.memory_space<vmem>>, vector<1x64xf32>,
    %c35_298 = arith.constant 35 : index
    %c0_299 = arith.constant 0 : index
    %224 = vector.load %arg12[%c35_298, %c0_299] : memref<64x64xf32, #tpu.memory_space<vmem>>, vector<1x64xf32>
    %c1_300 = arith.constant 1 : index
    %c2240_301 = arith.constant 2240 : index
    %225 = vector.load %arg13[%c1_300, %c2240_301] : memref<2x4096xf32, #tpu.memory_space<vmem>>, vector<1x64xf32>
    tpu.vector_store %arg13[%c1_300, %c2240_301], %224 {strides = array<i32>} : memref<2x4096xf32, #tpu.memory_space<vmem>>, vector<1x64xf32>,
    %c36_302 = arith.constant 36 : index
    %c0_303 = arith.constant 0 : index
    %226 = vector.load %arg12[%c36_302, %c0_303] : memref<64x64xf32, #tpu.memory_space<vmem>>, vector<1x64xf32>
    %c1_304 = arith.constant 1 : index
    %c2304_305 = arith.constant 2304 : index
    %227 = vector.load %arg13[%c1_304, %c2304_305] : memref<2x4096xf32, #tpu.memory_space<vmem>>, vector<1x64xf32>
    tpu.vector_store %arg13[%c1_304, %c2304_305], %226 {strides = array<i32>} : memref<2x4096xf32, #tpu.memory_space<vmem>>, vector<1x64xf32>,
    %c37_306 = arith.constant 37 : index
    %c0_307 = arith.constant 0 : index
    %228 = vector.load %arg12[%c37_306, %c0_307] : memref<64x64xf32, #tpu.memory_space<vmem>>, vector<1x64xf32>
    %c1_308 = arith.constant 1 : index
    %c2368_309 = arith.constant 2368 : index
    %229 = vector.load %arg13[%c1_308, %c2368_309] : memref<2x4096xf32, #tpu.memory_space<vmem>>, vector<1x64xf32>
    tpu.vector_store %arg13[%c1_308, %c2368_309], %228 {strides = array<i32>} : memref<2x4096xf32, #tpu.memory_space<vmem>>, vector<1x64xf32>,
    %c38_310 = arith.constant 38 : index
    %c0_311 = arith.constant 0 : index
    %230 = vector.load %arg12[%c38_310, %c0_311] : memref<64x64xf32, #tpu.memory_space<vmem>>, vector<1x64xf32>
    %c1_312 = arith.constant 1 : index
    %c2432_313 = arith.constant 2432 : index
    %231 = vector.load %arg13[%c1_312, %c2432_313] : memref<2x4096xf32, #tpu.memory_space<vmem>>, vector<1x64xf32>
    tpu.vector_store %arg13[%c1_312, %c2432_313], %230 {strides = array<i32>} : memref<2x4096xf32, #tpu.memory_space<vmem>>, vector<1x64xf32>,
    %c39_314 = arith.constant 39 : index
    %c0_315 = arith.constant 0 : index
    %232 = vector.load %arg12[%c39_314, %c0_315] : memref<64x64xf32, #tpu.memory_space<vmem>>, vector<1x64xf32>
    %c1_316 = arith.constant 1 : index
    %c2496_317 = arith.constant 2496 : index
    %233 = vector.load %arg13[%c1_316, %c2496_317] : memref<2x4096xf32, #tpu.memory_space<vmem>>, vector<1x64xf32>
    tpu.vector_store %arg13[%c1_316, %c2496_317], %232 {strides = array<i32>} : memref<2x4096xf32, #tpu.memory_space<vmem>>, vector<1x64xf32>,
    %c40_318 = arith.constant 40 : index
    %c0_319 = arith.constant 0 : index
    %234 = vector.load %arg12[%c40_318, %c0_319] : memref<64x64xf32, #tpu.memory_space<vmem>>, vector<1x64xf32>
    %c1_320 = arith.constant 1 : index
    %c2560_321 = arith.constant 2560 : index
    %235 = vector.load %arg13[%c1_320, %c2560_321] : memref<2x4096xf32, #tpu.memory_space<vmem>>, vector<1x64xf32>
    tpu.vector_store %arg13[%c1_320, %c2560_321], %234 {strides = array<i32>} : memref<2x4096xf32, #tpu.memory_space<vmem>>, vector<1x64xf32>,
    %c41_322 = arith.constant 41 : index
    %c0_323 = arith.constant 0 : index
    %236 = vector.load %arg12[%c41_322, %c0_323] : memref<64x64xf32, #tpu.memory_space<vmem>>, vector<1x64xf32>
    %c1_324 = arith.constant 1 : index
    %c2624_325 = arith.constant 2624 : index
    %237 = vector.load %arg13[%c1_324, %c2624_325] : memref<2x4096xf32, #tpu.memory_space<vmem>>, vector<1x64xf32>
    tpu.vector_store %arg13[%c1_324, %c2624_325], %236 {strides = array<i32>} : memref<2x4096xf32, #tpu.memory_space<vmem>>, vector<1x64xf32>,
    %c42_326 = arith.constant 42 : index
    %c0_327 = arith.constant 0 : index
    %238 = vector.load %arg12[%c42_326, %c0_327] : memref<64x64xf32, #tpu.memory_space<vmem>>, vector<1x64xf32>
    %c1_328 = arith.constant 1 : index
    %c2688_329 = arith.constant 2688 : index
    %239 = vector.load %arg13[%c1_328, %c2688_329] : memref<2x4096xf32, #tpu.memory_space<vmem>>, vector<1x64xf32>
    tpu.vector_store %arg13[%c1_328, %c2688_329], %238 {strides = array<i32>} : memref<2x4096xf32, #tpu.memory_space<vmem>>, vector<1x64xf32>,
    %c43_330 = arith.constant 43 : index
    %c0_331 = arith.constant 0 : index
    %240 = vector.load %arg12[%c43_330, %c0_331] : memref<64x64xf32, #tpu.memory_space<vmem>>, vector<1x64xf32>
    %c1_332 = arith.constant 1 : index
    %c2752_333 = arith.constant 2752 : index
    %241 = vector.load %arg13[%c1_332, %c2752_333] : memref<2x4096xf32, #tpu.memory_space<vmem>>, vector<1x64xf32>
    tpu.vector_store %arg13[%c1_332, %c2752_333], %240 {strides = array<i32>} : memref<2x4096xf32, #tpu.memory_space<vmem>>, vector<1x64xf32>,
    %c44_334 = arith.constant 44 : index
    %c0_335 = arith.constant 0 : index
    %242 = vector.load %arg12[%c44_334, %c0_335] : memref<64x64xf32, #tpu.memory_space<vmem>>, vector<1x64xf32>
    %c1_336 = arith.constant 1 : index
    %c2816_337 = arith.constant 2816 : index
    %243 = vector.load %arg13[%c1_336, %c2816_337] : memref<2x4096xf32, #tpu.memory_space<vmem>>, vector<1x64xf32>
    tpu.vector_store %arg13[%c1_336, %c2816_337], %242 {strides = array<i32>} : memref<2x4096xf32, #tpu.memory_space<vmem>>, vector<1x64xf32>,
    %c45_338 = arith.constant 45 : index
    %c0_339 = arith.constant 0 : index
    %244 = vector.load %arg12[%c45_338, %c0_339] : memref<64x64xf32, #tpu.memory_space<vmem>>, vector<1x64xf32>
    %c1_340 = arith.constant 1 : index
    %c2880_341 = arith.constant 2880 : index
    %245 = vector.load %arg13[%c1_340, %c2880_341] : memref<2x4096xf32, #tpu.memory_space<vmem>>, vector<1x64xf32>
    tpu.vector_store %arg13[%c1_340, %c2880_341], %244 {strides = array<i32>} : memref<2x4096xf32, #tpu.memory_space<vmem>>, vector<1x64xf32>,
    %c46_342 = arith.constant 46 : index
    %c0_343 = arith.constant 0 : index
    %246 = vector.load %arg12[%c46_342, %c0_343] : memref<64x64xf32, #tpu.memory_space<vmem>>, vector<1x64xf32>
    %c1_344 = arith.constant 1 : index
    %c2944_345 = arith.constant 2944 : index
    %247 = vector.load %arg13[%c1_344, %c2944_345] : memref<2x4096xf32, #tpu.memory_space<vmem>>, vector<1x64xf32>
    tpu.vector_store %arg13[%c1_344, %c2944_345], %246 {strides = array<i32>} : memref<2x4096xf32, #tpu.memory_space<vmem>>, vector<1x64xf32>,
    %c47_346 = arith.constant 47 : index
    %c0_347 = arith.constant 0 : index
    %248 = vector.load %arg12[%c47_346, %c0_347] : memref<64x64xf32, #tpu.memory_space<vmem>>, vector<1x64xf32>
    %c1_348 = arith.constant 1 : index
    %c3008_349 = arith.constant 3008 : index
    %249 = vector.load %arg13[%c1_348, %c3008_349] : memref<2x4096xf32, #tpu.memory_space<vmem>>, vector<1x64xf32>
    tpu.vector_store %arg13[%c1_348, %c3008_349], %248 {strides = array<i32>} : memref<2x4096xf32, #tpu.memory_space<vmem>>, vector<1x64xf32>,
    %c48_350 = arith.constant 48 : index
    %c0_351 = arith.constant 0 : index
    %250 = vector.load %arg12[%c48_350, %c0_351] : memref<64x64xf32, #tpu.memory_space<vmem>>, vector<1x64xf32>
    %c1_352 = arith.constant 1 : index
    %c3072_353 = arith.constant 3072 : index
    %251 = vector.load %arg13[%c1_352, %c3072_353] : memref<2x4096xf32, #tpu.memory_space<vmem>>, vector<1x64xf32>
    tpu.vector_store %arg13[%c1_352, %c3072_353], %250 {strides = array<i32>} : memref<2x4096xf32, #tpu.memory_space<vmem>>, vector<1x64xf32>,
    %c49_354 = arith.constant 49 : index
    %c0_355 = arith.constant 0 : index
    %252 = vector.load %arg12[%c49_354, %c0_355] : memref<64x64xf32, #tpu.memory_space<vmem>>, vector<1x64xf32>
    %c1_356 = arith.constant 1 : index
    %c3136_357 = arith.constant 3136 : index
    %253 = vector.load %arg13[%c1_356, %c3136_357] : memref<2x4096xf32, #tpu.memory_space<vmem>>, vector<1x64xf32>
    tpu.vector_store %arg13[%c1_356, %c3136_357], %252 {strides = array<i32>} : memref<2x4096xf32, #tpu.memory_space<vmem>>, vector<1x64xf32>,
    %c50_358 = arith.constant 50 : index
    %c0_359 = arith.constant 0 : index
    %254 = vector.load %arg12[%c50_358, %c0_359] : memref<64x64xf32, #tpu.memory_space<vmem>>, vector<1x64xf32>
    %c1_360 = arith.constant 1 : index
    %c3200_361 = arith.constant 3200 : index
    %255 = vector.load %arg13[%c1_360, %c3200_361] : memref<2x4096xf32, #tpu.memory_space<vmem>>, vector<1x64xf32>
    tpu.vector_store %arg13[%c1_360, %c3200_361], %254 {strides = array<i32>} : memref<2x4096xf32, #tpu.memory_space<vmem>>, vector<1x64xf32>,
    %c51_362 = arith.constant 51 : index
    %c0_363 = arith.constant 0 : index
    %256 = vector.load %arg12[%c51_362, %c0_363] : memref<64x64xf32, #tpu.memory_space<vmem>>, vector<1x64xf32>
    %c1_364 = arith.constant 1 : index
    %c3264_365 = arith.constant 3264 : index
    %257 = vector.load %arg13[%c1_364, %c3264_365] : memref<2x4096xf32, #tpu.memory_space<vmem>>, vector<1x64xf32>
    tpu.vector_store %arg13[%c1_364, %c3264_365], %256 {strides = array<i32>} : memref<2x4096xf32, #tpu.memory_space<vmem>>, vector<1x64xf32>,
    %c52_366 = arith.constant 52 : index
    %c0_367 = arith.constant 0 : index
    %258 = vector.load %arg12[%c52_366, %c0_367] : memref<64x64xf32, #tpu.memory_space<vmem>>, vector<1x64xf32>
    %c1_368 = arith.constant 1 : index
    %c3328_369 = arith.constant 3328 : index
    %259 = vector.load %arg13[%c1_368, %c3328_369] : memref<2x4096xf32, #tpu.memory_space<vmem>>, vector<1x64xf32>
    tpu.vector_store %arg13[%c1_368, %c3328_369], %258 {strides = array<i32>} : memref<2x4096xf32, #tpu.memory_space<vmem>>, vector<1x64xf32>,
    %c53_370 = arith.constant 53 : index
    %c0_371 = arith.constant 0 : index
    %260 = vector.load %arg12[%c53_370, %c0_371] : memref<64x64xf32, #tpu.memory_space<vmem>>, vector<1x64xf32>
    %c1_372 = arith.constant 1 : index
    %c3392_373 = arith.constant 3392 : index
    %261 = vector.load %arg13[%c1_372, %c3392_373] : memref<2x4096xf32, #tpu.memory_space<vmem>>, vector<1x64xf32>
    tpu.vector_store %arg13[%c1_372, %c3392_373], %260 {strides = array<i32>} : memref<2x4096xf32, #tpu.memory_space<vmem>>, vector<1x64xf32>,
    %c54_374 = arith.constant 54 : index
    %c0_375 = arith.constant 0 : index
    %262 = vector.load %arg12[%c54_374, %c0_375] : memref<64x64xf32, #tpu.memory_space<vmem>>, vector<1x64xf32>
    %c1_376 = arith.constant 1 : index
    %c3456_377 = arith.constant 3456 : index
    %263 = vector.load %arg13[%c1_376, %c3456_377] : memref<2x4096xf32, #tpu.memory_space<vmem>>, vector<1x64xf32>
    tpu.vector_store %arg13[%c1_376, %c3456_377], %262 {strides = array<i32>} : memref<2x4096xf32, #tpu.memory_space<vmem>>, vector<1x64xf32>,
    %c55_378 = arith.constant 55 : index
    %c0_379 = arith.constant 0 : index
    %264 = vector.load %arg12[%c55_378, %c0_379] : memref<64x64xf32, #tpu.memory_space<vmem>>, vector<1x64xf32>
    %c1_380 = arith.constant 1 : index
    %c3520_381 = arith.constant 3520 : index
    %265 = vector.load %arg13[%c1_380, %c3520_381] : memref<2x4096xf32, #tpu.memory_space<vmem>>, vector<1x64xf32>
    tpu.vector_store %arg13[%c1_380, %c3520_381], %264 {strides = array<i32>} : memref<2x4096xf32, #tpu.memory_space<vmem>>, vector<1x64xf32>,
    %c56_382 = arith.constant 56 : index
    %c0_383 = arith.constant 0 : index
    %266 = vector.load %arg12[%c56_382, %c0_383] : memref<64x64xf32, #tpu.memory_space<vmem>>, vector<1x64xf32>
    %c1_384 = arith.constant 1 : index
    %c3584_385 = arith.constant 3584 : index
    %267 = vector.load %arg13[%c1_384, %c3584_385] : memref<2x4096xf32, #tpu.memory_space<vmem>>, vector<1x64xf32>
    tpu.vector_store %arg13[%c1_384, %c3584_385], %266 {strides = array<i32>} : memref<2x4096xf32, #tpu.memory_space<vmem>>, vector<1x64xf32>,
    %c57_386 = arith.constant 57 : index
    %c0_387 = arith.constant 0 : index
    %268 = vector.load %arg12[%c57_386, %c0_387] : memref<64x64xf32, #tpu.memory_space<vmem>>, vector<1x64xf32>
    %c1_388 = arith.constant 1 : index
    %c3648_389 = arith.constant 3648 : index
    %269 = vector.load %arg13[%c1_388, %c3648_389] : memref<2x4096xf32, #tpu.memory_space<vmem>>, vector<1x64xf32>
    tpu.vector_store %arg13[%c1_388, %c3648_389], %268 {strides = array<i32>} : memref<2x4096xf32, #tpu.memory_space<vmem>>, vector<1x64xf32>,
    %c58_390 = arith.constant 58 : index
    %c0_391 = arith.constant 0 : index
    %270 = vector.load %arg12[%c58_390, %c0_391] : memref<64x64xf32, #tpu.memory_space<vmem>>, vector<1x64xf32>
    %c1_392 = arith.constant 1 : index
    %c3712_393 = arith.constant 3712 : index
    %271 = vector.load %arg13[%c1_392, %c3712_393] : memref<2x4096xf32, #tpu.memory_space<vmem>>, vector<1x64xf32>
    tpu.vector_store %arg13[%c1_392, %c3712_393], %270 {strides = array<i32>} : memref<2x4096xf32, #tpu.memory_space<vmem>>, vector<1x64xf32>,
    %c59_394 = arith.constant 59 : index
    %c0_395 = arith.constant 0 : index
    %272 = vector.load %arg12[%c59_394, %c0_395] : memref<64x64xf32, #tpu.memory_space<vmem>>, vector<1x64xf32>
    %c1_396 = arith.constant 1 : index
    %c3776_397 = arith.constant 3776 : index
    %273 = vector.load %arg13[%c1_396, %c3776_397] : memref<2x4096xf32, #tpu.memory_space<vmem>>, vector<1x64xf32>
    tpu.vector_store %arg13[%c1_396, %c3776_397], %272 {strides = array<i32>} : memref<2x4096xf32, #tpu.memory_space<vmem>>, vector<1x64xf32>,
    %c60_398 = arith.constant 60 : index
    %c0_399 = arith.constant 0 : index
    %274 = vector.load %arg12[%c60_398, %c0_399] : memref<64x64xf32, #tpu.memory_space<vmem>>, vector<1x64xf32>
    %c1_400 = arith.constant 1 : index
    %c3840_401 = arith.constant 3840 : index
    %275 = vector.load %arg13[%c1_400, %c3840_401] : memref<2x4096xf32, #tpu.memory_space<vmem>>, vector<1x64xf32>
    tpu.vector_store %arg13[%c1_400, %c3840_401], %274 {strides = array<i32>} : memref<2x4096xf32, #tpu.memory_space<vmem>>, vector<1x64xf32>,
    %c61_402 = arith.constant 61 : index
    %c0_403 = arith.constant 0 : index
    %276 = vector.load %arg12[%c61_402, %c0_403] : memref<64x64xf32, #tpu.memory_space<vmem>>, vector<1x64xf32>
    %c1_404 = arith.constant 1 : index
    %c3904_405 = arith.constant 3904 : index
    %277 = vector.load %arg13[%c1_404, %c3904_405] : memref<2x4096xf32, #tpu.memory_space<vmem>>, vector<1x64xf32>
    tpu.vector_store %arg13[%c1_404, %c3904_405], %276 {strides = array<i32>} : memref<2x4096xf32, #tpu.memory_space<vmem>>, vector<1x64xf32>,
    %c62_406 = arith.constant 62 : index
    %c0_407 = arith.constant 0 : index
    %278 = vector.load %arg12[%c62_406, %c0_407] : memref<64x64xf32, #tpu.memory_space<vmem>>, vector<1x64xf32>
    %c1_408 = arith.constant 1 : index
    %c3968_409 = arith.constant 3968 : index
    %279 = vector.load %arg13[%c1_408, %c3968_409] : memref<2x4096xf32, #tpu.memory_space<vmem>>, vector<1x64xf32>
    tpu.vector_store %arg13[%c1_408, %c3968_409], %278 {strides = array<i32>} : memref<2x4096xf32, #tpu.memory_space<vmem>>, vector<1x64xf32>,
    %c63_410 = arith.constant 63 : index
    %c0_411 = arith.constant 0 : index
    %280 = vector.load %arg12[%c63_410, %c0_411] : memref<64x64xf32, #tpu.memory_space<vmem>>, vector<1x64xf32>
    %c1_412 = arith.constant 1 : index
    %c4032_413 = arith.constant 4032 : index
    %281 = vector.load %arg13[%c1_412, %c4032_413] : memref<2x4096xf32, #tpu.memory_space<vmem>>, vector<1x64xf32>
    tpu.vector_store %arg13[%c1_412, %c4032_413], %280 {strides = array<i32>} : memref<2x4096xf32, #tpu.memory_space<vmem>>, vector<1x64xf32>,
    %c0_414 = arith.constant 0 : index
    %c0_415 = arith.constant 0 : index
    %282 = vector.load %arg13[%c0_414, %c0_415] : memref<2x4096xf32, #tpu.memory_space<vmem>>, vector<2x4096xf32>
    %283 = arith.truncf %282 : vector<2x4096xf32> to vector<2x4096xbf16>
    %c0_416 = arith.constant 0 : index
    %c0_417 = arith.constant 0 : index
    %284 = vector.load %arg5[%c0_416, %c0_417] : memref<4096x512xbf16, #tpu.memory_space<vmem>>, vector<4096x512xbf16>
    %cst_418 = arith.constant dense<0.000000e+00> : vector<2x512xf32>
    %285 = tpu.matmul %283, %284, %cst_418 {dimension_numbers = #tpu.dot_dimension_numbers<[1], [0], [0], [1], [0, 0, 1, 1], [], []>} : vector<2x4096xbf16>, vector<4096x512xbf16>, vector<2x512xf32> -> vector<2x512xf32>
    %c0_419 = arith.constant 0 : index
    %c0_420 = arith.constant 0 : index
    %286 = vector.load %arg6[%c0_419, %c0_420] : memref<1x512xf32, #tpu.memory_space<vmem>>, vector<1x512xf32>
    %287 = vector.broadcast %286 : vector<1x512xf32> to vector<2x512xf32>
    %288 = arith.addf %285, %287 : vector<2x512xf32>
    %cst_421 = arith.constant 0.000000e+00 : f32
    %289 = vector.broadcast %cst_421 : f32 to vector<2x512xf32>
    %290 = arith.maximumf %288, %289 : vector<2x512xf32>
    %c0_422 = arith.constant 0 : index
    %c0_423 = arith.constant 0 : index
    %291 = vector.load %arg7[%c0_422, %c0_423] : memref<512x32xf32, #tpu.memory_space<vmem>>, vector<512x32xf32>
    %cst_424 = arith.constant dense<0.000000e+00> : vector<2x32xf32>
    %292 = tpu.matmul %290, %291, %cst_424 {dimension_numbers = #tpu.dot_dimension_numbers<[1], [0], [0], [1], [0, 0, 1, 1], [], []>} : vector<2x512xf32>, vector<512x32xf32>, vector<2x32xf32> -> vector<2x32xf32>
    %c0_425 = arith.constant 0 : index
    %c0_426 = arith.constant 0 : index
    %293 = vector.load %arg8[%c0_425, %c0_426] : memref<1x32xf32, #tpu.memory_space<vmem>>, vector<1x32xf32>
    %294 = vector.broadcast %293 : vector<1x32xf32> to vector<2x32xf32>
    %295 = arith.addf %292, %294 : vector<2x32xf32>
    %cst_427 = arith.constant 0.000000e+00 : f32
    %296 = vector.broadcast %cst_427 : f32 to vector<2x32xf32>
    %297 = arith.maximumf %295, %296 : vector<2x32xf32>
    %c0_428 = arith.constant 0 : index
    %c0_429 = arith.constant 0 : index
    %298 = vector.load %arg9[%c0_428, %c0_429] : memref<32x1xf32, #tpu.memory_space<vmem>>, vector<32x1xf32>
    %cst_430 = arith.constant dense<0.000000e+00> : vector<2x1xf32>
    %299 = tpu.matmul %297, %298, %cst_430 {dimension_numbers = #tpu.dot_dimension_numbers<[1], [0], [0], [1], [0, 0, 1, 1], [], []>} : vector<2x32xf32>, vector<32x1xf32>, vector<2x1xf32> -> vector<2x1xf32>
    %c0_431 = arith.constant 0 : index
    %c0_432 = arith.constant 0 : index
    %300 = vector.load %arg10[%c0_431, %c0_432] : memref<1x1xf32, #tpu.memory_space<vmem>>, vector<1x1xf32>
    %301 = vector.broadcast %300 : vector<1x1xf32> to vector<2x1xf32>
    %302 = arith.addf %299, %301 : vector<2x1xf32>
    %303 = arith.negf %302 : vector<2x1xf32>
    %304 = math.exp %303 : vector<2x1xf32>
    %cst_433 = arith.constant 1.000000e+00 : f32
    %305 = vector.broadcast %cst_433 : f32 to vector<2x1xf32>
    %306 = arith.addf %305, %304 : vector<2x1xf32>
    %307 = arith.divf %305, %306 : vector<2x1xf32>
    %c0_434 = arith.constant 0 : index
    %c0_435 = arith.constant 0 : index
    %308 = vector.load %arg11[%c0_434, %c0_435] : memref<2x1xf32, #tpu.memory_space<vmem>>, vector<2x1xf32>
    tpu.vector_store %arg11[%c0_434, %c0_435], %307 {strides = array<i32>} : memref<2x1xf32, #tpu.memory_space<vmem>>, vector<2x1xf32>,
    return
  }
}

</mosaic_0001>

<bundles_post_ra>
// kernel: adversarial_network_forward.1
= control target key start
LH: loop header
LB: loop body
LE: loop exit
PB: predicated region body
PF: predicated region fallthrough
CT: control target
= control target key end

     0   :  { %s14557_s0 = inlined_call_operand.vmem [shape: f32[2,256,64], index: 0, kind: input, shape index: {}]   ;;  %s14558_s1 = inlined_call_operand.hbm [shape: f32[128,256], index: 1, kind: input, shape index: {}]   ;;  %s14559_s2 = inlined_call_operand.vmem [shape: f32[128,1], index: 2, kind: input, shape index: {}]   ;;  %s14560_s3 = inlined_call_operand.hbm [shape: f32[64,128], index: 3, kind: input, shape index: {}]   ;;  %s14561_s4 = inlined_call_operand.vmem [shape: f32[64,1], index: 4, kind: input, shape index: {}]   ;;  %s14562_s5 = inlined_call_operand.hbm [shape: bf16[4096,512], index: 5, kind: input, shape index: {}]   ;;  %s14563_s6 = inlined_call_operand.hbm [shape: f32[1,512], index: 6, kind: input, shape index: {}]   ;;  %s14564_s7 = inlined_call_operand.vmem [shape: f32[512,32], index: 7, kind: input, shape index: {}]   ;;  %s14565_s8 = inlined_call_operand.hbm [shape: f32[1,32], index: 8, kind: input, shape index: {}]   ;;  %s14566_s9 = inlined_call_operand.vmem [shape: f32[32,1], index: 9, kind: input, shape index: {}]   ;;  %s14567_s10 = inlined_call_operand.<no memory space> [shape: f32[1,1], index: 10, kind: input, shape index: {}]   ;;  %s14568_s11 = inlined_call_operand.vmem [shape: f32[2,1], index: 11, kind: output, shape index: {}]  }
   0x1   :  { %v16_v0 = vstv %s14567_s10 }
   0x2   :  { %17 = vst [vmem:[#allocation4] sm:$0x1] %v16_v0 }
   0x3   :  { %18 = vsyncpa [#allocation6], 0 }
   0x4   :  { %19 = vsyncpa [#allocation8], 0 }
   0x5   :  { %20 = vsyncpa [#allocation11], 0  ;;  %s13560_s19 = smov [#allocation7]   ;;  %s13444_s23 = scalar_lea.hbm %s14560_s3, 1024 }
   0x6   :  { %s42_s20 = sshll.u32 %s13560_s19, 4  ;;  %p13445_p0 = scmp.ne.s32.totalorder %s14560_s3, %s13444_s23  ;;  %s43_s20 = int_to_ptr.vmem [resolvable:$true] %s42_s20 }
   0x7   :  { %p13448_p1 = scmp.lt.u32.totalorder %s13444_s23, %s14560_s3 }
   0x9   :  { %p13450_p2 = pnand %p13448_p1, %p13445_p0 }
   0xb   :  { %13453 = shalt.err (!%p13450_p2)
}
   0xc   :  { %s13454_s10 = scalar_lea.vmem %s43_s20, 1024  ;;  %p13459_p4 = scmp.lt.s32.totalorder %s43_s20, %s43_s20 }
   0xd   :  { %p13455_p3 = scmp.ne.s32.totalorder %s43_s20, %s13454_s10  ;;  %p13460_p5 = scmp.lt.s32.totalorder %s13454_s10, %s13454_s10 }
   0xf   :  { %p13461_p6 = por %p13460_p5, %p13459_p4 }
  0x11   :  { %p13462_p7 = pnand %p13461_p6, %p13455_p3 }
  0x13   :  { %13465 = shalt.err (!%p13462_p7)
}
  0x14   :  { %s13561_s28 = smov 128   ;;  %s13562_s29 = smov 8  }
  0x15   :  { %48 = dma.hbm_to_vmem [thread:$0]  %s14560_s3, 1024, %s43_s20, [#allocation8], %s13561_s28, %s13561_s28, %s13562_s29  }
  0x16   :  { %s13563_s13 = smov [#allocation10]   ;;  %s13564_s15 = smov [#allocation5]  }
  0x17   :  { %s69_s14 = sshll.u32 %s13563_s13, 4  ;;  %s28_s16 = sshll.u32 %s13564_s15, 4  ;;  %s70_s14 = int_to_ptr.vmem [resolvable:$true] %s69_s14  ;;  %s29_s16 = int_to_ptr.vmem [resolvable:$true] %s28_s16 }
  0x18   :  { %s13466_s19 = scalar_lea.hbm %s14563_s6, 64 }
  0x19   :  { %p13467_p8 = scmp.ne.s32.totalorder %s14563_s6, %s13466_s19  ;;  %p13470_p9 = scmp.lt.u32.totalorder %s13466_s19, %s14563_s6 }
  0x1b   :  { %p13472_p10 = pnand %p13470_p9, %p13467_p8 }
  0x1d   :  { %13475 = shalt.err (!%p13472_p10)
}
  0x1e   :  { %s13476_s3 = scalar_lea.vmem %s70_s14, 64  ;;  %p13481_p12 = scmp.lt.s32.totalorder %s70_s14, %s70_s14 }
  0x1f   :  { %p13477_p11 = scmp.ne.s32.totalorder %s70_s14, %s13476_s3  ;;  %p13482_p13 = scmp.lt.s32.totalorder %s13476_s3, %s13476_s3 }
  0x21   :  { %p13483_p0 = por %p13482_p13, %p13481_p12 }
  0x23   :  { %p13484_p1 = pnand %p13483_p0, %p13477_p11 }
  0x25   :  { %13487 = shalt.err (!%p13484_p1)
}
  0x26   :  { %72 = dma.hbm_to_vmem [thread:$0]  %s14563_s6, 64, %s70_s14, [#allocation11]  }
  0x27   :  { %s13488_s10 = scalar_lea.hbm %s14558_s1, 4096 }
  0x28   :  { %p13489_p2 = scmp.ne.s32.totalorder %s14558_s1, %s13488_s10  ;;  %p13492_p3 = scmp.lt.u32.totalorder %s13488_s10, %s14558_s1 }
  0x2a   :  { %p13494_p4 = pnand %p13492_p3, %p13489_p2 }
  0x2c   :  { %13497 = shalt.err (!%p13494_p4)
}
  0x2d   :  { %s13498_s13 = scalar_lea.vmem %s29_s16, 4096  ;;  %p13503_p6 = scmp.lt.s32.totalorder %s29_s16, %s29_s16 }
  0x2e   :  { %p13499_p5 = scmp.ne.s32.totalorder %s29_s16, %s13498_s13  ;;  %p13504_p7 = scmp.lt.s32.totalorder %s13498_s13, %s13498_s13 }
  0x30   :  { %p13505_p8 = por %p13504_p7, %p13503_p6 }
  0x32   :  { %p13506_p9 = pnand %p13505_p8, %p13499_p5 }
  0x34   :  { %13509 = shalt.err (!%p13506_p9)
}
  0x35   :  { %s13565_s6 = smov 256   ;;  %s13566_s14 = smov 16  }
  0x36   :  { %34 = dma.hbm_to_vmem [thread:$0]  %s14558_s1, 4096, %s29_s16, [#allocation6], %s13565_s6, %s13565_s6, %s13566_s14  }
  0x37   :  { %s13567_s18 = smov [#allocation9]   ;;  %s13568_s21 = smov [#allocation12]  }
  0x38   :  { %s56_s19 = sshll.u32 %s13567_s18, 4  ;;  %s81_s22 = sshll.u32 %s13568_s21, 4  ;;  %s57_s19 = int_to_ptr.vmem [resolvable:$true] %s56_s19  ;;  %s82_s22 = int_to_ptr.vmem [resolvable:$true] %s81_s22 }
  0x39   :  { %s13510_s3 = scalar_lea.hbm %s14562_s5, 131072 }
  0x3a   :  { %p13511_p10 = scmp.ne.s32.totalorder %s14562_s5, %s13510_s3  ;;  %p13514_p11 = scmp.lt.u32.totalorder %s13510_s3, %s14562_s5 }
  0x3c   :  { %p13516_p12 = pnand %p13514_p11, %p13511_p10 }
  0x3e   :  { %13519 = shalt.err (!%p13516_p12)
}
  0x3f   :  { %s13520_s1 = scalar_lea.vmem %s57_s19, 131072  ;;  %p13525_p0 = scmp.lt.s32.totalorder %s57_s19, %s57_s19 }
  0x40   :  { %p13521_p13 = scmp.ne.s32.totalorder %s57_s19, %s13520_s1  ;;  %p13526_p1 = scmp.lt.s32.totalorder %s13520_s1, %s13520_s1 }
  0x42   :  { %p13527_p2 = por %p13526_p1, %p13525_p0 }
  0x44   :  { %p13528_p3 = pnand %p13527_p2, %p13521_p13 }
  0x46   :  { %13531 = shalt.err (!%p13528_p3)
}
  0x47   :  { %62 = dma.hbm_to_vmem [thread:$0]  %s14562_s5, 131072, %s57_s19, [#allocation8], %s13565_s6, %s13565_s6, %s13566_s14  }
  0x48   :  { %s13532_s30 = scalar_lea.hbm %s14565_s8, 16 }
  0x49   :  { %p13533_p4 = scmp.ne.s32.totalorder %s14565_s8, %s13532_s30  ;;  %p13536_p5 = scmp.lt.u32.totalorder %s13532_s30, %s14565_s8 }
  0x4b   :  { %p13538_p6 = pnand %p13536_p5, %p13533_p4 }
  0x4d   :  { %13541 = shalt.err (!%p13538_p6)
}
  0x4e   :  { %s13542_s18 = scalar_lea.vmem %s82_s22, 16  ;;  %s13546_s21 = scalar_lea.vmem %s82_s22, 32 }
  0x4f   :  { %p13543_p7 = scmp.ne.s32.totalorder %s82_s22, %s13542_s18  ;;  %p13547_p8 = scmp.lt.s32.totalorder %s82_s22, %s82_s22 }
  0x50   :  { %p13548_p9 = scmp.lt.s32.totalorder %s13546_s21, %s13542_s18 }
  0x52   :  { %p13549_p10 = por %p13548_p9, %p13547_p8 }
  0x54   :  { %p13550_p11 = pnand %p13549_p10, %p13543_p7 }
  0x56   :  { %13553 = shalt.err (!%p13550_p11)
}
  0x57   :  { %84 = dma.hbm_to_vmem [thread:$0]  %s14565_s8, 16, %s82_s22, [#allocation11]  }
  0x58   :  { %13554 = dma.done.wait [#allocation6], 4096  }
  0x59   :  { %13555 = vsyncadd [#allocation6], 4294963200 }
  0x5a   :  { %13556 = dma.done.wait [#allocation8], 132096  }
  0x5b   :  { %13557 = vsyncadd [#allocation8], 4294835200 }
  0x5c   :  { %13558 = dma.done.wait [#allocation11], 80  }
  0x5d   :  { %13559 = vsyncadd [#allocation11], 4294967216  ;;  %v13569_v1 = vmov 0   ;;  %v120_v2 = vld [vmem:[%s14557_s0 + $0x80] sm:$0xff]  ;;  %v121_v3 = vld [vmem:[%s14557_s0 + $0x88] sm:$0xff]  ;;  %vm570_vm0 = vcmask 523264  }
  0x5e   :  { %11869 = vset.pattern.permute.xlu0 %v13569_v1  ;;  %11870 = vset.pattern.permute.xlu1 %v13569_v1  ;;  %v104_v4 = vld [vmem:[%s14557_s0] sm:$0xff]  ;;  %v11532_v5 = vpack.c.bf16 %v121_v3, %v120_v2  ;;  %v105_v6 = vld [vmem:[%s14557_s0 + $0x8] sm:$0xff]  ;;  %v122_v7 = vld [vmem:[%s14557_s0 + $0x90] sm:$0xff]  ;;  %vm580_vm1 = vcmask 516096   ;;  %vm594_vm2 = vcmask 1040896   ;;  %vm13573_vm3 = vmmov 0  }
  0x5f   :  { %v123_v8 = vld [vmem:[%s14557_s0 + $0x98] sm:$0xff]  ;;  %v11534_v9 = vpack.c.bf16 %v105_v6, %v104_v4  ;;  %v106_v11 = vld [vmem:[%s14557_s0 + $0x10] sm:$0xff]  ;;  %v124_v13 = vld [vmem:[%s14557_s0 + $0xa0] sm:$0xff]  ;;  %vm9937_vm4 = vcmask 261120   ;;  %vm10017_vm5 = vcmask 1024  }
  0x60   :  { %v11536_v10 = vpack.c.bf16 %v123_v8, %v122_v7  ;;  %v107_v12 = vld [vmem:[%s14557_s0 + $0x18] sm:$0xff]  ;;  %11533 = vmatprep.subr.bf16.mxu0 %v11532_v5  ;;  %v125_v14 = vld [vmem:[%s14557_s0 + $0xa8] sm:$0xff]  ;;  %v108_v17 = vld [vmem:[%s14557_s0 + $0x20] sm:$0xff] }
  0x61   :  { %11535 = vmatpush3.bf16.msra.mxu0 %v11534_v9  ;;  %v11538_v15 = vpack.c.bf16 %v107_v12, %v106_v11  ;;  %v11540_v16 = vpack.c.bf16 %v125_v14, %v124_v13  ;;  %v109_v18 = vld [vmem:[%s14557_s0 + $0x28] sm:$0xff]  ;;  %v126_v19 = vld [vmem:[%s14557_s0 + $0xb0] sm:$0xff]  ;;  %v127_v20 = vld [vmem:[%s14557_s0 + $0xb8] sm:$0xff] }
  0x62   :  { %11537 = vmatprep.subr.bf16.mxu0 %v11536_v10  ;;  %v11542_v21 = vpack.c.bf16 %v109_v18, %v108_v17  ;;  %v11544_v22 = vpack.c.bf16 %v127_v20, %v126_v19  ;;  %v110_v23 = vld [vmem:[%s14557_s0 + $0x30] sm:$0xff]  ;;  %v111_v24 = vld [vmem:[%s14557_s0 + $0x38] sm:$0xff]  ;;  %v128_v25 = vld [vmem:[%s14557_s0 + $0xc0] sm:$0xff] }
  0x63   :  { %v129_v26 = vld [vmem:[%s14557_s0 + $0xc8] sm:$0xff]  ;;  %v11546_v28 = vpack.c.bf16 %v111_v24, %v110_v23  ;;  %v112_v30 = vld [vmem:[%s14557_s0 + $0x40] sm:$0xff]  ;;  %v130_v32 = vld [vmem:[%s14557_s0 + $0xd0] sm:$0xff] }
  0x64   :  { %v137_v27 = vld [vmem:[#allocation5 + $0x8] sm:$0xff]  ;;  %v11548_v29 = vpack.c.bf16 %v129_v26, %v128_v25  ;;  %v131_v33 = vld [vmem:[%s14557_s0 + $0xd8] sm:$0xff]  ;;  %v132_v38 = vld [vmem:[%s14557_s0 + $0xe0] sm:$0xff] }
  0x65   :  { %11539 = vmatpush3.bf16.msra.mxu0 %v11538_v15  ;;  %328 = vmatprep.mubr.f32.mxu0 %v137_v27  ;;  %v113_v31 = vld [vmem:[%s14557_s0 + $0x48] sm:$0xff]  ;;  %v11552_v35 = vpack.c.bf16 %v131_v33, %v130_v32  ;;  %v114_v36 = vld [vmem:[%s14557_s0 + $0x50] sm:$0xff]  ;;  %v115_v37 = vld [vmem:[%s14557_s0 + $0x58] sm:$0xff] }
  0x66   :  { %11541 = vmatprep.subr.bf16.mxu0 %v11540_v16  ;;  %v11550_v34 = vpack.c.bf16 %v113_v31, %v112_v30  ;;  %v133_v39 = vld [vmem:[%s14557_s0 + $0xe8] sm:$0xff]  ;;  %v13779_v40 = vld [vmem:[%s14559_s2] sm:$0xff]  ;;  %v11554_v41 = vpack.c.bf16 %v115_v37, %v114_v36  ;;  %v13785_v42 = vld [vmem:[%s14559_s2 + $0x10] sm:$0xff] }
  0x67   :  { %186 = vperm.xlu0 %11869, %v13779_v40   ;;  %v11556_v43 = vpack.c.bf16 %v133_v39, %v132_v38  ;;  %v116_v44 = vld [vmem:[%s14557_s0 + $0x60] sm:$0xff]  ;;  %v117_v45 = vld [vmem:[%s14557_s0 + $0x68] sm:$0xff]  ;;  %196 = vperm.xlu1 %11870, %v13785_v42   ;;  %v134_v47 = vld [vmem:[%s14557_s0 + $0xf0] sm:$0xff] }
  0x68   :  { %v169_v46 = vld [vmem:[%s14559_s2 + $0x8] sm:$0xff]  ;;  %v135_v48 = vld [vmem:[%s14557_s0 + $0xf8] sm:$0xff]  ;;  %v11558_v50 = vpack.c.bf16 %v117_v45, %v116_v44  ;;  %v118_v52 = vld [vmem:[%s14557_s0 + $0x70] sm:$0xff] }
  0x69   :  { %11543 = vmatpush3.bf16.msra.mxu0 %v11542_v21  ;;  %v13806_v49 = vld [vmem:[%s14559_s2 + $0x18] sm:$0xff]  ;;  %v11560_v51 = vpack.c.bf16 %v135_v48, %v134_v47  ;;  %v172_v54 = vld [vmem:[%s14559_s2 + $0x20] sm:$0xff]  ;;  %v173_v55 = vld [vmem:[%s14559_s2 + $0x28] sm:$0xff] }
  0x6a   :  { %11545 = vmatprep.subr.bf16.mxu0 %v11544_v22  ;;  %v119_v53 = vld [vmem:[%s14557_s0 + $0x78] sm:$0xff]  ;;  %v13824_v56 = vld [vmem:[%s14559_s2 + $0x30] sm:$0xff]  ;;  %v136_v59 = vld [vmem:[#allocation5] sm:$0xff] }
  0x6b   :  { %191 = vperm.xlu0 %11869, %v169_v46   ;;  %201 = vperm.xlu1 %11870, %v13806_v49   ;;  %v11562_v57 = vpack.c.bf16 %v119_v53, %v118_v52  ;;  %v175_v58 = vld [vmem:[%s14559_s2 + $0x38] sm:$0xff]  ;;  %v176_v61 = vld [vmem:[%s14559_s2 + $0x40] sm:$0xff]  ;;  %v177_v62 = vld [vmem:[%s14559_s2 + $0x48] sm:$0xff] }
  0x6c   :  { %v139_v60 = vld [vmem:[#allocation5 + $0x18] sm:$0xff]  ;;  %v138_v63 = vld [vmem:[#allocation5 + $0x10] sm:$0xff]  ;;  %v141_v0 = vld [vmem:[#allocation5 + $0x28] sm:$0xff] }
  0x6d   :  { %11547 = vmatpush3.bf16.msra.mxu0 %v11546_v28  ;;  %v178_v1 = vld [vmem:[%s14559_s2 + $0x50] sm:$0xff]  ;;  %v179_v2 = vld [vmem:[%s14559_s2 + $0x58] sm:$0xff]  ;;  %v140_v3 = vld [vmem:[#allocation5 + $0x20] sm:$0xff] }
  0x6e   :  { %11549 = vmatprep.subr.bf16.mxu0 %v11548_v29  ;;  %v143_v4 = vld [vmem:[#allocation5 + $0x38] sm:$0xff]  ;;  %v181_v6 = vld [vmem:[%s14559_s2 + $0x68] sm:$0xff]  ;;  %v142_v7 = vld [vmem:[#allocation5 + $0x30] sm:$0xff] }
  0x6f   :  { %206 = vperm.xlu0 %11869, %v172_v54   ;;  %211 = vperm.xlu1 %11870, %v173_v55   ;;  %v180_v5 = vld [vmem:[%s14559_s2 + $0x60] sm:$0xff]  ;;  %v145_v8 = vld [vmem:[#allocation5 + $0x48] sm:$0xff]  ;;  %v183_v10 = vld [vmem:[%s14559_s2 + $0x78] sm:$0xff] }
  0x70   :  { %v182_v9 = vld [vmem:[%s14559_s2 + $0x70] sm:$0xff]  ;;  %v144_v11 = vld [vmem:[#allocation5 + $0x40] sm:$0xff]  ;;  %v147_v12 = vld [vmem:[#allocation5 + $0x58] sm:$0xff] }
  0x71   :  { %11551 = vmatpush3.bf16.msra.mxu0 %v11550_v34  ;;  %v146_v13 = vld [vmem:[#allocation5 + $0x50] sm:$0xff]  ;;  %v149_v14 = vld [vmem:[#allocation5 + $0x68] sm:$0xff]  ;;  %v148_v15 = vld [vmem:[#allocation5 + $0x60] sm:$0xff] }
  0x72   :  { %11553 = vmatprep.subr.bf16.mxu0 %v11552_v35  ;;  %v151_v16 = vld [vmem:[#allocation5 + $0x78] sm:$0xff]  ;;  %v150_v17 = vld [vmem:[#allocation5 + $0x70] sm:$0xff]  ;;  %v153_v18 = vld [vmem:[#allocation5 + $0x88] sm:$0xff] }
  0x73   :  { %216 = vperm.xlu0 %11869, %v13824_v56   ;;  %221 = vperm.xlu1 %11870, %v175_v58   ;;  %v152_v19 = vld [vmem:[#allocation5 + $0x80] sm:$0xff]  ;;  %v155_v20 = vld [vmem:[#allocation5 + $0x98] sm:$0xff]  ;;  %v154_v21 = vld [vmem:[#allocation5 + $0x90] sm:$0xff] }
  0x74   :  { %v157_v22 = vld [vmem:[#allocation5 + $0xa8] sm:$0xff]  ;;  %v156_v23 = vld [vmem:[#allocation5 + $0xa0] sm:$0xff]  ;;  %v159_v24 = vld [vmem:[#allocation5 + $0xb8] sm:$0xff] }
  0x75   :  { %11555 = vmatpush3.bf16.msra.mxu0 %v11554_v41  ;;  %v158_v25 = vld [vmem:[#allocation5 + $0xb0] sm:$0xff]  ;;  %v161_v26 = vld [vmem:[#allocation5 + $0xc8] sm:$0xff]  ;;  %v160_v27 = vld [vmem:[#allocation5 + $0xc0] sm:$0xff] }
  0x76   :  { %11557 = vmatprep.subr.bf16.mxu0 %v11556_v43  ;;  %v163_v28 = vld [vmem:[#allocation5 + $0xd8] sm:$0xff]  ;;  %v162_v30 = vld [vmem:[#allocation5 + $0xd0] sm:$0xff]  ;;  %v165_v31 = vld [vmem:[#allocation5 + $0xe8] sm:$0xff] }
  0x77   :  { %226 = vperm.xlu0 %11869, %v176_v61   ;;  %231 = vperm.xlu1 %11870, %v177_v62   ;;  %v417_v29 = vld [vmem:[%s14561_s4] sm:$0xff]  ;;  %v166_v34 = vld [vmem:[#allocation5 + $0xf0] sm:$0xff] }
  0x78   :  { %v164_v32 = vld [vmem:[#allocation5 + $0xe0] sm:$0xff]  ;;  %v167_v33 = vld [vmem:[#allocation5 + $0xf8] sm:$0xff] }
  0x79   :  { %11559 = vmatpush3.bf16.msra.mxu0 %v11558_v50  ;;  %v409_v35 = vld [vmem:[#allocation7] sm:$0xff] }
  0x7a   :  { %11561 = vmatprep.subr.bf16.mxu0 %v11560_v51  ;;  %11465 = vmatprep.mubr.f32.mxu1 %v409_v35 }
  0x7b   :  { %236 = vperm.xlu0 %11869, %v178_v1   ;;  %241 = vperm.xlu1 %11870, %v179_v2  }
  0x7d   :  { %11563 = vmatpush3.bf16.msra.mxu0 %v11562_v57 }
  0x7f   :  { %246 = vperm.xlu0 %11869, %v180_v5   ;;  %251 = vperm.xlu1 %11870, %v181_v6  }
  0x80   :  { %329 = vmatmul.mubr.f32.vlgmr.msra.gmra.mrb[0].mxu0 %v136_v59 }
  0x81   :  { %333 = vmatprep.mubr.f32.mxu0 %v139_v60 }
  0x83   :  { %256 = vperm.xlu0 %11869, %v182_v9   ;;  %261 = vperm.xlu1 %11870, %v183_v10  }
  0x84   :  { %334 = vmatmul.mubr.f32.gmra.mrb[2].mxu0 %v138_v63 }
  0x85   :  { %338 = vmatprep.mubr.f32.mxu0 %v141_v0 }
  0x87   :  { %1144 = vperm.xlu0 %11869, %v13779_v40   ;;  %1149 = vperm.xlu1 %11870, %v169_v46  }
  0x88   :  { %339 = vmatmul.mubr.f32.gmra.mrb[4].mxu0 %v140_v3 }
  0x89   :  { %343 = vmatprep.mubr.f32.mxu0 %v143_v4 }
  0x8b   :  { %1154 = vperm.xlu0 %11869, %v13785_v42   ;;  %1159 = vperm.xlu1 %11870, %v13806_v49  }
  0x8c   :  { %344 = vmatmul.mubr.f32.gmra.mrb[6].mxu0 %v142_v7 }
  0x8d   :  { %348 = vmatprep.mubr.f32.mxu0 %v145_v8 }
  0x8f   :  { %1164 = vperm.xlu0 %11869, %v172_v54   ;;  %1169 = vperm.xlu1 %11870, %v173_v55  }
  0x90   :  { %349 = vmatmul.mubr.f32.gmra.mrb[8].mxu0 %v144_v11 }
  0x91   :  { %353 = vmatprep.mubr.f32.mxu0 %v147_v12 }
  0x93   :  { %1174 = vperm.xlu0 %11869, %v13824_v56   ;;  %1179 = vperm.xlu1 %11870, %v175_v58  }
  0x94   :  { %354 = vmatmul.mubr.f32.gmra.mrb[10].mxu0 %v146_v13 }
  0x95   :  { %358 = vmatprep.mubr.f32.mxu0 %v149_v14 }
  0x97   :  { %1184 = vperm.xlu0 %11869, %v176_v61   ;;  %1189 = vperm.xlu1 %11870, %v177_v62  }
  0x98   :  { %359 = vmatmul.mubr.f32.gmra.mrb[12].mxu0 %v148_v15 }
  0x99   :  { %363 = vmatprep.mubr.f32.mxu0 %v151_v16 }
  0x9b   :  { %1194 = vperm.xlu0 %11869, %v178_v1   ;;  %1199 = vperm.xlu1 %11870, %v179_v2  }
  0x9c   :  { %364 = vmatmul.mubr.f32.gmra.mrb[14].mxu0 %v150_v17 }
  0x9d   :  { %368 = vmatprep.mubr.f32.mxu0 %v153_v18 }
  0x9f   :  { %1204 = vperm.xlu0 %11869, %v180_v5   ;;  %1209 = vperm.xlu1 %11870, %v181_v6  }
  0xa0   :  { %369 = vmatmul.mubr.f32.gmra.mrb[16].mxu0 %v152_v19 }
  0xa1   :  { %373 = vmatprep.mubr.f32.mxu0 %v155_v20 }
  0xa3   :  { %1214 = vperm.xlu0 %11869, %v182_v9   ;;  %1219 = vperm.xlu1 %11870, %v183_v10  }
  0xa4   :  { %374 = vmatmul.mubr.f32.gmra.mrb[18].mxu0 %v154_v21 }
  0xa5   :  { %378 = vmatprep.mubr.f32.mxu0 %v157_v22 }
  0xa7   :  { %427 = vperm.xlu0 %11869, %v417_v29   ;;  %1385 = vperm.xlu1 %11870, %v417_v29  }
  0xa8   :  { %379 = vmatmul.mubr.f32.gmra.mrb[20].mxu0 %v156_v23 }
  0xa9   :  { %383 = vmatprep.mubr.f32.mxu0 %v159_v24 }
  0xac   :  { %384 = vmatmul.mubr.f32.gmra.mrb[22].mxu0 %v158_v25 }
  0xad   :  { %388 = vmatprep.mubr.f32.mxu0 %v161_v26 }
  0xb0   :  { %389 = vmatmul.mubr.f32.gmra.mrb[24].mxu0 %v160_v27 }
  0xb1   :  { %393 = vmatprep.mubr.f32.mxu0 %v163_v28 }
  0xb4   :  { %394 = vmatmul.mubr.f32.gmra.mrb[26].mxu0 %v162_v30 }
  0xb5   :  { %398 = vmatprep.mubr.f32.mxu0 %v165_v31 }
  0xb8   :  { %399 = vmatmul.mubr.f32.gmra.mrb[28].mxu0 %v164_v32 }
  0xb9   :  { %403 = vmatprep.mubr.f32.mxu0 %v167_v33 }
  0xbc   :  { %404 = vmatmul.mubr.f32.gmra.mrb[30].mxu0 %v166_v34 }
  0xbd   :  { %11509 = vmatprep.mubr.f32.mxu0 %v409_v35 }
  0xe6   :  { %v187_v37 = vpop.permute.xlu0 %186  ;;  %v197_v47 = vpop.permute.xlu1 %196 }
  0xea   :  { %v192_v43 = vpop.permute.xlu0 %191  ;;  %v202_v54 = vpop.permute.xlu1 %201 }
  0xee   :  { %v207_v0 = vpop.permute.xlu0 %206  ;;  %v212_v1 = vpop.permute.xlu1 %211 }
  0xf2   :  { %v217_v11 = vpop.permute.xlu0 %216  ;;  %v222_v12 = vpop.permute.xlu1 %221 }
  0xf6   :  { %v227_v22 = vpop.permute.xlu0 %226  ;;  %v232_v23 = vpop.permute.xlu1 %231 }
  0xfa   :  { %v237_v33 = vpop.permute.xlu0 %236  ;;  %v242_v34 = vpop.permute.xlu1 %241 }
 0x153   :  { %v11182_v36 = vpop.f32.mrb[0].mxu0 }
 0x154   :  { %v11183_v38 = vpop.f32.mrb[1].mxu0 }
 0x155   :  { %v11184_v39 = vadd.f32 %v11183_v38, %v11182_v36 }
 0x157   :  { %v11185_v40 = vpop.f32.mrb[2].mxu0  ;;  %v331_v44 = vadd.f32 %v11184_v39, %v187_v37 }
 0x158   :  { %v11186_v41 = vpop.f32.mrb[3].mxu0 }
 0x159   :  { %v11187_v42 = vadd.f32 %v11186_v41, %v11185_v40 }
 0x15b   :  { %v336_v45 = vadd.f32 %v11187_v42, %v192_v43  ;;  %v11188_v46 = vpop.f32.mrb[4].mxu0 }
 0x15c   :  { %v11189_v48 = vpop.f32.mrb[5].mxu0 }
 0x15d   :  { %v11190_v49 = vadd.f32 %v11189_v48, %v11188_v46  ;;  %v11564_v50 = vpack.c.bf16 %v336_v45, %v331_v44  ;;  %v247_v44 = vpop.permute.xlu0 %246  ;;  %v252_v45 = vpop.permute.xlu1 %251 }
 0x15f   :  { %v11191_v51 = vpop.f32.mrb[6].mxu0  ;;  %11565 = vmatprep.subr.bf16.mxu1 %v11564_v50  ;;  %v341_v55 = vadd.f32 %v11190_v49, %v197_v47 }
 0x160   :  { %v11192_v52 = vpop.f32.mrb[7].mxu0  ;;  %11567 = vmatpush3.bf16.msra.mxu1 %v11564_v50 }
 0x161   :  { %v11193_v53 = vadd.f32 %v11192_v52, %v11191_v51 }
 0x163   :  { %v346_v56 = vadd.f32 %v11193_v53, %v202_v54  ;;  %v11194_v57 = vpop.f32.mrb[8].mxu0  ;;  %v10074_v54 = vld [vmem:[%s14557_s0 + $0x180] sm:$0xff] }
 0x164   :  { %v11195_v58 = vpop.f32.mrb[9].mxu0 }
 0x165   :  { %v11196_v59 = vadd.f32 %v11195_v58, %v11194_v57  ;;  %v11568_v60 = vpack.c.bf16 %v346_v56, %v341_v55  ;;  %v10075_v55 = vld [vmem:[%s14557_s0 + $0x188] sm:$0xff]  ;;  %v257_v57 = vpop.permute.xlu0 %256  ;;  %v262_v58 = vpop.permute.xlu1 %261 }
 0x167   :  { %v11197_v61 = vpop.f32.mrb[10].mxu0  ;;  %11569 = vmatprep.subr.bf16.mxu1 %v11568_v60  ;;  %v351_v2 = vadd.f32 %v11196_v59, %v207_v0  ;;  %v10077_v0 = vld [vmem:[%s14557_s0 + $0x198] sm:$0xff] }
 0x168   :  { %v11198_v62 = vpop.f32.mrb[11].mxu0  ;;  %11571 = vmatpush3.bf16.msra.mxu1 %v11568_v60 }
 0x169   :  { %v11199_v63 = vadd.f32 %v11198_v62, %v11197_v61  ;;  %v10058_v61 = vld [vmem:[%s14557_s0 + $0x100] sm:$0xff]  ;;  %v10059_v62 = vld [vmem:[%s14557_s0 + $0x108] sm:$0xff] }
 0x16b   :  { %v356_v3 = vadd.f32 %v11199_v63, %v212_v1  ;;  %v11200_v4 = vpop.f32.mrb[12].mxu0  ;;  %v10076_v63 = vld [vmem:[%s14557_s0 + $0x190] sm:$0xff] }
 0x16c   :  { %v11201_v5 = vpop.f32.mrb[13].mxu0 }
 0x16d   :  { %v11202_v6 = vadd.f32 %v11201_v5, %v11200_v4  ;;  %v11572_v7 = vpack.c.bf16 %v356_v3, %v351_v2  ;;  %v11596_v2 = vpack.c.bf16 %v10075_v55, %v10074_v54  ;;  %v13879_v3 = vld [vmem:[#allocation7 + $0x8] sm:$0xff]  ;;  %v10061_v5 = vld [vmem:[%s14557_s0 + $0x118] sm:$0xff] }
 0x16e   :  { %v10060_v4 = vld [vmem:[%s14557_s0 + $0x110] sm:$0xff] }
 0x16f   :  { %v11203_v8 = vpop.f32.mrb[14].mxu0  ;;  %11573 = vmatprep.subr.bf16.mxu1 %v11572_v7  ;;  %v361_v13 = vadd.f32 %v11202_v6, %v217_v11  ;;  %v13887_v6 = vld [vmem:[#allocation7 + $0x10] sm:$0xff]  ;;  %v13895_v11 = vld [vmem:[#allocation7 + $0x18] sm:$0xff]  ;;  %v13416_v55 = vld [vmem:[#allocation5 + $0x28] sm:$0xff] }
 0x170   :  { %v11204_v9 = vpop.f32.mrb[15].mxu0  ;;  %11575 = vmatpush3.bf16.msra.mxu1 %v11572_v7  ;;  %v11598_v7 = vpack.c.bf16 %v10059_v62, %v10058_v61  ;;  %v13415_v54 = vld [vmem:[#allocation5 + $0x10] sm:$0xff]  ;;  %v13422_v61 = vld [vmem:[#allocation5 + $0x58] sm:$0xff] }
 0x171   :  { %v11205_v10 = vadd.f32 %v11204_v9, %v11203_v8  ;;  %v10078_v8 = vld [vmem:[%s14557_s0 + $0x1a0] sm:$0xff]  ;;  %v10079_v9 = vld [vmem:[%s14557_s0 + $0x1a8] sm:$0xff]  ;;  %v13423_v62 = vld [vmem:[#allocation5 + $0x50] sm:$0xff] }
 0x173   :  { %v366_v14 = vadd.f32 %v11205_v10, %v222_v12  ;;  %v11206_v15 = vpop.f32.mrb[16].mxu0  ;;  %v11600_v10 = vpack.c.bf16 %v10077_v0, %v10076_v63  ;;  %v10062_v12 = vld [vmem:[%s14557_s0 + $0x120] sm:$0xff]  ;;  %v13424_v63 = vld [vmem:[#allocation5 + $0x68] sm:$0xff] }
 0x174   :  { %v11207_v16 = vpop.f32.mrb[17].mxu0  ;;  %v13425_v0 = vld [vmem:[#allocation5 + $0x60] sm:$0xff] }
 0x175   :  { %v11208_v17 = vadd.f32 %v11207_v16, %v11206_v15  ;;  %v11576_v18 = vpack.c.bf16 %v366_v14, %v361_v13  ;;  %v10063_v13 = vld [vmem:[%s14557_s0 + $0x128] sm:$0xff]  ;;  %v11602_v15 = vpack.c.bf16 %v10061_v5, %v10060_v4  ;;  %v10080_v16 = vld [vmem:[%s14557_s0 + $0x1b0] sm:$0xff] }
 0x176   :  { %v13904_v14 = vld [vmem:[#allocation7 + $0x20] sm:$0xff]  ;;  %v13428_v4 = vld [vmem:[#allocation5 + $0x88] sm:$0xff] }
 0x177   :  { %v11209_v19 = vpop.f32.mrb[18].mxu0  ;;  %11577 = vmatprep.subr.bf16.mxu1 %v11576_v18  ;;  %v371_v24 = vadd.f32 %v11208_v17, %v227_v22  ;;  %v10081_v17 = vld [vmem:[%s14557_s0 + $0x1b8] sm:$0xff]  ;;  %v13429_v5 = vld [vmem:[#allocation5 + $0x80] sm:$0xff] }
 0x178   :  { %v11210_v20 = vpop.f32.mrb[19].mxu0  ;;  %11579 = vmatpush3.bf16.msra.mxu1 %v11576_v18  ;;  %v11604_v18 = vpack.c.bf16 %v10079_v9, %v10078_v8  ;;  %v13922_v22 = vld [vmem:[#allocation7 + $0x30] sm:$0xff]  ;;  %v13432_v9 = vld [vmem:[#allocation5 + $0xa8] sm:$0xff] }
 0x179   :  { %v11211_v21 = vadd.f32 %v11210_v20, %v11209_v19  ;;  %v13913_v19 = vld [vmem:[#allocation7 + $0x28] sm:$0xff]  ;;  %v13431_v8 = vld [vmem:[#allocation5 + $0x90] sm:$0xff] }
 0x17a   :  { %v10064_v20 = vld [vmem:[%s14557_s0 + $0x130] sm:$0xff] }
 0x17b   :  { %v376_v25 = vadd.f32 %v11211_v21, %v232_v23  ;;  %v11212_v26 = vpop.f32.mrb[20].mxu0  ;;  %v10065_v21 = vld [vmem:[%s14557_s0 + $0x138] sm:$0xff]  ;;  %v11606_v23 = vpack.c.bf16 %v10063_v13, %v10062_v12 }
 0x17c   :  { %v11213_v27 = vpop.f32.mrb[21].mxu0  ;;  %v13434_v12 = vld [vmem:[#allocation5 + $0xb8] sm:$0xff]  ;;  %v13435_v13 = vld [vmem:[#allocation5 + $0xb0] sm:$0xff] }
 0x17d   :  { %v11214_v28 = vadd.f32 %v11213_v27, %v11212_v26  ;;  %v11580_v29 = vpack.c.bf16 %v376_v25, %v371_v24  ;;  %v10082_v24 = vld [vmem:[%s14557_s0 + $0x1c0] sm:$0xff]  ;;  %v10083_v25 = vld [vmem:[%s14557_s0 + $0x1c8] sm:$0xff]  ;;  %v11608_v26 = vpack.c.bf16 %v10081_v17, %v10080_v16 }
 0x17e   :  { %v13931_v27 = vld [vmem:[#allocation7 + $0x38] sm:$0xff]  ;;  %v13437_v16 = vld [vmem:[#allocation5 + $0xc0] sm:$0xff] }
 0x17f   :  { %v11215_v30 = vpop.f32.mrb[22].mxu0  ;;  %11581 = vmatprep.subr.bf16.mxu1 %v11580_v29  ;;  %v381_v35 = vadd.f32 %v11214_v28, %v237_v33  ;;  %v10066_v28 = vld [vmem:[%s14557_s0 + $0x140] sm:$0xff]  ;;  %v11612_v33 = vpack.c.bf16 %v10083_v25, %v10082_v24  ;;  %v13443_v24 = vld [vmem:[#allocation5 + $0xf0] sm:$0xff]  ;;  %v1145_v25 = vpop.permute.xlu0 %1144 }
 0x180   :  { %v11216_v31 = vpop.f32.mrb[23].mxu0  ;;  %11583 = vmatpush3.bf16.msra.mxu1 %v11580_v29  ;;  %v10067_v29 = vld [vmem:[%s14557_s0 + $0x148] sm:$0xff]  ;;  %v13438_v17 = vld [vmem:[#allocation5 + $0xd8] sm:$0xff] }
 0x181   :  { %v11217_v32 = vadd.f32 %v11216_v31, %v11215_v30  ;;  %v11610_v30 = vpack.c.bf16 %v10065_v21, %v10064_v20  ;;  %v10084_v31 = vld [vmem:[%s14557_s0 + $0x1d0] sm:$0xff]  ;;  %v13441_v21 = vld [vmem:[#allocation5 + $0xe0] sm:$0xff] }
 0x182   :  { %v13440_v20 = vld [vmem:[#allocation5 + $0xe8] sm:$0xff] }
 0x183   :  { %v386_v36 = vadd.f32 %v11217_v32, %v242_v34  ;;  %v11218_v37 = vpop.f32.mrb[24].mxu0  ;;  %v10085_v32 = vld [vmem:[%s14557_s0 + $0x1d8] sm:$0xff]  ;;  %v10068_v34 = vld [vmem:[%s14557_s0 + $0x150] sm:$0xff] }
 0x184   :  { %v11219_v38 = vpop.f32.mrb[25].mxu0 }
 0x185   :  { %v11220_v39 = vadd.f32 %v11219_v38, %v11218_v37  ;;  %v11584_v40 = vpack.c.bf16 %v386_v36, %v381_v35  ;;  %v10069_v35 = vld [vmem:[%s14557_s0 + $0x158] sm:$0xff]  ;;  %v11614_v36 = vpack.c.bf16 %v10067_v29, %v10066_v28  ;;  %v10086_v37 = vld [vmem:[%s14557_s0 + $0x1e0] sm:$0xff]  ;;  %v10087_v38 = vld [vmem:[%s14557_s0 + $0x1e8] sm:$0xff] }
 0x187   :  { %v11221_v41 = vpop.f32.mrb[26].mxu0  ;;  %11585 = vmatprep.subr.bf16.mxu1 %v11584_v40  ;;  %v391_v46 = vadd.f32 %v11220_v39, %v247_v44  ;;  %v13412_v39 = vld [vmem:[#allocation5 + $0x8] sm:$0xff] }
 0x188   :  { %v11222_v42 = vpop.f32.mrb[27].mxu0  ;;  %11587 = vmatpush3.bf16.msra.mxu1 %v11584_v40  ;;  %v11616_v40 = vpack.c.bf16 %v10085_v32, %v10084_v31  ;;  %v10088_v44 = vld [vmem:[%s14557_s0 + $0x1f0] sm:$0xff] }
 0x189   :  { %v11223_v43 = vadd.f32 %v11222_v42, %v11221_v41  ;;  %v10070_v41 = vld [vmem:[%s14557_s0 + $0x160] sm:$0xff]  ;;  %v10071_v42 = vld [vmem:[%s14557_s0 + $0x168] sm:$0xff] }
 0x18b   :  { %v396_v47 = vadd.f32 %v11223_v43, %v252_v45  ;;  %v11224_v48 = vpop.f32.mrb[28].mxu0  ;;  %v11618_v43 = vpack.c.bf16 %v10069_v35, %v10068_v34  ;;  %v10089_v45 = vld [vmem:[%s14557_s0 + $0x1f8] sm:$0xff] }
 0x18c   :  { %v11225_v49 = vpop.f32.mrb[29].mxu0 }
 0x18d   :  { %v11226_v50 = vadd.f32 %v11225_v49, %v11224_v48  ;;  %v11588_v51 = vpack.c.bf16 %v396_v47, %v391_v46  ;;  %v11620_v46 = vpack.c.bf16 %v10087_v38, %v10086_v37  ;;  %v10072_v47 = vld [vmem:[%s14557_s0 + $0x170] sm:$0xff]  ;;  %v10073_v48 = vld [vmem:[%s14557_s0 + $0x178] sm:$0xff]  ;;  %v11622_v49 = vpack.c.bf16 %v10071_v42, %v10070_v41  ;;  %s13570_s0 = smov 64  }
 0x18f   :  { %v11227_v52 = vpop.f32.mrb[30].mxu0  ;;  %11589 = vmatprep.subr.bf16.mxu1 %v11588_v51  ;;  %v401_v59 = vadd.f32 %v11226_v50, %v257_v57  ;;  %v11624_v50 = vpack.c.bf16 %v10089_v45, %v10088_v44  ;;  %v13418_v57 = vld [vmem:[#allocation5 + $0x38] sm:$0xff] }
 0x190   :  { %v11228_v53 = vpop.f32.mrb[31].mxu0  ;;  %11591 = vmatpush3.bf16.msra.mxu1 %v11588_v51  ;;  %v11626_v51 = vpack.c.bf16 %v10073_v48, %v10072_v47 }
 0x191   :  { %v11229_v56 = vadd.f32 %v11228_v53, %v11227_v52  ;;  %v13413_v52 = vld [vmem:[#allocation5] sm:$0xff]  ;;  %v13414_v53 = vld [vmem:[#allocation5 + $0x18] sm:$0xff] }
 0x193   :  { %v406_v60 = vadd.f32 %v11229_v56, %v262_v58  ;;  %v13417_v56 = vld [vmem:[#allocation5 + $0x20] sm:$0xff]  ;;  %v13419_v58 = vld [vmem:[#allocation5 + $0x30] sm:$0xff] }
 0x195   :  { %v11592_v1 = vpack.c.bf16 %v406_v60, %v401_v59  ;;  %v13420_v59 = vld [vmem:[#allocation5 + $0x48] sm:$0xff]  ;;  %v13421_v60 = vld [vmem:[#allocation5 + $0x40] sm:$0xff] }
 0x197   :  { %11593 = vmatprep.subr.bf16.mxu1 %v11592_v1 }
 0x198   :  { %11595 = vmatpush3.bf16.msra.mxu1 %v11592_v1  ;;  %v13426_v1 = vld [vmem:[#allocation5 + $0x78] sm:$0xff] }
 0x199   :  { %11597 = vmatprep.subr.bf16.mxu1 %v11596_v2  ;;  %v13427_v2 = vld [vmem:[#allocation5 + $0x70] sm:$0xff] }
 0x19b   :  { %11466 = vmatmul.mubr.f32.vlgmr.msra.gmra.mrb[0].mxu1 %v13879_v3 }
 0x19c   :  { %11599 = vmatpush3.bf16.msra.mxu1 %v11598_v7  ;;  %11468 = vmatprep.mubr.f32.mxu1 %v13887_v6  ;;  %v13430_v7 = vld [vmem:[#allocation5 + $0x98] sm:$0xff] }
 0x19d   :  { %11601 = vmatprep.subr.bf16.mxu1 %v11600_v10  ;;  %v13433_v10 = vld [vmem:[#allocation5 + $0xa0] sm:$0xff] }
 0x19f   :  { %11469 = vmatmul.mubr.f32.gmra.mrb[2].mxu1 %v13895_v11 }
 0x1a0   :  { %11603 = vmatpush3.bf16.msra.mxu1 %v11602_v15  ;;  %11471 = vmatprep.mubr.f32.mxu1 %v13904_v14  ;;  %v13436_v15 = vld [vmem:[#allocation5 + $0xc8] sm:$0xff] }
 0x1a1   :  { %11605 = vmatprep.subr.bf16.mxu1 %v11604_v18  ;;  %v13439_v18 = vld [vmem:[#allocation5 + $0xd0] sm:$0xff] }
 0x1a3   :  { %11472 = vmatmul.mubr.f32.gmra.mrb[4].mxu1 %v13913_v19 }
 0x1a4   :  { %11607 = vmatpush3.bf16.msra.mxu1 %v11606_v23  ;;  %11474 = vmatprep.mubr.f32.mxu1 %v13922_v22  ;;  %v13442_v23 = vld [vmem:[#allocation5 + $0xf8] sm:$0xff] }
 0x1a5   :  { %11609 = vmatprep.subr.bf16.mxu1 %v11608_v26  ;;  %v1155_v26 = vpop.permute.xlu0 %1154 }
 0x1a7   :  { %11475 = vmatmul.mubr.f32.gmra.mrb[6].mxu1 %v13931_v27 }
 0x1a8   :  { %11611 = vmatpush3.bf16.msra.mxu1 %v11610_v30  ;;  %1286 = vmatprep.mubr.f32.mxu1 %v13412_v39 }
 0x1a9   :  { %11613 = vmatprep.subr.bf16.mxu1 %v11612_v33  ;;  %v13978_v28 = vpop.permute.xlu0 %1164 }
 0x1ac   :  { %11615 = vmatpush3.bf16.msra.mxu1 %v11614_v36 }
 0x1ad   :  { %11617 = vmatprep.subr.bf16.mxu1 %v11616_v40  ;;  %v13980_v29 = vpop.permute.xlu0 %1174 }
 0x1b0   :  { %11619 = vmatpush3.bf16.msra.mxu1 %v11618_v43 }
 0x1b1   :  { %11621 = vmatprep.subr.bf16.mxu1 %v11620_v46  ;;  %v13982_v30 = vpop.permute.xlu0 %1184 }
 0x1b4   :  { %11623 = vmatpush3.bf16.msra.mxu1 %v11622_v49 }
 0x1b5   :  { %11625 = vmatprep.subr.bf16.mxu1 %v11624_v50  ;;  %v13984_v31 = vpop.permute.xlu0 %1194 }
 0x1b8   :  { %11627 = vmatpush3.bf16.msra.mxu1 %v11626_v51 }
 0x1b9   :  { %v13986_v32 = vpop.permute.xlu0 %1204 }
 0x1bb   :  { %1287 = vmatmul.mubr.f32.vlgmr.msra.gmra.mrb[8].mxu1 %v13413_v52 }
 0x1bc   :  { %1291 = vmatprep.mubr.f32.mxu1 %v13414_v53 }
 0x1bd   :  { %v13988_v33 = vpop.permute.xlu0 %1214 }
 0x1bf   :  { %1292 = vmatmul.mubr.f32.gmra.mrb[10].mxu1 %v13415_v54 }
 0x1c0   :  { %1296 = vmatprep.mubr.f32.mxu1 %v13416_v55 }
 0x1c1   :  { %v428_v35 = vpop.permute.xlu0 %427 }
 0x1c3   :  { %1297 = vmatmul.mubr.f32.gmra.mrb[12].mxu1 %v13417_v56 }
 0x1c4   :  { %1301 = vmatprep.mubr.f32.mxu1 %v13418_v57 }
 0x1c7   :  { %1302 = vmatmul.mubr.f32.gmra.mrb[14].mxu1 %v13419_v58  ;;  %v1150_v58 = vpop.permute.xlu1 %1149 }
 0x1c8   :  { %1306 = vmatprep.mubr.f32.mxu1 %v13420_v59 }
 0x1cb   :  { %1307 = vmatmul.mubr.f32.gmra.mrb[16].mxu1 %v13421_v60 }
 0x1cc   :  { %1311 = vmatprep.mubr.f32.mxu1 %v13422_v61 }
 0x1cf   :  { %1312 = vmatmul.mubr.f32.gmra.mrb[18].mxu1 %v13423_v62 }
 0x1d0   :  { %1316 = vmatprep.mubr.f32.mxu1 %v13424_v63 }
 0x1d3   :  { %1317 = vmatmul.mubr.f32.gmra.mrb[20].mxu1 %v13425_v0 }
 0x1d4   :  { %1321 = vmatprep.mubr.f32.mxu1 %v13426_v1 }
 0x1d7   :  { %1322 = vmatmul.mubr.f32.gmra.mrb[22].mxu1 %v13427_v2 }
 0x1d8   :  { %1326 = vmatprep.mubr.f32.mxu1 %v13428_v4 }
 0x1db   :  { %1327 = vmatmul.mubr.f32.gmra.mrb[24].mxu1 %v13429_v5  ;;  %v1160_v5 = vpop.permute.xlu1 %1159 }
 0x1dc   :  { %1331 = vmatprep.mubr.f32.mxu1 %v13430_v7 }
 0x1df   :  { %1332 = vmatmul.mubr.f32.gmra.mrb[26].mxu1 %v13431_v8 }
 0x1e0   :  { %1336 = vmatprep.mubr.f32.mxu1 %v13432_v9 }
 0x1e3   :  { %1337 = vmatmul.mubr.f32.gmra.mrb[28].mxu1 %v13433_v10 }
 0x1e4   :  { %1341 = vmatprep.mubr.f32.mxu1 %v13434_v12 }
 0x1e7   :  { %1342 = vmatmul.mubr.f32.gmra.mrb[30].mxu1 %v13435_v13 }
 0x1e8   :  { %1346 = vmatprep.mubr.f32.mxu1 %v13436_v15 }
 0x1eb   :  { %1347 = vmatmul.mubr.f32.gmra.mrb[32].mxu1 %v13437_v16 }
 0x1ec   :  { %1351 = vmatprep.mubr.f32.mxu1 %v13438_v17 }
 0x1ef   :  { %1352 = vmatmul.mubr.f32.gmra.mrb[34].mxu1 %v13439_v18  ;;  %v1170_v18 = vpop.permute.xlu1 %1169 }
 0x1f0   :  { %1356 = vmatprep.mubr.f32.mxu1 %v13440_v20 }
 0x1f3   :  { %1357 = vmatmul.mubr.f32.gmra.mrb[36].mxu1 %v13441_v21 }
 0x1f4   :  { %1361 = vmatprep.mubr.f32.mxu1 %v13442_v23 }
 0x1f7   :  { %1362 = vmatmul.mubr.f32.gmra.mrb[38].mxu1 %v13443_v24 }
 0x26e   :  { %v13990_v34 = vpop.f32.mrb[0].mxu1 }
 0x26f   :  { %v531_v36 = vpop.f32.mrb[1].mxu1 }
 0x270   :  { %v532_v37 = vadd.f32 %v531_v36, %v428_v35 }
 0x272   :  { %571 = vst.msk [vmem:[#allocation2] sm:$0xff] %vm570_vm0, %v532_v37  ;;  %v13993_v38 = vpop.f32.mrb[2].mxu1 }
 0x273   :  { %v13995_v39 = vpop.f32.mrb[3].mxu1 }
 0x276   :  { %v13997_v40 = vpop.f32.mrb[4].mxu1 }
 0x277   :  { %v13999_v41 = vpop.f32.mrb[5].mxu1 }
 0x279   :  { %v10027_v42 = vld.sshfl [vmem:[#allocation2 + $0x3] sm:$0x1 pattern:$0x76325410]  ;;  %v596_v43 = vld [vmem:[#allocation2 + $0x2] sm:$0x1] }
 0x27a   :  { %607 = vrot.lane.b32.xlu1 %v10027_v42, %s13570_s0  ;;  %v10026_v44 = vld.sshfl [vmem:[#allocation2 + $0x1] sm:$0x1 pattern:$0x76325410]  ;;  %v14002_v45 = vpop.f32.mrb[6].mxu1  ;;  %v1180_v42 = vpop.permute.xlu1 %1179 }
 0x27b   :  { %597 = vst.msk [vmem:[#allocation3 + $0x2] sm:$0x1] %vm580_vm1, %v596_v43  ;;  %591 = vrot.lane.b32.xlu0 %v10026_v44, %s13570_s0  ;;  %v14006_v46 = vpop.f32.mrb[7].mxu1  ;;  %v579_v48 = vld [vmem:[#allocation2] sm:$0x1] }
 0x27c   :  { %v10029_v47 = vld.sshfl [vmem:[#allocation2 + $0x7] sm:$0x1 pattern:$0x76325410]  ;;  %581 = vst.msk [vmem:[#allocation3] sm:$0x1] %vm580_vm1, %v579_v48 }
 0x27d   :  { %v626_v49 = vld [vmem:[#allocation2 + $0x6] sm:$0x1]  ;;  %v611_v50 = vld [vmem:[#allocation2 + $0x4] sm:$0x1] }
 0x27e   :  { %637 = vrot.lane.b32.xlu1 %v10029_v47, %s13570_s0  ;;  %v10028_v51 = vld.sshfl [vmem:[#allocation2 + $0x5] sm:$0x1 pattern:$0x76325410]  ;;  %627 = vst.msk [vmem:[#allocation3 + $0x6] sm:$0x1] %vm580_vm1, %v626_v49 }
 0x27f   :  { %612 = vst.msk [vmem:[#allocation3 + $0x4] sm:$0x1] %vm580_vm1, %v611_v50  ;;  %622 = vrot.lane.b32.xlu0 %v10028_v51, %s13570_s0 }
 0x28e   :  { %v11286_v52 = vpop.f32.mrb[8].mxu1 }
 0x28f   :  { %v11287_v53 = vpop.f32.mrb[9].mxu1 }
 0x290   :  { %v11288_v54 = vadd.f32 %v11287_v53, %v11286_v52  ;;  %v1190_v53 = vpop.permute.xlu1 %1189 }
 0x292   :  { %v11289_v55 = vpop.f32.mrb[10].mxu1  ;;  %v1289_v59 = vadd.f32 %v11288_v54, %v1145_v25 }
 0x293   :  { %v11290_v56 = vpop.f32.mrb[11].mxu1 }
 0x294   :  { %v11291_v57 = vadd.f32 %v11290_v56, %v11289_v55 }
 0x296   :  { %v1294_v60 = vadd.f32 %v11291_v57, %v1150_v58  ;;  %v11292_v61 = vpop.f32.mrb[12].mxu1 }
 0x297   :  { %v11293_v62 = vpop.f32.mrb[13].mxu1 }
 0x298   :  { %v11294_v63 = vadd.f32 %v11293_v62, %v11292_v61  ;;  %v11628_v0 = vpack.c.bf16 %v1294_v60, %v1289_v59  ;;  %v1200_v62 = vpop.permute.xlu1 %1199 }
 0x29a   :  { %v11295_v1 = vpop.f32.mrb[14].mxu1  ;;  %11629 = vmatprep.subr.bf16.mxu0 %v11628_v0  ;;  %v1299_v7 = vadd.f32 %v11294_v63, %v1155_v26 }
 0x29b   :  { %v11296_v2 = vpop.f32.mrb[15].mxu1  ;;  %11631 = vmatpush3.bf16.msra.mxu0 %v11628_v0 }
 0x29c   :  { %v11297_v4 = vadd.f32 %v11296_v2, %v11295_v1 }
 0x29e   :  { %v1304_v8 = vadd.f32 %v11297_v4, %v1160_v5  ;;  %v11298_v9 = vpop.f32.mrb[16].mxu1 }
 0x29f   :  { %v11299_v10 = vpop.f32.mrb[17].mxu1 }
 0x2a0   :  { %v11300_v12 = vadd.f32 %v11299_v10, %v11298_v9  ;;  %v11632_v13 = vpack.c.bf16 %v1304_v8, %v1299_v7  ;;  %v1210_v9 = vpop.permute.xlu1 %1209 }
 0x2a2   :  { %v11301_v15 = vpop.f32.mrb[18].mxu1  ;;  %11633 = vmatprep.subr.bf16.mxu0 %v11632_v13  ;;  %v1309_v20 = vadd.f32 %v11300_v12, %v13978_v28 }
 0x2a3   :  { %v11302_v16 = vpop.f32.mrb[19].mxu1  ;;  %11635 = vmatpush3.bf16.msra.mxu0 %v11632_v13 }
 0x2a4   :  { %v11303_v17 = vadd.f32 %v11302_v16, %v11301_v15 }
 0x2a6   :  { %v1314_v21 = vadd.f32 %v11303_v17, %v1170_v18  ;;  %v11304_v23 = vpop.f32.mrb[20].mxu1 }
 0x2a7   :  { %v11305_v24 = vpop.f32.mrb[21].mxu1 }
 0x2a8   :  { %v11306_v25 = vadd.f32 %v11305_v24, %v11304_v23  ;;  %v11636_v35 = vpack.c.bf16 %v1314_v21, %v1309_v20  ;;  %v1220_v21 = vpop.permute.xlu1 %1219 }
 0x2aa   :  { %v11307_v36 = vpop.f32.mrb[22].mxu1  ;;  %11637 = vmatprep.subr.bf16.mxu0 %v11636_v35  ;;  %v1319_v43 = vadd.f32 %v11306_v25, %v13980_v29 }
 0x2ab   :  { %v11308_v26 = vpop.f32.mrb[23].mxu1  ;;  %11639 = vmatpush3.bf16.msra.mxu0 %v11636_v35 }
 0x2ac   :  { %v11309_v37 = vadd.f32 %v11308_v26, %v11307_v36  ;;  %v11882_v36 = vld [vmem:[#allocation9 + $0x2c] ss:$16 sps:$4 sm:$0xff]   ;;  %v11877_v26 = vld [vmem:[#allocation9 + $0x20] ss:$16 sps:$4 sm:$0xff]  }
 0x2ae   :  { %v1324_v44 = vadd.f32 %v11309_v37, %v1180_v42  ;;  %v11310_v47 = vpop.f32.mrb[24].mxu1  ;;  %v11880_v37 = vld [vmem:[#allocation9 + $0x28] ss:$16 sps:$4 sm:$0xff]   ;;  %v11885_v42 = vld [vmem:[#allocation9 + $0x44] ss:$16 sps:$4 sm:$0xff]  }
 0x2af   :  { %v11311_v48 = vpop.f32.mrb[25].mxu1 }
 0x2b0   :  { %v11312_v49 = vadd.f32 %v11311_v48, %v11310_v47  ;;  %v11640_v50 = vpack.c.bf16 %v1324_v44, %v1319_v43  ;;  %v11888_v43 = vld [vmem:[#allocation9 + $0x4c] ss:$16 sps:$4 sm:$0xff]   ;;  %v11883_v44 = vld [vmem:[#allocation9 + $0x40] ss:$16 sps:$4 sm:$0xff]   ;;  %v11886_v47 = vld [vmem:[#allocation9 + $0x48] ss:$16 sps:$4 sm:$0xff]  }
 0x2b1   :  { %v11891_v48 = vld [vmem:[#allocation9 + $0x64] ss:$16 sps:$4 sm:$0xff]  }
 0x2b2   :  { %v11313_v51 = vpop.f32.mrb[26].mxu1  ;;  %11641 = vmatprep.subr.bf16.mxu0 %v11640_v50  ;;  %v1329_v54 = vadd.f32 %v11312_v49, %v13982_v30  ;;  %v11894_v49 = vld [vmem:[#allocation9 + $0x6c] ss:$16 sps:$4 sm:$0xff]  }
 0x2b3   :  { %v11314_v28 = vpop.f32.mrb[27].mxu1  ;;  %11643 = vmatpush3.bf16.msra.mxu0 %v11640_v50  ;;  %v11889_v50 = vld [vmem:[#allocation9 + $0x60] ss:$16 sps:$4 sm:$0xff]  }
 0x2b4   :  { %v11315_v52 = vadd.f32 %v11314_v28, %v11313_v51  ;;  %v11892_v51 = vld [vmem:[#allocation9 + $0x68] ss:$16 sps:$4 sm:$0xff]   ;;  %v11897_v28 = vld [vmem:[#allocation9 + $0x84] ss:$16 sps:$4 sm:$0xff]  }
 0x2b6   :  { %v1334_v55 = vadd.f32 %v11315_v52, %v1190_v53  ;;  %v11316_v56 = vpop.f32.mrb[28].mxu1  ;;  %v11900_v52 = vld [vmem:[#allocation9 + $0x8c] ss:$16 sps:$4 sm:$0xff]   ;;  %v11895_v53 = vld [vmem:[#allocation9 + $0x80] ss:$16 sps:$4 sm:$0xff]  }
 0x2b7   :  { %v11317_v57 = vpop.f32.mrb[29].mxu1 }
 0x2b8   :  { %v11318_v58 = vadd.f32 %v11317_v57, %v11316_v56  ;;  %v11644_v59 = vpack.c.bf16 %v1334_v55, %v1329_v54  ;;  %v11898_v54 = vld [vmem:[#allocation9 + $0x88] ss:$16 sps:$4 sm:$0xff]   ;;  %v11903_v55 = vld [vmem:[#allocation9 + $0xa4] ss:$16 sps:$4 sm:$0xff]   ;;  %v11906_v56 = vld [vmem:[#allocation9 + $0xac] ss:$16 sps:$4 sm:$0xff]  }
 0x2b9   :  { %v11901_v57 = vld [vmem:[#allocation9 + $0xa0] ss:$16 sps:$4 sm:$0xff]  }
 0x2ba   :  { %v11319_v60 = vpop.f32.mrb[30].mxu1  ;;  %11645 = vmatprep.subr.bf16.mxu0 %v11644_v59  ;;  %v1339_v63 = vadd.f32 %v11318_v58, %v13984_v31  ;;  %v11904_v58 = vld [vmem:[#allocation9 + $0xa8] ss:$16 sps:$4 sm:$0xff]  }
 0x2bb   :  { %v11320_v29 = vpop.f32.mrb[31].mxu1  ;;  %11647 = vmatpush3.bf16.msra.mxu0 %v11644_v59  ;;  %v11909_v59 = vld [vmem:[#allocation9 + $0xc4] ss:$16 sps:$4 sm:$0xff]  }
 0x2bc   :  { %v11321_v61 = vadd.f32 %v11320_v29, %v11319_v60  ;;  %v11912_v60 = vld [vmem:[#allocation9 + $0xcc] ss:$16 sps:$4 sm:$0xff]   ;;  %v11907_v29 = vld [vmem:[#allocation9 + $0xc0] ss:$16 sps:$4 sm:$0xff]  }
 0x2be   :  { %v1344_v0 = vadd.f32 %v11321_v61, %v1200_v62  ;;  %v11322_v1 = vpop.f32.mrb[32].mxu1  ;;  %v11910_v61 = vld [vmem:[#allocation9 + $0xc8] ss:$16 sps:$4 sm:$0xff]   ;;  %v11915_v62 = vld [vmem:[#allocation9 + $0xe4] ss:$16 sps:$4 sm:$0xff]  }
 0x2bf   :  { %v11323_v2 = vpop.f32.mrb[33].mxu1 }
 0x2c0   :  { %v11324_v4 = vadd.f32 %v11323_v2, %v11322_v1  ;;  %v11648_v5 = vpack.c.bf16 %v1344_v0, %v1339_v63  ;;  %v11918_v63 = vld [vmem:[#allocation9 + $0xec] ss:$16 sps:$4 sm:$0xff]   ;;  %v11913_v0 = vld [vmem:[#allocation9 + $0xe0] ss:$16 sps:$4 sm:$0xff]   ;;  %v11916_v1 = vld [vmem:[#allocation9 + $0xe8] ss:$16 sps:$4 sm:$0xff]  }
 0x2c1   :  { %v11921_v2 = vld [vmem:[#allocation9 + $0x104] ss:$16 sps:$4 sm:$0xff]  }
 0x2c2   :  { %v11325_v7 = vpop.f32.mrb[34].mxu1  ;;  %11649 = vmatprep.subr.bf16.mxu0 %v11648_v5  ;;  %v1349_v10 = vadd.f32 %v11324_v4, %v13986_v32  ;;  %v14026_v32 = vpop.permute.xlu1 %1385  ;;  %v11924_v4 = vld [vmem:[#allocation9 + $0x10c] ss:$16 sps:$4 sm:$0xff]  }
 0x2c3   :  { %v11326_v30 = vpop.f32.mrb[35].mxu1  ;;  %11651 = vmatpush3.bf16.msra.mxu0 %v11648_v5  ;;  %v11919_v5 = vld [vmem:[#allocation9 + $0x100] ss:$16 sps:$4 sm:$0xff]  }
 0x2c4   :  { %v11327_v8 = vadd.f32 %v11326_v30, %v11325_v7  ;;  %v11922_v7 = vld [vmem:[#allocation9 + $0x108] ss:$16 sps:$4 sm:$0xff]   ;;  %v11927_v30 = vld [vmem:[#allocation9 + $0x124] ss:$16 sps:$4 sm:$0xff]  }
 0x2c6   :  { %v1354_v12 = vadd.f32 %v11327_v8, %v1210_v9  ;;  %v11328_v13 = vpop.f32.mrb[36].mxu1  ;;  %v11930_v8 = vld [vmem:[#allocation9 + $0x12c] ss:$16 sps:$4 sm:$0xff]   ;;  %v11925_v9 = vld [vmem:[#allocation9 + $0x120] ss:$16 sps:$4 sm:$0xff]  }
 0x2c7   :  { %v11329_v15 = vpop.f32.mrb[37].mxu1 }
 0x2c8   :  { %v11330_v16 = vadd.f32 %v11329_v15, %v11328_v13  ;;  %v11652_v17 = vpack.c.bf16 %v1354_v12, %v1349_v10  ;;  %v11928_v10 = vld [vmem:[#allocation9 + $0x128] ss:$16 sps:$4 sm:$0xff]   ;;  %v11933_v12 = vld [vmem:[#allocation9 + $0x144] ss:$16 sps:$4 sm:$0xff]   ;;  %v11936_v13 = vld [vmem:[#allocation9 + $0x14c] ss:$16 sps:$4 sm:$0xff]  }
 0x2c9   :  { %v11931_v15 = vld [vmem:[#allocation9 + $0x140] ss:$16 sps:$4 sm:$0xff]  }
 0x2ca   :  { %v11331_v18 = vpop.f32.mrb[38].mxu1  ;;  %11653 = vmatprep.subr.bf16.mxu0 %v11652_v17  ;;  %v1359_v23 = vadd.f32 %v11330_v16, %v13988_v33  ;;  %v11934_v16 = vld [vmem:[#allocation9 + $0x148] ss:$16 sps:$4 sm:$0xff]  }
 0x2cb   :  { %v11332_v31 = vpop.f32.mrb[39].mxu1  ;;  %11655 = vmatpush3.bf16.msra.mxu0 %v11652_v17  ;;  %v11939_v17 = vld [vmem:[#allocation9 + $0x164] ss:$16 sps:$4 sm:$0xff]  }
 0x2cc   :  { %v11333_v20 = vadd.f32 %v11332_v31, %v11331_v18  ;;  %v11942_v18 = vld [vmem:[#allocation9 + $0x16c] ss:$16 sps:$4 sm:$0xff]   ;;  %v11937_v31 = vld [vmem:[#allocation9 + $0x160] ss:$16 sps:$4 sm:$0xff]  }
 0x2ce   :  { %v1364_v24 = vadd.f32 %v11333_v20, %v1220_v21  ;;  %v11940_v20 = vld [vmem:[#allocation9 + $0x168] ss:$16 sps:$4 sm:$0xff]  }
 0x2d0   :  { %v11656_v25 = vpack.c.bf16 %v1364_v24, %v1359_v23  ;;  %v11943_v23 = vld [vmem:[#allocation9 + $0x180] ss:$16 sps:$4 sm:$0xff]   ;;  %v11945_v24 = vld [vmem:[#allocation9 + $0x184] ss:$16 sps:$4 sm:$0xff]  }
 0x2d2   :  { %11657 = vmatprep.subr.bf16.mxu0 %v11656_v25 }
 0x2d3   :  { %11659 = vmatpush3.bf16.msra.mxu0 %v11656_v25 }
 0x2d6   :  { %11510 = vmatmul.mubr.f32.vlgmr.msra.gmra.mrb[32].mxu0 %v13879_v3 }
 0x2d7   :  { %11512 = vmatprep.mubr.f32.mxu0 %v13887_v6 }
 0x2da   :  { %11513 = vmatmul.mubr.f32.gmra.mrb[34].mxu0 %v13895_v11  ;;  %v11871_v11 = vld [vmem:[#allocation9] ss:$16 sps:$4 sm:$0xff]  }
 0x2db   :  { %11515 = vmatprep.mubr.f32.mxu0 %v13904_v14  ;;  %v11873_v14 = vld [vmem:[#allocation9 + $0x4] ss:$16 sps:$4 sm:$0xff]  }
 0x2dc   :  { %8398 = vmatprep.subr.bf16.mxu1 %v11873_v14  ;;  %v11952_v14 = vld [vmem:[#allocation9 + $0x1a8] ss:$16 sps:$4 sm:$0xff]  }
 0x2dd   :  { %8399 = vmatpush1.bf16.msra.mxu1 %v11871_v11  ;;  %v11951_v11 = vld [vmem:[#allocation9 + $0x1a4] ss:$16 sps:$4 sm:$0xff]  }
 0x2de   :  { %11516 = vmatmul.mubr.f32.gmra.mrb[36].mxu0 %v13913_v19  ;;  %v11874_v19 = vld [vmem:[#allocation9 + $0x8] ss:$16 sps:$4 sm:$0xff]  }
 0x2df   :  { %11518 = vmatprep.mubr.f32.mxu0 %v13922_v22  ;;  %v11876_v22 = vld [vmem:[#allocation9 + $0xc] ss:$16 sps:$4 sm:$0xff]  }
 0x2e0   :  { %9054 = vmatprep.subr.bf16.mxu0 %v11876_v22  ;;  %v11957_v22 = vld [vmem:[#allocation9 + $0x1c4] ss:$16 sps:$4 sm:$0xff]  }
 0x2e1   :  { %9055 = vmatpush1.bf16.msra.mxu0 %v11874_v19  ;;  %v11954_v19 = vld [vmem:[#allocation9 + $0x1ac] ss:$16 sps:$4 sm:$0xff]  }
 0x2e2   :  { %11519 = vmatmul.mubr.f32.gmra.mrb[38].mxu0 %v13931_v27  ;;  %v11879_v27 = vld [vmem:[#allocation9 + $0x24] ss:$16 sps:$4 sm:$0xff]   ;;  %9056 = vmatprep.subr.bf16.mxu0 %v11882_v36  ;;  %v11955_v36 = vld [vmem:[#allocation9 + $0x1c0] ss:$16 sps:$4 sm:$0xff]  }
 0x2e3   :  { %8400 = vmatprep.subr.bf16.mxu1 %v11879_v27  ;;  %v11960_v27 = vld [vmem:[#allocation9 + $0x1cc] ss:$16 sps:$4 sm:$0xff]  }
 0x2e4   :  { %8401 = vmatpush1.bf16.msra.mxu1 %v11877_v26  ;;  %v11958_v26 = vld [vmem:[#allocation9 + $0x1c8] ss:$16 sps:$4 sm:$0xff]  }
 0x2e5   :  { %9057 = vmatpush1.bf16.msra.mxu0 %v11880_v37  ;;  %8402 = vmatprep.subr.bf16.mxu1 %v11885_v42  ;;  %v11961_v37 = vld [vmem:[#allocation9 + $0x1e0] ss:$16 sps:$4 sm:$0xff]   ;;  %v11964_v42 = vld [vmem:[#allocation9 + $0x1e8] ss:$16 sps:$4 sm:$0xff]  }
 0x2e6   :  { %9058 = vmatprep.subr.bf16.mxu0 %v11888_v43  ;;  %v11966_v43 = vld [vmem:[#allocation9 + $0x1ec] ss:$16 sps:$4 sm:$0xff]  }
 0x2e8   :  { %8403 = vmatpush1.bf16.msra.mxu1 %v11883_v44 }
 0x2e9   :  { %9059 = vmatpush1.bf16.msra.mxu0 %v11886_v47  ;;  %8404 = vmatprep.subr.bf16.mxu1 %v11891_v48 }
 0x2ea   :  { %9060 = vmatprep.subr.bf16.mxu0 %v11894_v49 }
 0x2ec   :  { %v608_v33 = vpop.permute.xlu1 %607  ;;  %8405 = vmatpush1.bf16.msra.mxu1 %v11889_v50 }
 0x2ed   :  { %610 = vst.msk [vmem:[#allocation3 + $0x2] sm:$0x1] %vm594_vm2, %v608_v33  ;;  %v592_v35 = vpop.permute.xlu0 %591  ;;  %9061 = vmatpush1.bf16.msra.mxu0 %v11892_v51  ;;  %8406 = vmatprep.subr.bf16.mxu1 %v11897_v28  ;;  %v11946_v33 = vld [vmem:[#allocation9 + $0x188] ss:$16 sps:$4 sm:$0xff]  }
 0x2ee   :  { %595 = vst.msk [vmem:[#allocation3] sm:$0x1] %vm594_vm2, %v592_v35  ;;  %9062 = vmatprep.subr.bf16.mxu0 %v11900_v52  ;;  %v11948_v35 = vld [vmem:[#allocation9 + $0x18c] ss:$16 sps:$4 sm:$0xff]  }
 0x2f0   :  { %v638_v3 = vpop.permute.xlu1 %637  ;;  %8407 = vmatpush1.bf16.msra.mxu1 %v11895_v53  ;;  %v1376_v53 = vld [vmem:[%s14561_s4 + $0x8] sm:$0xff] }
 0x2f1   :  { %640 = vst.msk [vmem:[#allocation3 + $0x6] sm:$0x1] %vm594_vm2, %v638_v3  ;;  %v623_v6 = vpop.permute.xlu0 %622  ;;  %9063 = vmatpush1.bf16.msra.mxu0 %v11898_v54  ;;  %8408 = vmatprep.subr.bf16.mxu1 %v11903_v55  ;;  %v11969_v54 = vld [vmem:[#allocation9 + $0x204] ss:$16 sps:$4 sm:$0xff]   ;;  %v11972_v55 = vld [vmem:[#allocation9 + $0x20c] ss:$16 sps:$4 sm:$0xff]  }
 0x2f2   :  { %625 = vst.msk [vmem:[#allocation3 + $0x4] sm:$0x1] %vm594_vm2, %v623_v6  ;;  %9064 = vmatprep.subr.bf16.mxu0 %v11906_v56  ;;  %v11949_v6 = vld [vmem:[#allocation9 + $0x1a0] ss:$16 sps:$4 sm:$0xff]  }
 0x2f4   :  { %8409 = vmatpush1.bf16.msra.mxu1 %v11901_v57 }
 0x2f5   :  { %9065 = vmatpush1.bf16.msra.mxu0 %v11904_v58  ;;  %8410 = vmatprep.subr.bf16.mxu1 %v11909_v59  ;;  %v13571_v58 = vmov 1983009808  }
 0x2f6   :  { %9066 = vmatprep.subr.bf16.mxu0 %v11912_v60  ;;  %v2034_v59 = vunpack.c.l.s4 %v13571_v58  ;;  %v2036_v60 = vlaneseq }
 0x2f8   :  { %8411 = vmatpush1.bf16.msra.mxu1 %v11907_v29 }
 0x2f9   :  { %9067 = vmatpush1.bf16.msra.mxu0 %v11910_v61  ;;  %8412 = vmatprep.subr.bf16.mxu1 %v11915_v62  ;;  %v2035_v62 = vunpack.c.0.s8 %v2034_v59 }
 0x2fa   :  { %9068 = vmatprep.subr.bf16.mxu0 %v11918_v63  ;;  %v14051_v63 = vshrl.u32 %v2036_v60, 7 }
 0x2fc   :  { %8413 = vmatpush1.bf16.msra.mxu1 %v11913_v0  ;;  %v14054_v0 = vsub.s32 %v2035_v62, %v14051_v63  ;;  %v12012_v62 = vld [vmem:[#allocation9 + $0x2e8] ss:$16 sps:$4 sm:$0xff]  }
 0x2fd   :  { %9069 = vmatpush1.bf16.msra.mxu0 %v11916_v1  ;;  %8414 = vmatprep.subr.bf16.mxu1 %v11921_v2 }
 0x2fe   :  { %9070 = vmatprep.subr.bf16.mxu0 %v11924_v4 }
 0x300   :  { %8415 = vmatpush1.bf16.msra.mxu1 %v11919_v5 }
 0x301   :  { %9071 = vmatpush1.bf16.msra.mxu0 %v11922_v7  ;;  %8416 = vmatprep.subr.bf16.mxu1 %v11927_v30 }
 0x302   :  { %9072 = vmatprep.subr.bf16.mxu0 %v11930_v8  ;;  %v11967_v8 = vld [vmem:[#allocation9 + $0x200] ss:$16 sps:$4 sm:$0xff]  }
 0x304   :  { %8417 = vmatpush1.bf16.msra.mxu1 %v11925_v9  ;;  %v11970_v9 = vld [vmem:[#allocation9 + $0x208] ss:$16 sps:$4 sm:$0xff]  }
 0x305   :  { %9073 = vmatpush1.bf16.msra.mxu0 %v11928_v10  ;;  %8418 = vmatprep.subr.bf16.mxu1 %v11933_v12 }
 0x306   :  { %9074 = vmatprep.subr.bf16.mxu0 %v11936_v13 }
 0x308   :  { %8419 = vmatpush1.bf16.msra.mxu1 %v11931_v15  ;;  %v11975_v15 = vld [vmem:[#allocation9 + $0x224] ss:$16 sps:$4 sm:$0xff]  }
 0x309   :  { %9075 = vmatpush1.bf16.msra.mxu0 %v11934_v16  ;;  %8420 = vmatprep.subr.bf16.mxu1 %v11939_v17  ;;  %v11978_v16 = vld [vmem:[#allocation9 + $0x22c] ss:$16 sps:$4 sm:$0xff]  }
 0x30a   :  { %9076 = vmatprep.subr.bf16.mxu0 %v11942_v18  ;;  %v11973_v18 = vld [vmem:[#allocation9 + $0x220] ss:$16 sps:$4 sm:$0xff]  }
 0x30c   :  { %8421 = vmatpush1.bf16.msra.mxu1 %v11937_v31  ;;  %v11976_v31 = vld [vmem:[#allocation9 + $0x228] ss:$16 sps:$4 sm:$0xff]  }
 0x30d   :  { %9077 = vmatpush1.bf16.msra.mxu0 %v11940_v20  ;;  %8422 = vmatprep.subr.bf16.mxu1 %v11945_v24  ;;  %v11984_v24 = vld [vmem:[#allocation9 + $0x24c] ss:$16 sps:$4 sm:$0xff]  }
 0x30e   :  { %9078 = vmatprep.subr.bf16.mxu0 %v11948_v35  ;;  %v11987_v35 = vld [vmem:[#allocation9 + $0x264] ss:$16 sps:$4 sm:$0xff]  }
 0x310   :  { %8423 = vmatpush1.bf16.msra.mxu1 %v11943_v23  ;;  %v11981_v23 = vld [vmem:[#allocation9 + $0x244] ss:$16 sps:$4 sm:$0xff]  }
 0x311   :  { %9079 = vmatpush1.bf16.msra.mxu0 %v11946_v33  ;;  %8424 = vmatprep.subr.bf16.mxu1 %v11951_v11  ;;  %v11982_v33 = vld [vmem:[#allocation9 + $0x248] ss:$16 sps:$4 sm:$0xff]   ;;  %v11993_v11 = vld [vmem:[#allocation9 + $0x284] ss:$16 sps:$4 sm:$0xff]  }
 0x312   :  { %9080 = vmatprep.subr.bf16.mxu0 %v11954_v19 }
 0x314   :  { %8425 = vmatpush1.bf16.msra.mxu1 %v11949_v6  ;;  %v11985_v6 = vld [vmem:[#allocation9 + $0x260] ss:$16 sps:$4 sm:$0xff]  }
 0x315   :  { %9081 = vmatpush1.bf16.msra.mxu0 %v11952_v14  ;;  %8426 = vmatprep.subr.bf16.mxu1 %v11957_v22  ;;  %v11996_v14 = vld [vmem:[#allocation9 + $0x28c] ss:$16 sps:$4 sm:$0xff]  }
 0x316   :  { %9082 = vmatprep.subr.bf16.mxu0 %v11960_v27 }
 0x318   :  { %8427 = vmatpush1.bf16.msra.mxu1 %v11955_v36 }
 0x319   :  { %9083 = vmatpush1.bf16.msra.mxu0 %v11958_v26  ;;  %v11991_v26 = vld [vmem:[#allocation9 + $0x280] ss:$16 sps:$4 sm:$0xff]  }
 0x31a   :  { %9084 = vmatprep.subr.bf16.mxu0 %v11966_v43  ;;  %v11994_v43 = vld [vmem:[#allocation9 + $0x288] ss:$16 sps:$4 sm:$0xff]  }
 0x31d   :  { %9085 = vmatpush1.bf16.msra.mxu0 %v11964_v42 }
 0x31e   :  { %9095 = vmatprep.subr.bf16.mxu0 %v11972_v55  ;;  %v12011_v55 = vld [vmem:[#allocation9 + $0x2e4] ss:$16 sps:$4 sm:$0xff]  }
 0x3a9   :  { %v14032_v21 = vpop.f32.mrb[32].mxu0 }
 0x3aa   :  { %v1489_v25 = vpop.f32.mrb[33].mxu0 }
 0x3ab   :  { %v1490_v3 = vadd.f32 %v1489_v25, %v14026_v32  ;;  %v11963_v32 = vld [vmem:[#allocation9 + $0x1e4] ss:$16 sps:$4 sm:$0xff]   ;;  %v11979_v25 = vld [vmem:[#allocation9 + $0x240] ss:$16 sps:$4 sm:$0xff]  }
 0x3ac   :  { %8428 = vmatprep.subr.bf16.mxu1 %v11963_v32 }
 0x3ad   :  { %1528 = vst.msk [vmem:[#allocation2] sm:$0xff] %vm570_vm0, %v1490_v3  ;;  %8429 = vmatpush1.bf16.msra.mxu1 %v11961_v37  ;;  %v11990_v3 = vld [vmem:[#allocation9 + $0x26c] ss:$16 sps:$4 sm:$0xff]  }
 0x3ae   :  { %8439 = vmatprep.subr.bf16.mxu1 %v11969_v54  ;;  %v12006_v54 = vld [vmem:[#allocation9 + $0x2c8] ss:$16 sps:$4 sm:$0xff]  }
 0x3b4   :  { %v10091_v44 = vld.sshfl [vmem:[#allocation2 + $0x3] sm:$0x1 pattern:$0x76325410]  ;;  %v1551_v47 = vld [vmem:[#allocation2 + $0x2] sm:$0x1] }
 0x3b5   :  { %1562 = vrot.lane.b32.xlu1 %v10091_v44, %s13570_s0  ;;  %v10090_v48 = vld.sshfl [vmem:[#allocation2 + $0x1] sm:$0x1 pattern:$0x76325410]  ;;  %1552 = vst.msk [vmem:[#allocation3 + $0x3] sm:$0x1] %vm580_vm1, %v1551_v47 }
 0x3b6   :  { %v1536_v49 = vld [vmem:[#allocation2] sm:$0x1]  ;;  %1547 = vrot.lane.b32.xlu0 %v10090_v48, %s13570_s0  ;;  %v1581_v50 = vld [vmem:[#allocation2 + $0x6] sm:$0x1]  ;;  %v1566_v51 = vld [vmem:[#allocation2 + $0x4] sm:$0x1] }
 0x3b7   :  { %1537 = vst.msk [vmem:[#allocation3 + $0x1] sm:$0x1] %vm580_vm1, %v1536_v49  ;;  %1582 = vst.msk [vmem:[#allocation3 + $0x7] sm:$0x1] %vm580_vm1, %v1581_v50  ;;  %v11999_v48 = vld [vmem:[#allocation9 + $0x2a4] ss:$16 sps:$4 sm:$0xff]  }
 0x3b8   :  { %v10093_v28 = vld.sshfl [vmem:[#allocation2 + $0x7] sm:$0x1 pattern:$0x76325410]  ;;  %1567 = vst.msk [vmem:[#allocation3 + $0x5] sm:$0x1] %vm580_vm1, %v1566_v51 }
 0x3b9   :  { %1592 = vrot.lane.b32.xlu1 %v10093_v28, %s13570_s0  ;;  %v10092_v52 = vld.sshfl [vmem:[#allocation2 + $0x5] sm:$0x1 pattern:$0x76325410]  ;;  %v12002_v50 = vld [vmem:[#allocation9 + $0x2ac] ss:$16 sps:$4 sm:$0xff]  }
 0x3ba   :  { %1577 = vrot.lane.b32.xlu0 %v10092_v52, %s13570_s0  ;;  %v11997_v51 = vld [vmem:[#allocation9 + $0x2a0] ss:$16 sps:$4 sm:$0xff]   ;;  %v12000_v28 = vld [vmem:[#allocation9 + $0x2a8] ss:$16 sps:$4 sm:$0xff]   ;;  %v12008_v52 = vld [vmem:[#allocation9 + $0x2cc] ss:$16 sps:$4 sm:$0xff]  }
 0x3bd   :  { %1390 = vperm.xlu1 %11870, %v1376_v53  }
 0x3be   :  { %432 = vperm.xlu0 %11869, %v1376_v53   ;;  %v12003_v53 = vld [vmem:[#allocation9 + $0x2c0] ss:$16 sps:$4 sm:$0xff]  }
 0x427   :  { %v1563_v56 = vpop.permute.xlu1 %1562 }
 0x428   :  { %1565 = vst.msk [vmem:[#allocation3 + $0x3] sm:$0x1] %vm594_vm2, %v1563_v56  ;;  %v1548_v57 = vpop.permute.xlu0 %1547  ;;  %v12014_v56 = vld [vmem:[#allocation9 + $0x2ec] ss:$16 sps:$4 sm:$0xff]  }
 0x429   :  { %1550 = vst.msk [vmem:[#allocation3 + $0x1] sm:$0x1] %vm594_vm2, %v1548_v57 }
 0x42b   :  { %v1593_v29 = vpop.permute.xlu1 %1592 }
 0x42c   :  { %1595 = vst.msk [vmem:[#allocation3 + $0x7] sm:$0x1] %vm594_vm2, %v1593_v29  ;;  %v1578_v61 = vpop.permute.xlu0 %1577  ;;  %v12009_v29 = vld [vmem:[#allocation9 + $0x2e0] ss:$16 sps:$4 sm:$0xff]  }
 0x42d   :  { %1580 = vst.msk [vmem:[#allocation3 + $0x5] sm:$0x1] %vm594_vm2, %v1578_v61 }
 0x434   :  { %v2016_v1 = vld [vmem:[#allocation3] sm:$0xff] }
 0x435   :  { %v2039_v2 = vrot.slane %v2016_v1, %v14054_v0  ;;  %v2032_v4 = vcombine.high %v2016_v1, %v2016_v1  ;;  %v12017_v1 = vld [vmem:[#allocation9 + $0x304] ss:$16 sps:$4 sm:$0xff]  }
 0x437   :  { %v2047_v5 = vcombine.high %v2039_v2, %v2039_v2  ;;  %v14058_v7 = vrot.slane %v2032_v4, %v14054_v0  ;;  %v2200_v12 = vpack.c.bf16 %v2039_v2, %v2039_v2 }
 0x439   :  { %v2201_v30 = vpack.c.bf16 %v2047_v5, %v2047_v5  ;;  %v2048_v10 = vcombine.high %v14058_v7, %v14058_v7  ;;  %v12020_v5 = vld [vmem:[#allocation9 + $0x30c] ss:$16 sps:$4 sm:$0xff]  }
 0x43b   :  { %8430 = vmatprep.mubr.bf16.mxu1 %v2201_v30  ;;  %9086 = vmatprep.mubr.bf16.mxu0 %v2201_v30  ;;  %v2203_v13 = vpack.c.bf16 %v2048_v10, %v2048_v10  ;;  %v12018_v10 = vld [vmem:[#allocation9 + $0x308] ss:$16 sps:$4 sm:$0xff]  }
 0x43c   :  { %8431 = vmatmul.mubr.bf16.vlgmr.msra.gmra.mrb[40].mxu1 %v2200_v12  ;;  %9087 = vmatmul.mubr.bf16.vlgmr.msra.gmra.mrb[40].mxu0 %v2200_v12  ;;  %v1391_v19 = vpop.permute.xlu1 %1390  ;;  %v12023_v12 = vld [vmem:[#allocation9 + $0x324] ss:$16 sps:$4 sm:$0xff]  }
 0x43d   :  { %8440 = vmatpush1.bf16.msra.mxu1 %v11967_v8  ;;  %9096 = vmatpush1.bf16.msra.mxu0 %v11970_v9  ;;  %v433_v17 = vpop.permute.xlu0 %432  ;;  %v1495_v44 = vadd.f32 %v14032_v21, %v1391_v19  ;;  %v12005_v21 = vld [vmem:[#allocation9 + $0x2c4] ss:$16 sps:$4 sm:$0xff]   ;;  %v12015_v9 = vld [vmem:[#allocation9 + $0x300] ss:$16 sps:$4 sm:$0xff]  }
 0x43e   :  { %v537_v20 = vadd.f32 %v13990_v34, %v433_v17  ;;  %8471 = vmatprep.mubr.bf16.mxu1 %v2203_v13  ;;  %9127 = vmatprep.mubr.bf16.mxu0 %v2203_v13  ;;  %v11988_v34 = vld [vmem:[#allocation9 + $0x268] ss:$16 sps:$4 sm:$0xff]   ;;  %v1377_v8 = vld [vmem:[%s14561_s4 + $0x10] sm:$0xff] }
 0x43f   :  { %8441 = vmatprep.subr.bf16.mxu1 %v11975_v15  ;;  %9097 = vmatprep.subr.bf16.mxu0 %v11978_v16  ;;  %v12026_v13 = vld [vmem:[#allocation9 + $0x32c] ss:$16 sps:$4 sm:$0xff]   ;;  %v14085_v15 = vpop.f32.mrb[34].mxu0  ;;  %v12021_v17 = vld [vmem:[#allocation9 + $0x320] ss:$16 sps:$4 sm:$0xff]  }
 0x440   :  { %572 = vst.msk [vmem:[#allocation2 + $0x8] sm:$0xff] %vm570_vm0, %v537_v20  ;;  %v14087_v16 = vpop.f32.mrb[35].mxu0  ;;  %v12032_v20 = vld [vmem:[#allocation9 + $0x34c] ss:$16 sps:$4 sm:$0xff]   ;;  %v12047_v19 = vld [vmem:[#allocation9 + $0x3a4] ss:$16 sps:$4 sm:$0xff]  }
 0x441   :  { %8442 = vmatpush1.bf16.msra.mxu1 %v11973_v18  ;;  %9098 = vmatpush1.bf16.msra.mxu0 %v11976_v31  ;;  %v12024_v18 = vld [vmem:[#allocation9 + $0x328] ss:$16 sps:$4 sm:$0xff]   ;;  %v12029_v31 = vld [vmem:[#allocation9 + $0x344] ss:$16 sps:$4 sm:$0xff]  }
 0x442   :  { %8443 = vmatprep.subr.bf16.mxu1 %v11981_v23  ;;  %9099 = vmatprep.subr.bf16.mxu0 %v11984_v24  ;;  %v12027_v23 = vld [vmem:[#allocation9 + $0x340] ss:$16 sps:$4 sm:$0xff]   ;;  %v12030_v24 = vld [vmem:[#allocation9 + $0x348] ss:$16 sps:$4 sm:$0xff]  }
 0x445   :  { %8444 = vmatpush1.bf16.msra.mxu1 %v11979_v25  ;;  %9100 = vmatpush1.bf16.msra.mxu0 %v11982_v33  ;;  %v12035_v25 = vld [vmem:[#allocation9 + $0x364] ss:$16 sps:$4 sm:$0xff]   ;;  %v12038_v33 = vld [vmem:[#allocation9 + $0x36c] ss:$16 sps:$4 sm:$0xff]  }
 0x446   :  { %8445 = vmatprep.subr.bf16.mxu1 %v11987_v35  ;;  %9101 = vmatprep.subr.bf16.mxu0 %v11990_v3  ;;  %v12033_v35 = vld [vmem:[#allocation9 + $0x360] ss:$16 sps:$4 sm:$0xff]   ;;  %v12036_v3 = vld [vmem:[#allocation9 + $0x368] ss:$16 sps:$4 sm:$0xff]  }
 0x447   :  { %v641_v22 = vld [vmem:[#allocation2 + $0x8] sm:$0x1]  ;;  %v656_v27 = vld [vmem:[#allocation2 + $0xa] sm:$0x1]  ;;  %v671_v36 = vld [vmem:[#allocation2 + $0xc] sm:$0x1] }
 0x448   :  { %v686_v32 = vld [vmem:[#allocation2 + $0xe] sm:$0x1]  ;;  %642 = vst.msk [vmem:[#allocation3 + $0x8] sm:$0x1] %vm580_vm1, %v641_v22  ;;  %657 = vst.msk [vmem:[#allocation3 + $0xa] sm:$0x1] %vm580_vm1, %v656_v27 }
 0x449   :  { %672 = vst.msk [vmem:[#allocation3 + $0xc] sm:$0x1] %vm580_vm1, %v671_v36  ;;  %v10031_v37 = vld.sshfl [vmem:[#allocation2 + $0xb] sm:$0x1 pattern:$0x76325410]  ;;  %8446 = vmatpush1.bf16.msra.mxu1 %v11985_v6  ;;  %9102 = vmatpush1.bf16.msra.mxu0 %v11988_v34 }
 0x44a   :  { %687 = vst.msk [vmem:[#allocation3 + $0xe] sm:$0x1] %vm580_vm1, %v686_v32  ;;  %667 = vrot.lane.b32.xlu1 %v10031_v37, %s13570_s0  ;;  %v10030_v42 = vld.sshfl [vmem:[#allocation2 + $0x9] sm:$0x1 pattern:$0x76325410]  ;;  %8447 = vmatprep.subr.bf16.mxu1 %v11993_v11 }
 0x44b   :  { %652 = vrot.lane.b32.xlu0 %v10030_v42, %s13570_s0  ;;  %v10033_v47 = vld.sshfl [vmem:[#allocation2 + $0xf] sm:$0x1 pattern:$0x76325410]  ;;  %9103 = vmatprep.subr.bf16.mxu0 %v11996_v14  ;;  %v12041_v6 = vld [vmem:[#allocation9 + $0x384] ss:$16 sps:$4 sm:$0xff]  }
 0x44c   :  { %v10032_v49 = vld.sshfl [vmem:[#allocation2 + $0xd] sm:$0x1 pattern:$0x76325410]  ;;  %v12039_v11 = vld [vmem:[#allocation9 + $0x380] ss:$16 sps:$4 sm:$0xff]  }
 0x44d   :  { %1529 = vst.msk [vmem:[#allocation2 + $0x8] sm:$0xff] %vm570_vm0, %v1495_v44  ;;  %8448 = vmatpush1.bf16.msra.mxu1 %v11991_v26  ;;  %9104 = vmatpush1.bf16.msra.mxu0 %v11994_v43  ;;  %v12044_v34 = vld [vmem:[#allocation9 + $0x38c] ss:$16 sps:$4 sm:$0xff]   ;;  %v12042_v14 = vld [vmem:[#allocation9 + $0x388] ss:$16 sps:$4 sm:$0xff]  }
 0x44e   :  { %697 = vrot.lane.b32.xlu1 %v10033_v47, %s13570_s0  ;;  %8449 = vmatprep.subr.bf16.mxu1 %v11999_v48  ;;  %v12050_v22 = vld [vmem:[#allocation9 + $0x3ac] ss:$16 sps:$4 sm:$0xff]   ;;  %v12045_v27 = vld [vmem:[#allocation9 + $0x3a0] ss:$16 sps:$4 sm:$0xff]   ;;  %v12048_v36 = vld [vmem:[#allocation9 + $0x3a8] ss:$16 sps:$4 sm:$0xff]  }
 0x44f   :  { %682 = vrot.lane.b32.xlu0 %v10032_v49, %s13570_s0  ;;  %9105 = vmatprep.subr.bf16.mxu0 %v12002_v50  ;;  %v12053_v26 = vld [vmem:[#allocation9 + $0x3c4] ss:$16 sps:$4 sm:$0xff]   ;;  %v12056_v32 = vld [vmem:[#allocation9 + $0x3cc] ss:$16 sps:$4 sm:$0xff]   ;;  %v12051_v37 = vld [vmem:[#allocation9 + $0x3c0] ss:$16 sps:$4 sm:$0xff]  }
 0x450   :  { %v12054_v42 = vld [vmem:[#allocation9 + $0x3c8] ss:$16 sps:$4 sm:$0xff]   ;;  %v12059_v43 = vld [vmem:[#allocation9 + $0x3e4] ss:$16 sps:$4 sm:$0xff]   ;;  %v12062_v44 = vld [vmem:[#allocation9 + $0x3ec] ss:$16 sps:$4 sm:$0xff]  }
 0x451   :  { %8450 = vmatpush1.bf16.msra.mxu1 %v11997_v51  ;;  %9106 = vmatpush1.bf16.msra.mxu0 %v12000_v28  ;;  %v12057_v47 = vld [vmem:[#allocation9 + $0x3e0] ss:$16 sps:$4 sm:$0xff]   ;;  %v12060_v48 = vld [vmem:[#allocation9 + $0x3e8] ss:$16 sps:$4 sm:$0xff]   ;;  %v12065_v49 = vld [vmem:[#allocation9 + $0x404] ss:$16 sps:$4 sm:$0xff]   ;;  %v2202_v28 = vpack.c.bf16 %v14058_v7, %v14058_v7 }
 0x452   :  { %8451 = vmatprep.subr.bf16.mxu1 %v12005_v21  ;;  %9107 = vmatprep.subr.bf16.mxu0 %v12008_v52  ;;  %v12068_v50 = vld [vmem:[#allocation9 + $0x40c] ss:$16 sps:$4 sm:$0xff]   ;;  %v12063_v51 = vld [vmem:[#allocation9 + $0x400] ss:$16 sps:$4 sm:$0xff]   ;;  %v12066_v21 = vld [vmem:[#allocation9 + $0x408] ss:$16 sps:$4 sm:$0xff]  }
 0x453   :  { %v12071_v52 = vld [vmem:[#allocation9 + $0x424] ss:$16 sps:$4 sm:$0xff]   ;;  %v12078_v7 = vld [vmem:[#allocation9 + $0x448] ss:$16 sps:$4 sm:$0xff]  }
 0x454   :  { %v10095_v57 = vld.sshfl [vmem:[#allocation2 + $0xb] sm:$0x1 pattern:$0x76325410]  ;;  %v1611_v58 = vld [vmem:[#allocation2 + $0xa] sm:$0x1] }
 0x455   :  { %1622 = vrot.lane.b32.xlu1 %v10095_v57, %s13570_s0  ;;  %v10094_v59 = vld.sshfl [vmem:[#allocation2 + $0x9] sm:$0x1 pattern:$0x76325410]  ;;  %1612 = vst.msk [vmem:[#allocation3 + $0xb] sm:$0x1] %vm580_vm1, %v1611_v58  ;;  %8452 = vmatpush1.bf16.msra.mxu1 %v12003_v53 }
 0x456   :  { %v1596_v60 = vld [vmem:[#allocation2 + $0x8] sm:$0x1]  ;;  %1607 = vrot.lane.b32.xlu0 %v10094_v59, %s13570_s0  ;;  %v1641_v61 = vld [vmem:[#allocation2 + $0xe] sm:$0x1]  ;;  %9108 = vmatpush1.bf16.msra.mxu0 %v12006_v54  ;;  %v1626_v2 = vld [vmem:[#allocation2 + $0xc] sm:$0x1] }
 0x457   :  { %1597 = vst.msk [vmem:[#allocation3 + $0x9] sm:$0x1] %vm580_vm1, %v1596_v60  ;;  %8453 = vmatprep.subr.bf16.mxu1 %v12011_v55  ;;  %1642 = vst.msk [vmem:[#allocation3 + $0xf] sm:$0x1] %vm580_vm1, %v1641_v61  ;;  %9109 = vmatprep.subr.bf16.mxu0 %v12014_v56  ;;  %v12074_v53 = vld [vmem:[#allocation9 + $0x42c] ss:$16 sps:$4 sm:$0xff]  }
 0x458   :  { %v10097_v4 = vld.sshfl [vmem:[#allocation2 + $0xf] sm:$0x1 pattern:$0x76325410]  ;;  %1627 = vst.msk [vmem:[#allocation3 + $0xd] sm:$0x1] %vm580_vm1, %v1626_v2 }
 0x459   :  { %1652 = vrot.lane.b32.xlu1 %v10097_v4, %s13570_s0  ;;  %v10096_v30 = vld.sshfl [vmem:[#allocation2 + $0xd] sm:$0x1 pattern:$0x76325410]  ;;  %8454 = vmatpush1.bf16.msra.mxu1 %v12009_v29  ;;  %v12069_v54 = vld [vmem:[#allocation9 + $0x420] ss:$16 sps:$4 sm:$0xff]  }
 0x45a   :  { %1637 = vrot.lane.b32.xlu0 %v10096_v30, %s13570_s0  ;;  %9110 = vmatpush1.bf16.msra.mxu0 %v12012_v62  ;;  %v12072_v55 = vld [vmem:[#allocation9 + $0x428] ss:$16 sps:$4 sm:$0xff]   ;;  %v12077_v56 = vld [vmem:[#allocation9 + $0x444] ss:$16 sps:$4 sm:$0xff]   ;;  %v12080_v57 = vld [vmem:[#allocation9 + $0x44c] ss:$16 sps:$4 sm:$0xff]  }
 0x45b   :  { %8455 = vmatprep.subr.bf16.mxu1 %v12017_v1  ;;  %9111 = vmatprep.subr.bf16.mxu0 %v12020_v5  ;;  %v12075_v58 = vld [vmem:[#allocation9 + $0x440] ss:$16 sps:$4 sm:$0xff]   ;;  %v12083_v59 = vld [vmem:[#allocation9 + $0x464] ss:$16 sps:$4 sm:$0xff]   ;;  %v12086_v60 = vld [vmem:[#allocation9 + $0x46c] ss:$16 sps:$4 sm:$0xff]  }
 0x45c   :  { %v12081_v29 = vld [vmem:[#allocation9 + $0x460] ss:$16 sps:$4 sm:$0xff]   ;;  %v12084_v61 = vld [vmem:[#allocation9 + $0x468] ss:$16 sps:$4 sm:$0xff]   ;;  %v12089_v62 = vld [vmem:[#allocation9 + $0x484] ss:$16 sps:$4 sm:$0xff]  }
 0x45d   :  { %1395 = vperm.xlu1 %11870, %v1377_v8   ;;  %8456 = vmatpush1.bf16.msra.mxu1 %v12015_v9  ;;  %v12092_v1 = vld [vmem:[#allocation9 + $0x48c] ss:$16 sps:$4 sm:$0xff]   ;;  %v12087_v2 = vld [vmem:[#allocation9 + $0x480] ss:$16 sps:$4 sm:$0xff]   ;;  %v12090_v4 = vld [vmem:[#allocation9 + $0x488] ss:$16 sps:$4 sm:$0xff]  }
 0x45e   :  { %437 = vperm.xlu0 %11869, %v1377_v8   ;;  %9112 = vmatpush1.bf16.msra.mxu0 %v12018_v10  ;;  %v12095_v5 = vld [vmem:[#allocation9 + $0x4a4] ss:$16 sps:$4 sm:$0xff]   ;;  %v12098_v30 = vld [vmem:[#allocation9 + $0x4ac] ss:$16 sps:$4 sm:$0xff]   ;;  %v12093_v8 = vld [vmem:[#allocation9 + $0x4a0] ss:$16 sps:$4 sm:$0xff]  }
 0x45f   :  { %8457 = vmatprep.subr.bf16.mxu1 %v12023_v12  ;;  %9113 = vmatprep.subr.bf16.mxu0 %v12026_v13  ;;  %v12096_v9 = vld [vmem:[#allocation9 + $0x4a8] ss:$16 sps:$4 sm:$0xff]   ;;  %v12101_v10 = vld [vmem:[#allocation9 + $0x4c4] ss:$16 sps:$4 sm:$0xff]   ;;  %v12104_v12 = vld [vmem:[#allocation9 + $0x4cc] ss:$16 sps:$4 sm:$0xff]  }
 0x460   :  { %v12099_v13 = vld [vmem:[#allocation9 + $0x4c0] ss:$16 sps:$4 sm:$0xff]  }
 0x461   :  { %8458 = vmatpush1.bf16.msra.mxu1 %v12021_v17  ;;  %v12102_v17 = vld [vmem:[#allocation9 + $0x4c8] ss:$16 sps:$4 sm:$0xff]  }
 0x462   :  { %9114 = vmatpush1.bf16.msra.mxu0 %v12024_v18  ;;  %8459 = vmatprep.subr.bf16.mxu1 %v12029_v31  ;;  %v12107_v18 = vld [vmem:[#allocation9 + $0x4e4] ss:$16 sps:$4 sm:$0xff]   ;;  %v12110_v31 = vld [vmem:[#allocation9 + $0x4ec] ss:$16 sps:$4 sm:$0xff]  }
 0x463   :  { %9115 = vmatprep.subr.bf16.mxu0 %v12032_v20  ;;  %v12105_v20 = vld [vmem:[#allocation9 + $0x4e0] ss:$16 sps:$4 sm:$0xff]  }
 0x465   :  { %8460 = vmatpush1.bf16.msra.mxu1 %v12027_v23  ;;  %v12108_v23 = vld [vmem:[#allocation9 + $0x4e8] ss:$16 sps:$4 sm:$0xff]  }
 0x466   :  { %9116 = vmatpush1.bf16.msra.mxu0 %v12030_v24  ;;  %8461 = vmatprep.subr.bf16.mxu1 %v12035_v25  ;;  %v12113_v24 = vld [vmem:[#allocation9 + $0x504] ss:$16 sps:$4 sm:$0xff]   ;;  %v12116_v25 = vld [vmem:[#allocation9 + $0x50c] ss:$16 sps:$4 sm:$0xff]  }
 0x467   :  { %9117 = vmatprep.subr.bf16.mxu0 %v12038_v33  ;;  %v12111_v33 = vld [vmem:[#allocation9 + $0x500] ss:$16 sps:$4 sm:$0xff]  }
 0x469   :  { %8462 = vmatpush1.bf16.msra.mxu1 %v12033_v35  ;;  %v12114_v35 = vld [vmem:[#allocation9 + $0x508] ss:$16 sps:$4 sm:$0xff]  }
 0x46a   :  { %9118 = vmatpush1.bf16.msra.mxu0 %v12036_v3  ;;  %8463 = vmatprep.subr.bf16.mxu1 %v12041_v6  ;;  %v12119_v3 = vld [vmem:[#allocation9 + $0x524] ss:$16 sps:$4 sm:$0xff]   ;;  %v12122_v6 = vld [vmem:[#allocation9 + $0x52c] ss:$16 sps:$4 sm:$0xff]  }
 0x46b   :  { %9119 = vmatprep.subr.bf16.mxu0 %v12044_v34  ;;  %v12117_v34 = vld [vmem:[#allocation9 + $0x520] ss:$16 sps:$4 sm:$0xff]  }
 0x46d   :  { %8464 = vmatpush1.bf16.msra.mxu1 %v12039_v11  ;;  %v12120_v11 = vld [vmem:[#allocation9 + $0x528] ss:$16 sps:$4 sm:$0xff]  }
 0x46e   :  { %9120 = vmatpush1.bf16.msra.mxu0 %v12042_v14  ;;  %8465 = vmatprep.subr.bf16.mxu1 %v12047_v19  ;;  %v12125_v14 = vld [vmem:[#allocation9 + $0x544] ss:$16 sps:$4 sm:$0xff]   ;;  %v12128_v19 = vld [vmem:[#allocation9 + $0x54c] ss:$16 sps:$4 sm:$0xff]  }
 0x46f   :  { %9121 = vmatprep.subr.bf16.mxu0 %v12050_v22  ;;  %v12123_v22 = vld [vmem:[#allocation9 + $0x540] ss:$16 sps:$4 sm:$0xff]  }
 0x471   :  { %8466 = vmatpush1.bf16.msra.mxu1 %v12045_v27  ;;  %v12126_v27 = vld [vmem:[#allocation9 + $0x548] ss:$16 sps:$4 sm:$0xff]  }
 0x472   :  { %9122 = vmatpush1.bf16.msra.mxu0 %v12048_v36  ;;  %8467 = vmatprep.subr.bf16.mxu1 %v12053_v26  ;;  %v12131_v36 = vld [vmem:[#allocation9 + $0x564] ss:$16 sps:$4 sm:$0xff]   ;;  %v12134_v26 = vld [vmem:[#allocation9 + $0x56c] ss:$16 sps:$4 sm:$0xff]  }
 0x473   :  { %9123 = vmatprep.subr.bf16.mxu0 %v12056_v32  ;;  %v12129_v32 = vld [vmem:[#allocation9 + $0x560] ss:$16 sps:$4 sm:$0xff]  }
 0x475   :  { %8468 = vmatpush1.bf16.msra.mxu1 %v12051_v37  ;;  %v12132_v37 = vld [vmem:[#allocation9 + $0x568] ss:$16 sps:$4 sm:$0xff]  }
 0x476   :  { %9124 = vmatpush1.bf16.msra.mxu0 %v12054_v42  ;;  %8469 = vmatprep.subr.bf16.mxu1 %v12059_v43  ;;  %v12137_v42 = vld [vmem:[#allocation9 + $0x584] ss:$16 sps:$4 sm:$0xff]   ;;  %v12140_v43 = vld [vmem:[#allocation9 + $0x58c] ss:$16 sps:$4 sm:$0xff]  }
 0x477   :  { %9125 = vmatprep.subr.bf16.mxu0 %v12062_v44  ;;  %v12135_v44 = vld [vmem:[#allocation9 + $0x580] ss:$16 sps:$4 sm:$0xff]  }
 0x479   :  { %8470 = vmatpush1.bf16.msra.mxu1 %v12057_v47  ;;  %v12138_v47 = vld [vmem:[#allocation9 + $0x588] ss:$16 sps:$4 sm:$0xff]  }
 0x47a   :  { %9126 = vmatpush1.bf16.msra.mxu0 %v12060_v48  ;;  %8480 = vmatprep.subr.bf16.mxu1 %v12065_v49  ;;  %v12143_v48 = vld [vmem:[#allocation9 + $0x5a4] ss:$16 sps:$4 sm:$0xff]   ;;  %v12146_v49 = vld [vmem:[#allocation9 + $0x5ac] ss:$16 sps:$4 sm:$0xff]  }
 0x47b   :  { %9136 = vmatprep.subr.bf16.mxu0 %v12068_v50  ;;  %v12141_v50 = vld [vmem:[#allocation9 + $0x5a0] ss:$16 sps:$4 sm:$0xff]  }
 0x47c   :  { %8472 = vmatmul.mubr.bf16.vlgmr.msra.gmra.mrb[40].mxu1 %v2202_v28 }
 0x47d   :  { %9128 = vmatmul.mubr.bf16.vlgmr.msra.gmra.mrb[40].mxu0 %v2202_v28  ;;  %8481 = vmatpush1.bf16.msra.mxu1 %v12063_v51  ;;  %v12144_v51 = vld [vmem:[#allocation9 + $0x5a8] ss:$16 sps:$4 sm:$0xff]   ;;  %v12149_v28 = vld [vmem:[#allocation9 + $0x5c4] ss:$16 sps:$4 sm:$0xff]  }
 0x47e   :  { %9137 = vmatpush1.bf16.msra.mxu0 %v12066_v21  ;;  %8482 = vmatprep.subr.bf16.mxu1 %v12071_v52  ;;  %v12152_v21 = vld [vmem:[#allocation9 + $0x5cc] ss:$16 sps:$4 sm:$0xff]   ;;  %v12147_v52 = vld [vmem:[#allocation9 + $0x5c0] ss:$16 sps:$4 sm:$0xff]  }
 0x47f   :  { %9138 = vmatprep.subr.bf16.mxu0 %v12074_v53  ;;  %v12150_v53 = vld [vmem:[#allocation9 + $0x5c8] ss:$16 sps:$4 sm:$0xff]  }
 0x481   :  { %8483 = vmatpush1.bf16.msra.mxu1 %v12069_v54  ;;  %v12155_v54 = vld [vmem:[#allocation9 + $0x5e4] ss:$16 sps:$4 sm:$0xff]  }
 0x482   :  { %9139 = vmatpush1.bf16.msra.mxu0 %v12072_v55  ;;  %8484 = vmatprep.subr.bf16.mxu1 %v12077_v56  ;;  %v12158_v55 = vld [vmem:[#allocation9 + $0x5ec] ss:$16 sps:$4 sm:$0xff]   ;;  %v12153_v56 = vld [vmem:[#allocation9 + $0x5e0] ss:$16 sps:$4 sm:$0xff]  }
 0x483   :  { %9140 = vmatprep.subr.bf16.mxu0 %v12080_v57  ;;  %v12156_v57 = vld [vmem:[#allocation9 + $0x5e8] ss:$16 sps:$4 sm:$0xff]  }
 0x485   :  { %8485 = vmatpush1.bf16.msra.mxu1 %v12075_v58  ;;  %v12161_v58 = vld [vmem:[#allocation9 + $0x604] ss:$16 sps:$4 sm:$0xff]  }
 0x486   :  { %9141 = vmatpush1.bf16.msra.mxu0 %v12078_v7  ;;  %8486 = vmatprep.subr.bf16.mxu1 %v12083_v59  ;;  %v12164_v7 = vld [vmem:[#allocation9 + $0x60c] ss:$16 sps:$4 sm:$0xff]  }
 0x487   :  { %9142 = vmatprep.subr.bf16.mxu0 %v12086_v60 }
 0x489   :  { %8487 = vmatpush1.bf16.msra.mxu1 %v12081_v29 }
 0x48a   :  { %9143 = vmatpush1.bf16.msra.mxu0 %v12084_v61  ;;  %8488 = vmatprep.subr.bf16.mxu1 %v12089_v62 }
 0x48b   :  { %9144 = vmatprep.subr.bf16.mxu0 %v12092_v1 }
 0x48d   :  { %8489 = vmatpush1.bf16.msra.mxu1 %v12087_v2 }
 0x48e   :  { %9145 = vmatpush1.bf16.msra.mxu0 %v12090_v4  ;;  %8490 = vmatprep.subr.bf16.mxu1 %v12095_v5 }
 0x48f   :  { %9146 = vmatprep.subr.bf16.mxu0 %v12098_v30 }
 0x491   :  { %8491 = vmatpush1.bf16.msra.mxu1 %v12093_v8 }
 0x492   :  { %9147 = vmatpush1.bf16.msra.mxu0 %v12096_v9  ;;  %8492 = vmatprep.subr.bf16.mxu1 %v12101_v10 }
 0x493   :  { %9148 = vmatprep.subr.bf16.mxu0 %v12104_v12 }
 0x495   :  { %8493 = vmatpush1.bf16.msra.mxu1 %v12099_v13  ;;  %v12159_v13 = vld [vmem:[#allocation9 + $0x600] ss:$16 sps:$4 sm:$0xff]  }
 0x496   :  { %9149 = vmatpush1.bf16.msra.mxu0 %v12102_v17  ;;  %8494 = vmatprep.subr.bf16.mxu1 %v12107_v18  ;;  %v12162_v17 = vld [vmem:[#allocation9 + $0x608] ss:$16 sps:$4 sm:$0xff]  }
 0x497   :  { %9150 = vmatprep.subr.bf16.mxu0 %v12110_v31 }
 0x499   :  { %8495 = vmatpush1.bf16.msra.mxu1 %v12105_v20 }
 0x49a   :  { %9151 = vmatpush1.bf16.msra.mxu0 %v12108_v23  ;;  %8496 = vmatprep.subr.bf16.mxu1 %v12113_v24  ;;  %v12167_v23 = vld [vmem:[#allocation9 + $0x624] ss:$16 sps:$4 sm:$0xff]   ;;  %v12170_v24 = vld [vmem:[#allocation9 + $0x62c] ss:$16 sps:$4 sm:$0xff]  }
 0x49b   :  { %9152 = vmatprep.subr.bf16.mxu0 %v12116_v25 }
 0x49d   :  { %8497 = vmatpush1.bf16.msra.mxu1 %v12111_v33  ;;  %v12165_v33 = vld [vmem:[#allocation9 + $0x620] ss:$16 sps:$4 sm:$0xff]  }
 0x49e   :  { %9153 = vmatpush1.bf16.msra.mxu0 %v12114_v35  ;;  %8498 = vmatprep.subr.bf16.mxu1 %v12119_v3  ;;  %v12168_v35 = vld [vmem:[#allocation9 + $0x628] ss:$16 sps:$4 sm:$0xff]  }
 0x49f   :  { %9154 = vmatprep.subr.bf16.mxu0 %v12122_v6  ;;  %v12173_v6 = vld [vmem:[#allocation9 + $0x644] ss:$16 sps:$4 sm:$0xff]  }
 0x4a1   :  { %8499 = vmatpush1.bf16.msra.mxu1 %v12117_v34  ;;  %v12176_v34 = vld [vmem:[#allocation9 + $0x64c] ss:$16 sps:$4 sm:$0xff]  }
 0x4a2   :  { %9155 = vmatpush1.bf16.msra.mxu0 %v12120_v11  ;;  %8500 = vmatprep.subr.bf16.mxu1 %v12125_v14  ;;  %v12171_v11 = vld [vmem:[#allocation9 + $0x640] ss:$16 sps:$4 sm:$0xff]   ;;  %v12174_v14 = vld [vmem:[#allocation9 + $0x648] ss:$16 sps:$4 sm:$0xff]  }
 0x4a3   :  { %9156 = vmatprep.subr.bf16.mxu0 %v12128_v19  ;;  %v12179_v19 = vld [vmem:[#allocation9 + $0x664] ss:$16 sps:$4 sm:$0xff]  }
 0x4a5   :  { %8501 = vmatpush1.bf16.msra.mxu1 %v12123_v22  ;;  %v12182_v22 = vld [vmem:[#allocation9 + $0x66c] ss:$16 sps:$4 sm:$0xff]  }
 0x4a6   :  { %9157 = vmatpush1.bf16.msra.mxu0 %v12126_v27  ;;  %8502 = vmatprep.subr.bf16.mxu1 %v12131_v36  ;;  %v12177_v27 = vld [vmem:[#allocation9 + $0x660] ss:$16 sps:$4 sm:$0xff]   ;;  %v12185_v36 = vld [vmem:[#allocation9 + $0x684] ss:$16 sps:$4 sm:$0xff]  }
 0x4a7   :  { %9158 = vmatprep.subr.bf16.mxu0 %v12134_v26  ;;  %v12188_v26 = vld [vmem:[#allocation9 + $0x68c] ss:$16 sps:$4 sm:$0xff]  }
 0x4a9   :  { %8503 = vmatpush1.bf16.msra.mxu1 %v12129_v32 }
 0x4aa   :  { %9159 = vmatpush1.bf16.msra.mxu0 %v12132_v37  ;;  %8504 = vmatprep.subr.bf16.mxu1 %v12137_v42 }
 0x4ab   :  { %9160 = vmatprep.subr.bf16.mxu0 %v12140_v43 }
 0x4ad   :  { %8505 = vmatpush1.bf16.msra.mxu1 %v12135_v44  ;;  %v12183_v44 = vld [vmem:[#allocation9 + $0x680] ss:$16 sps:$4 sm:$0xff]  }
 0x4ae   :  { %9161 = vmatpush1.bf16.msra.mxu0 %v12138_v47  ;;  %8506 = vmatprep.subr.bf16.mxu1 %v12143_v48 }
 0x4af   :  { %9162 = vmatprep.subr.bf16.mxu0 %v12146_v49 }
 0x4b1   :  { %8507 = vmatpush1.bf16.msra.mxu1 %v12141_v50  ;;  %v12186_v50 = vld [vmem:[#allocation9 + $0x688] ss:$16 sps:$4 sm:$0xff]  }
 0x4b2   :  { %9163 = vmatpush1.bf16.msra.mxu0 %v12144_v51  ;;  %8508 = vmatprep.subr.bf16.mxu1 %v12149_v28 }
 0x4b3   :  { %9164 = vmatprep.subr.bf16.mxu0 %v12152_v21  ;;  %v12191_v21 = vld [vmem:[#allocation9 + $0x6a4] ss:$16 sps:$4 sm:$0xff]  }
 0x4b5   :  { %8509 = vmatpush1.bf16.msra.mxu1 %v12147_v52 }
 0x4b6   :  { %9165 = vmatpush1.bf16.msra.mxu0 %v12150_v53  ;;  %8510 = vmatprep.subr.bf16.mxu1 %v12155_v54  ;;  %v12194_v53 = vld [vmem:[#allocation9 + $0x6ac] ss:$16 sps:$4 sm:$0xff]   ;;  %v12189_v54 = vld [vmem:[#allocation9 + $0x6a0] ss:$16 sps:$4 sm:$0xff]  }
 0x4b7   :  { %9166 = vmatprep.subr.bf16.mxu0 %v12158_v55  ;;  %v12192_v55 = vld [vmem:[#allocation9 + $0x6a8] ss:$16 sps:$4 sm:$0xff]  }
 0x4b9   :  { %8511 = vmatpush1.bf16.msra.mxu1 %v12153_v56  ;;  %v12200_v56 = vld [vmem:[#allocation9 + $0x6cc] ss:$16 sps:$4 sm:$0xff]  }
 0x4ba   :  { %9167 = vmatpush1.bf16.msra.mxu0 %v12156_v57  ;;  %8521 = vmatprep.subr.bf16.mxu1 %v12161_v58  ;;  %v12195_v57 = vld [vmem:[#allocation9 + $0x6c0] ss:$16 sps:$4 sm:$0xff]   ;;  %v12198_v58 = vld [vmem:[#allocation9 + $0x6c8] ss:$16 sps:$4 sm:$0xff]  }
 0x4bb   :  { %9177 = vmatprep.subr.bf16.mxu0 %v12164_v7  ;;  %v12203_v7 = vld [vmem:[#allocation9 + $0x6e4] ss:$16 sps:$4 sm:$0xff]  }
 0x4bc   :  { %v668_v59 = vpop.permute.xlu1 %667 }
 0x4bd   :  { %670 = vst.msk [vmem:[#allocation3 + $0xa] sm:$0x1] %vm594_vm2, %v668_v59  ;;  %v653_v60 = vpop.permute.xlu0 %652  ;;  %v12206_v59 = vld [vmem:[#allocation9 + $0x6ec] ss:$16 sps:$4 sm:$0xff]  }
 0x4be   :  { %655 = vst.msk [vmem:[#allocation3 + $0x8] sm:$0x1] %vm594_vm2, %v653_v60 }
 0x4c0   :  { %v698_v29 = vpop.permute.xlu1 %697 }
 0x4c1   :  { %700 = vst.msk [vmem:[#allocation3 + $0xe] sm:$0x1] %vm594_vm2, %v698_v29  ;;  %v683_v61 = vpop.permute.xlu0 %682 }
 0x4c2   :  { %685 = vst.msk [vmem:[#allocation3 + $0xc] sm:$0x1] %vm594_vm2, %v683_v61 }
 0x4c7   :  { %v1623_v62 = vpop.permute.xlu1 %1622 }
 0x4c8   :  { %1625 = vst.msk [vmem:[#allocation3 + $0xb] sm:$0x1] %vm594_vm2, %v1623_v62  ;;  %v1608_v1 = vpop.permute.xlu0 %1607 }
 0x4c9   :  { %1610 = vst.msk [vmem:[#allocation3 + $0x9] sm:$0x1] %vm594_vm2, %v1608_v1  ;;  %v12201_v1 = vld [vmem:[#allocation9 + $0x6e0] ss:$16 sps:$4 sm:$0xff]  }
 0x4cb   :  { %v1653_v2 = vpop.permute.xlu1 %1652 }
 0x4cc   :  { %1655 = vst.msk [vmem:[#allocation3 + $0xf] sm:$0x1] %vm594_vm2, %v1653_v2  ;;  %v1638_v4 = vpop.permute.xlu0 %1637 }
 0x4cd   :  { %1640 = vst.msk [vmem:[#allocation3 + $0xd] sm:$0x1] %vm594_vm2, %v1638_v4  ;;  %v12204_v4 = vld [vmem:[#allocation9 + $0x6e8] ss:$16 sps:$4 sm:$0xff]  }
 0x4d4   :  { %v2017_v5 = vld [vmem:[#allocation3 + $0x8] sm:$0xff] }
 0x4d5   :  { %v2056_v30 = vrot.slane %v2017_v5, %v14054_v0  ;;  %v2049_v8 = vcombine.high %v2017_v5, %v2017_v5  ;;  %v12209_v5 = vld [vmem:[#allocation9 + $0x704] ss:$16 sps:$4 sm:$0xff]  }
 0x4d7   :  { %v2064_v9 = vcombine.high %v2056_v30, %v2056_v30  ;;  %v14101_v10 = vrot.slane %v2049_v8, %v14054_v0  ;;  %v2204_v31 = vpack.c.bf16 %v2056_v30, %v2056_v30 }
 0x4d9   :  { %v2205_v12 = vpack.c.bf16 %v2064_v9, %v2064_v9  ;;  %v2065_v18 = vcombine.high %v14101_v10, %v14101_v10  ;;  %v12212_v9 = vld [vmem:[#allocation9 + $0x70c] ss:$16 sps:$4 sm:$0xff]  }
 0x4db   :  { %8512 = vmatprep.mubr.bf16.mxu1 %v2205_v12  ;;  %9168 = vmatprep.mubr.bf16.mxu0 %v2205_v12  ;;  %v2207_v20 = vpack.c.bf16 %v2065_v18, %v2065_v18  ;;  %v12210_v18 = vld [vmem:[#allocation9 + $0x708] ss:$16 sps:$4 sm:$0xff]  }
 0x4dc   :  { %8513 = vmatmul.mubr.bf16.vlgmr.msra.gmra.mrb[40].mxu1 %v2204_v31  ;;  %9169 = vmatmul.mubr.bf16.vlgmr.msra.gmra.mrb[40].mxu0 %v2204_v31  ;;  %v1396_v32 = vpop.permute.xlu1 %1395  ;;  %v12215_v31 = vld [vmem:[#allocation9 + $0x724] ss:$16 sps:$4 sm:$0xff]  }
 0x4dd   :  { %8522 = vmatpush1.bf16.msra.mxu1 %v12159_v13  ;;  %9178 = vmatpush1.bf16.msra.mxu0 %v12162_v17  ;;  %v438_v25 = vpop.permute.xlu0 %437  ;;  %v1500_v51 = vadd.f32 %v14087_v16, %v1396_v32  ;;  %v12197_v16 = vld [vmem:[#allocation9 + $0x6c4] ss:$16 sps:$4 sm:$0xff]   ;;  %v12207_v17 = vld [vmem:[#allocation9 + $0x700] ss:$16 sps:$4 sm:$0xff]  }
 0x4de   :  { %v542_v3 = vadd.f32 %v13995_v39, %v438_v25  ;;  %8553 = vmatprep.mubr.bf16.mxu1 %v2207_v20  ;;  %9209 = vmatprep.mubr.bf16.mxu0 %v2207_v20  ;;  %v12180_v39 = vld [vmem:[#allocation9 + $0x668] ss:$16 sps:$4 sm:$0xff]   ;;  %v12218_v20 = vld [vmem:[#allocation9 + $0x72c] ss:$16 sps:$4 sm:$0xff]   ;;  %v12221_v25 = vld [vmem:[#allocation9 + $0x744] ss:$16 sps:$4 sm:$0xff]  }
 0x4df   :  { %8523 = vmatprep.subr.bf16.mxu1 %v12167_v23  ;;  %9179 = vmatprep.subr.bf16.mxu0 %v12170_v24  ;;  %v1378_v13 = vld [vmem:[%s14561_s4 + $0x18] sm:$0xff]  ;;  %v12213_v23 = vld [vmem:[#allocation9 + $0x720] ss:$16 sps:$4 sm:$0xff]  }
 0x4e0   :  { %573 = vst.msk [vmem:[#allocation2 + $0x10] sm:$0xff] %vm570_vm0, %v542_v3  ;;  %v12216_v24 = vld [vmem:[#allocation9 + $0x728] ss:$16 sps:$4 sm:$0xff]   ;;  %v12237_v32 = vld [vmem:[#allocation9 + $0x7a0] ss:$16 sps:$4 sm:$0xff]  }
 0x4e1   :  { %8524 = vmatpush1.bf16.msra.mxu1 %v12165_v33  ;;  %9180 = vmatpush1.bf16.msra.mxu0 %v12168_v35  ;;  %v12224_v33 = vld [vmem:[#allocation9 + $0x74c] ss:$16 sps:$4 sm:$0xff]   ;;  %v12219_v35 = vld [vmem:[#allocation9 + $0x740] ss:$16 sps:$4 sm:$0xff]   ;;  %v12222_v3 = vld [vmem:[#allocation9 + $0x748] ss:$16 sps:$4 sm:$0xff]  }
 0x4e2   :  { %8525 = vmatprep.subr.bf16.mxu1 %v12173_v6  ;;  %9181 = vmatprep.subr.bf16.mxu0 %v12176_v34  ;;  %v12227_v6 = vld [vmem:[#allocation9 + $0x764] ss:$16 sps:$4 sm:$0xff]   ;;  %v12230_v34 = vld [vmem:[#allocation9 + $0x76c] ss:$16 sps:$4 sm:$0xff]  }
 0x4e5   :  { %8526 = vmatpush1.bf16.msra.mxu1 %v12171_v11  ;;  %9182 = vmatpush1.bf16.msra.mxu0 %v12174_v14  ;;  %v12225_v11 = vld [vmem:[#allocation9 + $0x760] ss:$16 sps:$4 sm:$0xff]   ;;  %v12228_v14 = vld [vmem:[#allocation9 + $0x768] ss:$16 sps:$4 sm:$0xff]  }
 0x4e6   :  { %8527 = vmatprep.subr.bf16.mxu1 %v12179_v19  ;;  %9183 = vmatprep.subr.bf16.mxu0 %v12182_v22  ;;  %v12233_v19 = vld [vmem:[#allocation9 + $0x784] ss:$16 sps:$4 sm:$0xff]   ;;  %v12236_v22 = vld [vmem:[#allocation9 + $0x78c] ss:$16 sps:$4 sm:$0xff]  }
 0x4e7   :  { %v701_v37 = vld [vmem:[#allocation2 + $0x10] sm:$0x1]  ;;  %v716_v42 = vld [vmem:[#allocation2 + $0x12] sm:$0x1]  ;;  %v731_v43 = vld [vmem:[#allocation2 + $0x14] sm:$0x1] }
 0x4e8   :  { %v746_v47 = vld [vmem:[#allocation2 + $0x16] sm:$0x1]  ;;  %702 = vst.msk [vmem:[#allocation3 + $0x10] sm:$0x1] %vm580_vm1, %v701_v37  ;;  %717 = vst.msk [vmem:[#allocation3 + $0x12] sm:$0x1] %vm580_vm1, %v716_v42 }
 0x4e9   :  { %732 = vst.msk [vmem:[#allocation3 + $0x14] sm:$0x1] %vm580_vm1, %v731_v43  ;;  %v10035_v48 = vld.sshfl [vmem:[#allocation2 + $0x13] sm:$0x1 pattern:$0x76325410]  ;;  %8528 = vmatpush1.bf16.msra.mxu1 %v12177_v27  ;;  %9184 = vmatpush1.bf16.msra.mxu0 %v12180_v39 }
 0x4ea   :  { %747 = vst.msk [vmem:[#allocation3 + $0x16] sm:$0x1] %vm580_vm1, %v746_v47  ;;  %727 = vrot.lane.b32.xlu1 %v10035_v48, %s13570_s0  ;;  %v10034_v49 = vld.sshfl [vmem:[#allocation2 + $0x11] sm:$0x1 pattern:$0x76325410]  ;;  %8529 = vmatprep.subr.bf16.mxu1 %v12185_v36 }
 0x4eb   :  { %712 = vrot.lane.b32.xlu0 %v10034_v49, %s13570_s0  ;;  %v10037_v28 = vld.sshfl [vmem:[#allocation2 + $0x17] sm:$0x1 pattern:$0x76325410]  ;;  %9185 = vmatprep.subr.bf16.mxu0 %v12188_v26  ;;  %v12231_v27 = vld [vmem:[#allocation9 + $0x780] ss:$16 sps:$4 sm:$0xff]  }
 0x4ec   :  { %v10036_v52 = vld.sshfl [vmem:[#allocation2 + $0x15] sm:$0x1 pattern:$0x76325410]  ;;  %v12234_v39 = vld [vmem:[#allocation9 + $0x788] ss:$16 sps:$4 sm:$0xff]  }
 0x4ed   :  { %1530 = vst.msk [vmem:[#allocation2 + $0x10] sm:$0xff] %vm570_vm0, %v1500_v51  ;;  %8530 = vmatpush1.bf16.msra.mxu1 %v12183_v44  ;;  %9186 = vmatpush1.bf16.msra.mxu0 %v12186_v50  ;;  %v12239_v36 = vld [vmem:[#allocation9 + $0x7a4] ss:$16 sps:$4 sm:$0xff]   ;;  %v12242_v26 = vld [vmem:[#allocation9 + $0x7ac] ss:$16 sps:$4 sm:$0xff]  }
 0x4ee   :  { %757 = vrot.lane.b32.xlu1 %v10037_v28, %s13570_s0  ;;  %8531 = vmatprep.subr.bf16.mxu1 %v12191_v21  ;;  %v12240_v37 = vld [vmem:[#allocation9 + $0x7a8] ss:$16 sps:$4 sm:$0xff]   ;;  %v12245_v42 = vld [vmem:[#allocation9 + $0x7c4] ss:$16 sps:$4 sm:$0xff]   ;;  %v12248_v43 = vld [vmem:[#allocation9 + $0x7cc] ss:$16 sps:$4 sm:$0xff]  }
 0x4ef   :  { %742 = vrot.lane.b32.xlu0 %v10036_v52, %s13570_s0  ;;  %9187 = vmatprep.subr.bf16.mxu0 %v12194_v53  ;;  %v12243_v44 = vld [vmem:[#allocation9 + $0x7c0] ss:$16 sps:$4 sm:$0xff]   ;;  %v12246_v47 = vld [vmem:[#allocation9 + $0x7c8] ss:$16 sps:$4 sm:$0xff]   ;;  %v12251_v48 = vld [vmem:[#allocation9 + $0x7e4] ss:$16 sps:$4 sm:$0xff]   ;;  %v2206_v53 = vpack.c.bf16 %v14101_v10, %v14101_v10 }
 0x4f0   :  { %v12254_v49 = vld [vmem:[#allocation9 + $0x7ec] ss:$16 sps:$4 sm:$0xff]   ;;  %v12249_v50 = vld [vmem:[#allocation9 + $0x7e0] ss:$16 sps:$4 sm:$0xff]   ;;  %v12252_v51 = vld [vmem:[#allocation9 + $0x7e8] ss:$16 sps:$4 sm:$0xff]  }
 0x4f1   :  { %8532 = vmatpush1.bf16.msra.mxu1 %v12189_v54  ;;  %9188 = vmatpush1.bf16.msra.mxu0 %v12192_v55  ;;  %v12257_v28 = vld [vmem:[#allocation9 + $0x804] ss:$16 sps:$4 sm:$0xff]   ;;  %v12260_v21 = vld [vmem:[#allocation9 + $0x80c] ss:$16 sps:$4 sm:$0xff]   ;;  %v12255_v52 = vld [vmem:[#allocation9 + $0x800] ss:$16 sps:$4 sm:$0xff]  }
 0x4f2   :  { %8533 = vmatprep.subr.bf16.mxu1 %v12197_v16  ;;  %9189 = vmatprep.subr.bf16.mxu0 %v12200_v56  ;;  %v12258_v54 = vld [vmem:[#allocation9 + $0x808] ss:$16 sps:$4 sm:$0xff]   ;;  %v12263_v55 = vld [vmem:[#allocation9 + $0x824] ss:$16 sps:$4 sm:$0xff]   ;;  %v12266_v16 = vld [vmem:[#allocation9 + $0x82c] ss:$16 sps:$4 sm:$0xff]  }
 0x4f3   :  { %v12261_v56 = vld [vmem:[#allocation9 + $0x820] ss:$16 sps:$4 sm:$0xff]   ;;  %v12270_v10 = vld [vmem:[#allocation9 + $0x848] ss:$16 sps:$4 sm:$0xff]  }
 0x4f4   :  { %v10099_v60 = vld.sshfl [vmem:[#allocation2 + $0x13] sm:$0x1 pattern:$0x76325410]  ;;  %v1671_v29 = vld [vmem:[#allocation2 + $0x12] sm:$0x1] }
 0x4f5   :  { %1682 = vrot.lane.b32.xlu1 %v10099_v60, %s13570_s0  ;;  %v10098_v61 = vld.sshfl [vmem:[#allocation2 + $0x11] sm:$0x1 pattern:$0x76325410]  ;;  %1672 = vst.msk [vmem:[#allocation3 + $0x13] sm:$0x1] %vm580_vm1, %v1671_v29  ;;  %8534 = vmatpush1.bf16.msra.mxu1 %v12195_v57 }
 0x4f6   :  { %v1656_v62 = vld [vmem:[#allocation2 + $0x10] sm:$0x1]  ;;  %1667 = vrot.lane.b32.xlu0 %v10098_v61, %s13570_s0  ;;  %v1701_v2 = vld [vmem:[#allocation2 + $0x16] sm:$0x1]  ;;  %9190 = vmatpush1.bf16.msra.mxu0 %v12198_v58  ;;  %v1686_v30 = vld [vmem:[#allocation2 + $0x14] sm:$0x1] }
 0x4f7   :  { %1657 = vst.msk [vmem:[#allocation3 + $0x11] sm:$0x1] %vm580_vm1, %v1656_v62  ;;  %8535 = vmatprep.subr.bf16.mxu1 %v12203_v7  ;;  %1702 = vst.msk [vmem:[#allocation3 + $0x17] sm:$0x1] %vm580_vm1, %v1701_v2  ;;  %9191 = vmatprep.subr.bf16.mxu0 %v12206_v59  ;;  %v12264_v57 = vld [vmem:[#allocation9 + $0x828] ss:$16 sps:$4 sm:$0xff]  }
 0x4f8   :  { %v10101_v8 = vld.sshfl [vmem:[#allocation2 + $0x17] sm:$0x1 pattern:$0x76325410]  ;;  %1687 = vst.msk [vmem:[#allocation3 + $0x15] sm:$0x1] %vm580_vm1, %v1686_v30 }
 0x4f9   :  { %1712 = vrot.lane.b32.xlu1 %v10101_v8, %s13570_s0  ;;  %v10100_v12 = vld.sshfl [vmem:[#allocation2 + $0x15] sm:$0x1 pattern:$0x76325410]  ;;  %8536 = vmatpush1.bf16.msra.mxu1 %v12201_v1  ;;  %v12272_v7 = vld [vmem:[#allocation9 + $0x84c] ss:$16 sps:$4 sm:$0xff]  }
 0x4fa   :  { %1697 = vrot.lane.b32.xlu0 %v10100_v12, %s13570_s0  ;;  %9192 = vmatpush1.bf16.msra.mxu0 %v12204_v4  ;;  %v12269_v58 = vld [vmem:[#allocation9 + $0x844] ss:$16 sps:$4 sm:$0xff]   ;;  %v12267_v59 = vld [vmem:[#allocation9 + $0x840] ss:$16 sps:$4 sm:$0xff]   ;;  %v12278_v29 = vld [vmem:[#allocation9 + $0x86c] ss:$16 sps:$4 sm:$0xff]  }
 0x4fb   :  { %8537 = vmatprep.subr.bf16.mxu1 %v12209_v5  ;;  %9193 = vmatprep.subr.bf16.mxu0 %v12212_v9  ;;  %v12275_v60 = vld [vmem:[#allocation9 + $0x864] ss:$16 sps:$4 sm:$0xff]   ;;  %v12273_v61 = vld [vmem:[#allocation9 + $0x860] ss:$16 sps:$4 sm:$0xff]   ;;  %v12276_v62 = vld [vmem:[#allocation9 + $0x868] ss:$16 sps:$4 sm:$0xff]  }
 0x4fc   :  { %v12281_v1 = vld [vmem:[#allocation9 + $0x884] ss:$16 sps:$4 sm:$0xff]   ;;  %v12284_v2 = vld [vmem:[#allocation9 + $0x88c] ss:$16 sps:$4 sm:$0xff]   ;;  %v12279_v4 = vld [vmem:[#allocation9 + $0x880] ss:$16 sps:$4 sm:$0xff]  }
 0x4fd   :  { %1400 = vperm.xlu1 %11870, %v1378_v13   ;;  %8538 = vmatpush1.bf16.msra.mxu1 %v12207_v17  ;;  %v12282_v5 = vld [vmem:[#allocation9 + $0x888] ss:$16 sps:$4 sm:$0xff]   ;;  %v12287_v30 = vld [vmem:[#allocation9 + $0x8a4] ss:$16 sps:$4 sm:$0xff]   ;;  %v12290_v8 = vld [vmem:[#allocation9 + $0x8ac] ss:$16 sps:$4 sm:$0xff]  }
 0x4fe   :  { %442 = vperm.xlu0 %11869, %v1378_v13   ;;  %9194 = vmatpush1.bf16.msra.mxu0 %v12210_v18  ;;  %v12285_v9 = vld [vmem:[#allocation9 + $0x8a0] ss:$16 sps:$4 sm:$0xff]   ;;  %v12288_v12 = vld [vmem:[#allocation9 + $0x8a8] ss:$16 sps:$4 sm:$0xff]   ;;  %v12293_v13 = vld [vmem:[#allocation9 + $0x8c4] ss:$16 sps:$4 sm:$0xff]  }
 0x4ff   :  { %8539 = vmatprep.subr.bf16.mxu1 %v12215_v31  ;;  %9195 = vmatprep.subr.bf16.mxu0 %v12218_v20  ;;  %v12296_v17 = vld [vmem:[#allocation9 + $0x8cc] ss:$16 sps:$4 sm:$0xff]   ;;  %v12291_v18 = vld [vmem:[#allocation9 + $0x8c0] ss:$16 sps:$4 sm:$0xff]   ;;  %v12294_v31 = vld [vmem:[#allocation9 + $0x8c8] ss:$16 sps:$4 sm:$0xff]  }
 0x500   :  { %v12299_v20 = vld [vmem:[#allocation9 + $0x8e4] ss:$16 sps:$4 sm:$0xff]  }
 0x501   :  { %8540 = vmatpush1.bf16.msra.mxu1 %v12213_v23  ;;  %v12302_v23 = vld [vmem:[#allocation9 + $0x8ec] ss:$16 sps:$4 sm:$0xff]  }
 0x502   :  { %9196 = vmatpush1.bf16.msra.mxu0 %v12216_v24  ;;  %8541 = vmatprep.subr.bf16.mxu1 %v12221_v25  ;;  %v12297_v24 = vld [vmem:[#allocation9 + $0x8e0] ss:$16 sps:$4 sm:$0xff]   ;;  %v12300_v25 = vld [vmem:[#allocation9 + $0x8e8] ss:$16 sps:$4 sm:$0xff]  }
 0x503   :  { %9197 = vmatprep.subr.bf16.mxu0 %v12224_v33  ;;  %v12305_v33 = vld [vmem:[#allocation9 + $0x904] ss:$16 sps:$4 sm:$0xff]  }
 0x505   :  { %8542 = vmatpush1.bf16.msra.mxu1 %v12219_v35  ;;  %v12308_v35 = vld [vmem:[#allocation9 + $0x90c] ss:$16 sps:$4 sm:$0xff]  }
 0x506   :  { %9198 = vmatpush1.bf16.msra.mxu0 %v12222_v3  ;;  %8543 = vmatprep.subr.bf16.mxu1 %v12227_v6  ;;  %v12303_v3 = vld [vmem:[#allocation9 + $0x900] ss:$16 sps:$4 sm:$0xff]   ;;  %v12306_v6 = vld [vmem:[#allocation9 + $0x908] ss:$16 sps:$4 sm:$0xff]  }
 0x507   :  { %9199 = vmatprep.subr.bf16.mxu0 %v12230_v34  ;;  %v12311_v34 = vld [vmem:[#allocation9 + $0x924] ss:$16 sps:$4 sm:$0xff]  }
 0x509   :  { %8544 = vmatpush1.bf16.msra.mxu1 %v12225_v11  ;;  %v12314_v11 = vld [vmem:[#allocation9 + $0x92c] ss:$16 sps:$4 sm:$0xff]  }
 0x50a   :  { %9200 = vmatpush1.bf16.msra.mxu0 %v12228_v14  ;;  %8545 = vmatprep.subr.bf16.mxu1 %v12233_v19  ;;  %v14130_v14 = vpop.f32.mrb[36].mxu0  ;;  %v12309_v19 = vld [vmem:[#allocation9 + $0x920] ss:$16 sps:$4 sm:$0xff]  }
 0x50b   :  { %9201 = vmatprep.subr.bf16.mxu0 %v12236_v22  ;;  %v14132_v22 = vpop.f32.mrb[37].mxu0 }
 0x50d   :  { %8546 = vmatpush1.bf16.msra.mxu1 %v12231_v27  ;;  %v12312_v27 = vld [vmem:[#allocation9 + $0x928] ss:$16 sps:$4 sm:$0xff]  }
 0x50e   :  { %9202 = vmatpush1.bf16.msra.mxu0 %v12234_v39  ;;  %8547 = vmatprep.subr.bf16.mxu1 %v12239_v36  ;;  %v12317_v39 = vld [vmem:[#allocation9 + $0x944] ss:$16 sps:$4 sm:$0xff]   ;;  %v14134_v36 = vpop.f32.mrb[38].mxu0 }
 0x50f   :  { %9203 = vmatprep.subr.bf16.mxu0 %v12242_v26  ;;  %v12320_v26 = vld [vmem:[#allocation9 + $0x94c] ss:$16 sps:$4 sm:$0xff]  }
 0x511   :  { %8548 = vmatpush1.bf16.msra.mxu1 %v12237_v32  ;;  %v14136_v32 = vpop.f32.mrb[39].mxu0 }
 0x512   :  { %9204 = vmatpush1.bf16.msra.mxu0 %v12240_v37  ;;  %8549 = vmatprep.subr.bf16.mxu1 %v12245_v42  ;;  %v12315_v37 = vld [vmem:[#allocation9 + $0x940] ss:$16 sps:$4 sm:$0xff]   ;;  %v12318_v42 = vld [vmem:[#allocation9 + $0x948] ss:$16 sps:$4 sm:$0xff]  }
 0x513   :  { %9205 = vmatprep.subr.bf16.mxu0 %v12248_v43  ;;  %v12323_v43 = vld [vmem:[#allocation9 + $0x964] ss:$16 sps:$4 sm:$0xff]  }
 0x515   :  { %8550 = vmatpush1.bf16.msra.mxu1 %v12243_v44  ;;  %v12326_v44 = vld [vmem:[#allocation9 + $0x96c] ss:$16 sps:$4 sm:$0xff]  }
 0x516   :  { %9206 = vmatpush1.bf16.msra.mxu0 %v12246_v47  ;;  %8551 = vmatprep.subr.bf16.mxu1 %v12251_v48  ;;  %v12321_v47 = vld [vmem:[#allocation9 + $0x960] ss:$16 sps:$4 sm:$0xff]   ;;  %v12324_v48 = vld [vmem:[#allocation9 + $0x968] ss:$16 sps:$4 sm:$0xff]  }
 0x517   :  { %9207 = vmatprep.subr.bf16.mxu0 %v12254_v49  ;;  %v12329_v49 = vld [vmem:[#allocation9 + $0x984] ss:$16 sps:$4 sm:$0xff]  }
 0x519   :  { %8552 = vmatpush1.bf16.msra.mxu1 %v12249_v50  ;;  %v12332_v50 = vld [vmem:[#allocation9 + $0x98c] ss:$16 sps:$4 sm:$0xff]  }
 0x51a   :  { %9208 = vmatpush1.bf16.msra.mxu0 %v12252_v51  ;;  %8562 = vmatprep.subr.bf16.mxu1 %v12257_v28  ;;  %v12327_v51 = vld [vmem:[#allocation9 + $0x980] ss:$16 sps:$4 sm:$0xff]   ;;  %v12330_v28 = vld [vmem:[#allocation9 + $0x988] ss:$16 sps:$4 sm:$0xff]  }
 0x51b   :  { %9218 = vmatprep.subr.bf16.mxu0 %v12260_v21  ;;  %v12335_v21 = vld [vmem:[#allocation9 + $0x9a4] ss:$16 sps:$4 sm:$0xff]  }
 0x51c   :  { %8554 = vmatmul.mubr.bf16.vlgmr.msra.gmra.mrb[40].mxu1 %v2206_v53 }
 0x51d   :  { %9210 = vmatmul.mubr.bf16.vlgmr.msra.gmra.mrb[40].mxu0 %v2206_v53  ;;  %8563 = vmatpush1.bf16.msra.mxu1 %v12255_v52  ;;  %v12338_v52 = vld [vmem:[#allocation9 + $0x9ac] ss:$16 sps:$4 sm:$0xff]   ;;  %v12333_v53 = vld [vmem:[#allocation9 + $0x9a0] ss:$16 sps:$4 sm:$0xff]  }
 0x51e   :  { %9219 = vmatpush1.bf16.msra.mxu0 %v12258_v54  ;;  %8564 = vmatprep.subr.bf16.mxu1 %v12263_v55  ;;  %v12336_v54 = vld [vmem:[#allocation9 + $0x9a8] ss:$16 sps:$4 sm:$0xff]   ;;  %v12341_v55 = vld [vmem:[#allocation9 + $0x9c4] ss:$16 sps:$4 sm:$0xff]  }
 0x51f   :  { %9220 = vmatprep.subr.bf16.mxu0 %v12266_v16  ;;  %v12344_v16 = vld [vmem:[#allocation9 + $0x9cc] ss:$16 sps:$4 sm:$0xff]  }
 0x521   :  { %8565 = vmatpush1.bf16.msra.mxu1 %v12261_v56  ;;  %v12339_v56 = vld [vmem:[#allocation9 + $0x9c0] ss:$16 sps:$4 sm:$0xff]  }
 0x522   :  { %9221 = vmatpush1.bf16.msra.mxu0 %v12264_v57  ;;  %8566 = vmatprep.subr.bf16.mxu1 %v12269_v58  ;;  %v12342_v57 = vld [vmem:[#allocation9 + $0x9c8] ss:$16 sps:$4 sm:$0xff]   ;;  %v12347_v58 = vld [vmem:[#allocation9 + $0x9e4] ss:$16 sps:$4 sm:$0xff]  }
 0x523   :  { %9222 = vmatprep.subr.bf16.mxu0 %v12272_v7  ;;  %v12350_v7 = vld [vmem:[#allocation9 + $0x9ec] ss:$16 sps:$4 sm:$0xff]  }
 0x525   :  { %8567 = vmatpush1.bf16.msra.mxu1 %v12267_v59  ;;  %v12345_v59 = vld [vmem:[#allocation9 + $0x9e0] ss:$16 sps:$4 sm:$0xff]  }
 0x526   :  { %9223 = vmatpush1.bf16.msra.mxu0 %v12270_v10  ;;  %8568 = vmatprep.subr.bf16.mxu1 %v12275_v60  ;;  %v12348_v10 = vld [vmem:[#allocation9 + $0x9e8] ss:$16 sps:$4 sm:$0xff]   ;;  %v12353_v60 = vld [vmem:[#allocation9 + $0xa04] ss:$16 sps:$4 sm:$0xff]  }
 0x527   :  { %9224 = vmatprep.subr.bf16.mxu0 %v12278_v29  ;;  %v12356_v29 = vld [vmem:[#allocation9 + $0xa0c] ss:$16 sps:$4 sm:$0xff]  }
 0x529   :  { %8569 = vmatpush1.bf16.msra.mxu1 %v12273_v61 }
 0x52a   :  { %9225 = vmatpush1.bf16.msra.mxu0 %v12276_v62  ;;  %8570 = vmatprep.subr.bf16.mxu1 %v12281_v1 }
 0x52b   :  { %9226 = vmatprep.subr.bf16.mxu0 %v12284_v2 }
 0x52d   :  { %8571 = vmatpush1.bf16.msra.mxu1 %v12279_v4 }
 0x52e   :  { %9227 = vmatpush1.bf16.msra.mxu0 %v12282_v5  ;;  %8572 = vmatprep.subr.bf16.mxu1 %v12287_v30 }
 0x52f   :  { %9228 = vmatprep.subr.bf16.mxu0 %v12290_v8 }
 0x531   :  { %8573 = vmatpush1.bf16.msra.mxu1 %v12285_v9 }
 0x532   :  { %9229 = vmatpush1.bf16.msra.mxu0 %v12288_v12  ;;  %8574 = vmatprep.subr.bf16.mxu1 %v12293_v13 }
 0x533   :  { %9230 = vmatprep.subr.bf16.mxu0 %v12296_v17 }
 0x535   :  { %8575 = vmatpush1.bf16.msra.mxu1 %v12291_v18 }
 0x536   :  { %9231 = vmatpush1.bf16.msra.mxu0 %v12294_v31  ;;  %8576 = vmatprep.subr.bf16.mxu1 %v12299_v20  ;;  %v12351_v20 = vld [vmem:[#allocation9 + $0xa00] ss:$16 sps:$4 sm:$0xff]  }
 0x537   :  { %9232 = vmatprep.subr.bf16.mxu0 %v12302_v23  ;;  %v12354_v23 = vld [vmem:[#allocation9 + $0xa08] ss:$16 sps:$4 sm:$0xff]  }
 0x539   :  { %8577 = vmatpush1.bf16.msra.mxu1 %v12297_v24 }
 0x53a   :  { %9233 = vmatpush1.bf16.msra.mxu0 %v12300_v25  ;;  %8578 = vmatprep.subr.bf16.mxu1 %v12305_v33 }
 0x53b   :  { %9234 = vmatprep.subr.bf16.mxu0 %v12308_v35  ;;  %v12359_v35 = vld [vmem:[#allocation9 + $0xa24] ss:$16 sps:$4 sm:$0xff]  }
 0x53d   :  { %8579 = vmatpush1.bf16.msra.mxu1 %v12303_v3  ;;  %v12362_v3 = vld [vmem:[#allocation9 + $0xa2c] ss:$16 sps:$4 sm:$0xff]  }
 0x53e   :  { %9235 = vmatpush1.bf16.msra.mxu0 %v12306_v6  ;;  %8580 = vmatprep.subr.bf16.mxu1 %v12311_v34  ;;  %v12357_v34 = vld [vmem:[#allocation9 + $0xa20] ss:$16 sps:$4 sm:$0xff]  }
 0x53f   :  { %9236 = vmatprep.subr.bf16.mxu0 %v12314_v11  ;;  %v12360_v11 = vld [vmem:[#allocation9 + $0xa28] ss:$16 sps:$4 sm:$0xff]  }
 0x541   :  { %8581 = vmatpush1.bf16.msra.mxu1 %v12309_v19 }
 0x542   :  { %9237 = vmatpush1.bf16.msra.mxu0 %v12312_v27  ;;  %8582 = vmatprep.subr.bf16.mxu1 %v12317_v39  ;;  %v12365_v27 = vld [vmem:[#allocation9 + $0xa44] ss:$16 sps:$4 sm:$0xff]   ;;  %v12368_v39 = vld [vmem:[#allocation9 + $0xa4c] ss:$16 sps:$4 sm:$0xff]  }
 0x543   :  { %9238 = vmatprep.subr.bf16.mxu0 %v12320_v26  ;;  %v12363_v26 = vld [vmem:[#allocation9 + $0xa40] ss:$16 sps:$4 sm:$0xff]  }
 0x545   :  { %8583 = vmatpush1.bf16.msra.mxu1 %v12315_v37  ;;  %v12366_v37 = vld [vmem:[#allocation9 + $0xa48] ss:$16 sps:$4 sm:$0xff]  }
 0x546   :  { %9239 = vmatpush1.bf16.msra.mxu0 %v12318_v42  ;;  %8584 = vmatprep.subr.bf16.mxu1 %v12323_v43  ;;  %v12371_v42 = vld [vmem:[#allocation9 + $0xa64] ss:$16 sps:$4 sm:$0xff]   ;;  %v12374_v43 = vld [vmem:[#allocation9 + $0xa6c] ss:$16 sps:$4 sm:$0xff]  }
 0x547   :  { %9240 = vmatprep.subr.bf16.mxu0 %v12326_v44  ;;  %v12369_v44 = vld [vmem:[#allocation9 + $0xa60] ss:$16 sps:$4 sm:$0xff]  }
 0x549   :  { %8585 = vmatpush1.bf16.msra.mxu1 %v12321_v47  ;;  %v12377_v47 = vld [vmem:[#allocation9 + $0xa84] ss:$16 sps:$4 sm:$0xff]  }
 0x54a   :  { %9241 = vmatpush1.bf16.msra.mxu0 %v12324_v48  ;;  %8586 = vmatprep.subr.bf16.mxu1 %v12329_v49  ;;  %v12380_v48 = vld [vmem:[#allocation9 + $0xa8c] ss:$16 sps:$4 sm:$0xff]  }
 0x54b   :  { %9242 = vmatprep.subr.bf16.mxu0 %v12332_v50 }
 0x54d   :  { %8587 = vmatpush1.bf16.msra.mxu1 %v12327_v51 }
 0x54e   :  { %9243 = vmatpush1.bf16.msra.mxu0 %v12330_v28  ;;  %8588 = vmatprep.subr.bf16.mxu1 %v12335_v21  ;;  %v12375_v21 = vld [vmem:[#allocation9 + $0xa80] ss:$16 sps:$4 sm:$0xff]  }
 0x54f   :  { %9244 = vmatprep.subr.bf16.mxu0 %v12338_v52 }
 0x551   :  { %8589 = vmatpush1.bf16.msra.mxu1 %v12333_v53 }
 0x552   :  { %9245 = vmatpush1.bf16.msra.mxu0 %v12336_v54  ;;  %8590 = vmatprep.subr.bf16.mxu1 %v12341_v55  ;;  %v12378_v55 = vld [vmem:[#allocation9 + $0xa88] ss:$16 sps:$4 sm:$0xff]  }
 0x553   :  { %9246 = vmatprep.subr.bf16.mxu0 %v12344_v16 }
 0x555   :  { %8591 = vmatpush1.bf16.msra.mxu1 %v12339_v56 }
 0x556   :  { %9247 = vmatpush1.bf16.msra.mxu0 %v12342_v57  ;;  %8592 = vmatprep.subr.bf16.mxu1 %v12347_v58  ;;  %v12383_v57 = vld [vmem:[#allocation9 + $0xaa4] ss:$16 sps:$4 sm:$0xff]  }
 0x557   :  { %9248 = vmatprep.subr.bf16.mxu0 %v12350_v7  ;;  %v12386_v7 = vld [vmem:[#allocation9 + $0xaac] ss:$16 sps:$4 sm:$0xff]  }
 0x559   :  { %8593 = vmatpush1.bf16.msra.mxu1 %v12345_v59  ;;  %v12381_v59 = vld [vmem:[#allocation9 + $0xaa0] ss:$16 sps:$4 sm:$0xff]  }
 0x55a   :  { %9249 = vmatpush1.bf16.msra.mxu0 %v12348_v10  ;;  %8603 = vmatprep.subr.bf16.mxu1 %v12353_v60  ;;  %v12384_v10 = vld [vmem:[#allocation9 + $0xaa8] ss:$16 sps:$4 sm:$0xff]   ;;  %v12392_v60 = vld [vmem:[#allocation9 + $0xacc] ss:$16 sps:$4 sm:$0xff]  }
 0x55b   :  { %9259 = vmatprep.subr.bf16.mxu0 %v12356_v29  ;;  %v12387_v29 = vld [vmem:[#allocation9 + $0xac0] ss:$16 sps:$4 sm:$0xff]  }
 0x55c   :  { %v728_v61 = vpop.permute.xlu1 %727 }
 0x55d   :  { %730 = vst.msk [vmem:[#allocation3 + $0x12] sm:$0x1] %vm594_vm2, %v728_v61  ;;  %v713_v62 = vpop.permute.xlu0 %712  ;;  %v12390_v61 = vld [vmem:[#allocation9 + $0xac8] ss:$16 sps:$4 sm:$0xff]  }
 0x55e   :  { %715 = vst.msk [vmem:[#allocation3 + $0x10] sm:$0x1] %vm594_vm2, %v713_v62  ;;  %v12395_v62 = vld [vmem:[#allocation9 + $0xae4] ss:$16 sps:$4 sm:$0xff]  }
 0x560   :  { %v758_v1 = vpop.permute.xlu1 %757 }
 0x561   :  { %760 = vst.msk [vmem:[#allocation3 + $0x16] sm:$0x1] %vm594_vm2, %v758_v1  ;;  %v743_v2 = vpop.permute.xlu0 %742  ;;  %v12398_v1 = vld [vmem:[#allocation9 + $0xaec] ss:$16 sps:$4 sm:$0xff]  }
 0x562   :  { %745 = vst.msk [vmem:[#allocation3 + $0x14] sm:$0x1] %vm594_vm2, %v743_v2 }
 0x567   :  { %v1683_v4 = vpop.permute.xlu1 %1682 }
 0x568   :  { %1685 = vst.msk [vmem:[#allocation3 + $0x13] sm:$0x1] %vm594_vm2, %v1683_v4  ;;  %v1668_v5 = vpop.permute.xlu0 %1667 }
 0x569   :  { %1670 = vst.msk [vmem:[#allocation3 + $0x11] sm:$0x1] %vm594_vm2, %v1668_v5 }
 0x56b   :  { %v1713_v30 = vpop.permute.xlu1 %1712 }
 0x56c   :  { %1715 = vst.msk [vmem:[#allocation3 + $0x17] sm:$0x1] %vm594_vm2, %v1713_v30  ;;  %v1698_v8 = vpop.permute.xlu0 %1697 }
 0x56d   :  { %1700 = vst.msk [vmem:[#allocation3 + $0x15] sm:$0x1] %vm594_vm2, %v1698_v8  ;;  %v12393_v8 = vld [vmem:[#allocation9 + $0xae0] ss:$16 sps:$4 sm:$0xff]  }
 0x574   :  { %v2018_v9 = vld [vmem:[#allocation3 + $0x10] sm:$0xff] }
 0x575   :  { %v2073_v12 = vrot.slane %v2018_v9, %v14054_v0  ;;  %v2066_v13 = vcombine.high %v2018_v9, %v2018_v9 }
 0x577   :  { %v2081_v17 = vcombine.high %v2073_v12, %v2073_v12  ;;  %v14148_v18 = vrot.slane %v2066_v13, %v14054_v0  ;;  %v2208_v25 = vpack.c.bf16 %v2073_v12, %v2073_v12  ;;  %v12396_v12 = vld [vmem:[#allocation9 + $0xae8] ss:$16 sps:$4 sm:$0xff]   ;;  %v12401_v13 = vld [vmem:[#allocation9 + $0xb04] ss:$16 sps:$4 sm:$0xff]  }
 0x579   :  { %v2209_v31 = vpack.c.bf16 %v2081_v17, %v2081_v17  ;;  %v2082_v24 = vcombine.high %v14148_v18, %v14148_v18 }
 0x57b   :  { %8594 = vmatprep.mubr.bf16.mxu1 %v2209_v31  ;;  %9250 = vmatprep.mubr.bf16.mxu0 %v2209_v31  ;;  %v2211_v33 = vpack.c.bf16 %v2082_v24, %v2082_v24  ;;  %v1379_v24 = vld [vmem:[%s14561_s4 + $0x20] sm:$0xff] }
 0x57c   :  { %8595 = vmatmul.mubr.bf16.vlgmr.msra.gmra.mrb[40].mxu1 %v2208_v25  ;;  %9251 = vmatmul.mubr.bf16.vlgmr.msra.gmra.mrb[40].mxu0 %v2208_v25  ;;  %v1401_v49 = vpop.permute.xlu1 %1400  ;;  %v12399_v25 = vld [vmem:[#allocation9 + $0xb00] ss:$16 sps:$4 sm:$0xff]  }
 0x57d   :  { %8604 = vmatpush1.bf16.msra.mxu1 %v12351_v20  ;;  %9260 = vmatpush1.bf16.msra.mxu0 %v12354_v23  ;;  %v443_v6 = vpop.permute.xlu0 %442  ;;  %v1505_v16 = vadd.f32 %v14085_v15, %v1401_v49  ;;  %v12389_v15 = vld [vmem:[#allocation9 + $0xac4] ss:$16 sps:$4 sm:$0xff]   ;;  %v12404_v20 = vld [vmem:[#allocation9 + $0xb0c] ss:$16 sps:$4 sm:$0xff]  }
 0x57e   :  { %v547_v19 = vadd.f32 %v13993_v38, %v443_v6  ;;  %8635 = vmatprep.mubr.bf16.mxu1 %v2211_v33  ;;  %9291 = vmatprep.mubr.bf16.mxu0 %v2211_v33  ;;  %v12372_v38 = vld [vmem:[#allocation9 + $0xa68] ss:$16 sps:$4 sm:$0xff]   ;;  %v12405_v6 = vld [vmem:[#allocation9 + $0xb20] ss:$16 sps:$4 sm:$0xff]   ;;  %v12431_v49 = vld [vmem:[#allocation9 + $0xba4] ss:$16 sps:$4 sm:$0xff]  }
 0x57f   :  { %8605 = vmatprep.subr.bf16.mxu1 %v12359_v35  ;;  %9261 = vmatprep.subr.bf16.mxu0 %v12362_v3  ;;  %v12402_v33 = vld [vmem:[#allocation9 + $0xb08] ss:$16 sps:$4 sm:$0xff]   ;;  %v12407_v35 = vld [vmem:[#allocation9 + $0xb24] ss:$16 sps:$4 sm:$0xff]   ;;  %v12410_v3 = vld [vmem:[#allocation9 + $0xb2c] ss:$16 sps:$4 sm:$0xff]  }
 0x580   :  { %574 = vst.msk [vmem:[#allocation2 + $0x18] sm:$0xff] %vm570_vm0, %v547_v19  ;;  %v12416_v19 = vld [vmem:[#allocation9 + $0xb4c] ss:$16 sps:$4 sm:$0xff]  }
 0x581   :  { %8606 = vmatpush1.bf16.msra.mxu1 %v12357_v34  ;;  %9262 = vmatpush1.bf16.msra.mxu0 %v12360_v11  ;;  %v12408_v34 = vld [vmem:[#allocation9 + $0xb28] ss:$16 sps:$4 sm:$0xff]   ;;  %v12413_v11 = vld [vmem:[#allocation9 + $0xb44] ss:$16 sps:$4 sm:$0xff]  }
 0x582   :  { %8607 = vmatprep.subr.bf16.mxu1 %v12365_v27  ;;  %9263 = vmatprep.subr.bf16.mxu0 %v12368_v39  ;;  %v12411_v27 = vld [vmem:[#allocation9 + $0xb40] ss:$16 sps:$4 sm:$0xff]   ;;  %v12414_v39 = vld [vmem:[#allocation9 + $0xb48] ss:$16 sps:$4 sm:$0xff]  }
 0x585   :  { %8608 = vmatpush1.bf16.msra.mxu1 %v12363_v26  ;;  %9264 = vmatpush1.bf16.msra.mxu0 %v12366_v37  ;;  %v12419_v26 = vld [vmem:[#allocation9 + $0xb64] ss:$16 sps:$4 sm:$0xff]   ;;  %v12422_v37 = vld [vmem:[#allocation9 + $0xb6c] ss:$16 sps:$4 sm:$0xff]  }
 0x586   :  { %8609 = vmatprep.subr.bf16.mxu1 %v12371_v42  ;;  %9265 = vmatprep.subr.bf16.mxu0 %v12374_v43  ;;  %v12417_v42 = vld [vmem:[#allocation9 + $0xb60] ss:$16 sps:$4 sm:$0xff]   ;;  %v12420_v43 = vld [vmem:[#allocation9 + $0xb68] ss:$16 sps:$4 sm:$0xff]  }
 0x587   :  { %v761_v50 = vld [vmem:[#allocation2 + $0x18] sm:$0x1]  ;;  %v776_v51 = vld [vmem:[#allocation2 + $0x1a] sm:$0x1]  ;;  %v791_v28 = vld [vmem:[#allocation2 + $0x1c] sm:$0x1] }
 0x588   :  { %v806_v52 = vld [vmem:[#allocation2 + $0x1e] sm:$0x1]  ;;  %762 = vst.msk [vmem:[#allocation3 + $0x18] sm:$0x1] %vm580_vm1, %v761_v50  ;;  %777 = vst.msk [vmem:[#allocation3 + $0x1a] sm:$0x1] %vm580_vm1, %v776_v51 }
 0x589   :  { %792 = vst.msk [vmem:[#allocation3 + $0x1c] sm:$0x1] %vm580_vm1, %v791_v28  ;;  %v10039_v53 = vld.sshfl [vmem:[#allocation2 + $0x1b] sm:$0x1 pattern:$0x76325410]  ;;  %8610 = vmatpush1.bf16.msra.mxu1 %v12369_v44  ;;  %9266 = vmatpush1.bf16.msra.mxu0 %v12372_v38 }
 0x58a   :  { %807 = vst.msk [vmem:[#allocation3 + $0x1e] sm:$0x1] %vm580_vm1, %v806_v52  ;;  %787 = vrot.lane.b32.xlu1 %v10039_v53, %s13570_s0  ;;  %v10038_v54 = vld.sshfl [vmem:[#allocation2 + $0x19] sm:$0x1 pattern:$0x76325410]  ;;  %8611 = vmatprep.subr.bf16.mxu1 %v12377_v47 }
 0x58b   :  { %772 = vrot.lane.b32.xlu0 %v10038_v54, %s13570_s0  ;;  %v10041_v56 = vld.sshfl [vmem:[#allocation2 + $0x1f] sm:$0x1 pattern:$0x76325410]  ;;  %9267 = vmatprep.subr.bf16.mxu0 %v12380_v48  ;;  %v12425_v44 = vld [vmem:[#allocation9 + $0xb84] ss:$16 sps:$4 sm:$0xff]  }
 0x58c   :  { %v10040_v58 = vld.sshfl [vmem:[#allocation2 + $0x1d] sm:$0x1 pattern:$0x76325410]  ;;  %v12423_v47 = vld [vmem:[#allocation9 + $0xb80] ss:$16 sps:$4 sm:$0xff]  }
 0x58d   :  { %1531 = vst.msk [vmem:[#allocation2 + $0x18] sm:$0xff] %vm570_vm0, %v1505_v16  ;;  %8612 = vmatpush1.bf16.msra.mxu1 %v12375_v21  ;;  %9268 = vmatpush1.bf16.msra.mxu0 %v12378_v55  ;;  %v12428_v38 = vld [vmem:[#allocation9 + $0xb8c] ss:$16 sps:$4 sm:$0xff]   ;;  %v12426_v48 = vld [vmem:[#allocation9 + $0xb88] ss:$16 sps:$4 sm:$0xff]  }
 0x58e   :  { %817 = vrot.lane.b32.xlu1 %v10041_v56, %s13570_s0  ;;  %8613 = vmatprep.subr.bf16.mxu1 %v12383_v57  ;;  %v12434_v50 = vld [vmem:[#allocation9 + $0xbac] ss:$16 sps:$4 sm:$0xff]   ;;  %v12429_v51 = vld [vmem:[#allocation9 + $0xba0] ss:$16 sps:$4 sm:$0xff]   ;;  %v12432_v28 = vld [vmem:[#allocation9 + $0xba8] ss:$16 sps:$4 sm:$0xff]  }
 0x58f   :  { %802 = vrot.lane.b32.xlu0 %v10040_v58, %s13570_s0  ;;  %9269 = vmatprep.subr.bf16.mxu0 %v12386_v7  ;;  %v12437_v21 = vld [vmem:[#allocation9 + $0xbc4] ss:$16 sps:$4 sm:$0xff]   ;;  %v12440_v52 = vld [vmem:[#allocation9 + $0xbcc] ss:$16 sps:$4 sm:$0xff]   ;;  %v12435_v53 = vld [vmem:[#allocation9 + $0xbc0] ss:$16 sps:$4 sm:$0xff]  }
 0x590   :  { %v12438_v54 = vld [vmem:[#allocation9 + $0xbc8] ss:$16 sps:$4 sm:$0xff]   ;;  %v12443_v55 = vld [vmem:[#allocation9 + $0xbe4] ss:$16 sps:$4 sm:$0xff]   ;;  %v12446_v16 = vld [vmem:[#allocation9 + $0xbec] ss:$16 sps:$4 sm:$0xff]  }
 0x591   :  { %8614 = vmatpush1.bf16.msra.mxu1 %v12381_v59  ;;  %9270 = vmatpush1.bf16.msra.mxu0 %v12384_v10  ;;  %v12441_v56 = vld [vmem:[#allocation9 + $0xbe0] ss:$16 sps:$4 sm:$0xff]   ;;  %v12444_v57 = vld [vmem:[#allocation9 + $0xbe8] ss:$16 sps:$4 sm:$0xff]   ;;  %v12449_v58 = vld [vmem:[#allocation9 + $0xc04] ss:$16 sps:$4 sm:$0xff]   ;;  %v2210_v10 = vpack.c.bf16 %v14148_v18, %v14148_v18 }
 0x592   :  { %8615 = vmatprep.subr.bf16.mxu1 %v12389_v15  ;;  %9271 = vmatprep.subr.bf16.mxu0 %v12392_v60  ;;  %v12452_v7 = vld [vmem:[#allocation9 + $0xc0c] ss:$16 sps:$4 sm:$0xff]   ;;  %v12447_v59 = vld [vmem:[#allocation9 + $0xc00] ss:$16 sps:$4 sm:$0xff]   ;;  %v12450_v15 = vld [vmem:[#allocation9 + $0xc08] ss:$16 sps:$4 sm:$0xff]  }
 0x593   :  { %v12455_v60 = vld [vmem:[#allocation9 + $0xc24] ss:$16 sps:$4 sm:$0xff]   ;;  %v12462_v18 = vld [vmem:[#allocation9 + $0xc48] ss:$16 sps:$4 sm:$0xff]  }
 0x594   :  { %v10103_v2 = vld.sshfl [vmem:[#allocation2 + $0x1b] sm:$0x1 pattern:$0x76325410]  ;;  %v1731_v4 = vld [vmem:[#allocation2 + $0x1a] sm:$0x1] }
 0x595   :  { %1742 = vrot.lane.b32.xlu1 %v10103_v2, %s13570_s0  ;;  %v10102_v5 = vld.sshfl [vmem:[#allocation2 + $0x19] sm:$0x1 pattern:$0x76325410]  ;;  %1732 = vst.msk [vmem:[#allocation3 + $0x1b] sm:$0x1] %vm580_vm1, %v1731_v4  ;;  %8616 = vmatpush1.bf16.msra.mxu1 %v12387_v29 }
 0x596   :  { %v1716_v30 = vld [vmem:[#allocation2 + $0x18] sm:$0x1]  ;;  %1727 = vrot.lane.b32.xlu0 %v10102_v5, %s13570_s0  ;;  %v1761_v9 = vld [vmem:[#allocation2 + $0x1e] sm:$0x1]  ;;  %9272 = vmatpush1.bf16.msra.mxu0 %v12390_v61  ;;  %v1746_v17 = vld [vmem:[#allocation2 + $0x1c] sm:$0x1] }
 0x597   :  { %1717 = vst.msk [vmem:[#allocation3 + $0x19] sm:$0x1] %vm580_vm1, %v1716_v30  ;;  %8617 = vmatprep.subr.bf16.mxu1 %v12395_v62  ;;  %1762 = vst.msk [vmem:[#allocation3 + $0x1f] sm:$0x1] %vm580_vm1, %v1761_v9  ;;  %9273 = vmatprep.subr.bf16.mxu0 %v12398_v1  ;;  %v12458_v29 = vld [vmem:[#allocation9 + $0xc2c] ss:$16 sps:$4 sm:$0xff]  }
 0x598   :  { %v10105_v31 = vld.sshfl [vmem:[#allocation2 + $0x1f] sm:$0x1 pattern:$0x76325410]  ;;  %1747 = vst.msk [vmem:[#allocation3 + $0x1d] sm:$0x1] %vm580_vm1, %v1746_v17 }
 0x599   :  { %1772 = vrot.lane.b32.xlu1 %v10105_v31, %s13570_s0  ;;  %v10104_v23 = vld.sshfl [vmem:[#allocation2 + $0x1d] sm:$0x1 pattern:$0x76325410]  ;;  %8618 = vmatpush1.bf16.msra.mxu1 %v12393_v8  ;;  %v12453_v61 = vld [vmem:[#allocation9 + $0xc20] ss:$16 sps:$4 sm:$0xff]  }
 0x59a   :  { %1757 = vrot.lane.b32.xlu0 %v10104_v23, %s13570_s0  ;;  %9274 = vmatpush1.bf16.msra.mxu0 %v12396_v12  ;;  %v12456_v62 = vld [vmem:[#allocation9 + $0xc28] ss:$16 sps:$4 sm:$0xff]   ;;  %v12461_v1 = vld [vmem:[#allocation9 + $0xc44] ss:$16 sps:$4 sm:$0xff]   ;;  %v12464_v2 = vld [vmem:[#allocation9 + $0xc4c] ss:$16 sps:$4 sm:$0xff]  }
 0x59b   :  { %8619 = vmatprep.subr.bf16.mxu1 %v12401_v13  ;;  %9275 = vmatprep.subr.bf16.mxu0 %v12404_v20  ;;  %v12459_v4 = vld [vmem:[#allocation9 + $0xc40] ss:$16 sps:$4 sm:$0xff]   ;;  %v12467_v5 = vld [vmem:[#allocation9 + $0xc64] ss:$16 sps:$4 sm:$0xff]   ;;  %v12470_v30 = vld [vmem:[#allocation9 + $0xc6c] ss:$16 sps:$4 sm:$0xff]  }
 0x59c   :  { %v12465_v8 = vld [vmem:[#allocation9 + $0xc60] ss:$16 sps:$4 sm:$0xff]   ;;  %v12468_v9 = vld [vmem:[#allocation9 + $0xc68] ss:$16 sps:$4 sm:$0xff]   ;;  %v12473_v12 = vld [vmem:[#allocation9 + $0xc84] ss:$16 sps:$4 sm:$0xff]  }
 0x59d   :  { %1405 = vperm.xlu1 %11870, %v1379_v24   ;;  %8620 = vmatpush1.bf16.msra.mxu1 %v12399_v25  ;;  %v12476_v13 = vld [vmem:[#allocation9 + $0xc8c] ss:$16 sps:$4 sm:$0xff]   ;;  %v12471_v17 = vld [vmem:[#allocation9 + $0xc80] ss:$16 sps:$4 sm:$0xff]   ;;  %v12474_v31 = vld [vmem:[#allocation9 + $0xc88] ss:$16 sps:$4 sm:$0xff]  }
 0x59e   :  { %447 = vperm.xlu0 %11869, %v1379_v24   ;;  %9276 = vmatpush1.bf16.msra.mxu0 %v12402_v33  ;;  %v12479_v20 = vld [vmem:[#allocation9 + $0xca4] ss:$16 sps:$4 sm:$0xff]   ;;  %v12482_v23 = vld [vmem:[#allocation9 + $0xcac] ss:$16 sps:$4 sm:$0xff]   ;;  %v12477_v24 = vld [vmem:[#allocation9 + $0xca0] ss:$16 sps:$4 sm:$0xff]  }
 0x59f   :  { %8621 = vmatprep.subr.bf16.mxu1 %v12407_v35  ;;  %9277 = vmatprep.subr.bf16.mxu0 %v12410_v3  ;;  %v12480_v25 = vld [vmem:[#allocation9 + $0xca8] ss:$16 sps:$4 sm:$0xff]   ;;  %v12485_v33 = vld [vmem:[#allocation9 + $0xcc4] ss:$16 sps:$4 sm:$0xff]   ;;  %v12488_v35 = vld [vmem:[#allocation9 + $0xccc] ss:$16 sps:$4 sm:$0xff]  }
 0x5a0   :  { %v12483_v3 = vld [vmem:[#allocation9 + $0xcc0] ss:$16 sps:$4 sm:$0xff]  }
 0x5a1   :  { %8622 = vmatpush1.bf16.msra.mxu1 %v12405_v6  ;;  %v12486_v6 = vld [vmem:[#allocation9 + $0xcc8] ss:$16 sps:$4 sm:$0xff]  }
 0x5a2   :  { %9278 = vmatpush1.bf16.msra.mxu0 %v12408_v34  ;;  %8623 = vmatprep.subr.bf16.mxu1 %v12413_v11  ;;  %v12491_v34 = vld [vmem:[#allocation9 + $0xce4] ss:$16 sps:$4 sm:$0xff]   ;;  %v12494_v11 = vld [vmem:[#allocation9 + $0xcec] ss:$16 sps:$4 sm:$0xff]  }
 0x5a3   :  { %9279 = vmatprep.subr.bf16.mxu0 %v12416_v19  ;;  %v12489_v19 = vld [vmem:[#allocation9 + $0xce0] ss:$16 sps:$4 sm:$0xff]  }
 0x5a5   :  { %8624 = vmatpush1.bf16.msra.mxu1 %v12411_v27  ;;  %v12492_v27 = vld [vmem:[#allocation9 + $0xce8] ss:$16 sps:$4 sm:$0xff]  }
 0x5a6   :  { %9280 = vmatpush1.bf16.msra.mxu0 %v12414_v39  ;;  %8625 = vmatprep.subr.bf16.mxu1 %v12419_v26  ;;  %v12497_v39 = vld [vmem:[#allocation9 + $0xd04] ss:$16 sps:$4 sm:$0xff]   ;;  %v12500_v26 = vld [vmem:[#allocation9 + $0xd0c] ss:$16 sps:$4 sm:$0xff]  }
 0x5a7   :  { %9281 = vmatprep.subr.bf16.mxu0 %v12422_v37  ;;  %v12495_v37 = vld [vmem:[#allocation9 + $0xd00] ss:$16 sps:$4 sm:$0xff]  }
 0x5a9   :  { %8626 = vmatpush1.bf16.msra.mxu1 %v12417_v42  ;;  %v12498_v42 = vld [vmem:[#allocation9 + $0xd08] ss:$16 sps:$4 sm:$0xff]  }
 0x5aa   :  { %9282 = vmatpush1.bf16.msra.mxu0 %v12420_v43  ;;  %8627 = vmatprep.subr.bf16.mxu1 %v12425_v44  ;;  %v12503_v43 = vld [vmem:[#allocation9 + $0xd24] ss:$16 sps:$4 sm:$0xff]   ;;  %v12506_v44 = vld [vmem:[#allocation9 + $0xd2c] ss:$16 sps:$4 sm:$0xff]  }
 0x5ab   :  { %9283 = vmatprep.subr.bf16.mxu0 %v12428_v38  ;;  %v12501_v38 = vld [vmem:[#allocation9 + $0xd20] ss:$16 sps:$4 sm:$0xff]  }
 0x5ad   :  { %8628 = vmatpush1.bf16.msra.mxu1 %v12423_v47  ;;  %v12504_v47 = vld [vmem:[#allocation9 + $0xd28] ss:$16 sps:$4 sm:$0xff]  }
 0x5ae   :  { %9284 = vmatpush1.bf16.msra.mxu0 %v12426_v48  ;;  %8629 = vmatprep.subr.bf16.mxu1 %v12431_v49  ;;  %v12509_v48 = vld [vmem:[#allocation9 + $0xd44] ss:$16 sps:$4 sm:$0xff]   ;;  %v12512_v49 = vld [vmem:[#allocation9 + $0xd4c] ss:$16 sps:$4 sm:$0xff]  }
 0x5af   :  { %9285 = vmatprep.subr.bf16.mxu0 %v12434_v50  ;;  %v12507_v50 = vld [vmem:[#allocation9 + $0xd40] ss:$16 sps:$4 sm:$0xff]  }
 0x5b1   :  { %8630 = vmatpush1.bf16.msra.mxu1 %v12429_v51  ;;  %v12510_v51 = vld [vmem:[#allocation9 + $0xd48] ss:$16 sps:$4 sm:$0xff]  }
 0x5b2   :  { %9286 = vmatpush1.bf16.msra.mxu0 %v12432_v28  ;;  %8631 = vmatprep.subr.bf16.mxu1 %v12437_v21  ;;  %v12515_v28 = vld [vmem:[#allocation9 + $0xd64] ss:$16 sps:$4 sm:$0xff]   ;;  %v12518_v21 = vld [vmem:[#allocation9 + $0xd6c] ss:$16 sps:$4 sm:$0xff]  }
 0x5b3   :  { %9287 = vmatprep.subr.bf16.mxu0 %v12440_v52  ;;  %v12513_v52 = vld [vmem:[#allocation9 + $0xd60] ss:$16 sps:$4 sm:$0xff]  }
 0x5b5   :  { %8632 = vmatpush1.bf16.msra.mxu1 %v12435_v53  ;;  %v12516_v53 = vld [vmem:[#allocation9 + $0xd68] ss:$16 sps:$4 sm:$0xff]  }
 0x5b6   :  { %9288 = vmatpush1.bf16.msra.mxu0 %v12438_v54  ;;  %8633 = vmatprep.subr.bf16.mxu1 %v12443_v55  ;;  %v12521_v54 = vld [vmem:[#allocation9 + $0xd84] ss:$16 sps:$4 sm:$0xff]   ;;  %v12524_v55 = vld [vmem:[#allocation9 + $0xd8c] ss:$16 sps:$4 sm:$0xff]  }
 0x5b7   :  { %9289 = vmatprep.subr.bf16.mxu0 %v12446_v16  ;;  %v12519_v16 = vld [vmem:[#allocation9 + $0xd80] ss:$16 sps:$4 sm:$0xff]  }
 0x5b9   :  { %8634 = vmatpush1.bf16.msra.mxu1 %v12441_v56  ;;  %v12522_v56 = vld [vmem:[#allocation9 + $0xd88] ss:$16 sps:$4 sm:$0xff]  }
 0x5ba   :  { %9290 = vmatpush1.bf16.msra.mxu0 %v12444_v57  ;;  %8644 = vmatprep.subr.bf16.mxu1 %v12449_v58  ;;  %v12527_v57 = vld [vmem:[#allocation9 + $0xda4] ss:$16 sps:$4 sm:$0xff]   ;;  %v12530_v58 = vld [vmem:[#allocation9 + $0xdac] ss:$16 sps:$4 sm:$0xff]  }
 0x5bb   :  { %9300 = vmatprep.subr.bf16.mxu0 %v12452_v7  ;;  %v12525_v7 = vld [vmem:[#allocation9 + $0xda0] ss:$16 sps:$4 sm:$0xff]  }
 0x5bc   :  { %8636 = vmatmul.mubr.bf16.vlgmr.msra.gmra.mrb[40].mxu1 %v2210_v10 }
 0x5bd   :  { %9292 = vmatmul.mubr.bf16.vlgmr.msra.gmra.mrb[40].mxu0 %v2210_v10  ;;  %8645 = vmatpush1.bf16.msra.mxu1 %v12447_v59  ;;  %v12528_v59 = vld [vmem:[#allocation9 + $0xda8] ss:$16 sps:$4 sm:$0xff]   ;;  %v12533_v10 = vld [vmem:[#allocation9 + $0xdc4] ss:$16 sps:$4 sm:$0xff]  }
 0x5be   :  { %9301 = vmatpush1.bf16.msra.mxu0 %v12450_v15  ;;  %8646 = vmatprep.subr.bf16.mxu1 %v12455_v60  ;;  %v12536_v15 = vld [vmem:[#allocation9 + $0xdcc] ss:$16 sps:$4 sm:$0xff]   ;;  %v12531_v60 = vld [vmem:[#allocation9 + $0xdc0] ss:$16 sps:$4 sm:$0xff]  }
 0x5bf   :  { %9302 = vmatprep.subr.bf16.mxu0 %v12458_v29  ;;  %v12534_v29 = vld [vmem:[#allocation9 + $0xdc8] ss:$16 sps:$4 sm:$0xff]  }
 0x5c1   :  { %8647 = vmatpush1.bf16.msra.mxu1 %v12453_v61  ;;  %v12539_v61 = vld [vmem:[#allocation9 + $0xde4] ss:$16 sps:$4 sm:$0xff]  }
 0x5c2   :  { %9303 = vmatpush1.bf16.msra.mxu0 %v12456_v62  ;;  %8648 = vmatprep.subr.bf16.mxu1 %v12461_v1  ;;  %v12542_v62 = vld [vmem:[#allocation9 + $0xdec] ss:$16 sps:$4 sm:$0xff]   ;;  %v12537_v1 = vld [vmem:[#allocation9 + $0xde0] ss:$16 sps:$4 sm:$0xff]  }
 0x5c3   :  { %9304 = vmatprep.subr.bf16.mxu0 %v12464_v2  ;;  %v12540_v2 = vld [vmem:[#allocation9 + $0xde8] ss:$16 sps:$4 sm:$0xff]  }
 0x5c5   :  { %8649 = vmatpush1.bf16.msra.mxu1 %v12459_v4  ;;  %v12545_v4 = vld [vmem:[#allocation9 + $0xe04] ss:$16 sps:$4 sm:$0xff]  }
 0x5c6   :  { %9305 = vmatpush1.bf16.msra.mxu0 %v12462_v18  ;;  %8650 = vmatprep.subr.bf16.mxu1 %v12467_v5  ;;  %v12548_v18 = vld [vmem:[#allocation9 + $0xe0c] ss:$16 sps:$4 sm:$0xff]  }
 0x5c7   :  { %9306 = vmatprep.subr.bf16.mxu0 %v12470_v30 }
 0x5c9   :  { %8651 = vmatpush1.bf16.msra.mxu1 %v12465_v8 }
 0x5ca   :  { %9307 = vmatpush1.bf16.msra.mxu0 %v12468_v9  ;;  %8652 = vmatprep.subr.bf16.mxu1 %v12473_v12 }
 0x5cb   :  { %9308 = vmatprep.subr.bf16.mxu0 %v12476_v13 }
 0x5cd   :  { %8653 = vmatpush1.bf16.msra.mxu1 %v12471_v17 }
 0x5ce   :  { %9309 = vmatpush1.bf16.msra.mxu0 %v12474_v31  ;;  %8654 = vmatprep.subr.bf16.mxu1 %v12479_v20 }
 0x5cf   :  { %9310 = vmatprep.subr.bf16.mxu0 %v12482_v23 }
 0x5d1   :  { %8655 = vmatpush1.bf16.msra.mxu1 %v12477_v24 }
 0x5d2   :  { %9311 = vmatpush1.bf16.msra.mxu0 %v12480_v25  ;;  %8656 = vmatprep.subr.bf16.mxu1 %v12485_v33 }
 0x5d3   :  { %9312 = vmatprep.subr.bf16.mxu0 %v12488_v35 }
 0x5d5   :  { %8657 = vmatpush1.bf16.msra.mxu1 %v12483_v3  ;;  %v12543_v3 = vld [vmem:[#allocation9 + $0xe00] ss:$16 sps:$4 sm:$0xff]  }
 0x5d6   :  { %9313 = vmatpush1.bf16.msra.mxu0 %v12486_v6  ;;  %8658 = vmatprep.subr.bf16.mxu1 %v12491_v34  ;;  %v12546_v6 = vld [vmem:[#allocation9 + $0xe08] ss:$16 sps:$4 sm:$0xff]  }
 0x5d7   :  { %9314 = vmatprep.subr.bf16.mxu0 %v12494_v11 }
 0x5d9   :  { %8659 = vmatpush1.bf16.msra.mxu1 %v12489_v19 }
 0x5da   :  { %9315 = vmatpush1.bf16.msra.mxu0 %v12492_v27  ;;  %8660 = vmatprep.subr.bf16.mxu1 %v12497_v39  ;;  %v12551_v27 = vld [vmem:[#allocation9 + $0xe24] ss:$16 sps:$4 sm:$0xff]   ;;  %v12554_v39 = vld [vmem:[#allocation9 + $0xe2c] ss:$16 sps:$4 sm:$0xff]  }
 0x5db   :  { %9316 = vmatprep.subr.bf16.mxu0 %v12500_v26 }
 0x5dd   :  { %8661 = vmatpush1.bf16.msra.mxu1 %v12495_v37  ;;  %v12549_v37 = vld [vmem:[#allocation9 + $0xe20] ss:$16 sps:$4 sm:$0xff]  }
 0x5de   :  { %9317 = vmatpush1.bf16.msra.mxu0 %v12498_v42  ;;  %8662 = vmatprep.subr.bf16.mxu1 %v12503_v43  ;;  %v12552_v42 = vld [vmem:[#allocation9 + $0xe28] ss:$16 sps:$4 sm:$0xff]  }
 0x5df   :  { %9318 = vmatprep.subr.bf16.mxu0 %v12506_v44  ;;  %v12557_v44 = vld [vmem:[#allocation9 + $0xe44] ss:$16 sps:$4 sm:$0xff]  }
 0x5e1   :  { %8663 = vmatpush1.bf16.msra.mxu1 %v12501_v38  ;;  %v12560_v38 = vld [vmem:[#allocation9 + $0xe4c] ss:$16 sps:$4 sm:$0xff]  }
 0x5e2   :  { %9319 = vmatpush1.bf16.msra.mxu0 %v12504_v47  ;;  %8664 = vmatprep.subr.bf16.mxu1 %v12509_v48  ;;  %v12555_v47 = vld [vmem:[#allocation9 + $0xe40] ss:$16 sps:$4 sm:$0xff]   ;;  %v12558_v48 = vld [vmem:[#allocation9 + $0xe48] ss:$16 sps:$4 sm:$0xff]  }
 0x5e3   :  { %9320 = vmatprep.subr.bf16.mxu0 %v12512_v49  ;;  %v12563_v49 = vld [vmem:[#allocation9 + $0xe64] ss:$16 sps:$4 sm:$0xff]  }
 0x5e5   :  { %8665 = vmatpush1.bf16.msra.mxu1 %v12507_v50  ;;  %v12566_v50 = vld [vmem:[#allocation9 + $0xe6c] ss:$16 sps:$4 sm:$0xff]  }
 0x5e6   :  { %9321 = vmatpush1.bf16.msra.mxu0 %v12510_v51  ;;  %8666 = vmatprep.subr.bf16.mxu1 %v12515_v28  ;;  %v12561_v51 = vld [vmem:[#allocation9 + $0xe60] ss:$16 sps:$4 sm:$0xff]   ;;  %v12569_v28 = vld [vmem:[#allocation9 + $0xe84] ss:$16 sps:$4 sm:$0xff]  }
 0x5e7   :  { %9322 = vmatprep.subr.bf16.mxu0 %v12518_v21  ;;  %v12572_v21 = vld [vmem:[#allocation9 + $0xe8c] ss:$16 sps:$4 sm:$0xff]  }
 0x5e9   :  { %8667 = vmatpush1.bf16.msra.mxu1 %v12513_v52 }
 0x5ea   :  { %9323 = vmatpush1.bf16.msra.mxu0 %v12516_v53  ;;  %8668 = vmatprep.subr.bf16.mxu1 %v12521_v54 }
 0x5eb   :  { %9324 = vmatprep.subr.bf16.mxu0 %v12524_v55 }
 0x5ed   :  { %8669 = vmatpush1.bf16.msra.mxu1 %v12519_v16  ;;  %v12567_v16 = vld [vmem:[#allocation9 + $0xe80] ss:$16 sps:$4 sm:$0xff]  }
 0x5ee   :  { %9325 = vmatpush1.bf16.msra.mxu0 %v12522_v56  ;;  %8670 = vmatprep.subr.bf16.mxu1 %v12527_v57 }
 0x5ef   :  { %9326 = vmatprep.subr.bf16.mxu0 %v12530_v58 }
 0x5f1   :  { %8671 = vmatpush1.bf16.msra.mxu1 %v12525_v7  ;;  %v12570_v7 = vld [vmem:[#allocation9 + $0xe88] ss:$16 sps:$4 sm:$0xff]  }
 0x5f2   :  { %9327 = vmatpush1.bf16.msra.mxu0 %v12528_v59  ;;  %8672 = vmatprep.subr.bf16.mxu1 %v12533_v10 }
 0x5f3   :  { %9328 = vmatprep.subr.bf16.mxu0 %v12536_v15  ;;  %v12575_v15 = vld [vmem:[#allocation9 + $0xea4] ss:$16 sps:$4 sm:$0xff]  }
 0x5f5   :  { %8673 = vmatpush1.bf16.msra.mxu1 %v12531_v60 }
 0x5f6   :  { %9329 = vmatpush1.bf16.msra.mxu0 %v12534_v29  ;;  %8674 = vmatprep.subr.bf16.mxu1 %v12539_v61  ;;  %v12578_v29 = vld [vmem:[#allocation9 + $0xeac] ss:$16 sps:$4 sm:$0xff]   ;;  %v12573_v61 = vld [vmem:[#allocation9 + $0xea0] ss:$16 sps:$4 sm:$0xff]  }
 0x5f7   :  { %9330 = vmatprep.subr.bf16.mxu0 %v12542_v62  ;;  %v12576_v62 = vld [vmem:[#allocation9 + $0xea8] ss:$16 sps:$4 sm:$0xff]  }
 0x5f9   :  { %8675 = vmatpush1.bf16.msra.mxu1 %v12537_v1  ;;  %v12584_v1 = vld [vmem:[#allocation9 + $0xecc] ss:$16 sps:$4 sm:$0xff]  }
 0x5fa   :  { %9331 = vmatpush1.bf16.msra.mxu0 %v12540_v2  ;;  %8685 = vmatprep.subr.bf16.mxu1 %v12545_v4  ;;  %v12579_v2 = vld [vmem:[#allocation9 + $0xec0] ss:$16 sps:$4 sm:$0xff]   ;;  %v12582_v4 = vld [vmem:[#allocation9 + $0xec8] ss:$16 sps:$4 sm:$0xff]  }
 0x5fb   :  { %9341 = vmatprep.subr.bf16.mxu0 %v12548_v18  ;;  %v12587_v18 = vld [vmem:[#allocation9 + $0xee4] ss:$16 sps:$4 sm:$0xff]  }
 0x5fc   :  { %v788_v5 = vpop.permute.xlu1 %787 }
 0x5fd   :  { %790 = vst.msk [vmem:[#allocation3 + $0x1a] sm:$0x1] %vm594_vm2, %v788_v5  ;;  %v773_v30 = vpop.permute.xlu0 %772  ;;  %v12590_v5 = vld [vmem:[#allocation9 + $0xeec] ss:$16 sps:$4 sm:$0xff]  }
 0x5fe   :  { %775 = vst.msk [vmem:[#allocation3 + $0x18] sm:$0x1] %vm594_vm2, %v773_v30 }
 0x600   :  { %v818_v8 = vpop.permute.xlu1 %817 }
 0x601   :  { %820 = vst.msk [vmem:[#allocation3 + $0x1e] sm:$0x1] %vm594_vm2, %v818_v8  ;;  %v803_v9 = vpop.permute.xlu0 %802 }
 0x602   :  { %805 = vst.msk [vmem:[#allocation3 + $0x1c] sm:$0x1] %vm594_vm2, %v803_v9 }
 0x607   :  { %v1743_v12 = vpop.permute.xlu1 %1742 }
 0x608   :  { %1745 = vst.msk [vmem:[#allocation3 + $0x1b] sm:$0x1] %vm594_vm2, %v1743_v12  ;;  %v1728_v13 = vpop.permute.xlu0 %1727 }
 0x609   :  { %1730 = vst.msk [vmem:[#allocation3 + $0x19] sm:$0x1] %vm594_vm2, %v1728_v13  ;;  %v12585_v13 = vld [vmem:[#allocation9 + $0xee0] ss:$16 sps:$4 sm:$0xff]  }
 0x60b   :  { %v1773_v17 = vpop.permute.xlu1 %1772 }
 0x60c   :  { %1775 = vst.msk [vmem:[#allocation3 + $0x1f] sm:$0x1] %vm594_vm2, %v1773_v17  ;;  %v1758_v31 = vpop.permute.xlu0 %1757 }
 0x60d   :  { %1760 = vst.msk [vmem:[#allocation3 + $0x1d] sm:$0x1] %vm594_vm2, %v1758_v31  ;;  %v12588_v31 = vld [vmem:[#allocation9 + $0xee8] ss:$16 sps:$4 sm:$0xff]  }
 0x614   :  { %v2019_v20 = vld [vmem:[#allocation3 + $0x18] sm:$0xff] }
 0x615   :  { %v2090_v23 = vrot.slane %v2019_v20, %v14054_v0  ;;  %v2083_v24 = vcombine.high %v2019_v20, %v2019_v20  ;;  %v12593_v20 = vld [vmem:[#allocation9 + $0xf04] ss:$16 sps:$4 sm:$0xff]  }
 0x617   :  { %v2098_v25 = vcombine.high %v2090_v23, %v2090_v23  ;;  %v14187_v33 = vrot.slane %v2083_v24, %v14054_v0  ;;  %v2212_v11 = vpack.c.bf16 %v2090_v23, %v2090_v23 }
 0x619   :  { %v2213_v35 = vpack.c.bf16 %v2098_v25, %v2098_v25  ;;  %v2099_v34 = vcombine.high %v14187_v33, %v14187_v33  ;;  %v12596_v25 = vld [vmem:[#allocation9 + $0xf0c] ss:$16 sps:$4 sm:$0xff]  }
 0x61b   :  { %8676 = vmatprep.mubr.bf16.mxu1 %v2213_v35  ;;  %9332 = vmatprep.mubr.bf16.mxu0 %v2213_v35  ;;  %v2215_v19 = vpack.c.bf16 %v2099_v34, %v2099_v34  ;;  %v12594_v34 = vld [vmem:[#allocation9 + $0xf08] ss:$16 sps:$4 sm:$0xff]  }
 0x61c   :  { %8677 = vmatmul.mubr.bf16.vlgmr.msra.gmra.mrb[40].mxu1 %v2212_v11  ;;  %9333 = vmatmul.mubr.bf16.vlgmr.msra.gmra.mrb[40].mxu0 %v2212_v11  ;;  %v1406_v52 = vpop.permute.xlu1 %1405  ;;  %v12599_v11 = vld [vmem:[#allocation9 + $0xf24] ss:$16 sps:$4 sm:$0xff]  }
 0x61d   :  { %8686 = vmatpush1.bf16.msra.mxu1 %v12543_v3  ;;  %9342 = vmatpush1.bf16.msra.mxu0 %v12546_v6  ;;  %v448_v26 = vpop.permute.xlu0 %447  ;;  %v1510_v59 = vadd.f32 %v14132_v22, %v1406_v52  ;;  %v12581_v22 = vld [vmem:[#allocation9 + $0xec4] ss:$16 sps:$4 sm:$0xff]   ;;  %v12591_v6 = vld [vmem:[#allocation9 + $0xf00] ss:$16 sps:$4 sm:$0xff]  }
 0x61e   :  { %v552_v43 = vadd.f32 %v13999_v41, %v448_v26  ;;  %8717 = vmatprep.mubr.bf16.mxu1 %v2215_v19  ;;  %9373 = vmatprep.mubr.bf16.mxu0 %v2215_v19  ;;  %v12564_v41 = vld [vmem:[#allocation9 + $0xe68] ss:$16 sps:$4 sm:$0xff]   ;;  %v12602_v19 = vld [vmem:[#allocation9 + $0xf2c] ss:$16 sps:$4 sm:$0xff]   ;;  %v12605_v26 = vld [vmem:[#allocation9 + $0xf44] ss:$16 sps:$4 sm:$0xff]  }
 0x61f   :  { %8687 = vmatprep.subr.bf16.mxu1 %v12551_v27  ;;  %9343 = vmatprep.subr.bf16.mxu0 %v12554_v39  ;;  %v1380_v3 = vld [vmem:[%s14561_s4 + $0x28] sm:$0xff]  ;;  %v12597_v27 = vld [vmem:[#allocation9 + $0xf20] ss:$16 sps:$4 sm:$0xff]  }
 0x620   :  { %575 = vst.msk [vmem:[#allocation2 + $0x20] sm:$0xff] %vm570_vm0, %v552_v43  ;;  %v12600_v39 = vld [vmem:[#allocation9 + $0xf28] ss:$16 sps:$4 sm:$0xff]   ;;  %v12621_v52 = vld [vmem:[#allocation9 + $0xfa0] ss:$16 sps:$4 sm:$0xff]  }
 0x621   :  { %8688 = vmatpush1.bf16.msra.mxu1 %v12549_v37  ;;  %9344 = vmatpush1.bf16.msra.mxu0 %v12552_v42  ;;  %v12608_v37 = vld [vmem:[#allocation9 + $0xf4c] ss:$16 sps:$4 sm:$0xff]   ;;  %v12603_v42 = vld [vmem:[#allocation9 + $0xf40] ss:$16 sps:$4 sm:$0xff]   ;;  %v12606_v43 = vld [vmem:[#allocation9 + $0xf48] ss:$16 sps:$4 sm:$0xff]  }
 0x622   :  { %8689 = vmatprep.subr.bf16.mxu1 %v12557_v44  ;;  %9345 = vmatprep.subr.bf16.mxu0 %v12560_v38  ;;  %v12611_v44 = vld [vmem:[#allocation9 + $0xf64] ss:$16 sps:$4 sm:$0xff]   ;;  %v12614_v38 = vld [vmem:[#allocation9 + $0xf6c] ss:$16 sps:$4 sm:$0xff]  }
 0x625   :  { %8690 = vmatpush1.bf16.msra.mxu1 %v12555_v47  ;;  %9346 = vmatpush1.bf16.msra.mxu0 %v12558_v48  ;;  %v12609_v47 = vld [vmem:[#allocation9 + $0xf60] ss:$16 sps:$4 sm:$0xff]   ;;  %v12612_v48 = vld [vmem:[#allocation9 + $0xf68] ss:$16 sps:$4 sm:$0xff]  }
 0x626   :  { %8691 = vmatprep.subr.bf16.mxu1 %v12563_v49  ;;  %9347 = vmatprep.subr.bf16.mxu0 %v12566_v50  ;;  %v12617_v49 = vld [vmem:[#allocation9 + $0xf84] ss:$16 sps:$4 sm:$0xff]   ;;  %v12620_v50 = vld [vmem:[#allocation9 + $0xf8c] ss:$16 sps:$4 sm:$0xff]  }
 0x627   :  { %v821_v53 = vld [vmem:[#allocation2 + $0x20] sm:$0x1]  ;;  %v836_v54 = vld [vmem:[#allocation2 + $0x22] sm:$0x1]  ;;  %v851_v55 = vld [vmem:[#allocation2 + $0x24] sm:$0x1] }
 0x628   :  { %v866_v56 = vld [vmem:[#allocation2 + $0x26] sm:$0x1]  ;;  %822 = vst.msk [vmem:[#allocation3 + $0x20] sm:$0x1] %vm580_vm1, %v821_v53  ;;  %837 = vst.msk [vmem:[#allocation3 + $0x22] sm:$0x1] %vm580_vm1, %v836_v54 }
 0x629   :  { %852 = vst.msk [vmem:[#allocation3 + $0x24] sm:$0x1] %vm580_vm1, %v851_v55  ;;  %v10043_v57 = vld.sshfl [vmem:[#allocation2 + $0x23] sm:$0x1 pattern:$0x76325410]  ;;  %8692 = vmatpush1.bf16.msra.mxu1 %v12561_v51  ;;  %9348 = vmatpush1.bf16.msra.mxu0 %v12564_v41 }
 0x62a   :  { %867 = vst.msk [vmem:[#allocation3 + $0x26] sm:$0x1] %vm580_vm1, %v866_v56  ;;  %847 = vrot.lane.b32.xlu1 %v10043_v57, %s13570_s0  ;;  %v10042_v58 = vld.sshfl [vmem:[#allocation2 + $0x21] sm:$0x1 pattern:$0x76325410]  ;;  %8693 = vmatprep.subr.bf16.mxu1 %v12569_v28 }
 0x62b   :  { %832 = vrot.lane.b32.xlu0 %v10042_v58, %s13570_s0  ;;  %v10045_v10 = vld.sshfl [vmem:[#allocation2 + $0x27] sm:$0x1 pattern:$0x76325410]  ;;  %9349 = vmatprep.subr.bf16.mxu0 %v12572_v21  ;;  %v12615_v51 = vld [vmem:[#allocation9 + $0xf80] ss:$16 sps:$4 sm:$0xff]  }
 0x62c   :  { %v10044_v60 = vld.sshfl [vmem:[#allocation2 + $0x25] sm:$0x1 pattern:$0x76325410]  ;;  %v12618_v41 = vld [vmem:[#allocation9 + $0xf88] ss:$16 sps:$4 sm:$0xff]  }
 0x62d   :  { %1532 = vst.msk [vmem:[#allocation2 + $0x20] sm:$0xff] %vm570_vm0, %v1510_v59  ;;  %8694 = vmatpush1.bf16.msra.mxu1 %v12567_v16  ;;  %9350 = vmatpush1.bf16.msra.mxu0 %v12570_v7  ;;  %v12623_v28 = vld [vmem:[#allocation9 + $0xfa4] ss:$16 sps:$4 sm:$0xff]   ;;  %v12626_v21 = vld [vmem:[#allocation9 + $0xfac] ss:$16 sps:$4 sm:$0xff]  }
 0x62e   :  { %877 = vrot.lane.b32.xlu1 %v10045_v10, %s13570_s0  ;;  %8695 = vmatprep.subr.bf16.mxu1 %v12575_v15  ;;  %v12624_v53 = vld [vmem:[#allocation9 + $0xfa8] ss:$16 sps:$4 sm:$0xff]   ;;  %v12629_v54 = vld [vmem:[#allocation9 + $0xfc4] ss:$16 sps:$4 sm:$0xff]   ;;  %v12632_v55 = vld [vmem:[#allocation9 + $0xfcc] ss:$16 sps:$4 sm:$0xff]  }
 0x62f   :  { %862 = vrot.lane.b32.xlu0 %v10044_v60, %s13570_s0  ;;  %9351 = vmatprep.subr.bf16.mxu0 %v12578_v29  ;;  %v12627_v16 = vld [vmem:[#allocation9 + $0xfc0] ss:$16 sps:$4 sm:$0xff]   ;;  %v12630_v56 = vld [vmem:[#allocation9 + $0xfc8] ss:$16 sps:$4 sm:$0xff]   ;;  %v12635_v57 = vld [vmem:[#allocation9 + $0xfe4] ss:$16 sps:$4 sm:$0xff]   ;;  %v2214_v29 = vpack.c.bf16 %v14187_v33, %v14187_v33 }
 0x630   :  { %v12638_v58 = vld [vmem:[#allocation9 + $0xfec] ss:$16 sps:$4 sm:$0xff]   ;;  %v12633_v7 = vld [vmem:[#allocation9 + $0xfe0] ss:$16 sps:$4 sm:$0xff]   ;;  %v12636_v59 = vld [vmem:[#allocation9 + $0xfe8] ss:$16 sps:$4 sm:$0xff]  }
 0x631   :  { %8696 = vmatpush1.bf16.msra.mxu1 %v12573_v61  ;;  %9352 = vmatpush1.bf16.msra.mxu0 %v12576_v62  ;;  %v12641_v10 = vld [vmem:[#allocation9 + $0x1004] ss:$16 sps:$4 sm:$0xff]   ;;  %v12644_v15 = vld [vmem:[#allocation9 + $0x100c] ss:$16 sps:$4 sm:$0xff]   ;;  %v12639_v60 = vld [vmem:[#allocation9 + $0x1000] ss:$16 sps:$4 sm:$0xff]  }
 0x632   :  { %8697 = vmatprep.subr.bf16.mxu1 %v12581_v22  ;;  %9353 = vmatprep.subr.bf16.mxu0 %v12584_v1  ;;  %v12642_v61 = vld [vmem:[#allocation9 + $0x1008] ss:$16 sps:$4 sm:$0xff]   ;;  %v12647_v62 = vld [vmem:[#allocation9 + $0x1024] ss:$16 sps:$4 sm:$0xff]   ;;  %v12650_v22 = vld [vmem:[#allocation9 + $0x102c] ss:$16 sps:$4 sm:$0xff]  }
 0x633   :  { %v12645_v1 = vld [vmem:[#allocation9 + $0x1020] ss:$16 sps:$4 sm:$0xff]   ;;  %v12654_v33 = vld [vmem:[#allocation9 + $0x1048] ss:$16 sps:$4 sm:$0xff]  }
 0x634   :  { %v10107_v30 = vld.sshfl [vmem:[#allocation2 + $0x23] sm:$0x1 pattern:$0x76325410]  ;;  %v1791_v8 = vld [vmem:[#allocation2 + $0x22] sm:$0x1] }
 0x635   :  { %1802 = vrot.lane.b32.xlu1 %v10107_v30, %s13570_s0  ;;  %v10106_v9 = vld.sshfl [vmem:[#allocation2 + $0x21] sm:$0x1 pattern:$0x76325410]  ;;  %1792 = vst.msk [vmem:[#allocation3 + $0x23] sm:$0x1] %vm580_vm1, %v1791_v8  ;;  %8698 = vmatpush1.bf16.msra.mxu1 %v12579_v2 }
 0x636   :  { %v1776_v12 = vld [vmem:[#allocation2 + $0x20] sm:$0x1]  ;;  %1787 = vrot.lane.b32.xlu0 %v10106_v9, %s13570_s0  ;;  %v1821_v17 = vld [vmem:[#allocation2 + $0x26] sm:$0x1]  ;;  %9354 = vmatpush1.bf16.msra.mxu0 %v12582_v4  ;;  %v1806_v23 = vld [vmem:[#allocation2 + $0x24] sm:$0x1] }
 0x637   :  { %1777 = vst.msk [vmem:[#allocation3 + $0x21] sm:$0x1] %vm580_vm1, %v1776_v12  ;;  %8699 = vmatprep.subr.bf16.mxu1 %v12587_v18  ;;  %1822 = vst.msk [vmem:[#allocation3 + $0x27] sm:$0x1] %vm580_vm1, %v1821_v17  ;;  %9355 = vmatprep.subr.bf16.mxu0 %v12590_v5  ;;  %v12648_v2 = vld [vmem:[#allocation9 + $0x1028] ss:$16 sps:$4 sm:$0xff]  }
 0x638   :  { %v10109_v24 = vld.sshfl [vmem:[#allocation2 + $0x27] sm:$0x1 pattern:$0x76325410]  ;;  %1807 = vst.msk [vmem:[#allocation3 + $0x25] sm:$0x1] %vm580_vm1, %v1806_v23 }
 0x639   :  { %1832 = vrot.lane.b32.xlu1 %v10109_v24, %s13570_s0  ;;  %v10108_v35 = vld.sshfl [vmem:[#allocation2 + $0x25] sm:$0x1 pattern:$0x76325410]  ;;  %8700 = vmatpush1.bf16.msra.mxu1 %v12585_v13  ;;  %v12656_v18 = vld [vmem:[#allocation9 + $0x104c] ss:$16 sps:$4 sm:$0xff]  }
 0x63a   :  { %1817 = vrot.lane.b32.xlu0 %v10108_v35, %s13570_s0  ;;  %9356 = vmatpush1.bf16.msra.mxu0 %v12588_v31  ;;  %v12653_v4 = vld [vmem:[#allocation9 + $0x1044] ss:$16 sps:$4 sm:$0xff]   ;;  %v12651_v5 = vld [vmem:[#allocation9 + $0x1040] ss:$16 sps:$4 sm:$0xff]   ;;  %v12662_v8 = vld [vmem:[#allocation9 + $0x106c] ss:$16 sps:$4 sm:$0xff]  }
 0x63b   :  { %8701 = vmatprep.subr.bf16.mxu1 %v12593_v20  ;;  %9357 = vmatprep.subr.bf16.mxu0 %v12596_v25  ;;  %v12659_v30 = vld [vmem:[#allocation9 + $0x1064] ss:$16 sps:$4 sm:$0xff]   ;;  %v12657_v9 = vld [vmem:[#allocation9 + $0x1060] ss:$16 sps:$4 sm:$0xff]   ;;  %v12660_v12 = vld [vmem:[#allocation9 + $0x1068] ss:$16 sps:$4 sm:$0xff]  }
 0x63c   :  { %v12665_v13 = vld [vmem:[#allocation9 + $0x1084] ss:$16 sps:$4 sm:$0xff]   ;;  %v12668_v17 = vld [vmem:[#allocation9 + $0x108c] ss:$16 sps:$4 sm:$0xff]   ;;  %v12663_v31 = vld [vmem:[#allocation9 + $0x1080] ss:$16 sps:$4 sm:$0xff]  }
 0x63d   :  { %1410 = vperm.xlu1 %11870, %v1380_v3   ;;  %8702 = vmatpush1.bf16.msra.mxu1 %v12591_v6  ;;  %v12666_v20 = vld [vmem:[#allocation9 + $0x1088] ss:$16 sps:$4 sm:$0xff]   ;;  %v12671_v23 = vld [vmem:[#allocation9 + $0x10a4] ss:$16 sps:$4 sm:$0xff]   ;;  %v12674_v24 = vld [vmem:[#allocation9 + $0x10ac] ss:$16 sps:$4 sm:$0xff]  }
 0x63e   :  { %452 = vperm.xlu0 %11869, %v1380_v3   ;;  %9358 = vmatpush1.bf16.msra.mxu0 %v12594_v34  ;;  %v12669_v25 = vld [vmem:[#allocation9 + $0x10a0] ss:$16 sps:$4 sm:$0xff]   ;;  %v12672_v35 = vld [vmem:[#allocation9 + $0x10a8] ss:$16 sps:$4 sm:$0xff]   ;;  %v12677_v3 = vld [vmem:[#allocation9 + $0x10c4] ss:$16 sps:$4 sm:$0xff]  }
 0x63f   :  { %8703 = vmatprep.subr.bf16.mxu1 %v12599_v11  ;;  %9359 = vmatprep.subr.bf16.mxu0 %v12602_v19  ;;  %v12680_v6 = vld [vmem:[#allocation9 + $0x10cc] ss:$16 sps:$4 sm:$0xff]   ;;  %v12675_v34 = vld [vmem:[#allocation9 + $0x10c0] ss:$16 sps:$4 sm:$0xff]   ;;  %v12678_v11 = vld [vmem:[#allocation9 + $0x10c8] ss:$16 sps:$4 sm:$0xff]  }
 0x640   :  { %v12683_v19 = vld [vmem:[#allocation9 + $0x10e4] ss:$16 sps:$4 sm:$0xff]  }
 0x641   :  { %8704 = vmatpush1.bf16.msra.mxu1 %v12597_v27  ;;  %v12686_v27 = vld [vmem:[#allocation9 + $0x10ec] ss:$16 sps:$4 sm:$0xff]  }
 0x642   :  { %9360 = vmatpush1.bf16.msra.mxu0 %v12600_v39  ;;  %8705 = vmatprep.subr.bf16.mxu1 %v12605_v26  ;;  %v12681_v39 = vld [vmem:[#allocation9 + $0x10e0] ss:$16 sps:$4 sm:$0xff]   ;;  %v12684_v26 = vld [vmem:[#allocation9 + $0x10e8] ss:$16 sps:$4 sm:$0xff]  }
 0x643   :  { %9361 = vmatprep.subr.bf16.mxu0 %v12608_v37  ;;  %v12689_v37 = vld [vmem:[#allocation9 + $0x1104] ss:$16 sps:$4 sm:$0xff]  }
 0x645   :  { %8706 = vmatpush1.bf16.msra.mxu1 %v12603_v42  ;;  %v12692_v42 = vld [vmem:[#allocation9 + $0x110c] ss:$16 sps:$4 sm:$0xff]  }
 0x646   :  { %9362 = vmatpush1.bf16.msra.mxu0 %v12606_v43  ;;  %8707 = vmatprep.subr.bf16.mxu1 %v12611_v44  ;;  %v12687_v43 = vld [vmem:[#allocation9 + $0x1100] ss:$16 sps:$4 sm:$0xff]   ;;  %v12690_v44 = vld [vmem:[#allocation9 + $0x1108] ss:$16 sps:$4 sm:$0xff]  }
 0x647   :  { %9363 = vmatprep.subr.bf16.mxu0 %v12614_v38  ;;  %v12695_v38 = vld [vmem:[#allocation9 + $0x1124] ss:$16 sps:$4 sm:$0xff]  }
 0x649   :  { %8708 = vmatpush1.bf16.msra.mxu1 %v12609_v47  ;;  %v12698_v47 = vld [vmem:[#allocation9 + $0x112c] ss:$16 sps:$4 sm:$0xff]  }
 0x64a   :  { %9364 = vmatpush1.bf16.msra.mxu0 %v12612_v48  ;;  %8709 = vmatprep.subr.bf16.mxu1 %v12617_v49  ;;  %v12693_v48 = vld [vmem:[#allocation9 + $0x1120] ss:$16 sps:$4 sm:$0xff]   ;;  %v12696_v49 = vld [vmem:[#allocation9 + $0x1128] ss:$16 sps:$4 sm:$0xff]  }
 0x64b   :  { %9365 = vmatprep.subr.bf16.mxu0 %v12620_v50  ;;  %v12701_v50 = vld [vmem:[#allocation9 + $0x1144] ss:$16 sps:$4 sm:$0xff]  }
 0x64d   :  { %8710 = vmatpush1.bf16.msra.mxu1 %v12615_v51  ;;  %v12704_v51 = vld [vmem:[#allocation9 + $0x114c] ss:$16 sps:$4 sm:$0xff]  }
 0x64e   :  { %9366 = vmatpush1.bf16.msra.mxu0 %v12618_v41  ;;  %8711 = vmatprep.subr.bf16.mxu1 %v12623_v28  ;;  %v12699_v41 = vld [vmem:[#allocation9 + $0x1140] ss:$16 sps:$4 sm:$0xff]   ;;  %v12702_v28 = vld [vmem:[#allocation9 + $0x1148] ss:$16 sps:$4 sm:$0xff]  }
 0x64f   :  { %9367 = vmatprep.subr.bf16.mxu0 %v12626_v21  ;;  %v12707_v21 = vld [vmem:[#allocation9 + $0x1164] ss:$16 sps:$4 sm:$0xff]  }
 0x651   :  { %8712 = vmatpush1.bf16.msra.mxu1 %v12621_v52  ;;  %v12710_v52 = vld [vmem:[#allocation9 + $0x116c] ss:$16 sps:$4 sm:$0xff]  }
 0x652   :  { %9368 = vmatpush1.bf16.msra.mxu0 %v12624_v53  ;;  %8713 = vmatprep.subr.bf16.mxu1 %v12629_v54  ;;  %v12705_v53 = vld [vmem:[#allocation9 + $0x1160] ss:$16 sps:$4 sm:$0xff]   ;;  %v12708_v54 = vld [vmem:[#allocation9 + $0x1168] ss:$16 sps:$4 sm:$0xff]  }
 0x653   :  { %9369 = vmatprep.subr.bf16.mxu0 %v12632_v55  ;;  %v12713_v55 = vld [vmem:[#allocation9 + $0x1184] ss:$16 sps:$4 sm:$0xff]  }
 0x655   :  { %8714 = vmatpush1.bf16.msra.mxu1 %v12627_v16  ;;  %v12716_v16 = vld [vmem:[#allocation9 + $0x118c] ss:$16 sps:$4 sm:$0xff]  }
 0x656   :  { %9370 = vmatpush1.bf16.msra.mxu0 %v12630_v56  ;;  %8715 = vmatprep.subr.bf16.mxu1 %v12635_v57  ;;  %v12711_v56 = vld [vmem:[#allocation9 + $0x1180] ss:$16 sps:$4 sm:$0xff]   ;;  %v12714_v57 = vld [vmem:[#allocation9 + $0x1188] ss:$16 sps:$4 sm:$0xff]  }
 0x657   :  { %9371 = vmatprep.subr.bf16.mxu0 %v12638_v58  ;;  %v12719_v58 = vld [vmem:[#allocation9 + $0x11a4] ss:$16 sps:$4 sm:$0xff]  }
 0x659   :  { %8716 = vmatpush1.bf16.msra.mxu1 %v12633_v7  ;;  %v12722_v7 = vld [vmem:[#allocation9 + $0x11ac] ss:$16 sps:$4 sm:$0xff]  }
 0x65a   :  { %9372 = vmatpush1.bf16.msra.mxu0 %v12636_v59  ;;  %8726 = vmatprep.subr.bf16.mxu1 %v12641_v10  ;;  %v12717_v59 = vld [vmem:[#allocation9 + $0x11a0] ss:$16 sps:$4 sm:$0xff]   ;;  %v12720_v10 = vld [vmem:[#allocation9 + $0x11a8] ss:$16 sps:$4 sm:$0xff]  }
 0x65b   :  { %9382 = vmatprep.subr.bf16.mxu0 %v12644_v15  ;;  %v12725_v15 = vld [vmem:[#allocation9 + $0x11c4] ss:$16 sps:$4 sm:$0xff]  }
 0x65c   :  { %8718 = vmatmul.mubr.bf16.vlgmr.msra.gmra.mrb[40].mxu1 %v2214_v29 }
 0x65d   :  { %9374 = vmatmul.mubr.bf16.vlgmr.msra.gmra.mrb[40].mxu0 %v2214_v29  ;;  %8727 = vmatpush1.bf16.msra.mxu1 %v12639_v60  ;;  %v12728_v60 = vld [vmem:[#allocation9 + $0x11cc] ss:$16 sps:$4 sm:$0xff]   ;;  %v12723_v29 = vld [vmem:[#allocation9 + $0x11c0] ss:$16 sps:$4 sm:$0xff]  }
 0x65e   :  { %9383 = vmatpush1.bf16.msra.mxu0 %v12642_v61  ;;  %8728 = vmatprep.subr.bf16.mxu1 %v12647_v62  ;;  %v12726_v61 = vld [vmem:[#allocation9 + $0x11c8] ss:$16 sps:$4 sm:$0xff]   ;;  %v12731_v62 = vld [vmem:[#allocation9 + $0x11e4] ss:$16 sps:$4 sm:$0xff]  }
 0x65f   :  { %9384 = vmatprep.subr.bf16.mxu0 %v12650_v22  ;;  %v12734_v22 = vld [vmem:[#allocation9 + $0x11ec] ss:$16 sps:$4 sm:$0xff]  }
 0x661   :  { %8729 = vmatpush1.bf16.msra.mxu1 %v12645_v1  ;;  %v12729_v1 = vld [vmem:[#allocation9 + $0x11e0] ss:$16 sps:$4 sm:$0xff]  }
 0x662   :  { %9385 = vmatpush1.bf16.msra.mxu0 %v12648_v2  ;;  %8730 = vmatprep.subr.bf16.mxu1 %v12653_v4  ;;  %v12732_v2 = vld [vmem:[#allocation9 + $0x11e8] ss:$16 sps:$4 sm:$0xff]   ;;  %v12737_v4 = vld [vmem:[#allocation9 + $0x1204] ss:$16 sps:$4 sm:$0xff]  }
 0x663   :  { %9386 = vmatprep.subr.bf16.mxu0 %v12656_v18  ;;  %v12740_v18 = vld [vmem:[#allocation9 + $0x120c] ss:$16 sps:$4 sm:$0xff]  }
 0x665   :  { %8731 = vmatpush1.bf16.msra.mxu1 %v12651_v5 }
 0x666   :  { %9387 = vmatpush1.bf16.msra.mxu0 %v12654_v33  ;;  %8732 = vmatprep.subr.bf16.mxu1 %v12659_v30 }
 0x667   :  { %9388 = vmatprep.subr.bf16.mxu0 %v12662_v8 }
 0x669   :  { %8733 = vmatpush1.bf16.msra.mxu1 %v12657_v9 }
 0x66a   :  { %9389 = vmatpush1.bf16.msra.mxu0 %v12660_v12  ;;  %8734 = vmatprep.subr.bf16.mxu1 %v12665_v13 }
 0x66b   :  { %9390 = vmatprep.subr.bf16.mxu0 %v12668_v17 }
 0x66d   :  { %8735 = vmatpush1.bf16.msra.mxu1 %v12663_v31 }
 0x66e   :  { %9391 = vmatpush1.bf16.msra.mxu0 %v12666_v20  ;;  %8736 = vmatprep.subr.bf16.mxu1 %v12671_v23 }
 0x66f   :  { %9392 = vmatprep.subr.bf16.mxu0 %v12674_v24 }
 0x671   :  { %8737 = vmatpush1.bf16.msra.mxu1 %v12669_v25 }
 0x672   :  { %9393 = vmatpush1.bf16.msra.mxu0 %v12672_v35  ;;  %8738 = vmatprep.subr.bf16.mxu1 %v12677_v3  ;;  %v12735_v3 = vld [vmem:[#allocation9 + $0x1200] ss:$16 sps:$4 sm:$0xff]  }
 0x673   :  { %9394 = vmatprep.subr.bf16.mxu0 %v12680_v6  ;;  %v12738_v6 = vld [vmem:[#allocation9 + $0x1208] ss:$16 sps:$4 sm:$0xff]  }
 0x675   :  { %8739 = vmatpush1.bf16.msra.mxu1 %v12675_v34 }
 0x676   :  { %9395 = vmatpush1.bf16.msra.mxu0 %v12678_v11  ;;  %8740 = vmatprep.subr.bf16.mxu1 %v12683_v19 }
 0x677   :  { %9396 = vmatprep.subr.bf16.mxu0 %v12686_v27  ;;  %v12743_v27 = vld [vmem:[#allocation9 + $0x1224] ss:$16 sps:$4 sm:$0xff]  }
 0x679   :  { %8741 = vmatpush1.bf16.msra.mxu1 %v12681_v39  ;;  %v12746_v39 = vld [vmem:[#allocation9 + $0x122c] ss:$16 sps:$4 sm:$0xff]  }
 0x67a   :  { %9397 = vmatpush1.bf16.msra.mxu0 %v12684_v26  ;;  %8742 = vmatprep.subr.bf16.mxu1 %v12689_v37  ;;  %v12741_v37 = vld [vmem:[#allocation9 + $0x1220] ss:$16 sps:$4 sm:$0xff]  }
 0x67b   :  { %9398 = vmatprep.subr.bf16.mxu0 %v12692_v42  ;;  %v12744_v42 = vld [vmem:[#allocation9 + $0x1228] ss:$16 sps:$4 sm:$0xff]  }
 0x67d   :  { %8743 = vmatpush1.bf16.msra.mxu1 %v12687_v43 }
 0x67e   :  { %9399 = vmatpush1.bf16.msra.mxu0 %v12690_v44  ;;  %8744 = vmatprep.subr.bf16.mxu1 %v12695_v38  ;;  %v12749_v44 = vld [vmem:[#allocation9 + $0x1244] ss:$16 sps:$4 sm:$0xff]   ;;  %v12752_v38 = vld [vmem:[#allocation9 + $0x124c] ss:$16 sps:$4 sm:$0xff]  }
 0x67f   :  { %9400 = vmatprep.subr.bf16.mxu0 %v12698_v47  ;;  %v12747_v47 = vld [vmem:[#allocation9 + $0x1240] ss:$16 sps:$4 sm:$0xff]  }
 0x681   :  { %8745 = vmatpush1.bf16.msra.mxu1 %v12693_v48  ;;  %v12750_v48 = vld [vmem:[#allocation9 + $0x1248] ss:$16 sps:$4 sm:$0xff]  }
 0x682   :  { %9401 = vmatpush1.bf16.msra.mxu0 %v12696_v49  ;;  %8746 = vmatprep.subr.bf16.mxu1 %v12701_v50  ;;  %v12755_v49 = vld [vmem:[#allocation9 + $0x1264] ss:$16 sps:$4 sm:$0xff]   ;;  %v12758_v50 = vld [vmem:[#allocation9 + $0x126c] ss:$16 sps:$4 sm:$0xff]  }
 0x683   :  { %9402 = vmatprep.subr.bf16.mxu0 %v12704_v51  ;;  %v12753_v51 = vld [vmem:[#allocation9 + $0x1260] ss:$16 sps:$4 sm:$0xff]  }
 0x685   :  { %8747 = vmatpush1.bf16.msra.mxu1 %v12699_v41  ;;  %v12761_v41 = vld [vmem:[#allocation9 + $0x1284] ss:$16 sps:$4 sm:$0xff]  }
 0x686   :  { %9403 = vmatpush1.bf16.msra.mxu0 %v12702_v28  ;;  %8748 = vmatprep.subr.bf16.mxu1 %v12707_v21  ;;  %v12764_v28 = vld [vmem:[#allocation9 + $0x128c] ss:$16 sps:$4 sm:$0xff]  }
 0x687   :  { %9404 = vmatprep.subr.bf16.mxu0 %v12710_v52 }
 0x689   :  { %8749 = vmatpush1.bf16.msra.mxu1 %v12705_v53 }
 0x68a   :  { %9405 = vmatpush1.bf16.msra.mxu0 %v12708_v54  ;;  %8750 = vmatprep.subr.bf16.mxu1 %v12713_v55  ;;  %v12759_v55 = vld [vmem:[#allocation9 + $0x1280] ss:$16 sps:$4 sm:$0xff]  }
 0x68b   :  { %9406 = vmatprep.subr.bf16.mxu0 %v12716_v16 }
 0x68d   :  { %8751 = vmatpush1.bf16.msra.mxu1 %v12711_v56 }
 0x68e   :  { %9407 = vmatpush1.bf16.msra.mxu0 %v12714_v57  ;;  %8752 = vmatprep.subr.bf16.mxu1 %v12719_v58  ;;  %v12762_v58 = vld [vmem:[#allocation9 + $0x1288] ss:$16 sps:$4 sm:$0xff]  }
 0x68f   :  { %9408 = vmatprep.subr.bf16.mxu0 %v12722_v7 }
 0x691   :  { %8753 = vmatpush1.bf16.msra.mxu1 %v12717_v59 }
 0x692   :  { %9409 = vmatpush1.bf16.msra.mxu0 %v12720_v10  ;;  %8754 = vmatprep.subr.bf16.mxu1 %v12725_v15  ;;  %v12767_v10 = vld [vmem:[#allocation9 + $0x12a4] ss:$16 sps:$4 sm:$0xff]  }
 0x693   :  { %9410 = vmatprep.subr.bf16.mxu0 %v12728_v60  ;;  %v12770_v60 = vld [vmem:[#allocation9 + $0x12ac] ss:$16 sps:$4 sm:$0xff]  }
 0x695   :  { %8755 = vmatpush1.bf16.msra.mxu1 %v12723_v29  ;;  %v12765_v29 = vld [vmem:[#allocation9 + $0x12a0] ss:$16 sps:$4 sm:$0xff]  }
 0x696   :  { %9411 = vmatpush1.bf16.msra.mxu0 %v12726_v61  ;;  %8756 = vmatprep.subr.bf16.mxu1 %v12731_v62  ;;  %v12768_v61 = vld [vmem:[#allocation9 + $0x12a8] ss:$16 sps:$4 sm:$0xff]   ;;  %v12776_v62 = vld [vmem:[#allocation9 + $0x12cc] ss:$16 sps:$4 sm:$0xff]  }
 0x697   :  { %9412 = vmatprep.subr.bf16.mxu0 %v12734_v22  ;;  %v12771_v22 = vld [vmem:[#allocation9 + $0x12c0] ss:$16 sps:$4 sm:$0xff]  }
 0x699   :  { %8757 = vmatpush1.bf16.msra.mxu1 %v12729_v1  ;;  %v12774_v1 = vld [vmem:[#allocation9 + $0x12c8] ss:$16 sps:$4 sm:$0xff]  }
 0x69a   :  { %9413 = vmatpush1.bf16.msra.mxu0 %v12732_v2  ;;  %8767 = vmatprep.subr.bf16.mxu1 %v12737_v4  ;;  %v12779_v2 = vld [vmem:[#allocation9 + $0x12e4] ss:$16 sps:$4 sm:$0xff]   ;;  %v12782_v4 = vld [vmem:[#allocation9 + $0x12ec] ss:$16 sps:$4 sm:$0xff]  }
 0x69b   :  { %9423 = vmatprep.subr.bf16.mxu0 %v12740_v18 }
 0x69c   :  { %v848_v5 = vpop.permute.xlu1 %847 }
 0x69d   :  { %850 = vst.msk [vmem:[#allocation3 + $0x22] sm:$0x1] %vm594_vm2, %v848_v5  ;;  %v833_v33 = vpop.permute.xlu0 %832 }
 0x69e   :  { %835 = vst.msk [vmem:[#allocation3 + $0x20] sm:$0x1] %vm594_vm2, %v833_v33 }
 0x6a0   :  { %v878_v30 = vpop.permute.xlu1 %877 }
 0x6a1   :  { %880 = vst.msk [vmem:[#allocation3 + $0x26] sm:$0x1] %vm594_vm2, %v878_v30  ;;  %v863_v8 = vpop.permute.xlu0 %862 }
 0x6a2   :  { %865 = vst.msk [vmem:[#allocation3 + $0x24] sm:$0x1] %vm594_vm2, %v863_v8  ;;  %v12777_v8 = vld [vmem:[#allocation9 + $0x12e0] ss:$16 sps:$4 sm:$0xff]  }
 0x6a7   :  { %v1803_v9 = vpop.permute.xlu1 %1802 }
 0x6a8   :  { %1805 = vst.msk [vmem:[#allocation3 + $0x23] sm:$0x1] %vm594_vm2, %v1803_v9  ;;  %v1788_v12 = vpop.permute.xlu0 %1787 }
 0x6a9   :  { %1790 = vst.msk [vmem:[#allocation3 + $0x21] sm:$0x1] %vm594_vm2, %v1788_v12  ;;  %v12780_v12 = vld [vmem:[#allocation9 + $0x12e8] ss:$16 sps:$4 sm:$0xff]  }
 0x6ab   :  { %v1833_v13 = vpop.permute.xlu1 %1832 }
 0x6ac   :  { %1835 = vst.msk [vmem:[#allocation3 + $0x27] sm:$0x1] %vm594_vm2, %v1833_v13  ;;  %v1818_v17 = vpop.permute.xlu0 %1817  ;;  %v12785_v13 = vld [vmem:[#allocation9 + $0x1304] ss:$16 sps:$4 sm:$0xff]  }
 0x6ad   :  { %1820 = vst.msk [vmem:[#allocation3 + $0x25] sm:$0x1] %vm594_vm2, %v1818_v17 }
 0x6b4   :  { %v2020_v31 = vld [vmem:[#allocation3 + $0x20] sm:$0xff] }
 0x6b5   :  { %v2107_v20 = vrot.slane %v2020_v31, %v14054_v0  ;;  %v2100_v23 = vcombine.high %v2020_v31, %v2020_v31 }
 0x6b7   :  { %v2115_v24 = vcombine.high %v2107_v20, %v2107_v20  ;;  %v14226_v25 = vrot.slane %v2100_v23, %v14054_v0  ;;  %v2216_v11 = vpack.c.bf16 %v2107_v20, %v2107_v20  ;;  %v12788_v20 = vld [vmem:[#allocation9 + $0x130c] ss:$16 sps:$4 sm:$0xff]  }
 0x6b9   :  { %v2217_v35 = vpack.c.bf16 %v2115_v24, %v2115_v24  ;;  %v2116_v34 = vcombine.high %v14226_v25, %v14226_v25  ;;  %v1381_v24 = vld [vmem:[%s14561_s4 + $0x30] sm:$0xff] }
 0x6bb   :  { %8758 = vmatprep.mubr.bf16.mxu1 %v2217_v35  ;;  %9414 = vmatprep.mubr.bf16.mxu0 %v2217_v35  ;;  %v2219_v19 = vpack.c.bf16 %v2116_v34, %v2116_v34  ;;  %v12783_v35 = vld [vmem:[#allocation9 + $0x1300] ss:$16 sps:$4 sm:$0xff]   ;;  %v12794_v34 = vld [vmem:[#allocation9 + $0x132c] ss:$16 sps:$4 sm:$0xff]  }
 0x6bc   :  { %8759 = vmatmul.mubr.bf16.vlgmr.msra.gmra.mrb[40].mxu1 %v2216_v11  ;;  %9415 = vmatmul.mubr.bf16.vlgmr.msra.gmra.mrb[40].mxu0 %v2216_v11  ;;  %v1411_v21 = vpop.permute.xlu1 %1410  ;;  %v12789_v11 = vld [vmem:[#allocation9 + $0x1320] ss:$16 sps:$4 sm:$0xff]  }
 0x6bd   :  { %8768 = vmatpush1.bf16.msra.mxu1 %v12735_v3  ;;  %9424 = vmatpush1.bf16.msra.mxu0 %v12738_v6  ;;  %v453_v26 = vpop.permute.xlu0 %452  ;;  %v1515_v7 = vadd.f32 %v14130_v14, %v1411_v21  ;;  %v12773_v14 = vld [vmem:[#allocation9 + $0x12c4] ss:$16 sps:$4 sm:$0xff]   ;;  %v12786_v3 = vld [vmem:[#allocation9 + $0x1308] ss:$16 sps:$4 sm:$0xff]  }
 0x6be   :  { %v557_v43 = vadd.f32 %v13997_v40, %v453_v26  ;;  %8799 = vmatprep.mubr.bf16.mxu1 %v2219_v19  ;;  %9455 = vmatprep.mubr.bf16.mxu0 %v2219_v19  ;;  %v12756_v40 = vld [vmem:[#allocation9 + $0x1268] ss:$16 sps:$4 sm:$0xff]   ;;  %v12791_v6 = vld [vmem:[#allocation9 + $0x1324] ss:$16 sps:$4 sm:$0xff]   ;;  %v12795_v26 = vld [vmem:[#allocation9 + $0x1340] ss:$16 sps:$4 sm:$0xff]  }
 0x6bf   :  { %8769 = vmatprep.subr.bf16.mxu1 %v12743_v27  ;;  %9425 = vmatprep.subr.bf16.mxu0 %v12746_v39  ;;  %v12792_v19 = vld [vmem:[#allocation9 + $0x1328] ss:$16 sps:$4 sm:$0xff]   ;;  %v12797_v27 = vld [vmem:[#allocation9 + $0x1344] ss:$16 sps:$4 sm:$0xff]   ;;  %v12800_v39 = vld [vmem:[#allocation9 + $0x134c] ss:$16 sps:$4 sm:$0xff]  }
 0x6c0   :  { %576 = vst.msk [vmem:[#allocation2 + $0x28] sm:$0xff] %vm570_vm0, %v557_v43  ;;  %v12806_v43 = vld [vmem:[#allocation9 + $0x136c] ss:$16 sps:$4 sm:$0xff]   ;;  %v12821_v21 = vld [vmem:[#allocation9 + $0x13c4] ss:$16 sps:$4 sm:$0xff]  }
 0x6c1   :  { %8770 = vmatpush1.bf16.msra.mxu1 %v12741_v37  ;;  %9426 = vmatpush1.bf16.msra.mxu0 %v12744_v42  ;;  %v12798_v37 = vld [vmem:[#allocation9 + $0x1348] ss:$16 sps:$4 sm:$0xff]   ;;  %v12803_v42 = vld [vmem:[#allocation9 + $0x1364] ss:$16 sps:$4 sm:$0xff]  }
 0x6c2   :  { %8771 = vmatprep.subr.bf16.mxu1 %v12749_v44  ;;  %9427 = vmatprep.subr.bf16.mxu0 %v12752_v38  ;;  %v12801_v44 = vld [vmem:[#allocation9 + $0x1360] ss:$16 sps:$4 sm:$0xff]   ;;  %v12804_v38 = vld [vmem:[#allocation9 + $0x1368] ss:$16 sps:$4 sm:$0xff]  }
 0x6c5   :  { %8772 = vmatpush1.bf16.msra.mxu1 %v12747_v47  ;;  %9428 = vmatpush1.bf16.msra.mxu0 %v12750_v48  ;;  %v12809_v47 = vld [vmem:[#allocation9 + $0x1384] ss:$16 sps:$4 sm:$0xff]   ;;  %v12812_v48 = vld [vmem:[#allocation9 + $0x138c] ss:$16 sps:$4 sm:$0xff]  }
 0x6c6   :  { %8773 = vmatprep.subr.bf16.mxu1 %v12755_v49  ;;  %9429 = vmatprep.subr.bf16.mxu0 %v12758_v50  ;;  %v12807_v49 = vld [vmem:[#allocation9 + $0x1380] ss:$16 sps:$4 sm:$0xff]   ;;  %v12810_v50 = vld [vmem:[#allocation9 + $0x1388] ss:$16 sps:$4 sm:$0xff]  }
 0x6c7   :  { %v881_v52 = vld [vmem:[#allocation2 + $0x28] sm:$0x1]  ;;  %v896_v53 = vld [vmem:[#allocation2 + $0x2a] sm:$0x1]  ;;  %v911_v54 = vld [vmem:[#allocation2 + $0x2c] sm:$0x1] }
 0x6c8   :  { %v926_v16 = vld [vmem:[#allocation2 + $0x2e] sm:$0x1]  ;;  %882 = vst.msk [vmem:[#allocation3 + $0x28] sm:$0x1] %vm580_vm1, %v881_v52  ;;  %897 = vst.msk [vmem:[#allocation3 + $0x2a] sm:$0x1] %vm580_vm1, %v896_v53 }
 0x6c9   :  { %912 = vst.msk [vmem:[#allocation3 + $0x2c] sm:$0x1] %vm580_vm1, %v911_v54  ;;  %v10047_v56 = vld.sshfl [vmem:[#allocation2 + $0x2b] sm:$0x1 pattern:$0x76325410]  ;;  %8774 = vmatpush1.bf16.msra.mxu1 %v12753_v51  ;;  %9430 = vmatpush1.bf16.msra.mxu0 %v12756_v40 }
 0x6ca   :  { %927 = vst.msk [vmem:[#allocation3 + $0x2e] sm:$0x1] %vm580_vm1, %v926_v16  ;;  %907 = vrot.lane.b32.xlu1 %v10047_v56, %s13570_s0  ;;  %v10046_v57 = vld.sshfl [vmem:[#allocation2 + $0x29] sm:$0x1 pattern:$0x76325410]  ;;  %8775 = vmatprep.subr.bf16.mxu1 %v12761_v41 }
 0x6cb   :  { %892 = vrot.lane.b32.xlu0 %v10046_v57, %s13570_s0  ;;  %v10049_v59 = vld.sshfl [vmem:[#allocation2 + $0x2f] sm:$0x1 pattern:$0x76325410]  ;;  %9431 = vmatprep.subr.bf16.mxu0 %v12764_v28  ;;  %v12815_v51 = vld [vmem:[#allocation9 + $0x13a4] ss:$16 sps:$4 sm:$0xff]  }
 0x6cc   :  { %v10048_v15 = vld.sshfl [vmem:[#allocation2 + $0x2d] sm:$0x1 pattern:$0x76325410]  ;;  %v12813_v41 = vld [vmem:[#allocation9 + $0x13a0] ss:$16 sps:$4 sm:$0xff]  }
 0x6cd   :  { %1533 = vst.msk [vmem:[#allocation2 + $0x28] sm:$0xff] %vm570_vm0, %v1515_v7  ;;  %8776 = vmatpush1.bf16.msra.mxu1 %v12759_v55  ;;  %9432 = vmatpush1.bf16.msra.mxu0 %v12762_v58  ;;  %v12818_v40 = vld [vmem:[#allocation9 + $0x13ac] ss:$16 sps:$4 sm:$0xff]   ;;  %v12816_v28 = vld [vmem:[#allocation9 + $0x13a8] ss:$16 sps:$4 sm:$0xff]  }
 0x6ce   :  { %937 = vrot.lane.b32.xlu1 %v10049_v59, %s13570_s0  ;;  %8777 = vmatprep.subr.bf16.mxu1 %v12767_v10  ;;  %v12824_v52 = vld [vmem:[#allocation9 + $0x13cc] ss:$16 sps:$4 sm:$0xff]   ;;  %v12819_v53 = vld [vmem:[#allocation9 + $0x13c0] ss:$16 sps:$4 sm:$0xff]   ;;  %v12822_v54 = vld [vmem:[#allocation9 + $0x13c8] ss:$16 sps:$4 sm:$0xff]   ;;  %v2218_v10 = vpack.c.bf16 %v14226_v25, %v14226_v25 }
 0x6cf   :  { %922 = vrot.lane.b32.xlu0 %v10048_v15, %s13570_s0  ;;  %9433 = vmatprep.subr.bf16.mxu0 %v12770_v60  ;;  %v12827_v55 = vld [vmem:[#allocation9 + $0x13e4] ss:$16 sps:$4 sm:$0xff]   ;;  %v12830_v16 = vld [vmem:[#allocation9 + $0x13ec] ss:$16 sps:$4 sm:$0xff]   ;;  %v12825_v56 = vld [vmem:[#allocation9 + $0x13e0] ss:$16 sps:$4 sm:$0xff]  }
 0x6d0   :  { %v12828_v57 = vld [vmem:[#allocation9 + $0x13e8] ss:$16 sps:$4 sm:$0xff]   ;;  %v12833_v58 = vld [vmem:[#allocation9 + $0x1404] ss:$16 sps:$4 sm:$0xff]   ;;  %v12836_v7 = vld [vmem:[#allocation9 + $0x140c] ss:$16 sps:$4 sm:$0xff]  }
 0x6d1   :  { %8778 = vmatpush1.bf16.msra.mxu1 %v12765_v29  ;;  %9434 = vmatpush1.bf16.msra.mxu0 %v12768_v61  ;;  %v12831_v59 = vld [vmem:[#allocation9 + $0x1400] ss:$16 sps:$4 sm:$0xff]   ;;  %v12834_v15 = vld [vmem:[#allocation9 + $0x1408] ss:$16 sps:$4 sm:$0xff]   ;;  %v12839_v60 = vld [vmem:[#allocation9 + $0x1424] ss:$16 sps:$4 sm:$0xff]  }
 0x6d2   :  { %8779 = vmatprep.subr.bf16.mxu1 %v12773_v14  ;;  %9435 = vmatprep.subr.bf16.mxu0 %v12776_v62  ;;  %v12842_v29 = vld [vmem:[#allocation9 + $0x142c] ss:$16 sps:$4 sm:$0xff]   ;;  %v12837_v61 = vld [vmem:[#allocation9 + $0x1420] ss:$16 sps:$4 sm:$0xff]   ;;  %v12840_v14 = vld [vmem:[#allocation9 + $0x1428] ss:$16 sps:$4 sm:$0xff]  }
 0x6d3   :  { %v12845_v62 = vld [vmem:[#allocation9 + $0x1444] ss:$16 sps:$4 sm:$0xff]   ;;  %v12846_v25 = vld [vmem:[#allocation9 + $0x1448] ss:$16 sps:$4 sm:$0xff]  }
 0x6d4   :  { %v10111_v18 = vld.sshfl [vmem:[#allocation2 + $0x2b] sm:$0x1 pattern:$0x76325410]  ;;  %v1851_v5 = vld [vmem:[#allocation2 + $0x2a] sm:$0x1] }
 0x6d5   :  { %1862 = vrot.lane.b32.xlu1 %v10111_v18, %s13570_s0  ;;  %v10110_v33 = vld.sshfl [vmem:[#allocation2 + $0x29] sm:$0x1 pattern:$0x76325410]  ;;  %1852 = vst.msk [vmem:[#allocation3 + $0x2b] sm:$0x1] %vm580_vm1, %v1851_v5  ;;  %8780 = vmatpush1.bf16.msra.mxu1 %v12771_v22 }
 0x6d6   :  { %v1836_v30 = vld [vmem:[#allocation2 + $0x28] sm:$0x1]  ;;  %1847 = vrot.lane.b32.xlu0 %v10110_v33, %s13570_s0  ;;  %v1881_v9 = vld [vmem:[#allocation2 + $0x2e] sm:$0x1]  ;;  %9436 = vmatpush1.bf16.msra.mxu0 %v12774_v1  ;;  %v1866_v17 = vld [vmem:[#allocation2 + $0x2c] sm:$0x1] }
 0x6d7   :  { %1837 = vst.msk [vmem:[#allocation3 + $0x29] sm:$0x1] %vm580_vm1, %v1836_v30  ;;  %8781 = vmatprep.subr.bf16.mxu1 %v12779_v2  ;;  %1882 = vst.msk [vmem:[#allocation3 + $0x2f] sm:$0x1] %vm580_vm1, %v1881_v9  ;;  %9437 = vmatprep.subr.bf16.mxu0 %v12782_v4  ;;  %v12848_v22 = vld [vmem:[#allocation9 + $0x144c] ss:$16 sps:$4 sm:$0xff]  }
 0x6d8   :  { %v10113_v31 = vld.sshfl [vmem:[#allocation2 + $0x2f] sm:$0x1 pattern:$0x76325410]  ;;  %1867 = vst.msk [vmem:[#allocation3 + $0x2d] sm:$0x1] %vm580_vm1, %v1866_v17 }
 0x6d9   :  { %1892 = vrot.lane.b32.xlu1 %v10113_v31, %s13570_s0  ;;  %v10112_v23 = vld.sshfl [vmem:[#allocation2 + $0x2d] sm:$0x1 pattern:$0x76325410]  ;;  %8782 = vmatpush1.bf16.msra.mxu1 %v12777_v8  ;;  %v12843_v1 = vld [vmem:[#allocation9 + $0x1440] ss:$16 sps:$4 sm:$0xff]  }
 0x6da   :  { %1877 = vrot.lane.b32.xlu0 %v10112_v23, %s13570_s0  ;;  %9438 = vmatpush1.bf16.msra.mxu0 %v12780_v12  ;;  %v12851_v2 = vld [vmem:[#allocation9 + $0x1464] ss:$16 sps:$4 sm:$0xff]   ;;  %v12854_v4 = vld [vmem:[#allocation9 + $0x146c] ss:$16 sps:$4 sm:$0xff]   ;;  %v12849_v18 = vld [vmem:[#allocation9 + $0x1460] ss:$16 sps:$4 sm:$0xff]  }
 0x6db   :  { %8783 = vmatprep.subr.bf16.mxu1 %v12785_v13  ;;  %9439 = vmatprep.subr.bf16.mxu0 %v12788_v20  ;;  %v12852_v5 = vld [vmem:[#allocation9 + $0x1468] ss:$16 sps:$4 sm:$0xff]   ;;  %v12857_v33 = vld [vmem:[#allocation9 + $0x1484] ss:$16 sps:$4 sm:$0xff]   ;;  %v12860_v30 = vld [vmem:[#allocation9 + $0x148c] ss:$16 sps:$4 sm:$0xff]  }
 0x6dc   :  { %v12855_v8 = vld [vmem:[#allocation9 + $0x1480] ss:$16 sps:$4 sm:$0xff]   ;;  %v12858_v9 = vld [vmem:[#allocation9 + $0x1488] ss:$16 sps:$4 sm:$0xff]   ;;  %v12863_v12 = vld [vmem:[#allocation9 + $0x14a4] ss:$16 sps:$4 sm:$0xff]  }
 0x6dd   :  { %1415 = vperm.xlu1 %11870, %v1381_v24   ;;  %8784 = vmatpush1.bf16.msra.mxu1 %v12783_v35  ;;  %v12866_v13 = vld [vmem:[#allocation9 + $0x14ac] ss:$16 sps:$4 sm:$0xff]   ;;  %v12861_v17 = vld [vmem:[#allocation9 + $0x14a0] ss:$16 sps:$4 sm:$0xff]   ;;  %v12864_v31 = vld [vmem:[#allocation9 + $0x14a8] ss:$16 sps:$4 sm:$0xff]  }
 0x6de   :  { %457 = vperm.xlu0 %11869, %v1381_v24   ;;  %9440 = vmatpush1.bf16.msra.mxu0 %v12786_v3  ;;  %v12869_v20 = vld [vmem:[#allocation9 + $0x14c4] ss:$16 sps:$4 sm:$0xff]   ;;  %v12872_v23 = vld [vmem:[#allocation9 + $0x14cc] ss:$16 sps:$4 sm:$0xff]   ;;  %v12867_v24 = vld [vmem:[#allocation9 + $0x14c0] ss:$16 sps:$4 sm:$0xff]  }
 0x6df   :  { %8785 = vmatprep.subr.bf16.mxu1 %v12791_v6  ;;  %9441 = vmatprep.subr.bf16.mxu0 %v12794_v34  ;;  %v12870_v35 = vld [vmem:[#allocation9 + $0x14c8] ss:$16 sps:$4 sm:$0xff]   ;;  %v12875_v3 = vld [vmem:[#allocation9 + $0x14e4] ss:$16 sps:$4 sm:$0xff]   ;;  %v12878_v6 = vld [vmem:[#allocation9 + $0x14ec] ss:$16 sps:$4 sm:$0xff]  }
 0x6e0   :  { %v12873_v34 = vld [vmem:[#allocation9 + $0x14e0] ss:$16 sps:$4 sm:$0xff]  }
 0x6e1   :  { %8786 = vmatpush1.bf16.msra.mxu1 %v12789_v11  ;;  %v12876_v11 = vld [vmem:[#allocation9 + $0x14e8] ss:$16 sps:$4 sm:$0xff]  }
 0x6e2   :  { %9442 = vmatpush1.bf16.msra.mxu0 %v12792_v19  ;;  %8787 = vmatprep.subr.bf16.mxu1 %v12797_v27  ;;  %v12881_v19 = vld [vmem:[#allocation9 + $0x1504] ss:$16 sps:$4 sm:$0xff]   ;;  %v12884_v27 = vld [vmem:[#allocation9 + $0x150c] ss:$16 sps:$4 sm:$0xff]  }
 0x6e3   :  { %9443 = vmatprep.subr.bf16.mxu0 %v12800_v39  ;;  %v12879_v39 = vld [vmem:[#allocation9 + $0x1500] ss:$16 sps:$4 sm:$0xff]  }
 0x6e5   :  { %8788 = vmatpush1.bf16.msra.mxu1 %v12795_v26  ;;  %v12882_v26 = vld [vmem:[#allocation9 + $0x1508] ss:$16 sps:$4 sm:$0xff]  }
 0x6e6   :  { %9444 = vmatpush1.bf16.msra.mxu0 %v12798_v37  ;;  %8789 = vmatprep.subr.bf16.mxu1 %v12803_v42  ;;  %v12887_v37 = vld [vmem:[#allocation9 + $0x1524] ss:$16 sps:$4 sm:$0xff]   ;;  %v12890_v42 = vld [vmem:[#allocation9 + $0x152c] ss:$16 sps:$4 sm:$0xff]  }
 0x6e7   :  { %9445 = vmatprep.subr.bf16.mxu0 %v12806_v43  ;;  %v12885_v43 = vld [vmem:[#allocation9 + $0x1520] ss:$16 sps:$4 sm:$0xff]  }
 0x6e9   :  { %8790 = vmatpush1.bf16.msra.mxu1 %v12801_v44  ;;  %v12888_v44 = vld [vmem:[#allocation9 + $0x1528] ss:$16 sps:$4 sm:$0xff]  }
 0x6ea   :  { %9446 = vmatpush1.bf16.msra.mxu0 %v12804_v38  ;;  %8791 = vmatprep.subr.bf16.mxu1 %v12809_v47  ;;  %v12893_v38 = vld [vmem:[#allocation9 + $0x1544] ss:$16 sps:$4 sm:$0xff]   ;;  %v12896_v47 = vld [vmem:[#allocation9 + $0x154c] ss:$16 sps:$4 sm:$0xff]  }
 0x6eb   :  { %9447 = vmatprep.subr.bf16.mxu0 %v12812_v48  ;;  %v12891_v48 = vld [vmem:[#allocation9 + $0x1540] ss:$16 sps:$4 sm:$0xff]  }
 0x6ed   :  { %8792 = vmatpush1.bf16.msra.mxu1 %v12807_v49  ;;  %v12894_v49 = vld [vmem:[#allocation9 + $0x1548] ss:$16 sps:$4 sm:$0xff]  }
 0x6ee   :  { %9448 = vmatpush1.bf16.msra.mxu0 %v12810_v50  ;;  %8793 = vmatprep.subr.bf16.mxu1 %v12815_v51  ;;  %v12899_v50 = vld [vmem:[#allocation9 + $0x1564] ss:$16 sps:$4 sm:$0xff]   ;;  %v12902_v51 = vld [vmem:[#allocation9 + $0x156c] ss:$16 sps:$4 sm:$0xff]  }
 0x6ef   :  { %9449 = vmatprep.subr.bf16.mxu0 %v12818_v40  ;;  %v12897_v40 = vld [vmem:[#allocation9 + $0x1560] ss:$16 sps:$4 sm:$0xff]  }
 0x6f1   :  { %8794 = vmatpush1.bf16.msra.mxu1 %v12813_v41  ;;  %v12900_v41 = vld [vmem:[#allocation9 + $0x1568] ss:$16 sps:$4 sm:$0xff]  }
 0x6f2   :  { %9450 = vmatpush1.bf16.msra.mxu0 %v12816_v28  ;;  %8795 = vmatprep.subr.bf16.mxu1 %v12821_v21  ;;  %v12905_v28 = vld [vmem:[#allocation9 + $0x1584] ss:$16 sps:$4 sm:$0xff]   ;;  %v12908_v21 = vld [vmem:[#allocation9 + $0x158c] ss:$16 sps:$4 sm:$0xff]  }
 0x6f3   :  { %9451 = vmatprep.subr.bf16.mxu0 %v12824_v52  ;;  %v12903_v52 = vld [vmem:[#allocation9 + $0x1580] ss:$16 sps:$4 sm:$0xff]  }
 0x6f5   :  { %8796 = vmatpush1.bf16.msra.mxu1 %v12819_v53  ;;  %v12906_v53 = vld [vmem:[#allocation9 + $0x1588] ss:$16 sps:$4 sm:$0xff]  }
 0x6f6   :  { %9452 = vmatpush1.bf16.msra.mxu0 %v12822_v54  ;;  %8797 = vmatprep.subr.bf16.mxu1 %v12827_v55  ;;  %v12911_v54 = vld [vmem:[#allocation9 + $0x15a4] ss:$16 sps:$4 sm:$0xff]   ;;  %v12914_v55 = vld [vmem:[#allocation9 + $0x15ac] ss:$16 sps:$4 sm:$0xff]  }
 0x6f7   :  { %9453 = vmatprep.subr.bf16.mxu0 %v12830_v16  ;;  %v12909_v16 = vld [vmem:[#allocation9 + $0x15a0] ss:$16 sps:$4 sm:$0xff]  }
 0x6f9   :  { %8798 = vmatpush1.bf16.msra.mxu1 %v12825_v56  ;;  %v12912_v56 = vld [vmem:[#allocation9 + $0x15a8] ss:$16 sps:$4 sm:$0xff]  }
 0x6fa   :  { %9454 = vmatpush1.bf16.msra.mxu0 %v12828_v57  ;;  %8808 = vmatprep.subr.bf16.mxu1 %v12833_v58  ;;  %v12917_v57 = vld [vmem:[#allocation9 + $0x15c4] ss:$16 sps:$4 sm:$0xff]   ;;  %v12920_v58 = vld [vmem:[#allocation9 + $0x15cc] ss:$16 sps:$4 sm:$0xff]  }
 0x6fb   :  { %9464 = vmatprep.subr.bf16.mxu0 %v12836_v7  ;;  %v12915_v7 = vld [vmem:[#allocation9 + $0x15c0] ss:$16 sps:$4 sm:$0xff]  }
 0x6fc   :  { %8800 = vmatmul.mubr.bf16.vlgmr.msra.gmra.mrb[40].mxu1 %v2218_v10 }
 0x6fd   :  { %9456 = vmatmul.mubr.bf16.vlgmr.msra.gmra.mrb[40].mxu0 %v2218_v10  ;;  %8809 = vmatpush1.bf16.msra.mxu1 %v12831_v59  ;;  %v12918_v59 = vld [vmem:[#allocation9 + $0x15c8] ss:$16 sps:$4 sm:$0xff]   ;;  %v12923_v10 = vld [vmem:[#allocation9 + $0x15e4] ss:$16 sps:$4 sm:$0xff]  }
 0x6fe   :  { %9465 = vmatpush1.bf16.msra.mxu0 %v12834_v15  ;;  %8810 = vmatprep.subr.bf16.mxu1 %v12839_v60  ;;  %v12926_v15 = vld [vmem:[#allocation9 + $0x15ec] ss:$16 sps:$4 sm:$0xff]   ;;  %v12921_v60 = vld [vmem:[#allocation9 + $0x15e0] ss:$16 sps:$4 sm:$0xff]  }
 0x6ff   :  { %9466 = vmatprep.subr.bf16.mxu0 %v12842_v29  ;;  %v12924_v29 = vld [vmem:[#allocation9 + $0x15e8] ss:$16 sps:$4 sm:$0xff]  }
 0x701   :  { %8811 = vmatpush1.bf16.msra.mxu1 %v12837_v61  ;;  %v12929_v61 = vld [vmem:[#allocation9 + $0x1604] ss:$16 sps:$4 sm:$0xff]  }
 0x702   :  { %9467 = vmatpush1.bf16.msra.mxu0 %v12840_v14  ;;  %8812 = vmatprep.subr.bf16.mxu1 %v12845_v62  ;;  %v12932_v14 = vld [vmem:[#allocation9 + $0x160c] ss:$16 sps:$4 sm:$0xff]  }
 0x703   :  { %9468 = vmatprep.subr.bf16.mxu0 %v12848_v22 }
 0x705   :  { %8813 = vmatpush1.bf16.msra.mxu1 %v12843_v1 }
 0x706   :  { %9469 = vmatpush1.bf16.msra.mxu0 %v12846_v25  ;;  %8814 = vmatprep.subr.bf16.mxu1 %v12851_v2 }
 0x707   :  { %9470 = vmatprep.subr.bf16.mxu0 %v12854_v4 }
 0x709   :  { %8815 = vmatpush1.bf16.msra.mxu1 %v12849_v18 }
 0x70a   :  { %9471 = vmatpush1.bf16.msra.mxu0 %v12852_v5  ;;  %8816 = vmatprep.subr.bf16.mxu1 %v12857_v33 }
 0x70b   :  { %9472 = vmatprep.subr.bf16.mxu0 %v12860_v30 }
 0x70d   :  { %8817 = vmatpush1.bf16.msra.mxu1 %v12855_v8 }
 0x70e   :  { %9473 = vmatpush1.bf16.msra.mxu0 %v12858_v9  ;;  %8818 = vmatprep.subr.bf16.mxu1 %v12863_v12 }
 0x70f   :  { %9474 = vmatprep.subr.bf16.mxu0 %v12866_v13 }
 0x711   :  { %8819 = vmatpush1.bf16.msra.mxu1 %v12861_v17  ;;  %v12927_v17 = vld [vmem:[#allocation9 + $0x1600] ss:$16 sps:$4 sm:$0xff]  }
 0x712   :  { %9475 = vmatpush1.bf16.msra.mxu0 %v12864_v31  ;;  %8820 = vmatprep.subr.bf16.mxu1 %v12869_v20  ;;  %v12930_v31 = vld [vmem:[#allocation9 + $0x1608] ss:$16 sps:$4 sm:$0xff]  }
 0x713   :  { %9476 = vmatprep.subr.bf16.mxu0 %v12872_v23 }
 0x715   :  { %8821 = vmatpush1.bf16.msra.mxu1 %v12867_v24 }
 0x716   :  { %9477 = vmatpush1.bf16.msra.mxu0 %v12870_v35  ;;  %8822 = vmatprep.subr.bf16.mxu1 %v12875_v3  ;;  %v12935_v35 = vld [vmem:[#allocation9 + $0x1624] ss:$16 sps:$4 sm:$0xff]   ;;  %v12938_v3 = vld [vmem:[#allocation9 + $0x162c] ss:$16 sps:$4 sm:$0xff]  }
 0x717   :  { %9478 = vmatprep.subr.bf16.mxu0 %v12878_v6 }
 0x719   :  { %8823 = vmatpush1.bf16.msra.mxu1 %v12873_v34  ;;  %v12933_v34 = vld [vmem:[#allocation9 + $0x1620] ss:$16 sps:$4 sm:$0xff]  }
 0x71a   :  { %9479 = vmatpush1.bf16.msra.mxu0 %v12876_v11  ;;  %8824 = vmatprep.subr.bf16.mxu1 %v12881_v19  ;;  %v12936_v11 = vld [vmem:[#allocation9 + $0x1628] ss:$16 sps:$4 sm:$0xff]  }
 0x71b   :  { %9480 = vmatprep.subr.bf16.mxu0 %v12884_v27  ;;  %v12941_v27 = vld [vmem:[#allocation9 + $0x1644] ss:$16 sps:$4 sm:$0xff]  }
 0x71d   :  { %8825 = vmatpush1.bf16.msra.mxu1 %v12879_v39  ;;  %v12944_v39 = vld [vmem:[#allocation9 + $0x164c] ss:$16 sps:$4 sm:$0xff]  }
 0x71e   :  { %9481 = vmatpush1.bf16.msra.mxu0 %v12882_v26  ;;  %8826 = vmatprep.subr.bf16.mxu1 %v12887_v37  ;;  %v12939_v26 = vld [vmem:[#allocation9 + $0x1640] ss:$16 sps:$4 sm:$0xff]   ;;  %v12942_v37 = vld [vmem:[#allocation9 + $0x1648] ss:$16 sps:$4 sm:$0xff]  }
 0x71f   :  { %9482 = vmatprep.subr.bf16.mxu0 %v12890_v42  ;;  %v12947_v42 = vld [vmem:[#allocation9 + $0x1664] ss:$16 sps:$4 sm:$0xff]  }
 0x721   :  { %8827 = vmatpush1.bf16.msra.mxu1 %v12885_v43  ;;  %v12950_v43 = vld [vmem:[#allocation9 + $0x166c] ss:$16 sps:$4 sm:$0xff]  }
 0x722   :  { %9483 = vmatpush1.bf16.msra.mxu0 %v12888_v44  ;;  %8828 = vmatprep.subr.bf16.mxu1 %v12893_v38  ;;  %v12945_v44 = vld [vmem:[#allocation9 + $0x1660] ss:$16 sps:$4 sm:$0xff]   ;;  %v12953_v38 = vld [vmem:[#allocation9 + $0x1684] ss:$16 sps:$4 sm:$0xff]  }
 0x723   :  { %9484 = vmatprep.subr.bf16.mxu0 %v12896_v47  ;;  %v12956_v47 = vld [vmem:[#allocation9 + $0x168c] ss:$16 sps:$4 sm:$0xff]  }
 0x725   :  { %8829 = vmatpush1.bf16.msra.mxu1 %v12891_v48 }
 0x726   :  { %9485 = vmatpush1.bf16.msra.mxu0 %v12894_v49  ;;  %8830 = vmatprep.subr.bf16.mxu1 %v12899_v50 }
 0x727   :  { %9486 = vmatprep.subr.bf16.mxu0 %v12902_v51 }
 0x729   :  { %8831 = vmatpush1.bf16.msra.mxu1 %v12897_v40  ;;  %v12951_v40 = vld [vmem:[#allocation9 + $0x1680] ss:$16 sps:$4 sm:$0xff]  }
 0x72a   :  { %9487 = vmatpush1.bf16.msra.mxu0 %v12900_v41  ;;  %8832 = vmatprep.subr.bf16.mxu1 %v12905_v28 }
 0x72b   :  { %9488 = vmatprep.subr.bf16.mxu0 %v12908_v21 }
 0x72d   :  { %8833 = vmatpush1.bf16.msra.mxu1 %v12903_v52  ;;  %v12954_v52 = vld [vmem:[#allocation9 + $0x1688] ss:$16 sps:$4 sm:$0xff]  }
 0x72e   :  { %9489 = vmatpush1.bf16.msra.mxu0 %v12906_v53  ;;  %8834 = vmatprep.subr.bf16.mxu1 %v12911_v54 }
 0x72f   :  { %9490 = vmatprep.subr.bf16.mxu0 %v12914_v55  ;;  %v12959_v55 = vld [vmem:[#allocation9 + $0x16a4] ss:$16 sps:$4 sm:$0xff]  }
 0x731   :  { %8835 = vmatpush1.bf16.msra.mxu1 %v12909_v16 }
 0x732   :  { %9491 = vmatpush1.bf16.msra.mxu0 %v12912_v56  ;;  %8836 = vmatprep.subr.bf16.mxu1 %v12917_v57  ;;  %v12962_v56 = vld [vmem:[#allocation9 + $0x16ac] ss:$16 sps:$4 sm:$0xff]   ;;  %v12957_v57 = vld [vmem:[#allocation9 + $0x16a0] ss:$16 sps:$4 sm:$0xff]  }
 0x733   :  { %9492 = vmatprep.subr.bf16.mxu0 %v12920_v58  ;;  %v12960_v58 = vld [vmem:[#allocation9 + $0x16a8] ss:$16 sps:$4 sm:$0xff]  }
 0x735   :  { %8837 = vmatpush1.bf16.msra.mxu1 %v12915_v7  ;;  %v12968_v7 = vld [vmem:[#allocation9 + $0x16cc] ss:$16 sps:$4 sm:$0xff]  }
 0x736   :  { %9493 = vmatpush1.bf16.msra.mxu0 %v12918_v59  ;;  %8838 = vmatprep.subr.bf16.mxu1 %v12923_v10  ;;  %v12963_v59 = vld [vmem:[#allocation9 + $0x16c0] ss:$16 sps:$4 sm:$0xff]   ;;  %v12966_v10 = vld [vmem:[#allocation9 + $0x16c8] ss:$16 sps:$4 sm:$0xff]  }
 0x737   :  { %9494 = vmatprep.subr.bf16.mxu0 %v12926_v15  ;;  %v12971_v15 = vld [vmem:[#allocation9 + $0x16e4] ss:$16 sps:$4 sm:$0xff]  }
 0x739   :  { %8839 = vmatpush1.bf16.msra.mxu1 %v12921_v60  ;;  %v12974_v60 = vld [vmem:[#allocation9 + $0x16ec] ss:$16 sps:$4 sm:$0xff]  }
 0x73a   :  { %9495 = vmatpush1.bf16.msra.mxu0 %v12924_v29  ;;  %8849 = vmatprep.subr.bf16.mxu1 %v12929_v61 }
 0x73b   :  { %9505 = vmatprep.subr.bf16.mxu0 %v12932_v14 }
 0x73c   :  { %v908_v62 = vpop.permute.xlu1 %907 }
 0x73d   :  { %910 = vst.msk [vmem:[#allocation3 + $0x2a] sm:$0x1] %vm594_vm2, %v908_v62  ;;  %v893_v22 = vpop.permute.xlu0 %892 }
 0x73e   :  { %895 = vst.msk [vmem:[#allocation3 + $0x28] sm:$0x1] %vm594_vm2, %v893_v22  ;;  %v12969_v22 = vld [vmem:[#allocation9 + $0x16e0] ss:$16 sps:$4 sm:$0xff]  }
 0x740   :  { %v938_v1 = vpop.permute.xlu1 %937 }
 0x741   :  { %940 = vst.msk [vmem:[#allocation3 + $0x2e] sm:$0x1] %vm594_vm2, %v938_v1  ;;  %v923_v25 = vpop.permute.xlu0 %922 }
 0x742   :  { %925 = vst.msk [vmem:[#allocation3 + $0x2c] sm:$0x1] %vm594_vm2, %v923_v25  ;;  %v12972_v25 = vld [vmem:[#allocation9 + $0x16e8] ss:$16 sps:$4 sm:$0xff]  }
 0x747   :  { %v1863_v2 = vpop.permute.xlu1 %1862 }
 0x748   :  { %1865 = vst.msk [vmem:[#allocation3 + $0x2b] sm:$0x1] %vm594_vm2, %v1863_v2  ;;  %v1848_v4 = vpop.permute.xlu0 %1847  ;;  %v12977_v2 = vld [vmem:[#allocation9 + $0x1704] ss:$16 sps:$4 sm:$0xff]  }
 0x749   :  { %1850 = vst.msk [vmem:[#allocation3 + $0x29] sm:$0x1] %vm594_vm2, %v1848_v4 }
 0x74b   :  { %v1893_v18 = vpop.permute.xlu1 %1892 }
 0x74c   :  { %1895 = vst.msk [vmem:[#allocation3 + $0x2f] sm:$0x1] %vm594_vm2, %v1893_v18  ;;  %v1878_v5 = vpop.permute.xlu0 %1877 }
 0x74d   :  { %1880 = vst.msk [vmem:[#allocation3 + $0x2d] sm:$0x1] %vm594_vm2, %v1878_v5  ;;  %v12980_v5 = vld [vmem:[#allocation9 + $0x170c] ss:$16 sps:$4 sm:$0xff]  }
 0x754   :  { %v2021_v33 = vld [vmem:[#allocation3 + $0x28] sm:$0xff] }
 0x755   :  { %v2124_v30 = vrot.slane %v2021_v33, %v14054_v0  ;;  %v2117_v8 = vcombine.high %v2021_v33, %v2021_v33 }
 0x757   :  { %v2132_v9 = vcombine.high %v2124_v30, %v2124_v30  ;;  %v14265_v12 = vrot.slane %v2117_v8, %v14054_v0  ;;  %v2220_v23 = vpack.c.bf16 %v2124_v30, %v2124_v30  ;;  %v1382_v30 = vld [vmem:[%s14561_s4 + $0x38] sm:$0xff]  ;;  %v12975_v8 = vld [vmem:[#allocation9 + $0x1700] ss:$16 sps:$4 sm:$0xff]  }
 0x759   :  { %v2221_v13 = vpack.c.bf16 %v2132_v9, %v2132_v9  ;;  %v2133_v20 = vcombine.high %v14265_v12, %v14265_v12  ;;  %v12978_v9 = vld [vmem:[#allocation9 + $0x1708] ss:$16 sps:$4 sm:$0xff]  }
 0x75b   :  { %8840 = vmatprep.mubr.bf16.mxu1 %v2221_v13  ;;  %9496 = vmatprep.mubr.bf16.mxu0 %v2221_v13  ;;  %v2223_v24 = vpack.c.bf16 %v2133_v20, %v2133_v20  ;;  %v12983_v13 = vld [vmem:[#allocation9 + $0x1724] ss:$16 sps:$4 sm:$0xff]   ;;  %v12984_v20 = vld [vmem:[#allocation9 + $0x1728] ss:$16 sps:$4 sm:$0xff]  }
 0x75c   :  { %8841 = vmatmul.mubr.bf16.vlgmr.msra.gmra.mrb[40].mxu1 %v2220_v23  ;;  %9497 = vmatmul.mubr.bf16.vlgmr.msra.gmra.mrb[40].mxu0 %v2220_v23  ;;  %v1416_v48 = vpop.permute.xlu1 %1415  ;;  %v12989_v23 = vld [vmem:[#allocation9 + $0x1744] ss:$16 sps:$4 sm:$0xff]  }
 0x75d   :  { %8850 = vmatpush1.bf16.msra.mxu1 %v12927_v17  ;;  %9506 = vmatpush1.bf16.msra.mxu0 %v12930_v31  ;;  %v458_v6 = vpop.permute.xlu0 %457  ;;  %v1520_v53 = vadd.f32 %v14136_v32, %v1416_v48  ;;  %v12965_v32 = vld [vmem:[#allocation9 + $0x16c4] ss:$16 sps:$4 sm:$0xff]   ;;  %v12986_v17 = vld [vmem:[#allocation9 + $0x172c] ss:$16 sps:$4 sm:$0xff]   ;;  %v12981_v31 = vld [vmem:[#allocation9 + $0x1720] ss:$16 sps:$4 sm:$0xff]  }
 0x75e   :  { %v562_v19 = vadd.f32 %v14006_v46, %v458_v6  ;;  %8881 = vmatprep.mubr.bf16.mxu1 %v2223_v24  ;;  %9537 = vmatprep.mubr.bf16.mxu0 %v2223_v24  ;;  %v12948_v46 = vld [vmem:[#allocation9 + $0x1668] ss:$16 sps:$4 sm:$0xff]   ;;  %v12992_v24 = vld [vmem:[#allocation9 + $0x174c] ss:$16 sps:$4 sm:$0xff]   ;;  %v12995_v6 = vld [vmem:[#allocation9 + $0x1764] ss:$16 sps:$4 sm:$0xff]  }
 0x75f   :  { %8851 = vmatprep.subr.bf16.mxu1 %v12935_v35  ;;  %9507 = vmatprep.subr.bf16.mxu0 %v12938_v3  ;;  %v12987_v35 = vld [vmem:[#allocation9 + $0x1740] ss:$16 sps:$4 sm:$0xff]   ;;  %v12990_v3 = vld [vmem:[#allocation9 + $0x1748] ss:$16 sps:$4 sm:$0xff]  }
 0x760   :  { %577 = vst.msk [vmem:[#allocation2 + $0x30] sm:$0xff] %vm570_vm0, %v562_v19  ;;  %v12996_v19 = vld [vmem:[#allocation9 + $0x1768] ss:$16 sps:$4 sm:$0xff]   ;;  %v13011_v48 = vld [vmem:[#allocation9 + $0x17c0] ss:$16 sps:$4 sm:$0xff]  }
 0x761   :  { %8852 = vmatpush1.bf16.msra.mxu1 %v12933_v34  ;;  %9508 = vmatpush1.bf16.msra.mxu0 %v12936_v11  ;;  %v12998_v34 = vld [vmem:[#allocation9 + $0x176c] ss:$16 sps:$4 sm:$0xff]   ;;  %v12993_v11 = vld [vmem:[#allocation9 + $0x1760] ss:$16 sps:$4 sm:$0xff]  }
 0x762   :  { %8853 = vmatprep.subr.bf16.mxu1 %v12941_v27  ;;  %9509 = vmatprep.subr.bf16.mxu0 %v12944_v39  ;;  %v13001_v27 = vld [vmem:[#allocation9 + $0x1784] ss:$16 sps:$4 sm:$0xff]   ;;  %v13004_v39 = vld [vmem:[#allocation9 + $0x178c] ss:$16 sps:$4 sm:$0xff]  }
 0x765   :  { %8854 = vmatpush1.bf16.msra.mxu1 %v12939_v26  ;;  %9510 = vmatpush1.bf16.msra.mxu0 %v12942_v37  ;;  %v12999_v26 = vld [vmem:[#allocation9 + $0x1780] ss:$16 sps:$4 sm:$0xff]   ;;  %v13002_v37 = vld [vmem:[#allocation9 + $0x1788] ss:$16 sps:$4 sm:$0xff]  }
 0x766   :  { %8855 = vmatprep.subr.bf16.mxu1 %v12947_v42  ;;  %9511 = vmatprep.subr.bf16.mxu0 %v12950_v43  ;;  %v13007_v42 = vld [vmem:[#allocation9 + $0x17a4] ss:$16 sps:$4 sm:$0xff]   ;;  %v13010_v43 = vld [vmem:[#allocation9 + $0x17ac] ss:$16 sps:$4 sm:$0xff]  }
 0x767   :  { %v941_v49 = vld [vmem:[#allocation2 + $0x30] sm:$0x1]  ;;  %v956_v50 = vld [vmem:[#allocation2 + $0x32] sm:$0x1]  ;;  %v971_v51 = vld [vmem:[#allocation2 + $0x34] sm:$0x1] }
 0x768   :  { %v986_v41 = vld [vmem:[#allocation2 + $0x36] sm:$0x1]  ;;  %942 = vst.msk [vmem:[#allocation3 + $0x30] sm:$0x1] %vm580_vm1, %v941_v49  ;;  %957 = vst.msk [vmem:[#allocation3 + $0x32] sm:$0x1] %vm580_vm1, %v956_v50 }
 0x769   :  { %972 = vst.msk [vmem:[#allocation3 + $0x34] sm:$0x1] %vm580_vm1, %v971_v51  ;;  %v10051_v28 = vld.sshfl [vmem:[#allocation2 + $0x33] sm:$0x1 pattern:$0x76325410]  ;;  %8856 = vmatpush1.bf16.msra.mxu1 %v12945_v44  ;;  %9512 = vmatpush1.bf16.msra.mxu0 %v12948_v46 }
 0x76a   :  { %987 = vst.msk [vmem:[#allocation3 + $0x36] sm:$0x1] %vm580_vm1, %v986_v41  ;;  %967 = vrot.lane.b32.xlu1 %v10051_v28, %s13570_s0  ;;  %v10050_v21 = vld.sshfl [vmem:[#allocation2 + $0x31] sm:$0x1 pattern:$0x76325410]  ;;  %8857 = vmatprep.subr.bf16.mxu1 %v12953_v38 }
 0x76b   :  { %952 = vrot.lane.b32.xlu0 %v10050_v21, %s13570_s0  ;;  %v10053_v54 = vld.sshfl [vmem:[#allocation2 + $0x37] sm:$0x1 pattern:$0x76325410]  ;;  %9513 = vmatprep.subr.bf16.mxu0 %v12956_v47  ;;  %v13005_v44 = vld [vmem:[#allocation9 + $0x17a0] ss:$16 sps:$4 sm:$0xff]  }
 0x76c   :  { %v10052_v16 = vld.sshfl [vmem:[#allocation2 + $0x35] sm:$0x1 pattern:$0x76325410]  ;;  %v13008_v46 = vld [vmem:[#allocation9 + $0x17a8] ss:$16 sps:$4 sm:$0xff]  }
 0x76d   :  { %1534 = vst.msk [vmem:[#allocation2 + $0x30] sm:$0xff] %vm570_vm0, %v1520_v53  ;;  %8858 = vmatpush1.bf16.msra.mxu1 %v12951_v40  ;;  %9514 = vmatpush1.bf16.msra.mxu0 %v12954_v52  ;;  %v13013_v38 = vld [vmem:[#allocation9 + $0x17c4] ss:$16 sps:$4 sm:$0xff]   ;;  %v13016_v47 = vld [vmem:[#allocation9 + $0x17cc] ss:$16 sps:$4 sm:$0xff]   ;;  %v2222_v53 = vpack.c.bf16 %v14265_v12, %v14265_v12 }
 0x76e   :  { %997 = vrot.lane.b32.xlu1 %v10053_v54, %s13570_s0  ;;  %8859 = vmatprep.subr.bf16.mxu1 %v12959_v55  ;;  %v13014_v49 = vld [vmem:[#allocation9 + $0x17c8] ss:$16 sps:$4 sm:$0xff]   ;;  %v13019_v50 = vld [vmem:[#allocation9 + $0x17e4] ss:$16 sps:$4 sm:$0xff]   ;;  %v13022_v51 = vld [vmem:[#allocation9 + $0x17ec] ss:$16 sps:$4 sm:$0xff]  }
 0x76f   :  { %982 = vrot.lane.b32.xlu0 %v10052_v16, %s13570_s0  ;;  %9515 = vmatprep.subr.bf16.mxu0 %v12962_v56  ;;  %v13017_v40 = vld [vmem:[#allocation9 + $0x17e0] ss:$16 sps:$4 sm:$0xff]   ;;  %v13020_v41 = vld [vmem:[#allocation9 + $0x17e8] ss:$16 sps:$4 sm:$0xff]   ;;  %v13025_v28 = vld [vmem:[#allocation9 + $0x1804] ss:$16 sps:$4 sm:$0xff]  }
 0x770   :  { %v13028_v21 = vld [vmem:[#allocation9 + $0x180c] ss:$16 sps:$4 sm:$0xff]   ;;  %v13023_v52 = vld [vmem:[#allocation9 + $0x1800] ss:$16 sps:$4 sm:$0xff]   ;;  %v13026_v54 = vld [vmem:[#allocation9 + $0x1808] ss:$16 sps:$4 sm:$0xff]  }
 0x771   :  { %8860 = vmatpush1.bf16.msra.mxu1 %v12957_v57  ;;  %9516 = vmatpush1.bf16.msra.mxu0 %v12960_v58  ;;  %v13031_v55 = vld [vmem:[#allocation9 + $0x1824] ss:$16 sps:$4 sm:$0xff]   ;;  %v13034_v16 = vld [vmem:[#allocation9 + $0x182c] ss:$16 sps:$4 sm:$0xff]   ;;  %v13029_v56 = vld [vmem:[#allocation9 + $0x1820] ss:$16 sps:$4 sm:$0xff]  }
 0x772   :  { %8861 = vmatprep.subr.bf16.mxu1 %v12965_v32  ;;  %9517 = vmatprep.subr.bf16.mxu0 %v12968_v7  ;;  %v13032_v57 = vld [vmem:[#allocation9 + $0x1828] ss:$16 sps:$4 sm:$0xff]   ;;  %v13037_v58 = vld [vmem:[#allocation9 + $0x1844] ss:$16 sps:$4 sm:$0xff]   ;;  %v13040_v32 = vld [vmem:[#allocation9 + $0x184c] ss:$16 sps:$4 sm:$0xff]  }
 0x773   :  { %v13035_v7 = vld [vmem:[#allocation9 + $0x1840] ss:$16 sps:$4 sm:$0xff]   ;;  %v13038_v12 = vld [vmem:[#allocation9 + $0x1848] ss:$16 sps:$4 sm:$0xff]  }
 0x774   :  { %v10115_v29 = vld.sshfl [vmem:[#allocation2 + $0x33] sm:$0x1 pattern:$0x76325410]  ;;  %v1911_v61 = vld [vmem:[#allocation2 + $0x32] sm:$0x1] }
 0x775   :  { %1922 = vrot.lane.b32.xlu1 %v10115_v29, %s13570_s0  ;;  %v10114_v14 = vld.sshfl [vmem:[#allocation2 + $0x31] sm:$0x1 pattern:$0x76325410]  ;;  %1912 = vst.msk [vmem:[#allocation3 + $0x33] sm:$0x1] %vm580_vm1, %v1911_v61  ;;  %8862 = vmatpush1.bf16.msra.mxu1 %v12963_v59 }
 0x776   :  { %v1896_v62 = vld [vmem:[#allocation2 + $0x30] sm:$0x1]  ;;  %1907 = vrot.lane.b32.xlu0 %v10114_v14, %s13570_s0  ;;  %v1941_v1 = vld [vmem:[#allocation2 + $0x36] sm:$0x1]  ;;  %9518 = vmatpush1.bf16.msra.mxu0 %v12966_v10  ;;  %v1926_v4 = vld [vmem:[#allocation2 + $0x34] sm:$0x1] }
 0x777   :  { %1897 = vst.msk [vmem:[#allocation3 + $0x31] sm:$0x1] %vm580_vm1, %v1896_v62  ;;  %8863 = vmatprep.subr.bf16.mxu1 %v12971_v15  ;;  %1942 = vst.msk [vmem:[#allocation3 + $0x37] sm:$0x1] %vm580_vm1, %v1941_v1  ;;  %9519 = vmatprep.subr.bf16.mxu0 %v12974_v60  ;;  %v13043_v59 = vld [vmem:[#allocation9 + $0x1864] ss:$16 sps:$4 sm:$0xff]  }
 0x778   :  { %v10117_v18 = vld.sshfl [vmem:[#allocation2 + $0x37] sm:$0x1 pattern:$0x76325410]  ;;  %1927 = vst.msk [vmem:[#allocation3 + $0x35] sm:$0x1] %vm580_vm1, %v1926_v4 }
 0x779   :  { %1952 = vrot.lane.b32.xlu1 %v10117_v18, %s13570_s0  ;;  %v10116_v33 = vld.sshfl [vmem:[#allocation2 + $0x35] sm:$0x1 pattern:$0x76325410]  ;;  %8864 = vmatpush1.bf16.msra.mxu1 %v12969_v22  ;;  %v13046_v10 = vld [vmem:[#allocation9 + $0x186c] ss:$16 sps:$4 sm:$0xff]  }
 0x77a   :  { %1937 = vrot.lane.b32.xlu0 %v10116_v33, %s13570_s0  ;;  %9520 = vmatpush1.bf16.msra.mxu0 %v12972_v25  ;;  %v13041_v15 = vld [vmem:[#allocation9 + $0x1860] ss:$16 sps:$4 sm:$0xff]   ;;  %v13044_v60 = vld [vmem:[#allocation9 + $0x1868] ss:$16 sps:$4 sm:$0xff]   ;;  %v13049_v29 = vld [vmem:[#allocation9 + $0x1884] ss:$16 sps:$4 sm:$0xff]  }
 0x77b   :  { %8865 = vmatprep.subr.bf16.mxu1 %v12977_v2  ;;  %9521 = vmatprep.subr.bf16.mxu0 %v12980_v5  ;;  %v13052_v61 = vld [vmem:[#allocation9 + $0x188c] ss:$16 sps:$4 sm:$0xff]   ;;  %v13047_v14 = vld [vmem:[#allocation9 + $0x1880] ss:$16 sps:$4 sm:$0xff]   ;;  %v13050_v62 = vld [vmem:[#allocation9 + $0x1888] ss:$16 sps:$4 sm:$0xff]  }
 0x77c   :  { %v13055_v22 = vld [vmem:[#allocation9 + $0x18a4] ss:$16 sps:$4 sm:$0xff]   ;;  %v13058_v1 = vld [vmem:[#allocation9 + $0x18ac] ss:$16 sps:$4 sm:$0xff]   ;;  %v13053_v25 = vld [vmem:[#allocation9 + $0x18a0] ss:$16 sps:$4 sm:$0xff]  }
 0x77d   :  { %1420 = vperm.xlu1 %11870, %v1382_v30   ;;  %8866 = vmatpush1.bf16.msra.mxu1 %v12975_v8  ;;  %v13056_v2 = vld [vmem:[#allocation9 + $0x18a8] ss:$16 sps:$4 sm:$0xff]   ;;  %v13061_v4 = vld [vmem:[#allocation9 + $0x18c4] ss:$16 sps:$4 sm:$0xff]   ;;  %v13064_v18 = vld [vmem:[#allocation9 + $0x18cc] ss:$16 sps:$4 sm:$0xff]  }
 0x77e   :  { %462 = vperm.xlu0 %11869, %v1382_v30   ;;  %9522 = vmatpush1.bf16.msra.mxu0 %v12978_v9  ;;  %v13059_v5 = vld [vmem:[#allocation9 + $0x18c0] ss:$16 sps:$4 sm:$0xff]   ;;  %v13062_v33 = vld [vmem:[#allocation9 + $0x18c8] ss:$16 sps:$4 sm:$0xff]   ;;  %v13067_v30 = vld [vmem:[#allocation9 + $0x18e4] ss:$16 sps:$4 sm:$0xff]  }
 0x77f   :  { %8867 = vmatprep.subr.bf16.mxu1 %v12983_v13  ;;  %9523 = vmatprep.subr.bf16.mxu0 %v12986_v17  ;;  %v13070_v8 = vld [vmem:[#allocation9 + $0x18ec] ss:$16 sps:$4 sm:$0xff]   ;;  %v13065_v9 = vld [vmem:[#allocation9 + $0x18e0] ss:$16 sps:$4 sm:$0xff]   ;;  %v13068_v13 = vld [vmem:[#allocation9 + $0x18e8] ss:$16 sps:$4 sm:$0xff]  }
 0x780   :  { %v13073_v17 = vld [vmem:[#allocation9 + $0x1904] ss:$16 sps:$4 sm:$0xff]  }
 0x781   :  { %8868 = vmatpush1.bf16.msra.mxu1 %v12981_v31  ;;  %v13076_v31 = vld [vmem:[#allocation9 + $0x190c] ss:$16 sps:$4 sm:$0xff]  }
 0x782   :  { %9524 = vmatpush1.bf16.msra.mxu0 %v12984_v20  ;;  %8869 = vmatprep.subr.bf16.mxu1 %v12989_v23  ;;  %v13071_v20 = vld [vmem:[#allocation9 + $0x1900] ss:$16 sps:$4 sm:$0xff]   ;;  %v13074_v23 = vld [vmem:[#allocation9 + $0x1908] ss:$16 sps:$4 sm:$0xff]  }
 0x783   :  { %9525 = vmatprep.subr.bf16.mxu0 %v12992_v24  ;;  %v13079_v24 = vld [vmem:[#allocation9 + $0x1924] ss:$16 sps:$4 sm:$0xff]  }
 0x785   :  { %8870 = vmatpush1.bf16.msra.mxu1 %v12987_v35  ;;  %v13082_v35 = vld [vmem:[#allocation9 + $0x192c] ss:$16 sps:$4 sm:$0xff]  }
 0x786   :  { %9526 = vmatpush1.bf16.msra.mxu0 %v12990_v3  ;;  %8871 = vmatprep.subr.bf16.mxu1 %v12995_v6  ;;  %v13077_v3 = vld [vmem:[#allocation9 + $0x1920] ss:$16 sps:$4 sm:$0xff]   ;;  %v13080_v6 = vld [vmem:[#allocation9 + $0x1928] ss:$16 sps:$4 sm:$0xff]  }
 0x787   :  { %9527 = vmatprep.subr.bf16.mxu0 %v12998_v34  ;;  %v13085_v34 = vld [vmem:[#allocation9 + $0x1944] ss:$16 sps:$4 sm:$0xff]  }
 0x789   :  { %8872 = vmatpush1.bf16.msra.mxu1 %v12993_v11  ;;  %v13088_v11 = vld [vmem:[#allocation9 + $0x194c] ss:$16 sps:$4 sm:$0xff]  }
 0x78a   :  { %9528 = vmatpush1.bf16.msra.mxu0 %v12996_v19  ;;  %8873 = vmatprep.subr.bf16.mxu1 %v13001_v27  ;;  %v13083_v19 = vld [vmem:[#allocation9 + $0x1940] ss:$16 sps:$4 sm:$0xff]   ;;  %v13086_v27 = vld [vmem:[#allocation9 + $0x1948] ss:$16 sps:$4 sm:$0xff]  }
 0x78b   :  { %9529 = vmatprep.subr.bf16.mxu0 %v13004_v39  ;;  %v13091_v39 = vld [vmem:[#allocation9 + $0x1964] ss:$16 sps:$4 sm:$0xff]  }
 0x78d   :  { %8874 = vmatpush1.bf16.msra.mxu1 %v12999_v26  ;;  %v13094_v26 = vld [vmem:[#allocation9 + $0x196c] ss:$16 sps:$4 sm:$0xff]  }
 0x78e   :  { %9530 = vmatpush1.bf16.msra.mxu0 %v13002_v37  ;;  %8875 = vmatprep.subr.bf16.mxu1 %v13007_v42  ;;  %v13089_v37 = vld [vmem:[#allocation9 + $0x1960] ss:$16 sps:$4 sm:$0xff]   ;;  %v13092_v42 = vld [vmem:[#allocation9 + $0x1968] ss:$16 sps:$4 sm:$0xff]  }
 0x78f   :  { %9531 = vmatprep.subr.bf16.mxu0 %v13010_v43  ;;  %v13097_v43 = vld [vmem:[#allocation9 + $0x1984] ss:$16 sps:$4 sm:$0xff]  }
 0x791   :  { %8876 = vmatpush1.bf16.msra.mxu1 %v13005_v44  ;;  %v13100_v44 = vld [vmem:[#allocation9 + $0x198c] ss:$16 sps:$4 sm:$0xff]  }
 0x792   :  { %9532 = vmatpush1.bf16.msra.mxu0 %v13008_v46  ;;  %8877 = vmatprep.subr.bf16.mxu1 %v13013_v38  ;;  %v13095_v46 = vld [vmem:[#allocation9 + $0x1980] ss:$16 sps:$4 sm:$0xff]   ;;  %v13098_v38 = vld [vmem:[#allocation9 + $0x1988] ss:$16 sps:$4 sm:$0xff]  }
 0x793   :  { %9533 = vmatprep.subr.bf16.mxu0 %v13016_v47  ;;  %v13103_v47 = vld [vmem:[#allocation9 + $0x19a4] ss:$16 sps:$4 sm:$0xff]  }
 0x795   :  { %8878 = vmatpush1.bf16.msra.mxu1 %v13011_v48  ;;  %v13106_v48 = vld [vmem:[#allocation9 + $0x19ac] ss:$16 sps:$4 sm:$0xff]  }
 0x796   :  { %9534 = vmatpush1.bf16.msra.mxu0 %v13014_v49  ;;  %8879 = vmatprep.subr.bf16.mxu1 %v13019_v50  ;;  %v13101_v49 = vld [vmem:[#allocation9 + $0x19a0] ss:$16 sps:$4 sm:$0xff]   ;;  %v13104_v50 = vld [vmem:[#allocation9 + $0x19a8] ss:$16 sps:$4 sm:$0xff]  }
 0x797   :  { %9535 = vmatprep.subr.bf16.mxu0 %v13022_v51  ;;  %v13109_v51 = vld [vmem:[#allocation9 + $0x19c4] ss:$16 sps:$4 sm:$0xff]  }
 0x799   :  { %8880 = vmatpush1.bf16.msra.mxu1 %v13017_v40  ;;  %v13112_v40 = vld [vmem:[#allocation9 + $0x19cc] ss:$16 sps:$4 sm:$0xff]  }
 0x79a   :  { %9536 = vmatpush1.bf16.msra.mxu0 %v13020_v41  ;;  %8890 = vmatprep.subr.bf16.mxu1 %v13025_v28  ;;  %v13107_v41 = vld [vmem:[#allocation9 + $0x19c0] ss:$16 sps:$4 sm:$0xff]   ;;  %v13110_v28 = vld [vmem:[#allocation9 + $0x19c8] ss:$16 sps:$4 sm:$0xff]  }
 0x79b   :  { %9546 = vmatprep.subr.bf16.mxu0 %v13028_v21  ;;  %v13115_v21 = vld [vmem:[#allocation9 + $0x19e4] ss:$16 sps:$4 sm:$0xff]  }
 0x79c   :  { %8882 = vmatmul.mubr.bf16.vlgmr.msra.gmra.mrb[40].mxu1 %v2222_v53 }
 0x79d   :  { %9538 = vmatmul.mubr.bf16.vlgmr.msra.gmra.mrb[40].mxu0 %v2222_v53  ;;  %8891 = vmatpush1.bf16.msra.mxu1 %v13023_v52  ;;  %v13118_v52 = vld [vmem:[#allocation9 + $0x19ec] ss:$16 sps:$4 sm:$0xff]   ;;  %v13113_v53 = vld [vmem:[#allocation9 + $0x19e0] ss:$16 sps:$4 sm:$0xff]  }
 0x79e   :  { %9547 = vmatpush1.bf16.msra.mxu0 %v13026_v54  ;;  %8892 = vmatprep.subr.bf16.mxu1 %v13031_v55  ;;  %v13116_v54 = vld [vmem:[#allocation9 + $0x19e8] ss:$16 sps:$4 sm:$0xff]   ;;  %v13121_v55 = vld [vmem:[#allocation9 + $0x1a04] ss:$16 sps:$4 sm:$0xff]  }
 0x79f   :  { %9548 = vmatprep.subr.bf16.mxu0 %v13034_v16  ;;  %v13124_v16 = vld [vmem:[#allocation9 + $0x1a0c] ss:$16 sps:$4 sm:$0xff]  }
 0x7a1   :  { %8893 = vmatpush1.bf16.msra.mxu1 %v13029_v56 }
 0x7a2   :  { %9549 = vmatpush1.bf16.msra.mxu0 %v13032_v57  ;;  %8894 = vmatprep.subr.bf16.mxu1 %v13037_v58 }
 0x7a3   :  { %9550 = vmatprep.subr.bf16.mxu0 %v13040_v32 }
 0x7a5   :  { %8895 = vmatpush1.bf16.msra.mxu1 %v13035_v7 }
 0x7a6   :  { %9551 = vmatpush1.bf16.msra.mxu0 %v13038_v12  ;;  %8896 = vmatprep.subr.bf16.mxu1 %v13043_v59 }
 0x7a7   :  { %9552 = vmatprep.subr.bf16.mxu0 %v13046_v10 }
 0x7a9   :  { %8897 = vmatpush1.bf16.msra.mxu1 %v13041_v15 }
 0x7aa   :  { %9553 = vmatpush1.bf16.msra.mxu0 %v13044_v60  ;;  %8898 = vmatprep.subr.bf16.mxu1 %v13049_v29 }
 0x7ab   :  { %9554 = vmatprep.subr.bf16.mxu0 %v13052_v61 }
 0x7ad   :  { %8899 = vmatpush1.bf16.msra.mxu1 %v13047_v14 }
 0x7ae   :  { %9555 = vmatpush1.bf16.msra.mxu0 %v13050_v62  ;;  %8900 = vmatprep.subr.bf16.mxu1 %v13055_v22  ;;  %v13119_v22 = vld [vmem:[#allocation9 + $0x1a00] ss:$16 sps:$4 sm:$0xff]  }
 0x7af   :  { %9556 = vmatprep.subr.bf16.mxu0 %v13058_v1  ;;  %v13122_v1 = vld [vmem:[#allocation9 + $0x1a08] ss:$16 sps:$4 sm:$0xff]  }
 0x7b1   :  { %8901 = vmatpush1.bf16.msra.mxu1 %v13053_v25 }
 0x7b2   :  { %9557 = vmatpush1.bf16.msra.mxu0 %v13056_v2  ;;  %8902 = vmatprep.subr.bf16.mxu1 %v13061_v4 }
 0x7b3   :  { %9558 = vmatprep.subr.bf16.mxu0 %v13064_v18  ;;  %v13127_v18 = vld [vmem:[#allocation9 + $0x1a24] ss:$16 sps:$4 sm:$0xff]  }
 0x7b5   :  { %8903 = vmatpush1.bf16.msra.mxu1 %v13059_v5  ;;  %v13130_v5 = vld [vmem:[#allocation9 + $0x1a2c] ss:$16 sps:$4 sm:$0xff]  }
 0x7b6   :  { %9559 = vmatpush1.bf16.msra.mxu0 %v13062_v33  ;;  %8904 = vmatprep.subr.bf16.mxu1 %v13067_v30  ;;  %v13125_v30 = vld [vmem:[#allocation9 + $0x1a20] ss:$16 sps:$4 sm:$0xff]  }
 0x7b7   :  { %9560 = vmatprep.subr.bf16.mxu0 %v13070_v8  ;;  %v13128_v8 = vld [vmem:[#allocation9 + $0x1a28] ss:$16 sps:$4 sm:$0xff]  }
 0x7b9   :  { %8905 = vmatpush1.bf16.msra.mxu1 %v13065_v9 }
 0x7ba   :  { %9561 = vmatpush1.bf16.msra.mxu0 %v13068_v13  ;;  %8906 = vmatprep.subr.bf16.mxu1 %v13073_v17  ;;  %v13133_v13 = vld [vmem:[#allocation9 + $0x1a44] ss:$16 sps:$4 sm:$0xff]   ;;  %v13136_v17 = vld [vmem:[#allocation9 + $0x1a4c] ss:$16 sps:$4 sm:$0xff]  }
 0x7bb   :  { %9562 = vmatprep.subr.bf16.mxu0 %v13076_v31  ;;  %v13131_v31 = vld [vmem:[#allocation9 + $0x1a40] ss:$16 sps:$4 sm:$0xff]  }
 0x7bd   :  { %8907 = vmatpush1.bf16.msra.mxu1 %v13071_v20  ;;  %v13134_v20 = vld [vmem:[#allocation9 + $0x1a48] ss:$16 sps:$4 sm:$0xff]  }
 0x7be   :  { %9563 = vmatpush1.bf16.msra.mxu0 %v13074_v23  ;;  %8908 = vmatprep.subr.bf16.mxu1 %v13079_v24  ;;  %v13139_v23 = vld [vmem:[#allocation9 + $0x1a64] ss:$16 sps:$4 sm:$0xff]   ;;  %v13142_v24 = vld [vmem:[#allocation9 + $0x1a6c] ss:$16 sps:$4 sm:$0xff]  }
 0x7bf   :  { %9564 = vmatprep.subr.bf16.mxu0 %v13082_v35  ;;  %v13137_v35 = vld [vmem:[#allocation9 + $0x1a60] ss:$16 sps:$4 sm:$0xff]  }
 0x7c1   :  { %8909 = vmatpush1.bf16.msra.mxu1 %v13077_v3  ;;  %v13145_v3 = vld [vmem:[#allocation9 + $0x1a84] ss:$16 sps:$4 sm:$0xff]  }
 0x7c2   :  { %9565 = vmatpush1.bf16.msra.mxu0 %v13080_v6  ;;  %8910 = vmatprep.subr.bf16.mxu1 %v13085_v34  ;;  %v13148_v6 = vld [vmem:[#allocation9 + $0x1a8c] ss:$16 sps:$4 sm:$0xff]  }
 0x7c3   :  { %9566 = vmatprep.subr.bf16.mxu0 %v13088_v11 }
 0x7c5   :  { %8911 = vmatpush1.bf16.msra.mxu1 %v13083_v19 }
 0x7c6   :  { %9567 = vmatpush1.bf16.msra.mxu0 %v13086_v27  ;;  %8912 = vmatprep.subr.bf16.mxu1 %v13091_v39  ;;  %v13143_v39 = vld [vmem:[#allocation9 + $0x1a80] ss:$16 sps:$4 sm:$0xff]  }
 0x7c7   :  { %9568 = vmatprep.subr.bf16.mxu0 %v13094_v26 }
 0x7c9   :  { %8913 = vmatpush1.bf16.msra.mxu1 %v13089_v37 }
 0x7ca   :  { %9569 = vmatpush1.bf16.msra.mxu0 %v13092_v42  ;;  %8914 = vmatprep.subr.bf16.mxu1 %v13097_v43  ;;  %v13146_v43 = vld [vmem:[#allocation9 + $0x1a88] ss:$16 sps:$4 sm:$0xff]  }
 0x7cb   :  { %9570 = vmatprep.subr.bf16.mxu0 %v13100_v44 }
 0x7cd   :  { %8915 = vmatpush1.bf16.msra.mxu1 %v13095_v46 }
 0x7ce   :  { %9571 = vmatpush1.bf16.msra.mxu0 %v13098_v38  ;;  %8916 = vmatprep.subr.bf16.mxu1 %v13103_v47  ;;  %v13151_v38 = vld [vmem:[#allocation9 + $0x1aa4] ss:$16 sps:$4 sm:$0xff]  }
 0x7cf   :  { %9572 = vmatprep.subr.bf16.mxu0 %v13106_v48  ;;  %v13154_v48 = vld [vmem:[#allocation9 + $0x1aac] ss:$16 sps:$4 sm:$0xff]  }
 0x7d1   :  { %8917 = vmatpush1.bf16.msra.mxu1 %v13101_v49  ;;  %v13149_v49 = vld [vmem:[#allocation9 + $0x1aa0] ss:$16 sps:$4 sm:$0xff]  }
 0x7d2   :  { %9573 = vmatpush1.bf16.msra.mxu0 %v13104_v50  ;;  %8918 = vmatprep.subr.bf16.mxu1 %v13109_v51  ;;  %v13152_v50 = vld [vmem:[#allocation9 + $0x1aa8] ss:$16 sps:$4 sm:$0xff]   ;;  %v13160_v51 = vld [vmem:[#allocation9 + $0x1acc] ss:$16 sps:$4 sm:$0xff]  }
 0x7d3   :  { %9574 = vmatprep.subr.bf16.mxu0 %v13112_v40  ;;  %v13155_v40 = vld [vmem:[#allocation9 + $0x1ac0] ss:$16 sps:$4 sm:$0xff]  }
 0x7d5   :  { %8919 = vmatpush1.bf16.msra.mxu1 %v13107_v41  ;;  %v13158_v41 = vld [vmem:[#allocation9 + $0x1ac8] ss:$16 sps:$4 sm:$0xff]  }
 0x7d6   :  { %9575 = vmatpush1.bf16.msra.mxu0 %v13110_v28  ;;  %8920 = vmatprep.subr.bf16.mxu1 %v13115_v21  ;;  %v13163_v28 = vld [vmem:[#allocation9 + $0x1ae4] ss:$16 sps:$4 sm:$0xff]   ;;  %v13166_v21 = vld [vmem:[#allocation9 + $0x1aec] ss:$16 sps:$4 sm:$0xff]  }
 0x7d7   :  { %9576 = vmatprep.subr.bf16.mxu0 %v13118_v52 }
 0x7d9   :  { %8921 = vmatpush1.bf16.msra.mxu1 %v13113_v53 }
 0x7da   :  { %9577 = vmatpush1.bf16.msra.mxu0 %v13116_v54  ;;  %8931 = vmatprep.subr.bf16.mxu1 %v13121_v55 }
 0x7db   :  { %9587 = vmatprep.subr.bf16.mxu0 %v13124_v16  ;;  %v13161_v16 = vld [vmem:[#allocation9 + $0x1ae0] ss:$16 sps:$4 sm:$0xff]  }
 0x7dc   :  { %v968_v56 = vpop.permute.xlu1 %967 }
 0x7dd   :  { %970 = vst.msk [vmem:[#allocation3 + $0x32] sm:$0x1] %vm594_vm2, %v968_v56  ;;  %v953_v57 = vpop.permute.xlu0 %952 }
 0x7de   :  { %955 = vst.msk [vmem:[#allocation3 + $0x30] sm:$0x1] %vm594_vm2, %v953_v57  ;;  %v13164_v57 = vld [vmem:[#allocation9 + $0x1ae8] ss:$16 sps:$4 sm:$0xff]  }
 0x7e0   :  { %v998_v58 = vpop.permute.xlu1 %997 }
 0x7e1   :  { %1000 = vst.msk [vmem:[#allocation3 + $0x36] sm:$0x1] %vm594_vm2, %v998_v58  ;;  %v983_v32 = vpop.permute.xlu0 %982  ;;  %v13169_v58 = vld [vmem:[#allocation9 + $0x1b04] ss:$16 sps:$4 sm:$0xff]  }
 0x7e2   :  { %985 = vst.msk [vmem:[#allocation3 + $0x34] sm:$0x1] %vm594_vm2, %v983_v32 }
 0x7e7   :  { %v1923_v7 = vpop.permute.xlu1 %1922 }
 0x7e8   :  { %1925 = vst.msk [vmem:[#allocation3 + $0x33] sm:$0x1] %vm594_vm2, %v1923_v7  ;;  %v1908_v12 = vpop.permute.xlu0 %1907 }
 0x7e9   :  { %1910 = vst.msk [vmem:[#allocation3 + $0x31] sm:$0x1] %vm594_vm2, %v1908_v12  ;;  %v13172_v12 = vld [vmem:[#allocation9 + $0x1b0c] ss:$16 sps:$4 sm:$0xff]  }
 0x7eb   :  { %v1953_v59 = vpop.permute.xlu1 %1952 }
 0x7ec   :  { %1955 = vst.msk [vmem:[#allocation3 + $0x37] sm:$0x1] %vm594_vm2, %v1953_v59  ;;  %v1938_v10 = vpop.permute.xlu0 %1937 }
 0x7ed   :  { %1940 = vst.msk [vmem:[#allocation3 + $0x35] sm:$0x1] %vm594_vm2, %v1938_v10  ;;  %v13167_v10 = vld [vmem:[#allocation9 + $0x1b00] ss:$16 sps:$4 sm:$0xff]  }
 0x7f4   :  { %v2022_v15 = vld [vmem:[#allocation3 + $0x30] sm:$0xff] }
 0x7f5   :  { %v2141_v60 = vrot.slane %v2022_v15, %v14054_v0  ;;  %v2134_v29 = vcombine.high %v2022_v15, %v2022_v15  ;;  %v13170_v15 = vld [vmem:[#allocation9 + $0x1b08] ss:$16 sps:$4 sm:$0xff]  }
 0x7f7   :  { %v2149_v61 = vcombine.high %v2141_v60, %v2141_v60  ;;  %v14304_v14 = vrot.slane %v2134_v29, %v14054_v0  ;;  %v2224_v2 = vpack.c.bf16 %v2141_v60, %v2141_v60  ;;  %v13175_v60 = vld [vmem:[#allocation9 + $0x1b24] ss:$16 sps:$4 sm:$0xff]   ;;  %v13178_v29 = vld [vmem:[#allocation9 + $0x1b2c] ss:$16 sps:$4 sm:$0xff]  }
 0x7f9   :  { %v2225_v62 = vpack.c.bf16 %v2149_v61, %v2149_v61  ;;  %v2150_v25 = vcombine.high %v14304_v14, %v14304_v14  ;;  %v13173_v61 = vld [vmem:[#allocation9 + $0x1b20] ss:$16 sps:$4 sm:$0xff]  }
 0x7fb   :  { %8922 = vmatprep.mubr.bf16.mxu1 %v2225_v62  ;;  %9578 = vmatprep.mubr.bf16.mxu0 %v2225_v62  ;;  %v2227_v4 = vpack.c.bf16 %v2150_v25, %v2150_v25  ;;  %v13176_v62 = vld [vmem:[#allocation9 + $0x1b28] ss:$16 sps:$4 sm:$0xff]   ;;  %v13179_v25 = vld [vmem:[#allocation9 + $0x1b40] ss:$16 sps:$4 sm:$0xff]  }
 0x7fc   :  { %8923 = vmatmul.mubr.bf16.vlgmr.msra.gmra.mrb[40].mxu1 %v2224_v2  ;;  %9579 = vmatmul.mubr.bf16.vlgmr.msra.gmra.mrb[40].mxu0 %v2224_v2  ;;  %v1421_v34 = vpop.permute.xlu1 %1420  ;;  %v13182_v2 = vld [vmem:[#allocation9 + $0x1b48] ss:$16 sps:$4 sm:$0xff]  }
 0x7fd   :  { %8932 = vmatpush1.bf16.msra.mxu1 %v13119_v22  ;;  %9588 = vmatpush1.bf16.msra.mxu0 %v13122_v1  ;;  %v463_v33 = vpop.permute.xlu0 %462  ;;  %v1525_v44 = vadd.f32 %v14134_v36, %v1421_v34  ;;  %v13157_v36 = vld [vmem:[#allocation9 + $0x1ac4] ss:$16 sps:$4 sm:$0xff]   ;;  %v13184_v1 = vld [vmem:[#allocation9 + $0x1b4c] ss:$16 sps:$4 sm:$0xff]  }
 0x7fe   :  { %v567_v9 = vadd.f32 %v14002_v45, %v463_v33  ;;  %8963 = vmatprep.mubr.bf16.mxu1 %v2227_v4  ;;  %9619 = vmatprep.mubr.bf16.mxu0 %v2227_v4  ;;  %v13140_v45 = vld [vmem:[#allocation9 + $0x1a68] ss:$16 sps:$4 sm:$0xff]   ;;  %v13181_v22 = vld [vmem:[#allocation9 + $0x1b44] ss:$16 sps:$4 sm:$0xff]   ;;  %v13214_v34 = vld [vmem:[#allocation9 + $0x1bec] ss:$16 sps:$4 sm:$0xff]  }
 0x7ff   :  { %8933 = vmatprep.subr.bf16.mxu1 %v13127_v18  ;;  %9589 = vmatprep.subr.bf16.mxu0 %v13130_v5  ;;  %v13187_v4 = vld [vmem:[#allocation9 + $0x1b64] ss:$16 sps:$4 sm:$0xff]   ;;  %v13190_v18 = vld [vmem:[#allocation9 + $0x1b6c] ss:$16 sps:$4 sm:$0xff]   ;;  %v13185_v5 = vld [vmem:[#allocation9 + $0x1b60] ss:$16 sps:$4 sm:$0xff]  }
 0x800   :  { %578 = vst.msk [vmem:[#allocation2 + $0x38] sm:$0xff] %vm570_vm0, %v567_v9  ;;  %v13188_v33 = vld [vmem:[#allocation9 + $0x1b68] ss:$16 sps:$4 sm:$0xff]   ;;  %v13191_v9 = vld [vmem:[#allocation9 + $0x1b80] ss:$16 sps:$4 sm:$0xff]  }
 0x801   :  { %8934 = vmatpush1.bf16.msra.mxu1 %v13125_v30  ;;  %9590 = vmatpush1.bf16.msra.mxu0 %v13128_v8  ;;  %v13193_v30 = vld [vmem:[#allocation9 + $0x1b84] ss:$16 sps:$4 sm:$0xff]   ;;  %v13196_v8 = vld [vmem:[#allocation9 + $0x1b8c] ss:$16 sps:$4 sm:$0xff]  }
 0x802   :  { %8935 = vmatprep.subr.bf16.mxu1 %v13133_v13  ;;  %9591 = vmatprep.subr.bf16.mxu0 %v13136_v17  ;;  %v13194_v13 = vld [vmem:[#allocation9 + $0x1b88] ss:$16 sps:$4 sm:$0xff]   ;;  %v13199_v17 = vld [vmem:[#allocation9 + $0x1ba4] ss:$16 sps:$4 sm:$0xff]  }
 0x805   :  { %8936 = vmatpush1.bf16.msra.mxu1 %v13131_v31  ;;  %9592 = vmatpush1.bf16.msra.mxu0 %v13134_v20  ;;  %v13202_v31 = vld [vmem:[#allocation9 + $0x1bac] ss:$16 sps:$4 sm:$0xff]   ;;  %v13197_v20 = vld [vmem:[#allocation9 + $0x1ba0] ss:$16 sps:$4 sm:$0xff]  }
 0x806   :  { %8937 = vmatprep.subr.bf16.mxu1 %v13139_v23  ;;  %9593 = vmatprep.subr.bf16.mxu0 %v13142_v24  ;;  %v13200_v23 = vld [vmem:[#allocation9 + $0x1ba8] ss:$16 sps:$4 sm:$0xff]   ;;  %v13205_v24 = vld [vmem:[#allocation9 + $0x1bc4] ss:$16 sps:$4 sm:$0xff]  }
 0x807   :  { %v1001_v11 = vld [vmem:[#allocation2 + $0x38] sm:$0x1]  ;;  %v1016_v19 = vld [vmem:[#allocation2 + $0x3a] sm:$0x1]  ;;  %v1031_v27 = vld [vmem:[#allocation2 + $0x3c] sm:$0x1] }
 0x808   :  { %v1046_v26 = vld [vmem:[#allocation2 + $0x3e] sm:$0x1]  ;;  %1002 = vst.msk [vmem:[#allocation3 + $0x38] sm:$0x1] %vm580_vm1, %v1001_v11  ;;  %1017 = vst.msk [vmem:[#allocation3 + $0x3a] sm:$0x1] %vm580_vm1, %v1016_v19 }
 0x809   :  { %1032 = vst.msk [vmem:[#allocation3 + $0x3c] sm:$0x1] %vm580_vm1, %v1031_v27  ;;  %v10055_v37 = vld.sshfl [vmem:[#allocation2 + $0x3b] sm:$0x1 pattern:$0x76325410]  ;;  %8938 = vmatpush1.bf16.msra.mxu1 %v13137_v35  ;;  %9594 = vmatpush1.bf16.msra.mxu0 %v13140_v45 }
 0x80a   :  { %1047 = vst.msk [vmem:[#allocation3 + $0x3e] sm:$0x1] %vm580_vm1, %v1046_v26  ;;  %1027 = vrot.lane.b32.xlu1 %v10055_v37, %s13570_s0  ;;  %v10054_v42 = vld.sshfl [vmem:[#allocation2 + $0x39] sm:$0x1 pattern:$0x76325410]  ;;  %8939 = vmatprep.subr.bf16.mxu1 %v13145_v3  ;;  %v2226_v37 = vpack.c.bf16 %v14304_v14, %v14304_v14 }
 0x80b   :  { %1012 = vrot.lane.b32.xlu0 %v10054_v42, %s13570_s0  ;;  %v10057_v46 = vld.sshfl [vmem:[#allocation2 + $0x3f] sm:$0x1 pattern:$0x76325410]  ;;  %9595 = vmatprep.subr.bf16.mxu0 %v13148_v6  ;;  %v13203_v45 = vld [vmem:[#allocation9 + $0x1bc0] ss:$16 sps:$4 sm:$0xff]  }
 0x80c   :  { %v10056_v47 = vld.sshfl [vmem:[#allocation2 + $0x3d] sm:$0x1 pattern:$0x76325410]  ;;  %v13206_v3 = vld [vmem:[#allocation9 + $0x1bc8] ss:$16 sps:$4 sm:$0xff]  }
 0x80d   :  { %1535 = vst.msk [vmem:[#allocation2 + $0x38] sm:$0xff] %vm570_vm0, %v1525_v44  ;;  %8940 = vmatpush1.bf16.msra.mxu1 %v13143_v39  ;;  %9596 = vmatpush1.bf16.msra.mxu0 %v13146_v43  ;;  %v13208_v35 = vld [vmem:[#allocation9 + $0x1bcc] ss:$16 sps:$4 sm:$0xff]   ;;  %v13211_v6 = vld [vmem:[#allocation9 + $0x1be4] ss:$16 sps:$4 sm:$0xff]  }
 0x80e   :  { %1057 = vrot.lane.b32.xlu1 %v10057_v46, %s13570_s0  ;;  %8941 = vmatprep.subr.bf16.mxu1 %v13151_v38  ;;  %v13209_v11 = vld [vmem:[#allocation9 + $0x1be0] ss:$16 sps:$4 sm:$0xff]   ;;  %v13212_v19 = vld [vmem:[#allocation9 + $0x1be8] ss:$16 sps:$4 sm:$0xff]   ;;  %v13217_v27 = vld [vmem:[#allocation9 + $0x1c04] ss:$16 sps:$4 sm:$0xff]  }
 0x80f   :  { %1042 = vrot.lane.b32.xlu0 %v10056_v47, %s13570_s0  ;;  %9597 = vmatprep.subr.bf16.mxu0 %v13154_v48  ;;  %v13220_v39 = vld [vmem:[#allocation9 + $0x1c0c] ss:$16 sps:$4 sm:$0xff]   ;;  %v13215_v26 = vld [vmem:[#allocation9 + $0x1c00] ss:$16 sps:$4 sm:$0xff]   ;;  %v13218_v42 = vld [vmem:[#allocation9 + $0x1c08] ss:$16 sps:$4 sm:$0xff]  }
 0x810   :  { %v13223_v43 = vld [vmem:[#allocation9 + $0x1c24] ss:$16 sps:$4 sm:$0xff]   ;;  %v13226_v44 = vld [vmem:[#allocation9 + $0x1c2c] ss:$16 sps:$4 sm:$0xff]   ;;  %v13221_v46 = vld [vmem:[#allocation9 + $0x1c20] ss:$16 sps:$4 sm:$0xff]  }
 0x811   :  { %8942 = vmatpush1.bf16.msra.mxu1 %v13149_v49  ;;  %9598 = vmatpush1.bf16.msra.mxu0 %v13152_v50  ;;  %v13224_v38 = vld [vmem:[#allocation9 + $0x1c28] ss:$16 sps:$4 sm:$0xff]   ;;  %v13229_v47 = vld [vmem:[#allocation9 + $0x1c44] ss:$16 sps:$4 sm:$0xff]   ;;  %v13232_v48 = vld [vmem:[#allocation9 + $0x1c4c] ss:$16 sps:$4 sm:$0xff]  }
 0x812   :  { %8943 = vmatprep.subr.bf16.mxu1 %v13157_v36  ;;  %9599 = vmatprep.subr.bf16.mxu0 %v13160_v51  ;;  %v13227_v49 = vld [vmem:[#allocation9 + $0x1c40] ss:$16 sps:$4 sm:$0xff]   ;;  %v13230_v14 = vld [vmem:[#allocation9 + $0x1c48] ss:$16 sps:$4 sm:$0xff]   ;;  %v13235_v50 = vld [vmem:[#allocation9 + $0x1c64] ss:$16 sps:$4 sm:$0xff]  }
 0x813   :  { %v13238_v36 = vld [vmem:[#allocation9 + $0x1c6c] ss:$16 sps:$4 sm:$0xff]   ;;  %v13233_v51 = vld [vmem:[#allocation9 + $0x1c60] ss:$16 sps:$4 sm:$0xff]  }
 0x814   :  { %v10119_v52 = vld.sshfl [vmem:[#allocation2 + $0x3b] sm:$0x1 pattern:$0x76325410]  ;;  %v1971_v53 = vld [vmem:[#allocation2 + $0x3a] sm:$0x1] }
 0x815   :  { %1982 = vrot.lane.b32.xlu1 %v10119_v52, %s13570_s0  ;;  %v10118_v54 = vld.sshfl [vmem:[#allocation2 + $0x39] sm:$0x1 pattern:$0x76325410]  ;;  %1972 = vst.msk [vmem:[#allocation3 + $0x3b] sm:$0x1] %vm580_vm1, %v1971_v53  ;;  %8944 = vmatpush1.bf16.msra.mxu1 %v13155_v40 }
 0x816   :  { %v1956_v55 = vld [vmem:[#allocation2 + $0x38] sm:$0x1]  ;;  %1967 = vrot.lane.b32.xlu0 %v10118_v54, %s13570_s0  ;;  %v2001_v56 = vld [vmem:[#allocation2 + $0x3e] sm:$0x1]  ;;  %9600 = vmatpush1.bf16.msra.mxu0 %v13158_v41  ;;  %v1986_v32 = vld [vmem:[#allocation2 + $0x3c] sm:$0x1] }
 0x817   :  { %1957 = vst.msk [vmem:[#allocation3 + $0x39] sm:$0x1] %vm580_vm1, %v1956_v55  ;;  %8945 = vmatprep.subr.bf16.mxu1 %v13163_v28  ;;  %2002 = vst.msk [vmem:[#allocation3 + $0x3f] sm:$0x1] %vm580_vm1, %v2001_v56  ;;  %9601 = vmatprep.subr.bf16.mxu0 %v13166_v21  ;;  %v13236_v40 = vld [vmem:[#allocation9 + $0x1c68] ss:$16 sps:$4 sm:$0xff]  }
 0x818   :  { %v10121_v7 = vld.sshfl [vmem:[#allocation2 + $0x3f] sm:$0x1 pattern:$0x76325410]  ;;  %1987 = vst.msk [vmem:[#allocation3 + $0x3d] sm:$0x1] %vm580_vm1, %v1986_v32 }
 0x819   :  { %2012 = vrot.lane.b32.xlu1 %v10121_v7, %s13570_s0  ;;  %v10120_v59 = vld.sshfl [vmem:[#allocation2 + $0x3d] sm:$0x1 pattern:$0x76325410]  ;;  %8946 = vmatpush1.bf16.msra.mxu1 %v13161_v16  ;;  %v13241_v41 = vld [vmem:[#allocation9 + $0x1c84] ss:$16 sps:$4 sm:$0xff]  }
 0x81a   :  { %1997 = vrot.lane.b32.xlu0 %v10120_v59, %s13570_s0  ;;  %9602 = vmatpush1.bf16.msra.mxu0 %v13164_v57  ;;  %v13244_v28 = vld [vmem:[#allocation9 + $0x1c8c] ss:$16 sps:$4 sm:$0xff]   ;;  %v13239_v21 = vld [vmem:[#allocation9 + $0x1c80] ss:$16 sps:$4 sm:$0xff]   ;;  %v13242_v52 = vld [vmem:[#allocation9 + $0x1c88] ss:$16 sps:$4 sm:$0xff]  }
 0x81b   :  { %8947 = vmatprep.subr.bf16.mxu1 %v13169_v58  ;;  %9603 = vmatprep.subr.bf16.mxu0 %v13172_v12  ;;  %v13247_v53 = vld [vmem:[#allocation9 + $0x1ca4] ss:$16 sps:$4 sm:$0xff]   ;;  %v13250_v54 = vld [vmem:[#allocation9 + $0x1cac] ss:$16 sps:$4 sm:$0xff]   ;;  %v13245_v55 = vld [vmem:[#allocation9 + $0x1ca0] ss:$16 sps:$4 sm:$0xff]  }
 0x81c   :  { %v13248_v16 = vld [vmem:[#allocation9 + $0x1ca8] ss:$16 sps:$4 sm:$0xff]   ;;  %v13253_v56 = vld [vmem:[#allocation9 + $0x1cc4] ss:$16 sps:$4 sm:$0xff]   ;;  %v13256_v57 = vld [vmem:[#allocation9 + $0x1ccc] ss:$16 sps:$4 sm:$0xff]  }
 0x81d   :  { %8948 = vmatpush1.bf16.msra.mxu1 %v13167_v10  ;;  %v13251_v58 = vld [vmem:[#allocation9 + $0x1cc0] ss:$16 sps:$4 sm:$0xff]   ;;  %v13254_v32 = vld [vmem:[#allocation9 + $0x1cc8] ss:$16 sps:$4 sm:$0xff]   ;;  %v13259_v7 = vld [vmem:[#allocation9 + $0x1ce4] ss:$16 sps:$4 sm:$0xff]  }
 0x81e   :  { %9604 = vmatpush1.bf16.msra.mxu0 %v13170_v15  ;;  %8949 = vmatprep.subr.bf16.mxu1 %v13175_v60  ;;  %v13262_v12 = vld [vmem:[#allocation9 + $0x1cec] ss:$16 sps:$4 sm:$0xff]   ;;  %v13257_v59 = vld [vmem:[#allocation9 + $0x1ce0] ss:$16 sps:$4 sm:$0xff]   ;;  %v13260_v10 = vld [vmem:[#allocation9 + $0x1ce8] ss:$16 sps:$4 sm:$0xff]  }
 0x81f   :  { %9605 = vmatprep.subr.bf16.mxu0 %v13178_v29  ;;  %v13265_v15 = vld [vmem:[#allocation9 + $0x1d04] ss:$16 sps:$4 sm:$0xff]   ;;  %v13268_v60 = vld [vmem:[#allocation9 + $0x1d0c] ss:$16 sps:$4 sm:$0xff]   ;;  %v13263_v29 = vld [vmem:[#allocation9 + $0x1d00] ss:$16 sps:$4 sm:$0xff]  }
 0x821   :  { %8950 = vmatpush1.bf16.msra.mxu1 %v13173_v61  ;;  %v13266_v61 = vld [vmem:[#allocation9 + $0x1d08] ss:$16 sps:$4 sm:$0xff]  }
 0x822   :  { %9606 = vmatpush1.bf16.msra.mxu0 %v13176_v62  ;;  %8951 = vmatprep.subr.bf16.mxu1 %v13181_v22  ;;  %v13271_v62 = vld [vmem:[#allocation9 + $0x1d24] ss:$16 sps:$4 sm:$0xff]   ;;  %v13274_v22 = vld [vmem:[#allocation9 + $0x1d2c] ss:$16 sps:$4 sm:$0xff]  }
 0x823   :  { %9607 = vmatprep.subr.bf16.mxu0 %v13184_v1  ;;  %v13269_v1 = vld [vmem:[#allocation9 + $0x1d20] ss:$16 sps:$4 sm:$0xff]  }
 0x825   :  { %8952 = vmatpush1.bf16.msra.mxu1 %v13179_v25  ;;  %v13272_v25 = vld [vmem:[#allocation9 + $0x1d28] ss:$16 sps:$4 sm:$0xff]  }
 0x826   :  { %9608 = vmatpush1.bf16.msra.mxu0 %v13182_v2  ;;  %8953 = vmatprep.subr.bf16.mxu1 %v13187_v4  ;;  %v13277_v2 = vld [vmem:[#allocation9 + $0x1d44] ss:$16 sps:$4 sm:$0xff]   ;;  %v13280_v4 = vld [vmem:[#allocation9 + $0x1d4c] ss:$16 sps:$4 sm:$0xff]  }
 0x827   :  { %9609 = vmatprep.subr.bf16.mxu0 %v13190_v18  ;;  %v13275_v18 = vld [vmem:[#allocation9 + $0x1d40] ss:$16 sps:$4 sm:$0xff]  }
 0x829   :  { %8954 = vmatpush1.bf16.msra.mxu1 %v13185_v5  ;;  %v13278_v5 = vld [vmem:[#allocation9 + $0x1d48] ss:$16 sps:$4 sm:$0xff]  }
 0x82a   :  { %9610 = vmatpush1.bf16.msra.mxu0 %v13188_v33  ;;  %8955 = vmatprep.subr.bf16.mxu1 %v13193_v30  ;;  %v13283_v33 = vld [vmem:[#allocation9 + $0x1d64] ss:$16 sps:$4 sm:$0xff]   ;;  %v13286_v30 = vld [vmem:[#allocation9 + $0x1d6c] ss:$16 sps:$4 sm:$0xff]  }
 0x82b   :  { %9611 = vmatprep.subr.bf16.mxu0 %v13196_v8  ;;  %v13281_v8 = vld [vmem:[#allocation9 + $0x1d60] ss:$16 sps:$4 sm:$0xff]  }
 0x82d   :  { %8956 = vmatpush1.bf16.msra.mxu1 %v13191_v9  ;;  %v13284_v9 = vld [vmem:[#allocation9 + $0x1d68] ss:$16 sps:$4 sm:$0xff]  }
 0x82e   :  { %9612 = vmatpush1.bf16.msra.mxu0 %v13194_v13  ;;  %8957 = vmatprep.subr.bf16.mxu1 %v13199_v17  ;;  %v13289_v13 = vld [vmem:[#allocation9 + $0x1d84] ss:$16 sps:$4 sm:$0xff]   ;;  %v13292_v17 = vld [vmem:[#allocation9 + $0x1d8c] ss:$16 sps:$4 sm:$0xff]  }
 0x82f   :  { %9613 = vmatprep.subr.bf16.mxu0 %v13202_v31  ;;  %v13287_v31 = vld [vmem:[#allocation9 + $0x1d80] ss:$16 sps:$4 sm:$0xff]  }
 0x831   :  { %8958 = vmatpush1.bf16.msra.mxu1 %v13197_v20  ;;  %v13290_v20 = vld [vmem:[#allocation9 + $0x1d88] ss:$16 sps:$4 sm:$0xff]  }
 0x832   :  { %9614 = vmatpush1.bf16.msra.mxu0 %v13200_v23  ;;  %8959 = vmatprep.subr.bf16.mxu1 %v13205_v24  ;;  %v13295_v23 = vld [vmem:[#allocation9 + $0x1da4] ss:$16 sps:$4 sm:$0xff]   ;;  %v13298_v24 = vld [vmem:[#allocation9 + $0x1dac] ss:$16 sps:$4 sm:$0xff]  }
 0x833   :  { %9615 = vmatprep.subr.bf16.mxu0 %v13208_v35  ;;  %v13293_v35 = vld [vmem:[#allocation9 + $0x1da0] ss:$16 sps:$4 sm:$0xff]  }
 0x835   :  { %8960 = vmatpush1.bf16.msra.mxu1 %v13203_v45  ;;  %v13296_v45 = vld [vmem:[#allocation9 + $0x1da8] ss:$16 sps:$4 sm:$0xff]  }
 0x836   :  { %9616 = vmatpush1.bf16.msra.mxu0 %v13206_v3  ;;  %8961 = vmatprep.subr.bf16.mxu1 %v13211_v6  ;;  %v13301_v3 = vld [vmem:[#allocation9 + $0x1dc4] ss:$16 sps:$4 sm:$0xff]   ;;  %v13304_v6 = vld [vmem:[#allocation9 + $0x1dcc] ss:$16 sps:$4 sm:$0xff]  }
 0x837   :  { %9617 = vmatprep.subr.bf16.mxu0 %v13214_v34  ;;  %v13299_v34 = vld [vmem:[#allocation9 + $0x1dc0] ss:$16 sps:$4 sm:$0xff]  }
 0x839   :  { %8962 = vmatpush1.bf16.msra.mxu1 %v13209_v11  ;;  %v13302_v11 = vld [vmem:[#allocation9 + $0x1dc8] ss:$16 sps:$4 sm:$0xff]  }
 0x83a   :  { %9618 = vmatpush1.bf16.msra.mxu0 %v13212_v19  ;;  %8972 = vmatprep.subr.bf16.mxu1 %v13217_v27  ;;  %v13307_v19 = vld [vmem:[#allocation9 + $0x1de4] ss:$16 sps:$4 sm:$0xff]   ;;  %v13310_v27 = vld [vmem:[#allocation9 + $0x1dec] ss:$16 sps:$4 sm:$0xff]  }
 0x83b   :  { %9628 = vmatprep.subr.bf16.mxu0 %v13220_v39  ;;  %v13305_v39 = vld [vmem:[#allocation9 + $0x1de0] ss:$16 sps:$4 sm:$0xff]  }
 0x83c   :  { %8964 = vmatmul.mubr.bf16.vlgmr.msra.gmra.mrb[40].mxu1 %v2226_v37 }
 0x83d   :  { %9620 = vmatmul.mubr.bf16.vlgmr.msra.gmra.mrb[40].mxu0 %v2226_v37  ;;  %8973 = vmatpush1.bf16.msra.mxu1 %v13215_v26  ;;  %v13308_v26 = vld [vmem:[#allocation9 + $0x1de8] ss:$16 sps:$4 sm:$0xff]   ;;  %v13313_v37 = vld [vmem:[#allocation9 + $0x1e04] ss:$16 sps:$4 sm:$0xff]  }
 0x83e   :  { %9629 = vmatpush1.bf16.msra.mxu0 %v13218_v42  ;;  %8974 = vmatprep.subr.bf16.mxu1 %v13223_v43  ;;  %v13316_v42 = vld [vmem:[#allocation9 + $0x1e0c] ss:$16 sps:$4 sm:$0xff]  }
 0x83f   :  { %9630 = vmatprep.subr.bf16.mxu0 %v13226_v44 }
 0x841   :  { %8975 = vmatpush1.bf16.msra.mxu1 %v13221_v46 }
 0x842   :  { %9631 = vmatpush1.bf16.msra.mxu0 %v13224_v38  ;;  %8976 = vmatprep.subr.bf16.mxu1 %v13229_v47 }
 0x843   :  { %9632 = vmatprep.subr.bf16.mxu0 %v13232_v48 }
 0x845   :  { %8977 = vmatpush1.bf16.msra.mxu1 %v13227_v49 }
 0x846   :  { %9633 = vmatpush1.bf16.msra.mxu0 %v13230_v14  ;;  %8978 = vmatprep.subr.bf16.mxu1 %v13235_v50 }
 0x847   :  { %9634 = vmatprep.subr.bf16.mxu0 %v13238_v36 }
 0x849   :  { %8979 = vmatpush1.bf16.msra.mxu1 %v13233_v51 }
 0x84a   :  { %9635 = vmatpush1.bf16.msra.mxu0 %v13236_v40  ;;  %8980 = vmatprep.subr.bf16.mxu1 %v13241_v41 }
 0x84b   :  { %9636 = vmatprep.subr.bf16.mxu0 %v13244_v28 }
 0x84d   :  { %8981 = vmatpush1.bf16.msra.mxu1 %v13239_v21  ;;  %v13311_v21 = vld [vmem:[#allocation9 + $0x1e00] ss:$16 sps:$4 sm:$0xff]  }
 0x84e   :  { %9637 = vmatpush1.bf16.msra.mxu0 %v13242_v52  ;;  %8982 = vmatprep.subr.bf16.mxu1 %v13247_v53  ;;  %v13314_v52 = vld [vmem:[#allocation9 + $0x1e08] ss:$16 sps:$4 sm:$0xff]  }
 0x84f   :  { %9638 = vmatprep.subr.bf16.mxu0 %v13250_v54 }
 0x851   :  { %8983 = vmatpush1.bf16.msra.mxu1 %v13245_v55 }
 0x852   :  { %9639 = vmatpush1.bf16.msra.mxu0 %v13248_v16  ;;  %8984 = vmatprep.subr.bf16.mxu1 %v13253_v56  ;;  %v13320_v16 = vld [vmem:[#allocation9 + $0x1e24] ss:$16 sps:$4 sm:$0xff]   ;;  %v13323_v56 = vld [vmem:[#allocation9 + $0x1e2c] ss:$16 sps:$4 sm:$0xff]  }
 0x853   :  { %9640 = vmatprep.subr.bf16.mxu0 %v13256_v57  ;;  %v13318_v57 = vld [vmem:[#allocation9 + $0x1e20] ss:$16 sps:$4 sm:$0xff]  }
 0x855   :  { %8985 = vmatpush1.bf16.msra.mxu1 %v13251_v58  ;;  %v13321_v58 = vld [vmem:[#allocation9 + $0x1e28] ss:$16 sps:$4 sm:$0xff]  }
 0x856   :  { %9641 = vmatpush1.bf16.msra.mxu0 %v13254_v32  ;;  %8986 = vmatprep.subr.bf16.mxu1 %v13259_v7  ;;  %v13329_v32 = vld [vmem:[#allocation9 + $0x1e4c] ss:$16 sps:$4 sm:$0xff]   ;;  %v13324_v7 = vld [vmem:[#allocation9 + $0x1e40] ss:$16 sps:$4 sm:$0xff]  }
 0x857   :  { %9642 = vmatprep.subr.bf16.mxu0 %v13262_v12  ;;  %v13327_v12 = vld [vmem:[#allocation9 + $0x1e48] ss:$16 sps:$4 sm:$0xff]  }
 0x859   :  { %8987 = vmatpush1.bf16.msra.mxu1 %v13257_v59  ;;  %v13332_v59 = vld [vmem:[#allocation9 + $0x1e64] ss:$16 sps:$4 sm:$0xff]  }
 0x85a   :  { %9643 = vmatpush1.bf16.msra.mxu0 %v13260_v10  ;;  %8988 = vmatprep.subr.bf16.mxu1 %v13265_v15  ;;  %v13335_v10 = vld [vmem:[#allocation9 + $0x1e6c] ss:$16 sps:$4 sm:$0xff]   ;;  %v13330_v15 = vld [vmem:[#allocation9 + $0x1e60] ss:$16 sps:$4 sm:$0xff]  }
 0x85b   :  { %9644 = vmatprep.subr.bf16.mxu0 %v13268_v60  ;;  %v13333_v60 = vld [vmem:[#allocation9 + $0x1e68] ss:$16 sps:$4 sm:$0xff]  }
 0x85d   :  { %8989 = vmatpush1.bf16.msra.mxu1 %v13263_v29  ;;  %v13338_v29 = vld [vmem:[#allocation9 + $0x1e84] ss:$16 sps:$4 sm:$0xff]  }
 0x85e   :  { %9645 = vmatpush1.bf16.msra.mxu0 %v13266_v61  ;;  %8990 = vmatprep.subr.bf16.mxu1 %v13271_v62  ;;  %v13341_v61 = vld [vmem:[#allocation9 + $0x1e8c] ss:$16 sps:$4 sm:$0xff]   ;;  %v13336_v62 = vld [vmem:[#allocation9 + $0x1e80] ss:$16 sps:$4 sm:$0xff]  }
 0x85f   :  { %9646 = vmatprep.subr.bf16.mxu0 %v13274_v22  ;;  %v13339_v22 = vld [vmem:[#allocation9 + $0x1e88] ss:$16 sps:$4 sm:$0xff]  }
 0x861   :  { %8991 = vmatpush1.bf16.msra.mxu1 %v13269_v1  ;;  %v13344_v1 = vld [vmem:[#allocation9 + $0x1ea4] ss:$16 sps:$4 sm:$0xff]  }
 0x862   :  { %9647 = vmatpush1.bf16.msra.mxu0 %v13272_v25  ;;  %8992 = vmatprep.subr.bf16.mxu1 %v13277_v2  ;;  %v13347_v25 = vld [vmem:[#allocation9 + $0x1eac] ss:$16 sps:$4 sm:$0xff]   ;;  %v13342_v2 = vld [vmem:[#allocation9 + $0x1ea0] ss:$16 sps:$4 sm:$0xff]  }
 0x863   :  { %9648 = vmatprep.subr.bf16.mxu0 %v13280_v4  ;;  %v13345_v4 = vld [vmem:[#allocation9 + $0x1ea8] ss:$16 sps:$4 sm:$0xff]  }
 0x865   :  { %8993 = vmatpush1.bf16.msra.mxu1 %v13275_v18  ;;  %v13350_v18 = vld [vmem:[#allocation9 + $0x1ec4] ss:$16 sps:$4 sm:$0xff]  }
 0x866   :  { %9649 = vmatpush1.bf16.msra.mxu0 %v13278_v5  ;;  %8994 = vmatprep.subr.bf16.mxu1 %v13283_v33  ;;  %v13353_v5 = vld [vmem:[#allocation9 + $0x1ecc] ss:$16 sps:$4 sm:$0xff]   ;;  %v13348_v33 = vld [vmem:[#allocation9 + $0x1ec0] ss:$16 sps:$4 sm:$0xff]  }
 0x867   :  { %9650 = vmatprep.subr.bf16.mxu0 %v13286_v30  ;;  %v13351_v30 = vld [vmem:[#allocation9 + $0x1ec8] ss:$16 sps:$4 sm:$0xff]  }
 0x869   :  { %8995 = vmatpush1.bf16.msra.mxu1 %v13281_v8  ;;  %v13356_v8 = vld [vmem:[#allocation9 + $0x1ee4] ss:$16 sps:$4 sm:$0xff]  }
 0x86a   :  { %9651 = vmatpush1.bf16.msra.mxu0 %v13284_v9  ;;  %8996 = vmatprep.subr.bf16.mxu1 %v13289_v13  ;;  %v13359_v9 = vld [vmem:[#allocation9 + $0x1eec] ss:$16 sps:$4 sm:$0xff]   ;;  %v13354_v13 = vld [vmem:[#allocation9 + $0x1ee0] ss:$16 sps:$4 sm:$0xff]  }
 0x86b   :  { %9652 = vmatprep.subr.bf16.mxu0 %v13292_v17  ;;  %v13357_v17 = vld [vmem:[#allocation9 + $0x1ee8] ss:$16 sps:$4 sm:$0xff]  }
 0x86d   :  { %8997 = vmatpush1.bf16.msra.mxu1 %v13287_v31  ;;  %v13362_v31 = vld [vmem:[#allocation9 + $0x1f04] ss:$16 sps:$4 sm:$0xff]  }
 0x86e   :  { %9653 = vmatpush1.bf16.msra.mxu0 %v13290_v20  ;;  %8998 = vmatprep.subr.bf16.mxu1 %v13295_v23  ;;  %v13365_v20 = vld [vmem:[#allocation9 + $0x1f0c] ss:$16 sps:$4 sm:$0xff]   ;;  %v13360_v23 = vld [vmem:[#allocation9 + $0x1f00] ss:$16 sps:$4 sm:$0xff]  }
 0x86f   :  { %9654 = vmatprep.subr.bf16.mxu0 %v13298_v24  ;;  %v13363_v24 = vld [vmem:[#allocation9 + $0x1f08] ss:$16 sps:$4 sm:$0xff]  }
 0x871   :  { %8999 = vmatpush1.bf16.msra.mxu1 %v13293_v35  ;;  %v13368_v35 = vld [vmem:[#allocation9 + $0x1f24] ss:$16 sps:$4 sm:$0xff]  }
 0x872   :  { %9655 = vmatpush1.bf16.msra.mxu0 %v13296_v45  ;;  %9000 = vmatprep.subr.bf16.mxu1 %v13301_v3  ;;  %v13371_v45 = vld [vmem:[#allocation9 + $0x1f2c] ss:$16 sps:$4 sm:$0xff]   ;;  %v13366_v3 = vld [vmem:[#allocation9 + $0x1f20] ss:$16 sps:$4 sm:$0xff]  }
 0x873   :  { %9656 = vmatprep.subr.bf16.mxu0 %v13304_v6  ;;  %v13369_v6 = vld [vmem:[#allocation9 + $0x1f28] ss:$16 sps:$4 sm:$0xff]  }
 0x875   :  { %9001 = vmatpush1.bf16.msra.mxu1 %v13299_v34  ;;  %v13374_v34 = vld [vmem:[#allocation9 + $0x1f44] ss:$16 sps:$4 sm:$0xff]  }
 0x876   :  { %9657 = vmatpush1.bf16.msra.mxu0 %v13302_v11  ;;  %9002 = vmatprep.subr.bf16.mxu1 %v13307_v19  ;;  %v13377_v11 = vld [vmem:[#allocation9 + $0x1f4c] ss:$16 sps:$4 sm:$0xff]   ;;  %v13372_v19 = vld [vmem:[#allocation9 + $0x1f40] ss:$16 sps:$4 sm:$0xff]  }
 0x877   :  { %9658 = vmatprep.subr.bf16.mxu0 %v13310_v27  ;;  %v13375_v27 = vld [vmem:[#allocation9 + $0x1f48] ss:$16 sps:$4 sm:$0xff]  }
 0x879   :  { %9003 = vmatpush1.bf16.msra.mxu1 %v13305_v39  ;;  %v13380_v39 = vld [vmem:[#allocation9 + $0x1f64] ss:$16 sps:$4 sm:$0xff]  }
 0x87a   :  { %9659 = vmatpush1.bf16.msra.mxu0 %v13308_v26  ;;  %9013 = vmatprep.subr.bf16.mxu1 %v13313_v37  ;;  %v13383_v26 = vld [vmem:[#allocation9 + $0x1f6c] ss:$16 sps:$4 sm:$0xff]   ;;  %v13378_v37 = vld [vmem:[#allocation9 + $0x1f60] ss:$16 sps:$4 sm:$0xff]  }
 0x87b   :  { %9669 = vmatprep.subr.bf16.mxu0 %v13316_v42  ;;  %v13381_v42 = vld [vmem:[#allocation9 + $0x1f68] ss:$16 sps:$4 sm:$0xff]  }
 0x87c   :  { %v1028_v43 = vpop.permute.xlu1 %1027 }
 0x87d   :  { %1030 = vst.msk [vmem:[#allocation3 + $0x3a] sm:$0x1] %vm594_vm2, %v1028_v43  ;;  %v1013_v44 = vpop.permute.xlu0 %1012  ;;  %v13386_v43 = vld [vmem:[#allocation9 + $0x1f84] ss:$16 sps:$4 sm:$0xff]  }
 0x87e   :  { %1015 = vst.msk [vmem:[#allocation3 + $0x38] sm:$0x1] %vm594_vm2, %v1013_v44  ;;  %v13389_v44 = vld [vmem:[#allocation9 + $0x1f8c] ss:$16 sps:$4 sm:$0xff]  }
 0x880   :  { %v1058_v46 = vpop.permute.xlu1 %1057 }
 0x881   :  { %1060 = vst.msk [vmem:[#allocation3 + $0x3e] sm:$0x1] %vm594_vm2, %v1058_v46  ;;  %v1043_v38 = vpop.permute.xlu0 %1042  ;;  %v13384_v46 = vld [vmem:[#allocation9 + $0x1f80] ss:$16 sps:$4 sm:$0xff]  }
 0x882   :  { %1045 = vst.msk [vmem:[#allocation3 + $0x3c] sm:$0x1] %vm594_vm2, %v1043_v38  ;;  %v13387_v38 = vld [vmem:[#allocation9 + $0x1f88] ss:$16 sps:$4 sm:$0xff]  }
 0x887   :  { %v1983_v47 = vpop.permute.xlu1 %1982 }
 0x888   :  { %1985 = vst.msk [vmem:[#allocation3 + $0x3b] sm:$0x1] %vm594_vm2, %v1983_v47  ;;  %v1968_v48 = vpop.permute.xlu0 %1967  ;;  %v13392_v47 = vld [vmem:[#allocation9 + $0x1fa4] ss:$16 sps:$4 sm:$0xff]  }
 0x889   :  { %1970 = vst.msk [vmem:[#allocation3 + $0x39] sm:$0x1] %vm594_vm2, %v1968_v48  ;;  %v13395_v48 = vld [vmem:[#allocation9 + $0x1fac] ss:$16 sps:$4 sm:$0xff]  }
 0x88b   :  { %v2013_v49 = vpop.permute.xlu1 %2012 }
 0x88c   :  { %2015 = vst.msk [vmem:[#allocation3 + $0x3f] sm:$0x1] %vm594_vm2, %v2013_v49  ;;  %v1998_v14 = vpop.permute.xlu0 %1997  ;;  %v13390_v49 = vld [vmem:[#allocation9 + $0x1fa0] ss:$16 sps:$4 sm:$0xff]  }
 0x88d   :  { %2000 = vst.msk [vmem:[#allocation3 + $0x3d] sm:$0x1] %vm594_vm2, %v1998_v14  ;;  %v13393_v14 = vld [vmem:[#allocation9 + $0x1fa8] ss:$16 sps:$4 sm:$0xff]  }
 0x894   :  { %v2023_v50 = vld [vmem:[#allocation3 + $0x38] sm:$0xff] }
 0x895   :  { %v2158_v36 = vrot.slane %v2023_v50, %v14054_v0  ;;  %v2151_v51 = vcombine.high %v2023_v50, %v2023_v50  ;;  %v13398_v50 = vld [vmem:[#allocation9 + $0x1fc4] ss:$16 sps:$4 sm:$0xff]  }
 0x897   :  { %v2166_v40 = vcombine.high %v2158_v36, %v2158_v36  ;;  %v14340_v41 = vrot.slane %v2151_v51, %v14054_v0  ;;  %v2228_v54 = vpack.c.bf16 %v2158_v36, %v2158_v36  ;;  %v13326_v0 = vld [vmem:[#allocation9 + $0x1e44] ss:$16 sps:$4 sm:$0xff]   ;;  %v13401_v36 = vld [vmem:[#allocation9 + $0x1fcc] ss:$16 sps:$4 sm:$0xff]   ;;  %v13396_v51 = vld [vmem:[#allocation9 + $0x1fc0] ss:$16 sps:$4 sm:$0xff]  }
 0x899   :  { %v2229_v28 = vpack.c.bf16 %v2166_v40, %v2166_v40  ;;  %v2167_v53 = vcombine.high %v14340_v41, %v14340_v41  ;;  %v13399_v40 = vld [vmem:[#allocation9 + $0x1fc8] ss:$16 sps:$4 sm:$0xff]  }
 0x89b   :  { %9004 = vmatprep.mubr.bf16.mxu1 %v2229_v28  ;;  %9660 = vmatprep.mubr.bf16.mxu0 %v2229_v28  ;;  %v2231_v55 = vpack.c.bf16 %v2167_v53, %v2167_v53  ;;  %v13404_v28 = vld [vmem:[#allocation9 + $0x1fe4] ss:$16 sps:$4 sm:$0xff]  }
 0x89c   :  { %9005 = vmatmul.mubr.bf16.vlgmr.msra.gmra.mrb[40].mxu1 %v2228_v54  ;;  %9661 = vmatmul.mubr.bf16.vlgmr.msra.gmra.mrb[40].mxu0 %v2228_v54  ;;  %v9731_v53 = vld [vmem:[%s14564_s7 + $0x88] sm:$0xff]  ;;  %v9762_v54 = vld [vmem:[%s14564_s7 + $0x180] sm:$0xff] }
 0x89d   :  { %9014 = vmatpush1.bf16.msra.mxu1 %v13311_v21  ;;  %9670 = vmatpush1.bf16.msra.mxu0 %v13314_v52  ;;  %v13407_v21 = vld [vmem:[#allocation9 + $0x1fec] ss:$16 sps:$4 sm:$0xff]  }
 0x89e   :  { %9045 = vmatprep.mubr.bf16.mxu1 %v2231_v55  ;;  %9701 = vmatprep.mubr.bf16.mxu0 %v2231_v55  ;;  %v9730_v52 = vld [vmem:[%s14564_s7 + $0x80] sm:$0xff]  ;;  %v9763_v55 = vld [vmem:[%s14564_s7 + $0x188] sm:$0xff] }
 0x89f   :  { %9015 = vmatprep.subr.bf16.mxu1 %v13320_v16  ;;  %9671 = vmatprep.subr.bf16.mxu0 %v13323_v56  ;;  %v13402_v16 = vld [vmem:[#allocation9 + $0x1fe0] ss:$16 sps:$4 sm:$0xff]   ;;  %v13405_v56 = vld [vmem:[#allocation9 + $0x1fe8] ss:$16 sps:$4 sm:$0xff]  }
 0x8a1   :  { %9016 = vmatpush1.bf16.msra.mxu1 %v13318_v57  ;;  %9672 = vmatpush1.bf16.msra.mxu0 %v13321_v58  ;;  %v9714_v57 = vld [vmem:[%s14564_s7] sm:$0xff]  ;;  %v9715_v58 = vld [vmem:[%s14564_s7 + $0x8] sm:$0xff] }
 0x8a2   :  { %9017 = vmatprep.subr.bf16.mxu1 %v13326_v0  ;;  %9673 = vmatprep.subr.bf16.mxu0 %v13329_v32  ;;  %v11660_v0 = vpack.c.bf16 %v9731_v53, %v9730_v52  ;;  %v11692_v32 = vpack.c.bf16 %v9763_v55, %v9762_v54  ;;  %v9772_v52 = vld [vmem:[%s14564_s7 + $0x1d0] sm:$0xff]  ;;  %v9773_v53 = vld [vmem:[%s14564_s7 + $0x1d8] sm:$0xff] }
 0x8a5   :  { %9018 = vmatpush1.bf16.msra.mxu1 %v13324_v7  ;;  %9674 = vmatpush1.bf16.msra.mxu0 %v13327_v12  ;;  %v9746_v7 = vld [vmem:[%s14564_s7 + $0x100] sm:$0xff]  ;;  %v9747_v12 = vld [vmem:[%s14564_s7 + $0x108] sm:$0xff] }
 0x8a6   :  { %9019 = vmatprep.subr.bf16.mxu1 %v13332_v59  ;;  %9675 = vmatprep.subr.bf16.mxu0 %v13335_v10  ;;  %v9732_v59 = vld [vmem:[%s14564_s7 + $0x90] sm:$0xff]  ;;  %v9733_v10 = vld [vmem:[%s14564_s7 + $0x98] sm:$0xff] }
 0x8a9   :  { %9020 = vmatpush1.bf16.msra.mxu1 %v13330_v15  ;;  %9676 = vmatpush1.bf16.msra.mxu0 %v13333_v60  ;;  %v9764_v15 = vld [vmem:[%s14564_s7 + $0x190] sm:$0xff]  ;;  %v9765_v60 = vld [vmem:[%s14564_s7 + $0x198] sm:$0xff] }
 0x8aa   :  { %9021 = vmatprep.subr.bf16.mxu1 %v13338_v29  ;;  %9677 = vmatprep.subr.bf16.mxu0 %v13341_v61  ;;  %v11662_v29 = vpack.c.bf16 %v9715_v58, %v9714_v57  ;;  %v11694_v61 = vpack.c.bf16 %v9747_v12, %v9746_v7  ;;  %v11712_v58 = vpack.c.bf16 %v9773_v53, %v9772_v52  ;;  %v9742_v7 = vld [vmem:[%s14564_s7 + $0xe0] sm:$0xff]  ;;  %v9743_v12 = vld [vmem:[%s14564_s7 + $0xe8] sm:$0xff]  ;;  %v13572_v52 = vmov 0.0|0.0   ;;  %v9928_v53 = vld [vmem:[%s14566_s9 + $0x10] sm:$0xff] }
 0x8ad   :  { %9022 = vmatpush1.bf16.msra.mxu1 %v13336_v62  ;;  %9678 = vmatpush1.bf16.msra.mxu0 %v13339_v22  ;;  %v9716_v62 = vld [vmem:[%s14564_s7 + $0x10] sm:$0xff]  ;;  %v9717_v22 = vld [vmem:[%s14564_s7 + $0x18] sm:$0xff] }
 0x8ae   :  { %9023 = vmatprep.subr.bf16.mxu1 %v13344_v1  ;;  %9679 = vmatprep.subr.bf16.mxu0 %v13347_v25  ;;  %v2230_v1 = vpack.c.bf16 %v14340_v41, %v14340_v41  ;;  %v11664_v25 = vpack.c.bf16 %v9733_v10, %v9732_v59  ;;  %v9735_v41 = vld [vmem:[%s14564_s7 + $0xa8] sm:$0xff]  ;;  %v9774_v59 = vld [vmem:[%s14564_s7 + $0x1e0] sm:$0xff] }
 0x8af   :  { %v9775_v10 = vld [vmem:[%s14564_s7 + $0x1e8] sm:$0xff] }
 0x8b1   :  { %9024 = vmatpush1.bf16.msra.mxu1 %v13342_v2  ;;  %9680 = vmatpush1.bf16.msra.mxu0 %v13345_v4  ;;  %v11696_v2 = vpack.c.bf16 %v9765_v60, %v9764_v15  ;;  %v9748_v4 = vld [vmem:[%s14564_s7 + $0x110] sm:$0xff] }
 0x8b2   :  { %9025 = vmatprep.subr.bf16.mxu1 %v13350_v18  ;;  %9681 = vmatprep.subr.bf16.mxu0 %v13353_v5  ;;  %v9749_v18 = vld [vmem:[%s14564_s7 + $0x118] sm:$0xff]  ;;  %v9734_v5 = vld [vmem:[%s14564_s7 + $0xa0] sm:$0xff] }
 0x8b5   :  { %9026 = vmatpush1.bf16.msra.mxu1 %v13348_v33  ;;  %9682 = vmatpush1.bf16.msra.mxu0 %v13351_v30  ;;  %v9766_v33 = vld [vmem:[%s14564_s7 + $0x1a0] sm:$0xff]  ;;  %v9767_v30 = vld [vmem:[%s14564_s7 + $0x1a8] sm:$0xff] }
 0x8b6   :  { %9027 = vmatprep.subr.bf16.mxu1 %v13356_v8  ;;  %9683 = vmatprep.subr.bf16.mxu0 %v13359_v9  ;;  %v11666_v8 = vpack.c.bf16 %v9717_v22, %v9716_v62  ;;  %v11698_v9 = vpack.c.bf16 %v9749_v18, %v9748_v4  ;;  %v9726_v62 = vld [vmem:[%s14564_s7 + $0x60] sm:$0xff]  ;;  %v9727_v22 = vld [vmem:[%s14564_s7 + $0x68] sm:$0xff]  ;;  %v9744_v18 = vld [vmem:[%s14564_s7 + $0xf0] sm:$0xff] }
 0x8b9   :  { %9028 = vmatpush1.bf16.msra.mxu1 %v13354_v13  ;;  %9684 = vmatpush1.bf16.msra.mxu0 %v13357_v17  ;;  %v9718_v13 = vld [vmem:[%s14564_s7 + $0x20] sm:$0xff]  ;;  %v9719_v17 = vld [vmem:[%s14564_s7 + $0x28] sm:$0xff] }
 0x8ba   :  { %9029 = vmatprep.subr.bf16.mxu1 %v13362_v31  ;;  %9685 = vmatprep.subr.bf16.mxu0 %v13365_v20  ;;  %v11668_v31 = vpack.c.bf16 %v9735_v41, %v9734_v5  ;;  %v11700_v20 = vpack.c.bf16 %v9767_v30, %v9766_v33  ;;  %v9745_v5 = vld [vmem:[%s14564_s7 + $0xf8] sm:$0xff]  ;;  %v9776_v41 = vld [vmem:[%s14564_s7 + $0x1f0] sm:$0xff] }
 0x8bb   :  { %v11688_v33 = vpack.c.bf16 %v9745_v5, %v9744_v18  ;;  %v9777_v30 = vld [vmem:[%s14564_s7 + $0x1f8] sm:$0xff] }
 0x8bd   :  { %9030 = vmatpush1.bf16.msra.mxu1 %v13360_v23  ;;  %9686 = vmatpush1.bf16.msra.mxu0 %v13363_v24  ;;  %v9750_v23 = vld [vmem:[%s14564_s7 + $0x120] sm:$0xff]  ;;  %v9751_v24 = vld [vmem:[%s14564_s7 + $0x128] sm:$0xff] }
 0x8be   :  { %9031 = vmatprep.subr.bf16.mxu1 %v13368_v35  ;;  %9687 = vmatprep.subr.bf16.mxu0 %v13371_v45  ;;  %v9736_v35 = vld [vmem:[%s14564_s7 + $0xb0] sm:$0xff]  ;;  %v9737_v45 = vld [vmem:[%s14564_s7 + $0xb8] sm:$0xff] }
 0x8c1   :  { %9032 = vmatpush1.bf16.msra.mxu1 %v13366_v3  ;;  %9688 = vmatpush1.bf16.msra.mxu0 %v13369_v6  ;;  %v9768_v3 = vld [vmem:[%s14564_s7 + $0x1b0] sm:$0xff]  ;;  %v9769_v6 = vld [vmem:[%s14564_s7 + $0x1b8] sm:$0xff] }
 0x8c2   :  { %9033 = vmatprep.subr.bf16.mxu1 %v13374_v34  ;;  %9689 = vmatprep.subr.bf16.mxu0 %v13377_v11  ;;  %v11670_v34 = vpack.c.bf16 %v9719_v17, %v9718_v13  ;;  %v11702_v11 = vpack.c.bf16 %v9751_v24, %v9750_v23  ;;  %v11720_v13 = vpack.c.bf16 %v9777_v30, %v9776_v41  ;;  %v3260_v24 = vsub.s32 0, %v14051_v63 }
 0x8c5   :  { %9034 = vmatpush1.bf16.msra.mxu1 %v13372_v19  ;;  %9690 = vmatpush1.bf16.msra.mxu0 %v13375_v27  ;;  %v9720_v19 = vld [vmem:[%s14564_s7 + $0x30] sm:$0xff]  ;;  %v9721_v27 = vld [vmem:[%s14564_s7 + $0x38] sm:$0xff] }
 0x8c6   :  { %9035 = vmatprep.subr.bf16.mxu1 %v13380_v39  ;;  %9691 = vmatprep.subr.bf16.mxu0 %v13383_v26  ;;  %v11672_v39 = vpack.c.bf16 %v9737_v45, %v9736_v35  ;;  %v11704_v26 = vpack.c.bf16 %v9769_v6, %v9768_v3  ;;  %v3268_v35 = vsub.s32 2, %v14051_v63  ;;  %v3256_v45 = vld [vmem:[#allocation10] sm:$0xf]  ;;  %v3264_v3 = vsub.s32 1, %v14051_v63 }
 0x8c7   :  { %v3272_v6 = vsub.s32 3, %v14051_v63 }
 0x8c9   :  { %9036 = vmatpush1.bf16.msra.mxu1 %v13378_v37  ;;  %9692 = vmatpush1.bf16.msra.mxu0 %v13381_v42  ;;  %v9752_v37 = vld [vmem:[%s14564_s7 + $0x130] sm:$0xff]  ;;  %v9753_v42 = vld [vmem:[%s14564_s7 + $0x138] sm:$0xff] }
 0x8ca   :  { %9037 = vmatprep.subr.bf16.mxu1 %v13386_v43  ;;  %9693 = vmatprep.subr.bf16.mxu0 %v13389_v44  ;;  %v9738_v43 = vld [vmem:[%s14564_s7 + $0xc0] sm:$0xff]  ;;  %v9739_v44 = vld [vmem:[%s14564_s7 + $0xc8] sm:$0xff] }
 0x8cd   :  { %9038 = vmatpush1.bf16.msra.mxu1 %v13384_v46  ;;  %9694 = vmatpush1.bf16.msra.mxu0 %v13387_v38  ;;  %v9770_v46 = vld [vmem:[%s14564_s7 + $0x1c0] sm:$0xff]  ;;  %v9771_v38 = vld [vmem:[%s14564_s7 + $0x1c8] sm:$0xff] }
 0x8ce   :  { %9039 = vmatprep.subr.bf16.mxu1 %v13392_v47  ;;  %9695 = vmatprep.subr.bf16.mxu0 %v13395_v48  ;;  %v11674_v47 = vpack.c.bf16 %v9721_v27, %v9720_v19  ;;  %v11706_v48 = vpack.c.bf16 %v9753_v42, %v9752_v37  ;;  %v3265_v19 = vrot.slane %v3256_v45, %v3264_v3 }
 0x8cf   :  { %v3273_v27 = vrot.slane %v3256_v45, %v3272_v6 }
 0x8d1   :  { %9040 = vmatpush1.bf16.msra.mxu1 %v13390_v49  ;;  %9696 = vmatpush1.bf16.msra.mxu0 %v13393_v14  ;;  %v9722_v49 = vld [vmem:[%s14564_s7 + $0x40] sm:$0xff]  ;;  %v9723_v14 = vld [vmem:[%s14564_s7 + $0x48] sm:$0xff] }
 0x8d2   :  { %9041 = vmatprep.subr.bf16.mxu1 %v13398_v50  ;;  %9697 = vmatprep.subr.bf16.mxu0 %v13401_v36  ;;  %v11676_v50 = vpack.c.bf16 %v9739_v44, %v9738_v43  ;;  %v11708_v36 = vpack.c.bf16 %v9771_v38, %v9770_v46  ;;  %v11678_v54 = vpack.c.bf16 %v9723_v14, %v9722_v49 }
 0x8d5   :  { %9042 = vmatpush1.bf16.msra.mxu1 %v13396_v51  ;;  %9698 = vmatpush1.bf16.msra.mxu0 %v13399_v40  ;;  %v9754_v51 = vld [vmem:[%s14564_s7 + $0x140] sm:$0xff]  ;;  %v9755_v40 = vld [vmem:[%s14564_s7 + $0x148] sm:$0xff] }
 0x8d6   :  { %9043 = vmatprep.subr.bf16.mxu1 %v13404_v28  ;;  %9699 = vmatprep.subr.bf16.mxu0 %v13407_v21  ;;  %v9740_v28 = vld [vmem:[%s14564_s7 + $0xd0] sm:$0xff]  ;;  %v9741_v21 = vld [vmem:[%s14564_s7 + $0xd8] sm:$0xff]  ;;  %v11710_v55 = vpack.c.bf16 %v9755_v40, %v9754_v51  ;;  %v9926_v40 = vld [vmem:[%s14566_s9] sm:$0xff] }
 0x8d7   :  { %v11680_v57 = vpack.c.bf16 %v9741_v21, %v9740_v28  ;;  %v9927_v28 = vld [vmem:[%s14566_s9 + $0x8] sm:$0xff] }
 0x8d8   :  { %v11725_v21 = vpack.c.bf16 %v9927_v28, %v9926_v40 }
 0x8d9   :  { %9044 = vmatpush1.bf16.msra.mxu1 %v13402_v16  ;;  %9700 = vmatpush1.bf16.msra.mxu0 %v13405_v56  ;;  %v9724_v16 = vld [vmem:[%s14564_s7 + $0x50] sm:$0xff]  ;;  %v9725_v56 = vld [vmem:[%s14564_s7 + $0x58] sm:$0xff] }
 0x8da   :  { %11661 = vmatprep.subr.bf16.mxu1 %v11660_v0  ;;  %11693 = vmatprep.subr.bf16.mxu0 %v11692_v32  ;;  %v9756_v0 = vld [vmem:[%s14564_s7 + $0x150] sm:$0xff]  ;;  %v9757_v32 = vld [vmem:[%s14564_s7 + $0x158] sm:$0xff]  ;;  %v11682_v15 = vpack.c.bf16 %v9725_v56, %v9724_v16  ;;  %v13574_v16 = vmov 0.0  }
 0x8db   :  { %v11714_v60 = vpack.c.bf16 %v9757_v32, %v9756_v0 }
 0x8dc   :  { %9046 = vmatmul.mubr.bf16.vlgmr.msra.gmra.mrb[40].mxu1 %v2230_v1  ;;  %9702 = vmatmul.mubr.bf16.vlgmr.msra.gmra.mrb[40].mxu0 %v2230_v1  ;;  %v9758_v1 = vld [vmem:[%s14564_s7 + $0x160] sm:$0xff] }
 0x8dd   :  { %11663 = vmatpush3.bf16.msra.mxu1 %v11662_v29  ;;  %11695 = vmatpush3.bf16.msra.mxu0 %v11694_v61  ;;  %v11684_v29 = vpack.c.bf16 %v9743_v12, %v9742_v7  ;;  %v11716_v61 = vpack.c.bf16 %v9775_v10, %v9774_v59 }
 0x8de   :  { %11665 = vmatprep.subr.bf16.mxu1 %v11664_v25  ;;  %11697 = vmatprep.subr.bf16.mxu0 %v11696_v2  ;;  %v11686_v25 = vpack.c.bf16 %v9727_v22, %v9726_v62  ;;  %v9759_v2 = vld [vmem:[%s14564_s7 + $0x168] sm:$0xff] }
 0x8df   :  { %v11718_v4 = vpack.c.bf16 %v9759_v2, %v9758_v1 }
 0x8e1   :  { %11667 = vmatpush3.bf16.msra.mxu1 %v11666_v8  ;;  %11699 = vmatpush3.bf16.msra.mxu0 %v11698_v9  ;;  %v9728_v8 = vld [vmem:[%s14564_s7 + $0x70] sm:$0xff]  ;;  %v9729_v9 = vld [vmem:[%s14564_s7 + $0x78] sm:$0xff] }
 0x8e2   :  { %11669 = vmatprep.subr.bf16.mxu1 %v11668_v31  ;;  %11701 = vmatprep.subr.bf16.mxu0 %v11700_v20  ;;  %v11690_v17 = vpack.c.bf16 %v9729_v9, %v9728_v8  ;;  %v9760_v31 = vld [vmem:[%s14564_s7 + $0x170] sm:$0xff]  ;;  %v9761_v20 = vld [vmem:[%s14564_s7 + $0x178] sm:$0xff] }
 0x8e3   :  { %v11722_v23 = vpack.c.bf16 %v9761_v20, %v9760_v31 }
 0x8e5   :  { %11671 = vmatpush3.bf16.msra.mxu1 %v11670_v34  ;;  %11703 = vmatpush3.bf16.msra.mxu0 %v11702_v11  ;;  %v3261_v34 = vrot.slane %v3256_v45, %v3260_v24  ;;  %v3269_v11 = vrot.slane %v3256_v45, %v3268_v35 }
 0x8e6   :  { %11673 = vmatprep.subr.bf16.mxu1 %v11672_v39  ;;  %11705 = vmatprep.subr.bf16.mxu0 %v11704_v26 }
 0x8e9   :  { %11675 = vmatpush3.bf16.msra.mxu1 %v11674_v47  ;;  %11707 = vmatpush3.bf16.msra.mxu0 %v11706_v48 }
 0x8ea   :  { %11677 = vmatprep.subr.bf16.mxu1 %v11676_v50  ;;  %11709 = vmatprep.subr.bf16.mxu0 %v11708_v36 }
 0x8ed   :  { %11679 = vmatpush3.bf16.msra.mxu1 %v11678_v54  ;;  %11711 = vmatpush3.bf16.msra.mxu0 %v11710_v55  ;;  %v9929_v54 = vld [vmem:[%s14566_s9 + $0x18] sm:$0xff] }
 0x8ee   :  { %11681 = vmatprep.subr.bf16.mxu1 %v11680_v57  ;;  %11713 = vmatprep.subr.bf16.mxu0 %v11712_v58  ;;  %v11728_v55 = vpack.c.bf16 %v9929_v54, %v9928_v53  ;;  %v11146_v58 = vld [vmem:[#allocation12] ss:$0 sm:$0xff] }
 0x8f1   :  { %11683 = vmatpush3.bf16.msra.mxu1 %v11682_v15  ;;  %11715 = vmatpush3.bf16.msra.mxu0 %v11714_v60  ;;  %v11147_v60 = vld [vmem:[#allocation4] ss:$0 sm:$0xff] }
 0x8f2   :  { %11685 = vmatprep.subr.bf16.mxu1 %v11684_v29  ;;  %11717 = vmatprep.subr.bf16.mxu0 %v11716_v61 }
 0x8f5   :  { %11687 = vmatpush3.bf16.msra.mxu1 %v11686_v25  ;;  %11719 = vmatpush3.bf16.msra.mxu0 %v11718_v4 }
 0x8f6   :  { %11689 = vmatprep.subr.bf16.mxu1 %v11688_v33  ;;  %11721 = vmatprep.subr.bf16.mxu0 %v11720_v13 }
 0x8f9   :  { %11691 = vmatpush3.bf16.msra.mxu1 %v11690_v17  ;;  %11723 = vmatpush3.bf16.msra.mxu0 %v11722_v23 }
 0x8fa   :  { %11724 = vmatprep.subr.bf16.mxu1 %v13572_v52 }
 0x9af   :  { %v9047_v39 = vpop.f32.mrb[40].mxu1  ;;  %v9703_v26 = vpop.f32.mrb[40].mxu0 }
 0x9b0   :  { %v11730_v37 = vadd.f32 %v9047_v39, %v3261_v34  ;;  %v11732_v42 = vadd.f32 %v9703_v26, %v3269_v11  ;;  %v9049_v43 = vpop.f32.mrb[41].mxu1  ;;  %v9705_v44 = vpop.f32.mrb[41].mxu0 }
 0x9b1   :  { %v11731_v46 = vadd.f32 %v9049_v43, %v3265_v19  ;;  %v11733_v38 = vadd.f32 %v9705_v44, %v3273_v27  ;;  %v9051_v47 = vpop.f32.mrb[42].mxu1  ;;  %v9707_v48 = vpop.f32.mrb[42].mxu0 }
 0x9b2   :  { %v9052_v49 = vpop.f32.mrb[43].mxu1  ;;  %v9708_v14 = vpop.f32.mrb[43].mxu0  ;;  %v9710_v51 = vmax.f32 %v11730_v37, 0.0  ;;  %v9712_v63 = vmax.f32 %v11732_v42, 0.0 }
 0x9b3   :  { %v9711_v50 = vmax.f32 %v11731_v46, 0.0  ;;  %v9713_v36 = vmax.f32 %v11733_v38, 0.0 }
 0x9b5   :  { %9849 = vmatprep.mubr.f32.mxu1 %v9711_v50  ;;  %9919 = vmatprep.mubr.f32.mxu0 %v9713_v36 }
 0x9b6   :  { %9850 = vmatmul.mubr.f32.vlgmr.msra.gmra.mrb[44].mxu1 %v9710_v51  ;;  %9920 = vmatmul.mubr.f32.vlgmr.msra.gmra.mrb[44].mxu0 %v9712_v63 }
 0x9b7   :  { %11726 = vmatpush3.bf16.msra.mxu1 %v11725_v21  ;;  %11529 = vmatprep.mubr.msk.f32.mxu1 %vm13573_vm3, %v13574_v16 }
 0x9b8   :  { %11727 = vmatprep.subr.bf16.mxu1 %v13572_v52 }
 0x9bb   :  { %11729 = vmatpush3.bf16.msra.mxu1 %v11728_v55 }
 0xa89   :  { %v11390_v56 = vpop.f32.mrb[44].mxu1  ;;  %v11425_v57 = vpop.f32.mrb[44].mxu0 }
 0xa8a   :  { %v11391_v0 = vpop.f32.mrb[45].mxu1  ;;  %v11426_v32 = vpop.f32.mrb[45].mxu0 }
 0xa8b   :  { %v11392_v7 = vadd.f32 %v11391_v0, %v11390_v56  ;;  %v11427_v12 = vadd.f32 %v11426_v32, %v11425_v57 }
 0xa8d   :  { %v9852_v59 = vadd.f32 %v11392_v7, %v11146_v58 }
 0xa8f   :  { %v9922_v10 = vadd.f32 %v11427_v12, %v9852_v59 }
 0xa91   :  { %v9925_v15 = vmax.f32 %v9922_v10, 0.0 }
 0xa93   :  { %11530 = vmatmul.mubr.msk.f32.vlgmr.msra.gmra.mrb[46].mxu1 %vm9937_vm4, %v9925_v15 }
 0xb66   :  { %v10007_v29 = vpop.f32.mrb[46].mxu1 }
 0xb67   :  { %v10008_v61 = vadd.f32 %v11147_v60, %v10007_v29  ;;  %v11531_v62 = vpop.f32.mrb[47].mxu1 }
 0xb69   :  { %v11149_v22 = vmul.f32 -1.442695, %v10008_v61 }
 0xb6b   :  { %13408 = vpow2.f32 %v11149_v22 }
 0xb75   :  { %v13409_v1 = vpop.eup %13408 }
 0xb76   :  { %v10014_v25 = vadd.f32 1.0, %v13409_v1 }
 0xb78   :  { %13410 = vrcp.f32 %v10014_v25 }
 0xb82   :  { %v13411_v2 = vpop.eup %13410 }
 0xb83   :  { %10018 = vst.msk [vmem:[%s14568_s11] sm:$0x3] %vm10017_vm5, %v13411_v2 }
 0xb84   :  { %10023 = vsyncpa [#allocation6], 1 }
 0xb85   :  { %10024 = vsyncpa [#allocation8], 1 }
 0xb86   :  { %10025 = vsyncpa [#allocation11], 1 }

</bundles_post_ra>
